<compile_context>
chip_gen: v7x
topology: tpu7x:2x2x1
jax: 0.10.0
libtpu: 0.0.40
codegen_flags: <defaults>
</compile_context>

<pallas_src>
import functools
import math

import jax
import jax.numpy as jnp
from jax import lax
from jax.experimental import pallas as pl
from jax.experimental.pallas import tpu as pltpu


# ----------------------------- in-kernel helpers -----------------------------

def _elu(x):
    # ELU(alpha=1); exp arg clamped so the discarded branch of the select stays finite.
    return jnp.where(x > 0, x, jnp.exp(jnp.minimum(x, 0.0)) - 1.0)


def _gelu_tanh(x):
    # TODO(synk): tanh-approx GELU; torch's activation='gelu' is the exact erf form
    # (deviation ~1e-3), but the tanh form halves VALU work on the (S, dff) slab which
    # is the binding VLIW slot in the encoder kernel.
    c = math.sqrt(2.0 / math.pi)
    return 0.5 * x * (1.0 + jnp.tanh(c * (x + 0.044715 * (x * x * x))))


def _layernorm(x, g, b, eps=1e-5):
    mu = jnp.mean(x, axis=-1, keepdims=True)
    var = jnp.mean(jnp.square(x - mu), axis=-1, keepdims=True)
    return (x - mu) * lax.rsqrt(var + eps) * g + b


def _conv3tap_bn_elu_pool(xpad, w_taps, scale, shift, pool):
    """Conv1d(k=3, pad=1) + folded BN (+ conv bias) + ELU + AvgPool(2,2) as matmuls.

    xpad   : (Cin, L+2)   input with one zero column on each side
    w_taps : (3, Cout, Cin)
    scale  : (Cout, 1)    folded BN scale
    shift  : (Cout, 1)    folded BN shift (conv bias folded in)
    pool   : (L, Lout)    avg-pool matrix; intermediate stages emit zero boundary
                          columns so the next stage's padding is free.
    """
    L = pool.shape[0]
    y = (jnp.dot(w_taps[0], xpad[:, 0:L], preferred_element_type=jnp.float32)
         + jnp.dot(w_taps[1], xpad[:, 1:L + 1], preferred_element_type=jnp.float32)
         + jnp.dot(w_taps[2], xpad[:, 2:L + 2], preferred_element_type=jnp.float32))
    y = _elu(y * scale + shift)
    return jnp.dot(y, pool, preferred_element_type=jnp.float32)


# ------------------------------- Pallas kernels ------------------------------

def conv_stack_kernel(x_ref,
                      w1_ref, s1_ref, t1_ref, p1_ref,
                      w2_ref, s2_ref, t2_ref, p2_ref,
                      w3_ref, s3_ref, t3_ref, p3_ref,
                      out_ref):
    """All three conv+BN+ELU+pool blocks for one batch sample, fully in VMEM."""
    # Stage 1: wrapper-provided im2col input (3*Cin, L) -> single K=3*Cin dot.
    y = jnp.dot(w1_ref[...], x_ref[0], preferred_element_type=jnp.float32)
    y = _elu(y * s1_ref[...] + t1_ref[...])
    h = jnp.dot(y, p1_ref[...], preferred_element_type=jnp.float32)   # (nc1, L/2 + 2)
    h = _conv3tap_bn_elu_pool(h, w2_ref[...], s2_ref[...], t2_ref[...], p2_ref[...])
    out_ref[0] = _conv3tap_bn_elu_pool(h, w3_ref[...], s3_ref[...], t3_ref[...], p3_ref[...])


def encoder_layer_kernel(x_ref, pe_ref, wqkv_ref, bqkv_ref, wo_ref, bo_ref,
                         g1_ref, b1_ref, wf1_ref, bf1_ref, wf2_ref, bf2_ref,
                         g2_ref, b2_ref, out_ref, *, nhead):
    """x + PE -> MHA -> add&LN -> FFN(gelu) -> add&LN, seq-major (S, N, E), whole batch."""
    S, N, E = x_ref.shape
    hd = E // nhead

    pe = pe_ref[...]
    wqkv = wqkv_ref[...]
    bqkv = bqkv_ref[...]
    wo = wo_ref[...]
    bo = bo_ref[...]
    g1 = g1_ref[...]
    b1 = b1_ref[...]
    wf1 = wf1_ref[...]
    bf1 = bf1_ref[...]
    wf2 = wf2_ref[...]
    bf2 = bf2_ref[...]
    g2 = g2_ref[...]
    b2 = b2_ref[...]

    nt = (((1,), (1,)), ((), ()))   # contract the last dims of both operands (q @ k^T)

    for n in range(N):              # static batch loop, unrolled at trace time
        x = x_ref[:, n, :] + pe                                             # (S, E)
        # Fused QKV projection: one (S,E)@(E,3E) dot; 1/sqrt(hd) pre-folded into q.
        qkv = jnp.dot(x, wqkv, preferred_element_type=jnp.float32) + bqkv   # (S, 3E)

        ctx_heads = []
        for h in range(nhead):
            q = qkv[:, h * hd:(h + 1) * hd]
            k = qkv[:, E + h * hd:E + (h + 1) * hd]
            v = qkv[:, 2 * E + h * hd:2 * E + (h + 1) * hd]
            s = lax.dot_general(q, k, nt, preferred_element_type=jnp.float32)  # (S, S)
            s = s - jnp.max(s, axis=-1, keepdims=True)
            p = jnp.exp(s)
            p = p * pl.reciprocal(jnp.sum(p, axis=-1, keepdims=True), approx=True)
            ctx_heads.append(jnp.dot(p, v, preferred_element_type=jnp.float32))  # (S, hd)
        ctx = jnp.concatenate(ctx_heads, axis=-1)                           # (S, E)

        mha = jnp.dot(ctx, wo, preferred_element_type=jnp.float32) + bo
        x1 = _layernorm(x + mha, g1, b1)
        hid = _gelu_tanh(jnp.dot(x1, wf1, preferred_element_type=jnp.float32) + bf1)
        x2 = x1 + jnp.dot(hid, wf2, preferred_element_type=jnp.float32) + bf2
        out_ref[:, n, :] = _layernorm(x2, g2, b2)


def head_kernel(x_ref, w1_ref, sc_ref, sh_ref, w2_ref, b2_ref, out_ref):
    """fc1 -> BatchNorm1d (folded, fc1 bias folded in) -> ELU -> fc2, whole batch."""
    h = jnp.dot(x_ref[...], w1_ref[...], preferred_element_type=jnp.float32)
    h = _elu(h * sc_ref[...] + sh_ref[...])
    out_ref[...] = jnp.dot(h, w2_ref[...], preferred_element_type=jnp.float32) + b2_ref[...]


# -------------------------------- wrappers -----------------------------------

_CONV_KEYS = ("w1", "s1", "t1", "p1", "w2", "s2", "t2", "p2", "w3", "s3", "t3", "p3")
_ENC_KEYS = ("pe", "wqkv", "bqkv", "wo", "bo", "g1", "b1",
             "wf1", "bf1", "wf2", "bf2", "g2", "b2")


def _full_spec(arr):
    nd = arr.ndim
    return pl.BlockSpec(arr.shape, lambda n, _nd=nd: (0,) * _nd)


def conv_stack(xim, cp):
    """xim: (N, 3*Cin, L) im2col'd input -> (N, Cout3, L//8). Grid over the batch."""
    N, K1, L = xim.shape
    Cout = cp["w3"].shape[1]
    Lo = L // 8
    return pl.pallas_call(
        conv_stack_kernel,
        out_shape=jax.ShapeDtypeStruct((N, Cout, Lo), jnp.float32),
        grid=(N,),
        in_specs=[pl.BlockSpec((1, K1, L), lambda n: (n, 0, 0))]
                 + [_full_spec(cp[k]) for k in _CONV_KEYS],
        out_specs=pl.BlockSpec((1, Cout, Lo), lambda n: (n, 0, 0)),
        compiler_params=pltpu.CompilerParams(dimension_semantics=("parallel",)),
    )(xim, *(cp[k] for k in _CONV_KEYS))


def transformer_layer(x_sne, ep, nhead=4):
    """x_sne: (S, N, E) seq-major (the torch .view layout) -> (S, N, E).

    Single grid-less call over the whole (tiny) batch, so no wrapper transposes are
    needed on either side (the seq-major layout also makes the final torch
    .reshape(N, -1) a free row-major reinterpretation).
    """
    S, N, E = x_sne.shape
    return pl.pallas_call(
        functools.partial(encoder_layer_kernel, nhead=nhead),
        out_shape=jax.ShapeDtypeStruct((S, N, E), jnp.float32),
    )(x_sne, *(ep[k] for k in _ENC_KEYS))


def mlp_head(x, hp):
    """x: (N, nc3*25) -> (N, out_features). Whole batch, single grid-less kernel."""
    N = x.shape[0]
    out_f = hp["w2"].shape[1]
    return pl.pallas_call(
        head_kernel,
        out_shape=jax.ShapeDtypeStruct((N, out_f), jnp.float32),
    )(x, hp["w1"], hp["scale"], hp["shift"], hp["w2"], hp["b2"])


# ----------------------------- params & folding ------------------------------

def make_positional_encoding(d_model, max_len=200):
    position = jnp.arange(max_len, dtype=jnp.float32)[:, None]
    div_term = jnp.exp(jnp.arange(0, d_model, 2, dtype=jnp.float32)
                       * (-math.log(10000.0) / d_model))
    ang = position * div_term
    pe = jnp.zeros((max_len, d_model), jnp.float32)
    pe = pe.at[:, 0::2].set(jnp.sin(ang))
    pe = pe.at[:, 1::2].set(jnp.cos(ang))
    return pe                                                     # (max_len, d_model)


def init_raw_params(key, nc0, nc1, nc2, nc3, fc1_out, out_features):
    """Parameters in PyTorch layout (what a state_dict would contain)."""
    ks = iter(jax.random.split(key, 32))
    nrm = lambda shape, s=0.05: s * jax.random.normal(next(ks), shape, jnp.float32)

    def conv_p(cin, cout):
        return dict(w=nrm((cout, cin, 3)), b=nrm((cout,)),
                    bn_gamma=jnp.ones((cout,), jnp.float32),
                    bn_beta=jnp.zeros((cout,), jnp.float32),
                    bn_mean=jnp.zeros((cout,), jnp.float32),
                    bn_var=jnp.ones((cout,), jnp.float32))

    E, dff = nc3, nc3 * 25
    return dict(
        conv1=conv_p(nc0, nc1), conv2=conv_p(nc1, nc2), conv3=conv_p(nc2, nc3),
        enc=dict(
            w_qkv=nrm((3 * E, E)), b_qkv=nrm((3 * E,)),
            w_out=nrm((E, E)), b_out=nrm((E,)),
            w_ff1=nrm((dff, E)), b_ff1=nrm((dff,)),
            w_ff2=nrm((E, dff)), b_ff2=nrm((E,)),
            ln1_g=jnp.ones((E,), jnp.float32), ln1_b=jnp.zeros((E,), jnp.float32),
            ln2_g=jnp.ones((E,), jnp.float32), ln2_b=jnp.zeros((E,), jnp.float32),
        ),
        head=dict(
            fc1_w=nrm((fc1_out, nc3 * 25)), fc1_b=nrm((fc1_out,)),
            bn_gamma=jnp.ones((fc1_out,), jnp.float32),
            bn_beta=jnp.zeros((fc1_out,), jnp.float32),
            bn_mean=jnp.zeros((fc1_out,), jnp.float32),
            bn_var=jnp.ones((fc1_out,), jnp.float32),
            fc2_w=nrm((out_features, fc1_out)), fc2_b=nrm((out_features,)),
        ),
    )


def prepare_params(raw, length=200, nhead=4, eps=1e-5):
    """One-time (outside jit) folding of PyTorch-layout params into kernel constants."""
    def bn_fold(cp):
        inv = 1.0 / jnp.sqrt(cp["bn_var"] + eps)
        scale = cp["bn_gamma"] * inv
        shift = (cp["b"] - cp["bn_mean"]) * cp["bn_gamma"] * inv + cp["bn_beta"]
        return scale, shift

    def pool_matrix(L, pad_out):
        Lo = L // 2
        cols = jnp.arange(L) // 2 + (1 if pad_out else 0)
        return jax.nn.one_hot(cols, Lo + (2 if pad_out else 0), dtype=jnp.float32) * 0.5

    # Stage 1: fused im2col weight (Cout, 3*Cin); the wrapper builds the matching input.
    c1 = raw["conv1"]
    cout1 = c1["w"].shape[0]
    sc1, sh1 = bn_fold(c1)
    conv = dict(
        w1=jnp.transpose(c1["w"], (0, 2, 1)).reshape(cout1, -1),
        s1=sc1.reshape(cout1, 1), t1=sh1.reshape(cout1, 1),
        p1=pool_matrix(length, True),
    )
    # Stages 2/3: keep the 3-tap form (K = 8 / 16); avoids an in-kernel sublane concat.
    for i, (key, L, pad_out) in enumerate(
            [("conv2", length // 2, True), ("conv3", length // 4, False)], start=2):
        cp = raw[key]
        cout = cp["w"].shape[0]
        sc, sh = bn_fold(cp)
        conv[f"w{i}"] = jnp.transpose(cp["w"], (2, 0, 1))          # (3, Cout, Cin)
        conv[f"s{i}"] = sc.reshape(cout, 1)
        conv[f"t{i}"] = sh.reshape(cout, 1)
        conv[f"p{i}"] = pool_matrix(L, pad_out)

    ep = raw["enc"]
    E = ep["w_out"].shape[0]
    hd = E // nhead
    dff = ep["w_ff1"].shape[0]
    inv_sqrt_hd = 1.0 / math.sqrt(hd)
    # Fused QKV weight (E, 3E), columns [q | k | v]; 1/sqrt(hd) folded into q cols/bias.
    wqkv = ep["w_qkv"].T
    bqkv = ep["b_qkv"].reshape(1, 3 * E)
    wqkv = wqkv.at[:, :E].multiply(inv_sqrt_hd)
    bqkv = bqkv.at[:, :E].multiply(inv_sqrt_hd)
    enc = dict(
        pe=make_positional_encoding(E)[: length // 8],             # (S, E), pre-sliced
        wqkv=wqkv, bqkv=bqkv,
        wo=ep["w_out"].T, bo=ep["b_out"].reshape(1, E),
        g1=ep["ln1_g"].reshape(1, E), b1=ep["ln1_b"].reshape(1, E),
        wf1=ep["w_ff1"].T, bf1=ep["b_ff1"].reshape(1, dff),
        wf2=ep["w_ff2"].T, bf2=ep["b_ff2"].reshape(1, E),
        g2=ep["ln2_g"].reshape(1, E), b2=ep["ln2_b"].reshape(1, E),
    )

    hp = raw["head"]
    fc1_out = hp["fc1_w"].shape[0]
    out_f = hp["fc2_w"].shape[0]
    inv = 1.0 / jnp.sqrt(hp["bn_var"] + eps)
    head_p = dict(
        w1=hp["fc1_w"].T,                                          # (nc3*25, fc1_out)
        scale=(hp["bn_gamma"] * inv).reshape(1, fc1_out),
        shift=((hp["fc1_b"] - hp["bn_mean"]) * hp["bn_gamma"] * inv
               + hp["bn_beta"]).reshape(1, fc1_out),
        w2=hp["fc2_w"].T,                                          # (fc1_out, out_f)
        b2=hp["fc2_b"].reshape(1, out_f),
    )
    return dict(conv=conv, enc=enc, head=head_p)


# --------------------------------- forward -----------------------------------

@jax.jit
def forward(params, inputs):
    N, _, L = inputs.shape
    xpad = jnp.pad(inputs, ((0, 0), (0, 0), (1, 1)))
    # im2col for conv1 (kernel=3, pad=1): stage 1 becomes a single K=3*Cin matmul.
    xim = jnp.concatenate(
        [xpad[:, :, 0:L], xpad[:, :, 1:L + 1], xpad[:, :, 2:L + 2]], axis=1)
    out = conv_stack(xim, params["conv"])                         # (N, nc3, 25)
    E = out.shape[1]
    # torch: out.view(-1, N, nc3)  (raw row-major reinterpretation, batch-scrambling)
    out = jnp.reshape(out, (-1, N, E))                            # (25, N, nc3)
    out = transformer_layer(out, params["enc"])                   # (25, N, nc3)
    # torch: out.reshape(N, -1)    (raw row-major reinterpretation, free in seq-major)
    out = jnp.reshape(out, (N, -1))                               # (N, nc3*25)
    return mlp_head(out, params["head"])


# ----------------------------------- main ------------------------------------

if __name__ == "__main__":
    nc0, nc1, nc2, nc3 = 4, 8, 16, 32
    fc1_out, out_features = 32, 8
    batch, length = 2, 200   # length must be 200: fc1 expects nc3*25 features (200/8 = 25)

    key = jax.random.PRNGKey(0)
    k_param, k_x = jax.random.split(key)
    raw = init_raw_params(k_param, nc0, nc1, nc2, nc3, fc1_out, out_features)
    params = prepare_params(raw, length=length)          # one-time folding, outside jit
    x = jax.random.normal(k_x, (batch, nc0, length), jnp.float32)

    y = forward(params, x)
    y = jax.block_until_ready(y)
    assert y.shape == (batch, out_features), y.shape
    assert bool(jnp.all(jnp.isfinite(y)))
    print("KERNEL_OK")
</pallas_src>

<mosaic_0001>
module attributes {stable_mosaic.version = 11 : i64} {
  func.func @encoder_layer_kernel(%arg0: memref<25x2x32xf32, #tpu.memory_space<vmem>>, %arg1: memref<25x32xf32, #tpu.memory_space<vmem>>, %arg2: memref<32x96xf32, #tpu.memory_space<vmem>>, %arg3: memref<1x96xf32, #tpu.memory_space<vmem>>, %arg4: memref<32x32xf32, #tpu.memory_space<vmem>>, %arg5: memref<1x32xf32, #tpu.memory_space<vmem>>, %arg6: memref<1x32xf32, #tpu.memory_space<vmem>>, %arg7: memref<1x32xf32, #tpu.memory_space<vmem>>, %arg8: memref<32x800xf32, #tpu.memory_space<vmem>>, %arg9: memref<1x800xf32, #tpu.memory_space<vmem>>, %arg10: memref<800x32xf32, #tpu.memory_space<vmem>>, %arg11: memref<1x32xf32, #tpu.memory_space<vmem>>, %arg12: memref<1x32xf32, #tpu.memory_space<vmem>>, %arg13: memref<1x32xf32, #tpu.memory_space<vmem>>, %arg14: memref<25x2x32xf32, #tpu.memory_space<vmem>>) attributes {dimension_semantics = [], scalar_prefetch = 0 : i64, scratch_operands = 0 : i64, tpu.core_type = #tpu.core_type<tc>} {
    %c0 = arith.constant 0 : index
    %c0_0 = arith.constant 0 : index
    %0 = vector.load %arg1[%c0, %c0_0] : memref<25x32xf32, #tpu.memory_space<vmem>>, vector<25x32xf32>
    %c0_1 = arith.constant 0 : index
    %c0_2 = arith.constant 0 : index
    %1 = vector.load %arg2[%c0_1, %c0_2] : memref<32x96xf32, #tpu.memory_space<vmem>>, vector<32x96xf32>
    %c0_3 = arith.constant 0 : index
    %c0_4 = arith.constant 0 : index
    %2 = vector.load %arg3[%c0_3, %c0_4] : memref<1x96xf32, #tpu.memory_space<vmem>>, vector<1x96xf32>
    %c0_5 = arith.constant 0 : index
    %c0_6 = arith.constant 0 : index
    %3 = vector.load %arg4[%c0_5, %c0_6] : memref<32x32xf32, #tpu.memory_space<vmem>>, vector<32x32xf32>
    %c0_7 = arith.constant 0 : index
    %c0_8 = arith.constant 0 : index
    %4 = vector.load %arg5[%c0_7, %c0_8] : memref<1x32xf32, #tpu.memory_space<vmem>>, vector<1x32xf32>
    %c0_9 = arith.constant 0 : index
    %c0_10 = arith.constant 0 : index
    %5 = vector.load %arg6[%c0_9, %c0_10] : memref<1x32xf32, #tpu.memory_space<vmem>>, vector<1x32xf32>
    %c0_11 = arith.constant 0 : index
    %c0_12 = arith.constant 0 : index
    %6 = vector.load %arg7[%c0_11, %c0_12] : memref<1x32xf32, #tpu.memory_space<vmem>>, vector<1x32xf32>
    %c0_13 = arith.constant 0 : index
    %c0_14 = arith.constant 0 : index
    %7 = vector.load %arg8[%c0_13, %c0_14] : memref<32x800xf32, #tpu.memory_space<vmem>>, vector<32x800xf32>
    %c0_15 = arith.constant 0 : index
    %c0_16 = arith.constant 0 : index
    %8 = vector.load %arg9[%c0_15, %c0_16] : memref<1x800xf32, #tpu.memory_space<vmem>>, vector<1x800xf32>
    %c0_17 = arith.constant 0 : index
    %c0_18 = arith.constant 0 : index
    %9 = vector.load %arg10[%c0_17, %c0_18] : memref<800x32xf32, #tpu.memory_space<vmem>>, vector<800x32xf32>
    %c0_19 = arith.constant 0 : index
    %c0_20 = arith.constant 0 : index
    %10 = vector.load %arg11[%c0_19, %c0_20] : memref<1x32xf32, #tpu.memory_space<vmem>>, vector<1x32xf32>
    %c0_21 = arith.constant 0 : index
    %c0_22 = arith.constant 0 : index
    %11 = vector.load %arg12[%c0_21, %c0_22] : memref<1x32xf32, #tpu.memory_space<vmem>>, vector<1x32xf32>
    %c0_23 = arith.constant 0 : index
    %c0_24 = arith.constant 0 : index
    %12 = vector.load %arg13[%c0_23, %c0_24] : memref<1x32xf32, #tpu.memory_space<vmem>>, vector<1x32xf32>
    %c0_25 = arith.constant 0 : index
    %c0_26 = arith.constant 0 : index
    %c0_27 = arith.constant 0 : index
    %13 = vector.load %arg0[%c0_25, %c0_26, %c0_27] : memref<25x2x32xf32, #tpu.memory_space<vmem>>, vector<25x1x32xf32>
    %14 = vector.shape_cast %13 : vector<25x1x32xf32> to vector<25x32xf32>
    %15 = arith.addf %14, %0 : vector<25x32xf32>
    %cst = arith.constant dense<0.000000e+00> : vector<25x96xf32>
    %16 = tpu.matmul %15, %1, %cst {dimension_numbers = #tpu.dot_dimension_numbers<[1], [0], [0], [1], [0, 0, 1, 1], [], []>} : vector<25x32xf32>, vector<32x96xf32>, vector<25x96xf32> -> vector<25x96xf32>
    %17 = vector.broadcast %2 : vector<1x96xf32> to vector<25x96xf32>
    %18 = arith.addf %16, %17 : vector<25x96xf32>
    %19 = vector.extract_strided_slice %18 {offsets = [0, 0], sizes = [25, 8], strides = [1, 1]} : vector<25x96xf32> to vector<25x8xf32>
    %20 = vector.extract_strided_slice %18 {offsets = [0, 32], sizes = [25, 8], strides = [1, 1]} : vector<25x96xf32> to vector<25x8xf32>
    %21 = vector.extract_strided_slice %18 {offsets = [0, 64], sizes = [25, 8], strides = [1, 1]} : vector<25x96xf32> to vector<25x8xf32>
    %cst_28 = arith.constant dense<0.000000e+00> : vector<25x25xf32>
    %22 = tpu.matmul %19, %20, %cst_28 {dimension_numbers = #tpu.dot_dimension_numbers<[1], [1], [0], [0], [0, 0, 1, 0], [], []>} : vector<25x8xf32>, vector<25x8xf32>, vector<25x25xf32> -> vector<25x25xf32>
    %cst_29 = arith.constant dense<0xFF800000> : vector<25xf32>
    %23 = vector.multi_reduction <maximumf>, %22, %cst_29 [1] : vector<25x25xf32> to vector<25xf32>
    %24 = vector.shape_cast %23 : vector<25xf32> to vector<25x1xf32>
    %25 = vector.broadcast %24 : vector<25x1xf32> to vector<25x25xf32>
    %26 = arith.subf %22, %25 : vector<25x25xf32>
    %27 = math.exp %26 : vector<25x25xf32>
    %cst_30 = arith.constant dense<0.000000e+00> : vector<25xf32>
    %28 = vector.multi_reduction <add>, %27, %cst_30 [1] : vector<25x25xf32> to vector<25xf32>
    %29 = vector.shape_cast %28 : vector<25xf32> to vector<25x1xf32>
    %30 = tpu.reciprocal %29 {approx = true} : vector<25x1xf32> -> vector<25x1xf32>
    %31 = vector.broadcast %30 : vector<25x1xf32> to vector<25x25xf32>
    %32 = arith.mulf %27, %31 : vector<25x25xf32>
    %cst_31 = arith.constant dense<0.000000e+00> : vector<25x8xf32>
    %33 = tpu.matmul %32, %21, %cst_31 {dimension_numbers = #tpu.dot_dimension_numbers<[1], [0], [0], [1], [0, 0, 1, 1], [], []>} : vector<25x25xf32>, vector<25x8xf32>, vector<25x8xf32> -> vector<25x8xf32>
    %34 = vector.extract_strided_slice %18 {offsets = [0, 8], sizes = [25, 8], strides = [1, 1]} : vector<25x96xf32> to vector<25x8xf32>
    %35 = vector.extract_strided_slice %18 {offsets = [0, 40], sizes = [25, 8], strides = [1, 1]} : vector<25x96xf32> to vector<25x8xf32>
    %36 = vector.extract_strided_slice %18 {offsets = [0, 72], sizes = [25, 8], strides = [1, 1]} : vector<25x96xf32> to vector<25x8xf32>
    %cst_32 = arith.constant dense<0.000000e+00> : vector<25x25xf32>
    %37 = tpu.matmul %34, %35, %cst_32 {dimension_numbers = #tpu.dot_dimension_numbers<[1], [1], [0], [0], [0, 0, 1, 0], [], []>} : vector<25x8xf32>, vector<25x8xf32>, vector<25x25xf32> -> vector<25x25xf32>
    %cst_33 = arith.constant dense<0xFF800000> : vector<25xf32>
    %38 = vector.multi_reduction <maximumf>, %37, %cst_33 [1] : vector<25x25xf32> to vector<25xf32>
    %39 = vector.shape_cast %38 : vector<25xf32> to vector<25x1xf32>
    %40 = vector.broadcast %39 : vector<25x1xf32> to vector<25x25xf32>
    %41 = arith.subf %37, %40 : vector<25x25xf32>
    %42 = math.exp %41 : vector<25x25xf32>
    %cst_34 = arith.constant dense<0.000000e+00> : vector<25xf32>
    %43 = vector.multi_reduction <add>, %42, %cst_34 [1] : vector<25x25xf32> to vector<25xf32>
    %44 = vector.shape_cast %43 : vector<25xf32> to vector<25x1xf32>
    %45 = tpu.reciprocal %44 {approx = true} : vector<25x1xf32> -> vector<25x1xf32>
    %46 = vector.broadcast %45 : vector<25x1xf32> to vector<25x25xf32>
    %47 = arith.mulf %42, %46 : vector<25x25xf32>
    %cst_35 = arith.constant dense<0.000000e+00> : vector<25x8xf32>
    %48 = tpu.matmul %47, %36, %cst_35 {dimension_numbers = #tpu.dot_dimension_numbers<[1], [0], [0], [1], [0, 0, 1, 1], [], []>} : vector<25x25xf32>, vector<25x8xf32>, vector<25x8xf32> -> vector<25x8xf32>
    %49 = vector.extract_strided_slice %18 {offsets = [0, 16], sizes = [25, 8], strides = [1, 1]} : vector<25x96xf32> to vector<25x8xf32>
    %50 = vector.extract_strided_slice %18 {offsets = [0, 48], sizes = [25, 8], strides = [1, 1]} : vector<25x96xf32> to vector<25x8xf32>
    %51 = vector.extract_strided_slice %18 {offsets = [0, 80], sizes = [25, 8], strides = [1, 1]} : vector<25x96xf32> to vector<25x8xf32>
    %cst_36 = arith.constant dense<0.000000e+00> : vector<25x25xf32>
    %52 = tpu.matmul %49, %50, %cst_36 {dimension_numbers = #tpu.dot_dimension_numbers<[1], [1], [0], [0], [0, 0, 1, 0], [], []>} : vector<25x8xf32>, vector<25x8xf32>, vector<25x25xf32> -> vector<25x25xf32>
    %cst_37 = arith.constant dense<0xFF800000> : vector<25xf32>
    %53 = vector.multi_reduction <maximumf>, %52, %cst_37 [1] : vector<25x25xf32> to vector<25xf32>
    %54 = vector.shape_cast %53 : vector<25xf32> to vector<25x1xf32>
    %55 = vector.broadcast %54 : vector<25x1xf32> to vector<25x25xf32>
    %56 = arith.subf %52, %55 : vector<25x25xf32>
    %57 = math.exp %56 : vector<25x25xf32>
    %cst_38 = arith.constant dense<0.000000e+00> : vector<25xf32>
    %58 = vector.multi_reduction <add>, %57, %cst_38 [1] : vector<25x25xf32> to vector<25xf32>
    %59 = vector.shape_cast %58 : vector<25xf32> to vector<25x1xf32>
    %60 = tpu.reciprocal %59 {approx = true} : vector<25x1xf32> -> vector<25x1xf32>
    %61 = vector.broadcast %60 : vector<25x1xf32> to vector<25x25xf32>
    %62 = arith.mulf %57, %61 : vector<25x25xf32>
    %cst_39 = arith.constant dense<0.000000e+00> : vector<25x8xf32>
    %63 = tpu.matmul %62, %51, %cst_39 {dimension_numbers = #tpu.dot_dimension_numbers<[1], [0], [0], [1], [0, 0, 1, 1], [], []>} : vector<25x25xf32>, vector<25x8xf32>, vector<25x8xf32> -> vector<25x8xf32>
    %64 = vector.extract_strided_slice %18 {offsets = [0, 24], sizes = [25, 8], strides = [1, 1]} : vector<25x96xf32> to vector<25x8xf32>
    %65 = vector.extract_strided_slice %18 {offsets = [0, 56], sizes = [25, 8], strides = [1, 1]} : vector<25x96xf32> to vector<25x8xf32>
    %66 = vector.extract_strided_slice %18 {offsets = [0, 88], sizes = [25, 8], strides = [1, 1]} : vector<25x96xf32> to vector<25x8xf32>
    %cst_40 = arith.constant dense<0.000000e+00> : vector<25x25xf32>
    %67 = tpu.matmul %64, %65, %cst_40 {dimension_numbers = #tpu.dot_dimension_numbers<[1], [1], [0], [0], [0, 0, 1, 0], [], []>} : vector<25x8xf32>, vector<25x8xf32>, vector<25x25xf32> -> vector<25x25xf32>
    %cst_41 = arith.constant dense<0xFF800000> : vector<25xf32>
    %68 = vector.multi_reduction <maximumf>, %67, %cst_41 [1] : vector<25x25xf32> to vector<25xf32>
    %69 = vector.shape_cast %68 : vector<25xf32> to vector<25x1xf32>
    %70 = vector.broadcast %69 : vector<25x1xf32> to vector<25x25xf32>
    %71 = arith.subf %67, %70 : vector<25x25xf32>
    %72 = math.exp %71 : vector<25x25xf32>
    %cst_42 = arith.constant dense<0.000000e+00> : vector<25xf32>
    %73 = vector.multi_reduction <add>, %72, %cst_42 [1] : vector<25x25xf32> to vector<25xf32>
    %74 = vector.shape_cast %73 : vector<25xf32> to vector<25x1xf32>
    %75 = tpu.reciprocal %74 {approx = true} : vector<25x1xf32> -> vector<25x1xf32>
    %76 = vector.broadcast %75 : vector<25x1xf32> to vector<25x25xf32>
    %77 = arith.mulf %72, %76 : vector<25x25xf32>
    %cst_43 = arith.constant dense<0.000000e+00> : vector<25x8xf32>
    %78 = tpu.matmul %77, %66, %cst_43 {dimension_numbers = #tpu.dot_dimension_numbers<[1], [0], [0], [1], [0, 0, 1, 1], [], []>} : vector<25x25xf32>, vector<25x8xf32>, vector<25x8xf32> -> vector<25x8xf32>
    %79 = tpu.concatenate %33, %48, %63, %78 in 1 : vector<25x8xf32>, vector<25x8xf32>, vector<25x8xf32>, vector<25x8xf32> -> vector<25x32xf32>
    %cst_44 = arith.constant dense<0.000000e+00> : vector<25x32xf32>
    %80 = tpu.matmul %79, %3, %cst_44 {dimension_numbers = #tpu.dot_dimension_numbers<[1], [0], [0], [1], [0, 0, 1, 1], [], []>} : vector<25x32xf32>, vector<32x32xf32>, vector<25x32xf32> -> vector<25x32xf32>
    %81 = vector.broadcast %4 : vector<1x32xf32> to vector<25x32xf32>
    %82 = arith.addf %80, %81 : vector<25x32xf32>
    %83 = arith.addf %15, %82 : vector<25x32xf32>
    %cst_45 = arith.constant dense<0.000000e+00> : vector<25xf32>
    %84 = vector.multi_reduction <add>, %83, %cst_45 [1] : vector<25x32xf32> to vector<25xf32>
    %85 = vector.shape_cast %84 : vector<25xf32> to vector<25x1xf32>
    %cst_46 = arith.constant 3.200000e+01 : f32
    %86 = vector.broadcast %cst_46 : f32 to vector<25x1xf32>
    %87 = arith.divf %85, %86 : vector<25x1xf32>
    %88 = vector.broadcast %87 : vector<25x1xf32> to vector<25x32xf32>
    %89 = arith.subf %83, %88 : vector<25x32xf32>
    %90 = arith.mulf %89, %89 : vector<25x32xf32>
    %cst_47 = arith.constant dense<0.000000e+00> : vector<25xf32>
    %91 = vector.multi_reduction <add>, %90, %cst_47 [1] : vector<25x32xf32> to vector<25xf32>
    %92 = vector.shape_cast %91 : vector<25xf32> to vector<25x1xf32>
    %cst_48 = arith.constant 3.200000e+01 : f32
    %93 = vector.broadcast %cst_48 : f32 to vector<25x1xf32>
    %94 = arith.divf %92, %93 : vector<25x1xf32>
    %95 = vector.broadcast %87 : vector<25x1xf32> to vector<25x32xf32>
    %96 = arith.subf %83, %95 : vector<25x32xf32>
    %cst_49 = arith.constant 9.99999974E-6 : f32
    %97 = vector.broadcast %cst_49 : f32 to vector<25x1xf32>
    %98 = arith.addf %94, %97 : vector<25x1xf32>
    %99 = math.rsqrt %98 : vector<25x1xf32>
    %100 = vector.broadcast %99 : vector<25x1xf32> to vector<25x32xf32>
    %101 = arith.mulf %96, %100 : vector<25x32xf32>
    %102 = vector.broadcast %5 : vector<1x32xf32> to vector<25x32xf32>
    %103 = arith.mulf %101, %102 : vector<25x32xf32>
    %104 = vector.broadcast %6 : vector<1x32xf32> to vector<25x32xf32>
    %105 = arith.addf %103, %104 : vector<25x32xf32>
    %cst_50 = arith.constant dense<0.000000e+00> : vector<25x800xf32>
    %106 = tpu.matmul %105, %7, %cst_50 {dimension_numbers = #tpu.dot_dimension_numbers<[1], [0], [0], [1], [0, 0, 1, 1], [], []>} : vector<25x32xf32>, vector<32x800xf32>, vector<25x800xf32> -> vector<25x800xf32>
    %107 = vector.broadcast %8 : vector<1x800xf32> to vector<25x800xf32>
    %108 = arith.addf %106, %107 : vector<25x800xf32>
    %cst_51 = arith.constant 5.000000e-01 : f32
    %109 = vector.broadcast %cst_51 : f32 to vector<25x800xf32>
    %110 = arith.mulf %109, %108 : vector<25x800xf32>
    %111 = arith.mulf %108, %108 : vector<25x800xf32>
    %112 = arith.mulf %111, %108 : vector<25x800xf32>
    %cst_52 = arith.constant 4.471500e-02 : f32
    %113 = vector.broadcast %cst_52 : f32 to vector<25x800xf32>
    %114 = arith.mulf %113, %112 : vector<25x800xf32>
    %115 = arith.addf %108, %114 : vector<25x800xf32>
    %cst_53 = arith.constant 0.797884583 : f32
    %116 = vector.broadcast %cst_53 : f32 to vector<25x800xf32>
    %117 = arith.mulf %116, %115 : vector<25x800xf32>
    %118 = math.tanh %117 : vector<25x800xf32>
    %cst_54 = arith.constant 1.000000e+00 : f32
    %119 = vector.broadcast %cst_54 : f32 to vector<25x800xf32>
    %120 = arith.addf %119, %118 : vector<25x800xf32>
    %121 = arith.mulf %110, %120 : vector<25x800xf32>
    %cst_55 = arith.constant dense<0.000000e+00> : vector<25x32xf32>
    %122 = tpu.matmul %121, %9, %cst_55 {dimension_numbers = #tpu.dot_dimension_numbers<[1], [0], [0], [1], [0, 0, 1, 1], [], []>} : vector<25x800xf32>, vector<800x32xf32>, vector<25x32xf32> -> vector<25x32xf32>
    %123 = arith.addf %105, %122 : vector<25x32xf32>
    %124 = vector.broadcast %10 : vector<1x32xf32> to vector<25x32xf32>
    %125 = arith.addf %123, %124 : vector<25x32xf32>
    %cst_56 = arith.constant dense<0.000000e+00> : vector<25xf32>
    %126 = vector.multi_reduction <add>, %125, %cst_56 [1] : vector<25x32xf32> to vector<25xf32>
    %127 = vector.shape_cast %126 : vector<25xf32> to vector<25x1xf32>
    %cst_57 = arith.constant 3.200000e+01 : f32
    %128 = vector.broadcast %cst_57 : f32 to vector<25x1xf32>
    %129 = arith.divf %127, %128 : vector<25x1xf32>
    %130 = vector.broadcast %129 : vector<25x1xf32> to vector<25x32xf32>
    %131 = arith.subf %125, %130 : vector<25x32xf32>
    %132 = arith.mulf %131, %131 : vector<25x32xf32>
    %cst_58 = arith.constant dense<0.000000e+00> : vector<25xf32>
    %133 = vector.multi_reduction <add>, %132, %cst_58 [1] : vector<25x32xf32> to vector<25xf32>
    %134 = vector.shape_cast %133 : vector<25xf32> to vector<25x1xf32>
    %cst_59 = arith.constant 3.200000e+01 : f32
    %135 = vector.broadcast %cst_59 : f32 to vector<25x1xf32>
    %136 = arith.divf %134, %135 : vector<25x1xf32>
    %137 = vector.broadcast %129 : vector<25x1xf32> to vector<25x32xf32>
    %138 = arith.subf %125, %137 : vector<25x32xf32>
    %cst_60 = arith.constant 9.99999974E-6 : f32
    %139 = vector.broadcast %cst_60 : f32 to vector<25x1xf32>
    %140 = arith.addf %136, %139 : vector<25x1xf32>
    %141 = math.rsqrt %140 : vector<25x1xf32>
    %142 = vector.broadcast %141 : vector<25x1xf32> to vector<25x32xf32>
    %143 = arith.mulf %138, %142 : vector<25x32xf32>
    %144 = vector.broadcast %11 : vector<1x32xf32> to vector<25x32xf32>
    %145 = arith.mulf %143, %144 : vector<25x32xf32>
    %146 = vector.broadcast %12 : vector<1x32xf32> to vector<25x32xf32>
    %147 = arith.addf %145, %146 : vector<25x32xf32>
    %c0_61 = arith.constant 0 : index
    %c0_62 = arith.constant 0 : index
    %c0_63 = arith.constant 0 : index
    %148 = vector.load %arg14[%c0_61, %c0_62, %c0_63] : memref<25x2x32xf32, #tpu.memory_space<vmem>>, vector<25x1x32xf32>
    %149 = vector.shape_cast %148 : vector<25x1x32xf32> to vector<25x32xf32>
    %150 = vector.shape_cast %147 : vector<25x32xf32> to vector<25x1x32xf32>
    tpu.vector_store %arg14[%c0_61, %c0_62, %c0_63], %150 {strides = array<i32>} : memref<25x2x32xf32, #tpu.memory_space<vmem>>, vector<25x1x32xf32>,
    %c0_64 = arith.constant 0 : index
    %c1 = arith.constant 1 : index
    %c0_65 = arith.constant 0 : index
    %151 = vector.load %arg0[%c0_64, %c1, %c0_65] : memref<25x2x32xf32, #tpu.memory_space<vmem>>, vector<25x1x32xf32>
    %152 = vector.shape_cast %151 : vector<25x1x32xf32> to vector<25x32xf32>
    %153 = arith.addf %152, %0 : vector<25x32xf32>
    %cst_66 = arith.constant dense<0.000000e+00> : vector<25x96xf32>
    %154 = tpu.matmul %153, %1, %cst_66 {dimension_numbers = #tpu.dot_dimension_numbers<[1], [0], [0], [1], [0, 0, 1, 1], [], []>} : vector<25x32xf32>, vector<32x96xf32>, vector<25x96xf32> -> vector<25x96xf32>
    %155 = vector.broadcast %2 : vector<1x96xf32> to vector<25x96xf32>
    %156 = arith.addf %154, %155 : vector<25x96xf32>
    %157 = vector.extract_strided_slice %156 {offsets = [0, 0], sizes = [25, 8], strides = [1, 1]} : vector<25x96xf32> to vector<25x8xf32>
    %158 = vector.extract_strided_slice %156 {offsets = [0, 32], sizes = [25, 8], strides = [1, 1]} : vector<25x96xf32> to vector<25x8xf32>
    %159 = vector.extract_strided_slice %156 {offsets = [0, 64], sizes = [25, 8], strides = [1, 1]} : vector<25x96xf32> to vector<25x8xf32>
    %cst_67 = arith.constant dense<0.000000e+00> : vector<25x25xf32>
    %160 = tpu.matmul %157, %158, %cst_67 {dimension_numbers = #tpu.dot_dimension_numbers<[1], [1], [0], [0], [0, 0, 1, 0], [], []>} : vector<25x8xf32>, vector<25x8xf32>, vector<25x25xf32> -> vector<25x25xf32>
    %cst_68 = arith.constant dense<0xFF800000> : vector<25xf32>
    %161 = vector.multi_reduction <maximumf>, %160, %cst_68 [1] : vector<25x25xf32> to vector<25xf32>
    %162 = vector.shape_cast %161 : vector<25xf32> to vector<25x1xf32>
    %163 = vector.broadcast %162 : vector<25x1xf32> to vector<25x25xf32>
    %164 = arith.subf %160, %163 : vector<25x25xf32>
    %165 = math.exp %164 : vector<25x25xf32>
    %cst_69 = arith.constant dense<0.000000e+00> : vector<25xf32>
    %166 = vector.multi_reduction <add>, %165, %cst_69 [1] : vector<25x25xf32> to vector<25xf32>
    %167 = vector.shape_cast %166 : vector<25xf32> to vector<25x1xf32>
    %168 = tpu.reciprocal %167 {approx = true} : vector<25x1xf32> -> vector<25x1xf32>
    %169 = vector.broadcast %168 : vector<25x1xf32> to vector<25x25xf32>
    %170 = arith.mulf %165, %169 : vector<25x25xf32>
    %cst_70 = arith.constant dense<0.000000e+00> : vector<25x8xf32>
    %171 = tpu.matmul %170, %159, %cst_70 {dimension_numbers = #tpu.dot_dimension_numbers<[1], [0], [0], [1], [0, 0, 1, 1], [], []>} : vector<25x25xf32>, vector<25x8xf32>, vector<25x8xf32> -> vector<25x8xf32>
    %172 = vector.extract_strided_slice %156 {offsets = [0, 8], sizes = [25, 8], strides = [1, 1]} : vector<25x96xf32> to vector<25x8xf32>
    %173 = vector.extract_strided_slice %156 {offsets = [0, 40], sizes = [25, 8], strides = [1, 1]} : vector<25x96xf32> to vector<25x8xf32>
    %174 = vector.extract_strided_slice %156 {offsets = [0, 72], sizes = [25, 8], strides = [1, 1]} : vector<25x96xf32> to vector<25x8xf32>
    %cst_71 = arith.constant dense<0.000000e+00> : vector<25x25xf32>
    %175 = tpu.matmul %172, %173, %cst_71 {dimension_numbers = #tpu.dot_dimension_numbers<[1], [1], [0], [0], [0, 0, 1, 0], [], []>} : vector<25x8xf32>, vector<25x8xf32>, vector<25x25xf32> -> vector<25x25xf32>
    %cst_72 = arith.constant dense<0xFF800000> : vector<25xf32>
    %176 = vector.multi_reduction <maximumf>, %175, %cst_72 [1] : vector<25x25xf32> to vector<25xf32>
    %177 = vector.shape_cast %176 : vector<25xf32> to vector<25x1xf32>
    %178 = vector.broadcast %177 : vector<25x1xf32> to vector<25x25xf32>
    %179 = arith.subf %175, %178 : vector<25x25xf32>
    %180 = math.exp %179 : vector<25x25xf32>
    %cst_73 = arith.constant dense<0.000000e+00> : vector<25xf32>
    %181 = vector.multi_reduction <add>, %180, %cst_73 [1] : vector<25x25xf32> to vector<25xf32>
    %182 = vector.shape_cast %181 : vector<25xf32> to vector<25x1xf32>
    %183 = tpu.reciprocal %182 {approx = true} : vector<25x1xf32> -> vector<25x1xf32>
    %184 = vector.broadcast %183 : vector<25x1xf32> to vector<25x25xf32>
    %185 = arith.mulf %180, %184 : vector<25x25xf32>
    %cst_74 = arith.constant dense<0.000000e+00> : vector<25x8xf32>
    %186 = tpu.matmul %185, %174, %cst_74 {dimension_numbers = #tpu.dot_dimension_numbers<[1], [0], [0], [1], [0, 0, 1, 1], [], []>} : vector<25x25xf32>, vector<25x8xf32>, vector<25x8xf32> -> vector<25x8xf32>
    %187 = vector.extract_strided_slice %156 {offsets = [0, 16], sizes = [25, 8], strides = [1, 1]} : vector<25x96xf32> to vector<25x8xf32>
    %188 = vector.extract_strided_slice %156 {offsets = [0, 48], sizes = [25, 8], strides = [1, 1]} : vector<25x96xf32> to vector<25x8xf32>
    %189 = vector.extract_strided_slice %156 {offsets = [0, 80], sizes = [25, 8], strides = [1, 1]} : vector<25x96xf32> to vector<25x8xf32>
    %cst_75 = arith.constant dense<0.000000e+00> : vector<25x25xf32>
    %190 = tpu.matmul %187, %188, %cst_75 {dimension_numbers = #tpu.dot_dimension_numbers<[1], [1], [0], [0], [0, 0, 1, 0], [], []>} : vector<25x8xf32>, vector<25x8xf32>, vector<25x25xf32> -> vector<25x25xf32>
    %cst_76 = arith.constant dense<0xFF800000> : vector<25xf32>
    %191 = vector.multi_reduction <maximumf>, %190, %cst_76 [1] : vector<25x25xf32> to vector<25xf32>
    %192 = vector.shape_cast %191 : vector<25xf32> to vector<25x1xf32>
    %193 = vector.broadcast %192 : vector<25x1xf32> to vector<25x25xf32>
    %194 = arith.subf %190, %193 : vector<25x25xf32>
    %195 = math.exp %194 : vector<25x25xf32>
    %cst_77 = arith.constant dense<0.000000e+00> : vector<25xf32>
    %196 = vector.multi_reduction <add>, %195, %cst_77 [1] : vector<25x25xf32> to vector<25xf32>
    %197 = vector.shape_cast %196 : vector<25xf32> to vector<25x1xf32>
    %198 = tpu.reciprocal %197 {approx = true} : vector<25x1xf32> -> vector<25x1xf32>
    %199 = vector.broadcast %198 : vector<25x1xf32> to vector<25x25xf32>
    %200 = arith.mulf %195, %199 : vector<25x25xf32>
    %cst_78 = arith.constant dense<0.000000e+00> : vector<25x8xf32>
    %201 = tpu.matmul %200, %189, %cst_78 {dimension_numbers = #tpu.dot_dimension_numbers<[1], [0], [0], [1], [0, 0, 1, 1], [], []>} : vector<25x25xf32>, vector<25x8xf32>, vector<25x8xf32> -> vector<25x8xf32>
    %202 = vector.extract_strided_slice %156 {offsets = [0, 24], sizes = [25, 8], strides = [1, 1]} : vector<25x96xf32> to vector<25x8xf32>
    %203 = vector.extract_strided_slice %156 {offsets = [0, 56], sizes = [25, 8], strides = [1, 1]} : vector<25x96xf32> to vector<25x8xf32>
    %204 = vector.extract_strided_slice %156 {offsets = [0, 88], sizes = [25, 8], strides = [1, 1]} : vector<25x96xf32> to vector<25x8xf32>
    %cst_79 = arith.constant dense<0.000000e+00> : vector<25x25xf32>
    %205 = tpu.matmul %202, %203, %cst_79 {dimension_numbers = #tpu.dot_dimension_numbers<[1], [1], [0], [0], [0, 0, 1, 0], [], []>} : vector<25x8xf32>, vector<25x8xf32>, vector<25x25xf32> -> vector<25x25xf32>
    %cst_80 = arith.constant dense<0xFF800000> : vector<25xf32>
    %206 = vector.multi_reduction <maximumf>, %205, %cst_80 [1] : vector<25x25xf32> to vector<25xf32>
    %207 = vector.shape_cast %206 : vector<25xf32> to vector<25x1xf32>
    %208 = vector.broadcast %207 : vector<25x1xf32> to vector<25x25xf32>
    %209 = arith.subf %205, %208 : vector<25x25xf32>
    %210 = math.exp %209 : vector<25x25xf32>
    %cst_81 = arith.constant dense<0.000000e+00> : vector<25xf32>
    %211 = vector.multi_reduction <add>, %210, %cst_81 [1] : vector<25x25xf32> to vector<25xf32>
    %212 = vector.shape_cast %211 : vector<25xf32> to vector<25x1xf32>
    %213 = tpu.reciprocal %212 {approx = true} : vector<25x1xf32> -> vector<25x1xf32>
    %214 = vector.broadcast %213 : vector<25x1xf32> to vector<25x25xf32>
    %215 = arith.mulf %210, %214 : vector<25x25xf32>
    %cst_82 = arith.constant dense<0.000000e+00> : vector<25x8xf32>
    %216 = tpu.matmul %215, %204, %cst_82 {dimension_numbers = #tpu.dot_dimension_numbers<[1], [0], [0], [1], [0, 0, 1, 1], [], []>} : vector<25x25xf32>, vector<25x8xf32>, vector<25x8xf32> -> vector<25x8xf32>
    %217 = tpu.concatenate %171, %186, %201, %216 in 1 : vector<25x8xf32>, vector<25x8xf32>, vector<25x8xf32>, vector<25x8xf32> -> vector<25x32xf32>
    %cst_83 = arith.constant dense<0.000000e+00> : vector<25x32xf32>
    %218 = tpu.matmul %217, %3, %cst_83 {dimension_numbers = #tpu.dot_dimension_numbers<[1], [0], [0], [1], [0, 0, 1, 1], [], []>} : vector<25x32xf32>, vector<32x32xf32>, vector<25x32xf32> -> vector<25x32xf32>
    %219 = vector.broadcast %4 : vector<1x32xf32> to vector<25x32xf32>
    %220 = arith.addf %218, %219 : vector<25x32xf32>
    %221 = arith.addf %153, %220 : vector<25x32xf32>
    %cst_84 = arith.constant dense<0.000000e+00> : vector<25xf32>
    %222 = vector.multi_reduction <add>, %221, %cst_84 [1] : vector<25x32xf32> to vector<25xf32>
    %223 = vector.shape_cast %222 : vector<25xf32> to vector<25x1xf32>
    %cst_85 = arith.constant 3.200000e+01 : f32
    %224 = vector.broadcast %cst_85 : f32 to vector<25x1xf32>
    %225 = arith.divf %223, %224 : vector<25x1xf32>
    %226 = vector.broadcast %225 : vector<25x1xf32> to vector<25x32xf32>
    %227 = arith.subf %221, %226 : vector<25x32xf32>
    %228 = arith.mulf %227, %227 : vector<25x32xf32>
    %cst_86 = arith.constant dense<0.000000e+00> : vector<25xf32>
    %229 = vector.multi_reduction <add>, %228, %cst_86 [1] : vector<25x32xf32> to vector<25xf32>
    %230 = vector.shape_cast %229 : vector<25xf32> to vector<25x1xf32>
    %cst_87 = arith.constant 3.200000e+01 : f32
    %231 = vector.broadcast %cst_87 : f32 to vector<25x1xf32>
    %232 = arith.divf %230, %231 : vector<25x1xf32>
    %233 = vector.broadcast %225 : vector<25x1xf32> to vector<25x32xf32>
    %234 = arith.subf %221, %233 : vector<25x32xf32>
    %cst_88 = arith.constant 9.99999974E-6 : f32
    %235 = vector.broadcast %cst_88 : f32 to vector<25x1xf32>
    %236 = arith.addf %232, %235 : vector<25x1xf32>
    %237 = math.rsqrt %236 : vector<25x1xf32>
    %238 = vector.broadcast %237 : vector<25x1xf32> to vector<25x32xf32>
    %239 = arith.mulf %234, %238 : vector<25x32xf32>
    %240 = vector.broadcast %5 : vector<1x32xf32> to vector<25x32xf32>
    %241 = arith.mulf %239, %240 : vector<25x32xf32>
    %242 = vector.broadcast %6 : vector<1x32xf32> to vector<25x32xf32>
    %243 = arith.addf %241, %242 : vector<25x32xf32>
    %cst_89 = arith.constant dense<0.000000e+00> : vector<25x800xf32>
    %244 = tpu.matmul %243, %7, %cst_89 {dimension_numbers = #tpu.dot_dimension_numbers<[1], [0], [0], [1], [0, 0, 1, 1], [], []>} : vector<25x32xf32>, vector<32x800xf32>, vector<25x800xf32> -> vector<25x800xf32>
    %245 = vector.broadcast %8 : vector<1x800xf32> to vector<25x800xf32>
    %246 = arith.addf %244, %245 : vector<25x800xf32>
    %cst_90 = arith.constant 5.000000e-01 : f32
    %247 = vector.broadcast %cst_90 : f32 to vector<25x800xf32>
    %248 = arith.mulf %247, %246 : vector<25x800xf32>
    %249 = arith.mulf %246, %246 : vector<25x800xf32>
    %250 = arith.mulf %249, %246 : vector<25x800xf32>
    %cst_91 = arith.constant 4.471500e-02 : f32
    %251 = vector.broadcast %cst_91 : f32 to vector<25x800xf32>
    %252 = arith.mulf %251, %250 : vector<25x800xf32>
    %253 = arith.addf %246, %252 : vector<25x800xf32>
    %cst_92 = arith.constant 0.797884583 : f32
    %254 = vector.broadcast %cst_92 : f32 to vector<25x800xf32>
    %255 = arith.mulf %254, %253 : vector<25x800xf32>
    %256 = math.tanh %255 : vector<25x800xf32>
    %cst_93 = arith.constant 1.000000e+00 : f32
    %257 = vector.broadcast %cst_93 : f32 to vector<25x800xf32>
    %258 = arith.addf %257, %256 : vector<25x800xf32>
    %259 = arith.mulf %248, %258 : vector<25x800xf32>
    %cst_94 = arith.constant dense<0.000000e+00> : vector<25x32xf32>
    %260 = tpu.matmul %259, %9, %cst_94 {dimension_numbers = #tpu.dot_dimension_numbers<[1], [0], [0], [1], [0, 0, 1, 1], [], []>} : vector<25x800xf32>, vector<800x32xf32>, vector<25x32xf32> -> vector<25x32xf32>
    %261 = arith.addf %243, %260 : vector<25x32xf32>
    %262 = vector.broadcast %10 : vector<1x32xf32> to vector<25x32xf32>
    %263 = arith.addf %261, %262 : vector<25x32xf32>
    %cst_95 = arith.constant dense<0.000000e+00> : vector<25xf32>
    %264 = vector.multi_reduction <add>, %263, %cst_95 [1] : vector<25x32xf32> to vector<25xf32>
    %265 = vector.shape_cast %264 : vector<25xf32> to vector<25x1xf32>
    %cst_96 = arith.constant 3.200000e+01 : f32
    %266 = vector.broadcast %cst_96 : f32 to vector<25x1xf32>
    %267 = arith.divf %265, %266 : vector<25x1xf32>
    %268 = vector.broadcast %267 : vector<25x1xf32> to vector<25x32xf32>
    %269 = arith.subf %263, %268 : vector<25x32xf32>
    %270 = arith.mulf %269, %269 : vector<25x32xf32>
    %cst_97 = arith.constant dense<0.000000e+00> : vector<25xf32>
    %271 = vector.multi_reduction <add>, %270, %cst_97 [1] : vector<25x32xf32> to vector<25xf32>
    %272 = vector.shape_cast %271 : vector<25xf32> to vector<25x1xf32>
    %cst_98 = arith.constant 3.200000e+01 : f32
    %273 = vector.broadcast %cst_98 : f32 to vector<25x1xf32>
    %274 = arith.divf %272, %273 : vector<25x1xf32>
    %275 = vector.broadcast %267 : vector<25x1xf32> to vector<25x32xf32>
    %276 = arith.subf %263, %275 : vector<25x32xf32>
    %cst_99 = arith.constant 9.99999974E-6 : f32
    %277 = vector.broadcast %cst_99 : f32 to vector<25x1xf32>
    %278 = arith.addf %274, %277 : vector<25x1xf32>
    %279 = math.rsqrt %278 : vector<25x1xf32>
    %280 = vector.broadcast %279 : vector<25x1xf32> to vector<25x32xf32>
    %281 = arith.mulf %276, %280 : vector<25x32xf32>
    %282 = vector.broadcast %11 : vector<1x32xf32> to vector<25x32xf32>
    %283 = arith.mulf %281, %282 : vector<25x32xf32>
    %284 = vector.broadcast %12 : vector<1x32xf32> to vector<25x32xf32>
    %285 = arith.addf %283, %284 : vector<25x32xf32>
    %c0_100 = arith.constant 0 : index
    %c1_101 = arith.constant 1 : index
    %c0_102 = arith.constant 0 : index
    %286 = vector.load %arg14[%c0_100, %c1_101, %c0_102] : memref<25x2x32xf32, #tpu.memory_space<vmem>>, vector<25x1x32xf32>
    %287 = vector.shape_cast %286 : vector<25x1x32xf32> to vector<25x32xf32>
    %288 = vector.shape_cast %285 : vector<25x32xf32> to vector<25x1x32xf32>
    tpu.vector_store %arg14[%c0_100, %c1_101, %c0_102], %288 {strides = array<i32>} : memref<25x2x32xf32, #tpu.memory_space<vmem>>, vector<25x1x32xf32>,
    return
  }
}

module attributes {stable_mosaic.version = 11 : i64} {
  func.func @conv_stack_kernel(%arg0: i32, %arg1: memref<1x12x200xf32, #tpu.memory_space<vmem>>, %arg2: memref<8x12xf32, #tpu.memory_space<vmem>>, %arg3: memref<8x1xf32, #tpu.memory_space<vmem>>, %arg4: memref<8x1xf32, #tpu.memory_space<vmem>>, %arg5: memref<200x102xf32, #tpu.memory_space<vmem>>, %arg6: memref<3x16x8xf32, #tpu.memory_space<vmem>>, %arg7: memref<16x1xf32, #tpu.memory_space<vmem>>, %arg8: memref<16x1xf32, #tpu.memory_space<vmem>>, %arg9: memref<100x52xf32, #tpu.memory_space<vmem>>, %arg10: memref<3x32x16xf32, #tpu.memory_space<vmem>>, %arg11: memref<32x1xf32, #tpu.memory_space<vmem>>, %arg12: memref<32x1xf32, #tpu.memory_space<vmem>>, %arg13: memref<50x25xf32, #tpu.memory_space<vmem>>, %arg14: memref<1x32x25xf32, #tpu.memory_space<vmem>>) attributes {dimension_semantics = [#tpu.dimension_semantics<parallel>], iteration_bounds = array<i64: 2>, scalar_prefetch = 0 : i64, scratch_operands = 0 : i64, tpu.core_type = #tpu.core_type<tc>, window_params = [{transform_indices = @transform_0, window_bounds = array<i64: 1, 12, 200>}, {pipeline_mode = #tpu.pipeline_mode<synchronous>, transform_indices = @transform_1, window_bounds = array<i64: 8, 12>}, {pipeline_mode = #tpu.pipeline_mode<synchronous>, transform_indices = @transform_2, window_bounds = array<i64: 8, 1>}, {pipeline_mode = #tpu.pipeline_mode<synchronous>, transform_indices = @transform_3, window_bounds = array<i64: 8, 1>}, {pipeline_mode = #tpu.pipeline_mode<synchronous>, transform_indices = @transform_4, window_bounds = array<i64: 200, 102>}, {pipeline_mode = #tpu.pipeline_mode<synchronous>, transform_indices = @transform_5, window_bounds = array<i64: 3, 16, 8>}, {pipeline_mode = #tpu.pipeline_mode<synchronous>, transform_indices = @transform_6, window_bounds = array<i64: 16, 1>}, {pipeline_mode = #tpu.pipeline_mode<synchronous>, transform_indices = @transform_7, window_bounds = array<i64: 16, 1>}, {pipeline_mode = #tpu.pipeline_mode<synchronous>, transform_indices = @transform_8, window_bounds = array<i64: 100, 52>}, {pipeline_mode = #tpu.pipeline_mode<synchronous>, transform_indices = @transform_9, window_bounds = array<i64: 3, 32, 16>}, {pipeline_mode = #tpu.pipeline_mode<synchronous>, transform_indices = @transform_10, window_bounds = array<i64: 32, 1>}, {pipeline_mode = #tpu.pipeline_mode<synchronous>, transform_indices = @transform_11, window_bounds = array<i64: 32, 1>}, {pipeline_mode = #tpu.pipeline_mode<synchronous>, transform_indices = @transform_12, window_bounds = array<i64: 50, 25>}, {transform_indices = @transform_13, window_bounds = array<i64: 1, 32, 25>}]} {
    %c0 = arith.constant 0 : index
    %c0_0 = arith.constant 0 : index
    %0 = vector.load %arg2[%c0, %c0_0] : memref<8x12xf32, #tpu.memory_space<vmem>>, vector<8x12xf32>
    %c0_1 = arith.constant 0 : index
    %c0_2 = arith.constant 0 : index
    %c0_3 = arith.constant 0 : index
    %1 = vector.load %arg1[%c0_1, %c0_2, %c0_3] : memref<1x12x200xf32, #tpu.memory_space<vmem>>, vector<1x12x200xf32>
    %2 = vector.shape_cast %1 : vector<1x12x200xf32> to vector<12x200xf32>
    %cst = arith.constant dense<0.000000e+00> : vector<8x200xf32>
    %3 = tpu.matmul %0, %2, %cst {dimension_numbers = #tpu.dot_dimension_numbers<[1], [0], [0], [1], [0, 0, 1, 1], [], []>} : vector<8x12xf32>, vector<12x200xf32>, vector<8x200xf32> -> vector<8x200xf32>
    %c0_4 = arith.constant 0 : index
    %c0_5 = arith.constant 0 : index
    %4 = vector.load %arg3[%c0_4, %c0_5] : memref<8x1xf32, #tpu.memory_space<vmem>>, vector<8x1xf32>
    %5 = vector.broadcast %4 : vector<8x1xf32> to vector<8x200xf32>
    %6 = arith.mulf %3, %5 : vector<8x200xf32>
    %c0_6 = arith.constant 0 : index
    %c0_7 = arith.constant 0 : index
    %7 = vector.load %arg4[%c0_6, %c0_7] : memref<8x1xf32, #tpu.memory_space<vmem>>, vector<8x1xf32>
    %8 = vector.broadcast %7 : vector<8x1xf32> to vector<8x200xf32>
    %9 = arith.addf %6, %8 : vector<8x200xf32>
    %cst_8 = arith.constant 0.000000e+00 : f32
    %10 = vector.broadcast %cst_8 : f32 to vector<8x200xf32>
    %11 = arith.cmpf ogt, %9, %10 : vector<8x200xf32>
    %cst_9 = arith.constant 0.000000e+00 : f32
    %12 = vector.broadcast %cst_9 : f32 to vector<8x200xf32>
    %13 = arith.minimumf %9, %12 : vector<8x200xf32>
    %14 = math.exp %13 : vector<8x200xf32>
    %cst_10 = arith.constant 1.000000e+00 : f32
    %15 = vector.broadcast %cst_10 : f32 to vector<8x200xf32>
    %16 = arith.subf %14, %15 : vector<8x200xf32>
    %17 = arith.select %11, %9, %16 : vector<8x200xi1>, vector<8x200xf32>
    %c0_11 = arith.constant 0 : index
    %c0_12 = arith.constant 0 : index
    %18 = vector.load %arg5[%c0_11, %c0_12] : memref<200x102xf32, #tpu.memory_space<vmem>>, vector<200x102xf32>
    %cst_13 = arith.constant dense<0.000000e+00> : vector<8x102xf32>
    %19 = tpu.matmul %17, %18, %cst_13 {dimension_numbers = #tpu.dot_dimension_numbers<[1], [0], [0], [1], [0, 0, 1, 1], [], []>} : vector<8x200xf32>, vector<200x102xf32>, vector<8x102xf32> -> vector<8x102xf32>
    %c0_14 = arith.constant 0 : index
    %c0_15 = arith.constant 0 : index
    %c0_16 = arith.constant 0 : index
    %20 = vector.load %arg6[%c0_14, %c0_15, %c0_16] : memref<3x16x8xf32, #tpu.memory_space<vmem>>, vector<3x16x8xf32>
    %c0_17 = arith.constant 0 : index
    %c0_18 = arith.constant 0 : index
    %21 = vector.load %arg7[%c0_17, %c0_18] : memref<16x1xf32, #tpu.memory_space<vmem>>, vector<16x1xf32>
    %c0_19 = arith.constant 0 : index
    %c0_20 = arith.constant 0 : index
    %22 = vector.load %arg8[%c0_19, %c0_20] : memref<16x1xf32, #tpu.memory_space<vmem>>, vector<16x1xf32>
    %c0_21 = arith.constant 0 : index
    %c0_22 = arith.constant 0 : index
    %23 = vector.load %arg9[%c0_21, %c0_22] : memref<100x52xf32, #tpu.memory_space<vmem>>, vector<100x52xf32>
    %24 = vector.extract_strided_slice %20 {offsets = [0, 0, 0], sizes = [1, 16, 8], strides = [1, 1, 1]} : vector<3x16x8xf32> to vector<1x16x8xf32>
    %25 = vector.shape_cast %24 : vector<1x16x8xf32> to vector<16x8xf32>
    %26 = vector.extract_strided_slice %19 {offsets = [0, 0], sizes = [8, 100], strides = [1, 1]} : vector<8x102xf32> to vector<8x100xf32>
    %cst_23 = arith.constant dense<0.000000e+00> : vector<16x100xf32>
    %27 = tpu.matmul %25, %26, %cst_23 {dimension_numbers = #tpu.dot_dimension_numbers<[1], [0], [0], [1], [0, 0, 1, 1], [], []>} : vector<16x8xf32>, vector<8x100xf32>, vector<16x100xf32> -> vector<16x100xf32>
    %28 = vector.extract_strided_slice %20 {offsets = [1, 0, 0], sizes = [1, 16, 8], strides = [1, 1, 1]} : vector<3x16x8xf32> to vector<1x16x8xf32>
    %29 = vector.shape_cast %28 : vector<1x16x8xf32> to vector<16x8xf32>
    %30 = vector.extract_strided_slice %19 {offsets = [0, 1], sizes = [8, 100], strides = [1, 1]} : vector<8x102xf32> to vector<8x100xf32>
    %cst_24 = arith.constant dense<0.000000e+00> : vector<16x100xf32>
    %31 = tpu.matmul %29, %30, %cst_24 {dimension_numbers = #tpu.dot_dimension_numbers<[1], [0], [0], [1], [0, 0, 1, 1], [], []>} : vector<16x8xf32>, vector<8x100xf32>, vector<16x100xf32> -> vector<16x100xf32>
    %32 = arith.addf %27, %31 : vector<16x100xf32>
    %33 = vector.extract_strided_slice %20 {offsets = [2, 0, 0], sizes = [1, 16, 8], strides = [1, 1, 1]} : vector<3x16x8xf32> to vector<1x16x8xf32>
    %34 = vector.shape_cast %33 : vector<1x16x8xf32> to vector<16x8xf32>
    %35 = vector.extract_strided_slice %19 {offsets = [0, 2], sizes = [8, 100], strides = [1, 1]} : vector<8x102xf32> to vector<8x100xf32>
    %cst_25 = arith.constant dense<0.000000e+00> : vector<16x100xf32>
    %36 = tpu.matmul %34, %35, %cst_25 {dimension_numbers = #tpu.dot_dimension_numbers<[1], [0], [0], [1], [0, 0, 1, 1], [], []>} : vector<16x8xf32>, vector<8x100xf32>, vector<16x100xf32> -> vector<16x100xf32>
    %37 = arith.addf %32, %36 : vector<16x100xf32>
    %38 = vector.broadcast %21 : vector<16x1xf32> to vector<16x100xf32>
    %39 = arith.mulf %37, %38 : vector<16x100xf32>
    %40 = vector.broadcast %22 : vector<16x1xf32> to vector<16x100xf32>
    %41 = arith.addf %39, %40 : vector<16x100xf32>
    %cst_26 = arith.constant 0.000000e+00 : f32
    %42 = vector.broadcast %cst_26 : f32 to vector<16x100xf32>
    %43 = arith.cmpf ogt, %41, %42 : vector<16x100xf32>
    %cst_27 = arith.constant 0.000000e+00 : f32
    %44 = vector.broadcast %cst_27 : f32 to vector<16x100xf32>
    %45 = arith.minimumf %41, %44 : vector<16x100xf32>
    %46 = math.exp %45 : vector<16x100xf32>
    %cst_28 = arith.constant 1.000000e+00 : f32
    %47 = vector.broadcast %cst_28 : f32 to vector<16x100xf32>
    %48 = arith.subf %46, %47 : vector<16x100xf32>
    %49 = arith.select %43, %41, %48 : vector<16x100xi1>, vector<16x100xf32>
    %cst_29 = arith.constant dense<0.000000e+00> : vector<16x52xf32>
    %50 = tpu.matmul %49, %23, %cst_29 {dimension_numbers = #tpu.dot_dimension_numbers<[1], [0], [0], [1], [0, 0, 1, 1], [], []>} : vector<16x100xf32>, vector<100x52xf32>, vector<16x52xf32> -> vector<16x52xf32>
    %c0_30 = arith.constant 0 : index
    %c0_31 = arith.constant 0 : index
    %c0_32 = arith.constant 0 : index
    %51 = vector.load %arg10[%c0_30, %c0_31, %c0_32] : memref<3x32x16xf32, #tpu.memory_space<vmem>>, vector<3x32x16xf32>
    %c0_33 = arith.constant 0 : index
    %c0_34 = arith.constant 0 : index
    %52 = vector.load %arg11[%c0_33, %c0_34] : memref<32x1xf32, #tpu.memory_space<vmem>>, vector<32x1xf32>
    %c0_35 = arith.constant 0 : index
    %c0_36 = arith.constant 0 : index
    %53 = vector.load %arg12[%c0_35, %c0_36] : memref<32x1xf32, #tpu.memory_space<vmem>>, vector<32x1xf32>
    %c0_37 = arith.constant 0 : index
    %c0_38 = arith.constant 0 : index
    %54 = vector.load %arg13[%c0_37, %c0_38] : memref<50x25xf32, #tpu.memory_space<vmem>>, vector<50x25xf32>
    %55 = vector.extract_strided_slice %51 {offsets = [0, 0, 0], sizes = [1, 32, 16], strides = [1, 1, 1]} : vector<3x32x16xf32> to vector<1x32x16xf32>
    %56 = vector.shape_cast %55 : vector<1x32x16xf32> to vector<32x16xf32>
    %57 = vector.extract_strided_slice %50 {offsets = [0, 0], sizes = [16, 50], strides = [1, 1]} : vector<16x52xf32> to vector<16x50xf32>
    %cst_39 = arith.constant dense<0.000000e+00> : vector<32x50xf32>
    %58 = tpu.matmul %56, %57, %cst_39 {dimension_numbers = #tpu.dot_dimension_numbers<[1], [0], [0], [1], [0, 0, 1, 1], [], []>} : vector<32x16xf32>, vector<16x50xf32>, vector<32x50xf32> -> vector<32x50xf32>
    %59 = vector.extract_strided_slice %51 {offsets = [1, 0, 0], sizes = [1, 32, 16], strides = [1, 1, 1]} : vector<3x32x16xf32> to vector<1x32x16xf32>
    %60 = vector.shape_cast %59 : vector<1x32x16xf32> to vector<32x16xf32>
    %61 = vector.extract_strided_slice %50 {offsets = [0, 1], sizes = [16, 50], strides = [1, 1]} : vector<16x52xf32> to vector<16x50xf32>
    %cst_40 = arith.constant dense<0.000000e+00> : vector<32x50xf32>
    %62 = tpu.matmul %60, %61, %cst_40 {dimension_numbers = #tpu.dot_dimension_numbers<[1], [0], [0], [1], [0, 0, 1, 1], [], []>} : vector<32x16xf32>, vector<16x50xf32>, vector<32x50xf32> -> vector<32x50xf32>
    %63 = arith.addf %58, %62 : vector<32x50xf32>
    %64 = vector.extract_strided_slice %51 {offsets = [2, 0, 0], sizes = [1, 32, 16], strides = [1, 1, 1]} : vector<3x32x16xf32> to vector<1x32x16xf32>
    %65 = vector.shape_cast %64 : vector<1x32x16xf32> to vector<32x16xf32>
    %66 = vector.extract_strided_slice %50 {offsets = [0, 2], sizes = [16, 50], strides = [1, 1]} : vector<16x52xf32> to vector<16x50xf32>
    %cst_41 = arith.constant dense<0.000000e+00> : vector<32x50xf32>
    %67 = tpu.matmul %65, %66, %cst_41 {dimension_numbers = #tpu.dot_dimension_numbers<[1], [0], [0], [1], [0, 0, 1, 1], [], []>} : vector<32x16xf32>, vector<16x50xf32>, vector<32x50xf32> -> vector<32x50xf32>
    %68 = arith.addf %63, %67 : vector<32x50xf32>
    %69 = vector.broadcast %52 : vector<32x1xf32> to vector<32x50xf32>
    %70 = arith.mulf %68, %69 : vector<32x50xf32>
    %71 = vector.broadcast %53 : vector<32x1xf32> to vector<32x50xf32>
    %72 = arith.addf %70, %71 : vector<32x50xf32>
    %cst_42 = arith.constant 0.000000e+00 : f32
    %73 = vector.broadcast %cst_42 : f32 to vector<32x50xf32>
    %74 = arith.cmpf ogt, %72, %73 : vector<32x50xf32>
    %cst_43 = arith.constant 0.000000e+00 : f32
    %75 = vector.broadcast %cst_43 : f32 to vector<32x50xf32>
    %76 = arith.minimumf %72, %75 : vector<32x50xf32>
    %77 = math.exp %76 : vector<32x50xf32>
    %cst_44 = arith.constant 1.000000e+00 : f32
    %78 = vector.broadcast %cst_44 : f32 to vector<32x50xf32>
    %79 = arith.subf %77, %78 : vector<32x50xf32>
    %80 = arith.select %74, %72, %79 : vector<32x50xi1>, vector<32x50xf32>
    %cst_45 = arith.constant dense<0.000000e+00> : vector<32x25xf32>
    %81 = tpu.matmul %80, %54, %cst_45 {dimension_numbers = #tpu.dot_dimension_numbers<[1], [0], [0], [1], [0, 0, 1, 1], [], []>} : vector<32x50xf32>, vector<50x25xf32>, vector<32x25xf32> -> vector<32x25xf32>
    %c0_46 = arith.constant 0 : index
    %c0_47 = arith.constant 0 : index
    %c0_48 = arith.constant 0 : index
    %82 = vector.load %arg14[%c0_46, %c0_47, %c0_48] : memref<1x32x25xf32, #tpu.memory_space<vmem>>, vector<1x32x25xf32>
    %83 = vector.shape_cast %82 : vector<1x32x25xf32> to vector<32x25xf32>
    %84 = vector.shape_cast %81 : vector<32x25xf32> to vector<1x32x25xf32>
    tpu.vector_store %arg14[%c0_46, %c0_47, %c0_48], %84 {strides = array<i32>} : memref<1x32x25xf32, #tpu.memory_space<vmem>>, vector<1x32x25xf32>,
    return
  }
  func.func @transform_0(%arg0: i32) -> (i32, i32, i32) {
    %c0_i32 = arith.constant 0 : i32
    %c0_i32_0 = arith.constant 0 : i32
    %c0_i32_1 = arith.constant 0 : i32
    return %arg0, %c0_i32, %c0_i32_0 : i32, i32, i32
  }
  func.func @transform_1(%arg0: i32) -> (i32, i32) {
    %c0_i32 = arith.constant 0 : i32
    %c0_i32_0 = arith.constant 0 : i32
    %c0_i32_1 = arith.constant 0 : i32
    return %c0_i32, %c0_i32_0 : i32, i32
  }
  func.func @transform_2(%arg0: i32) -> (i32, i32) {
    %c0_i32 = arith.constant 0 : i32
    %c0_i32_0 = arith.constant 0 : i32
    %c0_i32_1 = arith.constant 0 : i32
    return %c0_i32, %c0_i32_0 : i32, i32
  }
  func.func @transform_3(%arg0: i32) -> (i32, i32) {
    %c0_i32 = arith.constant 0 : i32
    %c0_i32_0 = arith.constant 0 : i32
    %c0_i32_1 = arith.constant 0 : i32
    return %c0_i32, %c0_i32_0 : i32, i32
  }
  func.func @transform_4(%arg0: i32) -> (i32, i32) {
    %c0_i32 = arith.constant 0 : i32
    %c0_i32_0 = arith.constant 0 : i32
    %c0_i32_1 = arith.constant 0 : i32
    return %c0_i32, %c0_i32_0 : i32, i32
  }
  func.func @transform_5(%arg0: i32) -> (i32, i32, i32) {
    %c0_i32 = arith.constant 0 : i32
    %c0_i32_0 = arith.constant 0 : i32
    %c0_i32_1 = arith.constant 0 : i32
    %c0_i32_2 = arith.constant 0 : i32
    return %c0_i32, %c0_i32_0, %c0_i32_1 : i32, i32, i32
  }
  func.func @transform_6(%arg0: i32) -> (i32, i32) {
    %c0_i32 = arith.constant 0 : i32
    %c0_i32_0 = arith.constant 0 : i32
    %c0_i32_1 = arith.constant 0 : i32
    return %c0_i32, %c0_i32_0 : i32, i32
  }
  func.func @transform_7(%arg0: i32) -> (i32, i32) {
    %c0_i32 = arith.constant 0 : i32
    %c0_i32_0 = arith.constant 0 : i32
    %c0_i32_1 = arith.constant 0 : i32
    return %c0_i32, %c0_i32_0 : i32, i32
  }
  func.func @transform_8(%arg0: i32) -> (i32, i32) {
    %c0_i32 = arith.constant 0 : i32
    %c0_i32_0 = arith.constant 0 : i32
    %c0_i32_1 = arith.constant 0 : i32
    return %c0_i32, %c0_i32_0 : i32, i32
  }
  func.func @transform_9(%arg0: i32) -> (i32, i32, i32) {
    %c0_i32 = arith.constant 0 : i32
    %c0_i32_0 = arith.constant 0 : i32
    %c0_i32_1 = arith.constant 0 : i32
    %c0_i32_2 = arith.constant 0 : i32
    return %c0_i32, %c0_i32_0, %c0_i32_1 : i32, i32, i32
  }
  func.func @transform_10(%arg0: i32) -> (i32, i32) {
    %c0_i32 = arith.constant 0 : i32
    %c0_i32_0 = arith.constant 0 : i32
    %c0_i32_1 = arith.constant 0 : i32
    return %c0_i32, %c0_i32_0 : i32, i32
  }
  func.func @transform_11(%arg0: i32) -> (i32, i32) {
    %c0_i32 = arith.constant 0 : i32
    %c0_i32_0 = arith.constant 0 : i32
    %c0_i32_1 = arith.constant 0 : i32
    return %c0_i32, %c0_i32_0 : i32, i32
  }
  func.func @transform_12(%arg0: i32) -> (i32, i32) {
    %c0_i32 = arith.constant 0 : i32
    %c0_i32_0 = arith.constant 0 : i32
    %c0_i32_1 = arith.constant 0 : i32
    return %c0_i32, %c0_i32_0 : i32, i32
  }
  func.func @transform_13(%arg0: i32) -> (i32, i32, i32) {
    %c0_i32 = arith.constant 0 : i32
    %c0_i32_0 = arith.constant 0 : i32
    %c0_i32_1 = arith.constant 0 : i32
    return %arg0, %c0_i32, %c0_i32_0 : i32, i32, i32
  }
}

module attributes {stable_mosaic.version = 11 : i64} {
  func.func @head_kernel(%arg0: memref<2x800xf32, #tpu.memory_space<vmem>>, %arg1: memref<800x32xf32, #tpu.memory_space<vmem>>, %arg2: memref<1x32xf32, #tpu.memory_space<vmem>>, %arg3: memref<1x32xf32, #tpu.memory_space<vmem>>, %arg4: memref<32x8xf32, #tpu.memory_space<vmem>>, %arg5: memref<1x8xf32, #tpu.memory_space<vmem>>, %arg6: memref<2x8xf32, #tpu.memory_space<vmem>>) attributes {dimension_semantics = [], scalar_prefetch = 0 : i64, scratch_operands = 0 : i64, tpu.core_type = #tpu.core_type<tc>} {
    %c0 = arith.constant 0 : index
    %c0_0 = arith.constant 0 : index
    %0 = vector.load %arg0[%c0, %c0_0] : memref<2x800xf32, #tpu.memory_space<vmem>>, vector<2x800xf32>
    %c0_1 = arith.constant 0 : index
    %c0_2 = arith.constant 0 : index
    %1 = vector.load %arg1[%c0_1, %c0_2] : memref<800x32xf32, #tpu.memory_space<vmem>>, vector<800x32xf32>
    %cst = arith.constant dense<0.000000e+00> : vector<2x32xf32>
    %2 = tpu.matmul %0, %1, %cst {dimension_numbers = #tpu.dot_dimension_numbers<[1], [0], [0], [1], [0, 0, 1, 1], [], []>} : vector<2x800xf32>, vector<800x32xf32>, vector<2x32xf32> -> vector<2x32xf32>
    %c0_3 = arith.constant 0 : index
    %c0_4 = arith.constant 0 : index
    %3 = vector.load %arg2[%c0_3, %c0_4] : memref<1x32xf32, #tpu.memory_space<vmem>>, vector<1x32xf32>
    %4 = vector.broadcast %3 : vector<1x32xf32> to vector<2x32xf32>
    %5 = arith.mulf %2, %4 : vector<2x32xf32>
    %c0_5 = arith.constant 0 : index
    %c0_6 = arith.constant 0 : index
    %6 = vector.load %arg3[%c0_5, %c0_6] : memref<1x32xf32, #tpu.memory_space<vmem>>, vector<1x32xf32>
    %7 = vector.broadcast %6 : vector<1x32xf32> to vector<2x32xf32>
    %8 = arith.addf %5, %7 : vector<2x32xf32>
    %cst_7 = arith.constant 0.000000e+00 : f32
    %9 = vector.broadcast %cst_7 : f32 to vector<2x32xf32>
    %10 = arith.cmpf ogt, %8, %9 : vector<2x32xf32>
    %cst_8 = arith.constant 0.000000e+00 : f32
    %11 = vector.broadcast %cst_8 : f32 to vector<2x32xf32>
    %12 = arith.minimumf %8, %11 : vector<2x32xf32>
    %13 = math.exp %12 : vector<2x32xf32>
    %cst_9 = arith.constant 1.000000e+00 : f32
    %14 = vector.broadcast %cst_9 : f32 to vector<2x32xf32>
    %15 = arith.subf %13, %14 : vector<2x32xf32>
    %16 = arith.select %10, %8, %15 : vector<2x32xi1>, vector<2x32xf32>
    %c0_10 = arith.constant 0 : index
    %c0_11 = arith.constant 0 : index
    %17 = vector.load %arg4[%c0_10, %c0_11] : memref<32x8xf32, #tpu.memory_space<vmem>>, vector<32x8xf32>
    %cst_12 = arith.constant dense<0.000000e+00> : vector<2x8xf32>
    %18 = tpu.matmul %16, %17, %cst_12 {dimension_numbers = #tpu.dot_dimension_numbers<[1], [0], [0], [1], [0, 0, 1, 1], [], []>} : vector<2x32xf32>, vector<32x8xf32>, vector<2x8xf32> -> vector<2x8xf32>
    %c0_13 = arith.constant 0 : index
    %c0_14 = arith.constant 0 : index
    %19 = vector.load %arg5[%c0_13, %c0_14] : memref<1x8xf32, #tpu.memory_space<vmem>>, vector<1x8xf32>
    %20 = vector.broadcast %19 : vector<1x8xf32> to vector<2x8xf32>
    %21 = arith.addf %18, %20 : vector<2x8xf32>
    %c0_15 = arith.constant 0 : index
    %c0_16 = arith.constant 0 : index
    %22 = vector.load %arg6[%c0_15, %c0_16] : memref<2x8xf32, #tpu.memory_space<vmem>>, vector<2x8xf32>
    tpu.vector_store %arg6[%c0_15, %c0_16], %21 {strides = array<i32>} : memref<2x8xf32, #tpu.memory_space<vmem>>, vector<2x8xf32>,
    return
  }
}

</mosaic_0001>

<bundles_post_ra>
// kernel: forward.5
= control target key start
LH: loop header
LB: loop body
LE: loop exit
PB: predicated region body
PF: predicated region fallthrough
CT: control target
= control target key end

     0   :  { %v856_v47 = vmov 1983009808   ;;  %v132_v49 = vlaneseq  ;;  %s1254_s0 = inlined_call_operand.vmem [shape: f32[2,800], index: 0, kind: input, shape index: {}]   ;;  %s1255_s1 = inlined_call_operand.vmem [shape: f32[800,32], index: 1, kind: input, shape index: {}]   ;;  %s1256_s2 = inlined_call_operand.vmem [shape: f32[1,32], index: 2, kind: input, shape index: {}]   ;;  %s1257_s3 = inlined_call_operand.vmem [shape: f32[1,32], index: 3, kind: input, shape index: {}]   ;;  %s1258_s4 = inlined_call_operand.vmem [shape: f32[32,8], index: 4, kind: input, shape index: {}]   ;;  %s1259_s5 = inlined_call_operand.vmem [shape: f32[1,8], index: 5, kind: input, shape index: {}]   ;;  %s1260_s6 = inlined_call_operand.hbm [shape: f32[2,8], index: 6, kind: output, shape index: {}]  }
   0x1   :  { %v42_v0 = vld [vmem:[%s1255_s1 + $0x80] sm:$0xff]  ;;  %v43_v1 = vld [vmem:[%s1255_s1 + $0x88] sm:$0xff]  ;;  %v44_v11 = vld [vmem:[%s1255_s1 + $0x90] sm:$0xff]  ;;  %v130_v48 = vunpack.c.l.s4 %v856_v47 }
   0x2   :  { %v74_v2 = vld [vmem:[%s1255_s1 + $0x180] sm:$0xff]  ;;  %v715_v3 = vpack.c.bf16 %v43_v1, %v42_v0  ;;  %v75_v4 = vld [vmem:[%s1255_s1 + $0x188] sm:$0xff]  ;;  %v45_v13 = vld [vmem:[%s1255_s1 + $0x98] sm:$0xff]  ;;  %v133_v0 = vshrl.u32 %v132_v49, 7 }
   0x3   :  { %v26_v5 = vld [vmem:[%s1255_s1] sm:$0xff]  ;;  %v27_v6 = vld [vmem:[%s1255_s1 + $0x8] sm:$0xff]  ;;  %v747_v7 = vpack.c.bf16 %v75_v4, %v74_v2  ;;  %v76_v14 = vld [vmem:[%s1255_s1 + $0x190] sm:$0xff]  ;;  %v719_v16 = vpack.c.bf16 %v45_v13, %v44_v11  ;;  %v131_v63 = vunpack.c.0.s8 %v130_v48 }
   0x4   :  { %v717_v8 = vpack.c.bf16 %v27_v6, %v26_v5  ;;  %v58_v9 = vld [vmem:[%s1255_s1 + $0x100] sm:$0xff]  ;;  %v59_v10 = vld [vmem:[%s1255_s1 + $0x108] sm:$0xff]  ;;  %716 = vmatprep.subr.bf16.mxu0 %v715_v3  ;;  %v77_v15 = vld [vmem:[%s1255_s1 + $0x198] sm:$0xff] }
   0x5   :  { %v749_v12 = vpack.c.bf16 %v59_v10, %v58_v9  ;;  %748 = vmatprep.subr.bf16.mxu1 %v747_v7  ;;  %v751_v17 = vpack.c.bf16 %v77_v15, %v76_v14  ;;  %v28_v18 = vld [vmem:[%s1255_s1 + $0x10] sm:$0xff]  ;;  %v29_v19 = vld [vmem:[%s1255_s1 + $0x18] sm:$0xff]  ;;  %v46_v23 = vld [vmem:[%s1255_s1 + $0xa0] sm:$0xff]  ;;  %v1046_v13 = vsub.s32 %v131_v63, %v133_v0 }
   0x6   :  { %718 = vmatpush3.bf16.msra.mxu0 %v717_v8  ;;  %v60_v20 = vld [vmem:[%s1255_s1 + $0x110] sm:$0xff]  ;;  %v721_v21 = vpack.c.bf16 %v29_v19, %v28_v18  ;;  %v61_v22 = vld [vmem:[%s1255_s1 + $0x118] sm:$0xff]  ;;  %v47_v24 = vld [vmem:[%s1255_s1 + $0xa8] sm:$0xff] }
   0x7   :  { %750 = vmatpush3.bf16.msra.mxu1 %v749_v12  ;;  %720 = vmatprep.subr.bf16.mxu0 %v719_v16  ;;  %v753_v25 = vpack.c.bf16 %v61_v22, %v60_v20  ;;  %v723_v26 = vpack.c.bf16 %v47_v24, %v46_v23  ;;  %v78_v27 = vld [vmem:[%s1255_s1 + $0x1a0] sm:$0xff]  ;;  %v79_v28 = vld [vmem:[%s1255_s1 + $0x1a8] sm:$0xff]  ;;  %v48_v35 = vld [vmem:[%s1255_s1 + $0xb0] sm:$0xff] }
   0x8   :  { %752 = vmatprep.subr.bf16.mxu1 %v751_v17  ;;  %v30_v29 = vld [vmem:[%s1255_s1 + $0x20] sm:$0xff]  ;;  %v755_v30 = vpack.c.bf16 %v79_v28, %v78_v27  ;;  %v31_v31 = vld [vmem:[%s1255_s1 + $0x28] sm:$0xff]  ;;  %v49_v36 = vld [vmem:[%s1255_s1 + $0xb8] sm:$0xff] }
   0x9   :  { %v62_v32 = vld [vmem:[%s1255_s1 + $0x120] sm:$0xff]  ;;  %v63_v33 = vld [vmem:[%s1255_s1 + $0x128] sm:$0xff]  ;;  %v725_v34 = vpack.c.bf16 %v31_v31, %v30_v29  ;;  %v80_v37 = vld [vmem:[%s1255_s1 + $0x1b0] sm:$0xff]  ;;  %v727_v39 = vpack.c.bf16 %v49_v36, %v48_v35 }
   0xa   :  { %722 = vmatpush3.bf16.msra.mxu0 %v721_v21  ;;  %v757_v38 = vpack.c.bf16 %v63_v33, %v62_v32  ;;  %v81_v40 = vld [vmem:[%s1255_s1 + $0x1b8] sm:$0xff]  ;;  %v32_v41 = vld [vmem:[%s1255_s1 + $0x30] sm:$0xff]  ;;  %v50_v46 = vld [vmem:[%s1255_s1 + $0xc0] sm:$0xff] }
   0xb   :  { %754 = vmatpush3.bf16.msra.mxu1 %v753_v25  ;;  %724 = vmatprep.subr.bf16.mxu0 %v723_v26  ;;  %v33_v42 = vld [vmem:[%s1255_s1 + $0x38] sm:$0xff]  ;;  %v759_v43 = vpack.c.bf16 %v81_v40, %v80_v37  ;;  %v64_v44 = vld [vmem:[%s1255_s1 + $0x130] sm:$0xff]  ;;  %v51_v50 = vld [vmem:[%s1255_s1 + $0xc8] sm:$0xff] }
   0xc   :  { %756 = vmatprep.subr.bf16.mxu1 %v755_v30  ;;  %v65_v45 = vld [vmem:[%s1255_s1 + $0x138] sm:$0xff]  ;;  %v82_v51 = vld [vmem:[%s1255_s1 + $0x1c0] sm:$0xff]  ;;  %v83_v52 = vld [vmem:[%s1255_s1 + $0x1c8] sm:$0xff]  ;;  %v729_v53 = vpack.c.bf16 %v33_v42, %v32_v41  ;;  %v731_v55 = vpack.c.bf16 %v51_v50, %v50_v46 }
   0xd   :  { %v761_v54 = vpack.c.bf16 %v65_v45, %v64_v44  ;;  %v34_v56 = vld [vmem:[%s1255_s1 + $0x40] sm:$0xff]  ;;  %v35_v57 = vld [vmem:[%s1255_s1 + $0x48] sm:$0xff]  ;;  %v763_v59 = vpack.c.bf16 %v83_v52, %v82_v51  ;;  %v52_v61 = vld [vmem:[%s1255_s1 + $0xd0] sm:$0xff] }
   0xe   :  { %726 = vmatpush3.bf16.msra.mxu0 %v725_v34  ;;  %v66_v58 = vld [vmem:[%s1255_s1 + $0x140] sm:$0xff]  ;;  %v67_v60 = vld [vmem:[%s1255_s1 + $0x148] sm:$0xff]  ;;  %v53_v62 = vld [vmem:[%s1255_s1 + $0xd8] sm:$0xff]  ;;  %v733_v3 = vpack.c.bf16 %v35_v57, %v34_v56 }
   0xf   :  { %758 = vmatpush3.bf16.msra.mxu1 %v757_v38  ;;  %728 = vmatprep.subr.bf16.mxu0 %v727_v39  ;;  %v84_v1 = vld [vmem:[%s1255_s1 + $0x1d0] sm:$0xff]  ;;  %v85_v2 = vld [vmem:[%s1255_s1 + $0x1d8] sm:$0xff]  ;;  %v765_v4 = vpack.c.bf16 %v67_v60, %v66_v58  ;;  %v735_v5 = vpack.c.bf16 %v53_v62, %v52_v61  ;;  %v54_v11 = vld [vmem:[%s1255_s1 + $0xe0] sm:$0xff]  ;;  %v857_v61 = vmov 0.0|0.0  }
  0x10   :  { %760 = vmatprep.subr.bf16.mxu1 %v759_v43  ;;  %v36_v6 = vld [vmem:[%s1255_s1 + $0x50] sm:$0xff]  ;;  %v37_v7 = vld [vmem:[%s1255_s1 + $0x58] sm:$0xff]  ;;  %v767_v9 = vpack.c.bf16 %v85_v2, %v84_v1  ;;  %v55_v12 = vld [vmem:[%s1255_s1 + $0xe8] sm:$0xff] }
  0x11   :  { %v68_v8 = vld [vmem:[%s1255_s1 + $0x150] sm:$0xff]  ;;  %v69_v10 = vld [vmem:[%s1255_s1 + $0x158] sm:$0xff]  ;;  %v86_v14 = vld [vmem:[%s1255_s1 + $0x1e0] sm:$0xff]  ;;  %v737_v16 = vpack.c.bf16 %v37_v7, %v36_v6  ;;  %v739_v19 = vpack.c.bf16 %v55_v12, %v54_v11 }
  0x12   :  { %730 = vmatpush3.bf16.msra.mxu0 %v729_v53  ;;  %v87_v15 = vld [vmem:[%s1255_s1 + $0x1e8] sm:$0xff]  ;;  %v38_v17 = vld [vmem:[%s1255_s1 + $0x60] sm:$0xff]  ;;  %v769_v18 = vpack.c.bf16 %v69_v10, %v68_v8  ;;  %v56_v25 = vld [vmem:[%s1255_s1 + $0xf0] sm:$0xff] }
  0x13   :  { %762 = vmatpush3.bf16.msra.mxu1 %v761_v54  ;;  %732 = vmatprep.subr.bf16.mxu0 %v731_v55  ;;  %v39_v20 = vld [vmem:[%s1255_s1 + $0x68] sm:$0xff]  ;;  %v70_v21 = vld [vmem:[%s1255_s1 + $0x160] sm:$0xff]  ;;  %v771_v23 = vpack.c.bf16 %v87_v15, %v86_v14  ;;  %v57_v26 = vld [vmem:[%s1255_s1 + $0xf8] sm:$0xff] }
  0x14   :  { %764 = vmatprep.subr.bf16.mxu1 %v763_v59  ;;  %v24_v22 = vld [vmem:[%s1254_s0] sm:$0xff]  ;;  %v71_v24 = vld [vmem:[%s1255_s1 + $0x168] sm:$0xff]  ;;  %v88_v29 = vld [vmem:[%s1255_s1 + $0x1f0] sm:$0xff]  ;;  %v741_v31 = vpack.c.bf16 %v39_v20, %v38_v17  ;;  %v743_v35 = vpack.c.bf16 %v57_v26, %v56_v25 }
  0x15   :  { %v135_v27 = vrot.slane %v24_v22, %v1046_v13  ;;  %v128_v28 = vcombine.high %v24_v22, %v24_v22  ;;  %v89_v30 = vld [vmem:[%s1255_s1 + $0x1f8] sm:$0xff]  ;;  %v773_v34 = vpack.c.bf16 %v71_v24, %v70_v21  ;;  %v40_v36 = vld [vmem:[%s1255_s1 + $0x70] sm:$0xff]  ;;  %v106_v42 = vld [vmem:[%s1255_s1 + $0x280] sm:$0xff] }
  0x16   :  { %734 = vmatpush3.bf16.msra.mxu0 %v733_v3  ;;  %v41_v37 = vld [vmem:[%s1255_s1 + $0x78] sm:$0xff]  ;;  %v72_v38 = vld [vmem:[%s1255_s1 + $0x170] sm:$0xff]  ;;  %v775_v39 = vpack.c.bf16 %v89_v30, %v88_v29  ;;  %v107_v43 = vld [vmem:[%s1255_s1 + $0x288] sm:$0xff] }
  0x17   :  { %766 = vmatpush3.bf16.msra.mxu1 %v765_v4  ;;  %736 = vmatprep.subr.bf16.mxu0 %v735_v5  ;;  %v143_v32 = vcombine.high %v135_v27, %v135_v27  ;;  %v142_v33 = vrot.slane %v128_v28, %v1046_v13  ;;  %v73_v40 = vld [vmem:[%s1255_s1 + $0x178] sm:$0xff]  ;;  %v745_v44 = vpack.c.bf16 %v41_v37, %v40_v36  ;;  %v90_v47 = vld [vmem:[%s1255_s1 + $0x200] sm:$0xff]  ;;  %v91_v48 = vld [vmem:[%s1255_s1 + $0x208] sm:$0xff] }
  0x18   :  { %768 = vmatprep.subr.bf16.mxu1 %v767_v9  ;;  %v777_v45 = vpack.c.bf16 %v73_v40, %v72_v38  ;;  %v779_v46 = vpack.c.bf16 %v107_v43, %v106_v42  ;;  %v108_v49 = vld [vmem:[%s1255_s1 + $0x290] sm:$0xff]  ;;  %v109_v50 = vld [vmem:[%s1255_s1 + $0x298] sm:$0xff]  ;;  %v781_v52 = vpack.c.bf16 %v91_v48, %v90_v47  ;;  %v122_v54 = vld [vmem:[%s1255_s1 + $0x300] sm:$0xff] }
  0x19   :  { %234 = vmatprep.mubr.f32.mxu0 %v143_v32  ;;  %v144_v41 = vcombine.high %v142_v33, %v142_v33  ;;  %v92_v51 = vld [vmem:[%s1255_s1 + $0x210] sm:$0xff]  ;;  %v93_v53 = vld [vmem:[%s1255_s1 + $0x218] sm:$0xff]  ;;  %v123_v55 = vld [vmem:[%s1255_s1 + $0x308] sm:$0xff]  ;;  %v783_v56 = vpack.c.bf16 %v109_v50, %v108_v49 }
  0x1a   :  { %738 = vmatpush3.bf16.msra.mxu0 %v737_v16  ;;  %v110_v57 = vld [vmem:[%s1255_s1 + $0x2a0] sm:$0xff]  ;;  %v111_v58 = vld [vmem:[%s1255_s1 + $0x2a8] sm:$0xff]  ;;  %v812_v59 = vpack.c.bf16 %v123_v55, %v122_v54  ;;  %v124_v63 = vld [vmem:[%s1255_s1 + $0x310] sm:$0xff] }
  0x1b   :  { %770 = vmatpush3.bf16.msra.mxu1 %v769_v18  ;;  %740 = vmatprep.subr.bf16.mxu0 %v739_v19  ;;  %v25_v60 = vld [vmem:[%s1254_s0 + $0x8] sm:$0x3f]  ;;  %v125_v0 = vld [vmem:[%s1255_s1 + $0x318] sm:$0xff] }
  0x1c   :  { %772 = vmatprep.subr.bf16.mxu1 %v771_v23  ;;  %304 = vmatprep.mubr.f32.mxu1 %v144_v41  ;;  %v1136_v62 = vrot.slane %v25_v60, %v1046_v13 }
  0x1e   :  { %742 = vmatpush3.bf16.msra.mxu0 %v741_v31 }
  0x1f   :  { %774 = vmatpush3.bf16.msra.mxu1 %v773_v34  ;;  %744 = vmatprep.subr.bf16.mxu0 %v743_v35 }
  0x20   :  { %776 = vmatprep.subr.bf16.mxu1 %v775_v39 }
  0x22   :  { %746 = vmatpush3.bf16.msra.mxu0 %v745_v44 }
  0x23   :  { %778 = vmatpush3.bf16.msra.mxu1 %v777_v45  ;;  %780 = vmatprep.subr.bf16.mxu0 %v779_v46 }
  0x24   :  { %811 = vmatprep.subr.bf16.mxu1 %v857_v61 }
  0x25   :  { %11 = vsyncpa [#allocation3], 0  ;;  %235 = vmatmul.mubr.f32.vlgmr.msra.gmra.mrb[0].mxu0 %v135_v27  ;;  %v785_v1 = vpack.c.bf16 %v93_v53, %v92_v51  ;;  %v145_v2 = vcombine.high %v25_v60, %v25_v60  ;;  %v160_v3 = vcombine.high %v1136_v62, %v1136_v62  ;;  %v787_v4 = vpack.c.bf16 %v111_v58, %v110_v57  ;;  %v94_v5 = vld [vmem:[%s1255_s1 + $0x220] sm:$0xff]  ;;  %v95_v6 = vld [vmem:[%s1255_s1 + $0x228] sm:$0xff] }
  0x26   :  { %305 = vmatmul.mubr.f32.vlgmr.msra.gmra.mrb[0].mxu1 %v142_v33  ;;  %782 = vmatpush3.bf16.msra.mxu0 %v781_v52  ;;  %v815_v7 = vpack.c.bf16 %v125_v0, %v124_v63  ;;  %v112_v8 = vld [vmem:[%s1255_s1 + $0x2b0] sm:$0xff]  ;;  %v113_v9 = vld [vmem:[%s1255_s1 + $0x2b8] sm:$0xff]  ;;  %vm858_vm0 = vmmov 0   ;;  %v859_v10 = vmov 0.0   ;;  %v789_v11 = vpack.c.bf16 %v95_v6, %v94_v5  ;;  %v114_v17 = vld [vmem:[%s1255_s1 + $0x2c0] sm:$0xff] }
  0x27   :  { %784 = vmatprep.subr.bf16.mxu0 %v783_v56  ;;  %813 = vmatpush3.bf16.msra.mxu1 %v812_v59  ;;  %v159_v12 = vrot.slane %v145_v2, %v1046_v13  ;;  %v791_v14 = vpack.c.bf16 %v113_v9, %v112_v8  ;;  %v96_v15 = vld [vmem:[%s1255_s1 + $0x230] sm:$0xff]  ;;  %v97_v16 = vld [vmem:[%s1255_s1 + $0x238] sm:$0xff]  ;;  %vm167_vm1 = vcmask 261120   ;;  %v115_v13 = vld [vmem:[%s1255_s1 + $0x2c8] sm:$0xff]  ;;  %vm556_vm3 = vcmask 58368  }
  0x28   :  { %374 = vmatprep.mubr.f32.mxu0 %v160_v3  ;;  %814 = vmatprep.subr.bf16.mxu1 %v857_v61  ;;  %v793_v18 = vpack.c.bf16 %v97_v16, %v96_v15  ;;  %v795_v19 = vpack.c.bf16 %v115_v13, %v114_v17  ;;  %v98_v20 = vld [vmem:[%s1255_s1 + $0x240] sm:$0xff]  ;;  %v99_v21 = vld [vmem:[%s1255_s1 + $0x248] sm:$0xff]  ;;  %v116_v22 = vld [vmem:[%s1255_s1 + $0x2d0] sm:$0xff] }
  0x29   :  { %701 = vmatprep.mubr.msk.f32.mxu1 %vm858_vm0, %v859_v10  ;;  %v117_v23 = vld [vmem:[%s1255_s1 + $0x2d8] sm:$0xff]  ;;  %v797_v24 = vpack.c.bf16 %v99_v21, %v98_v20  ;;  %v100_v26 = vld [vmem:[%s1255_s1 + $0x250] sm:$0xff]  ;;  %v118_v28 = vld [vmem:[%s1255_s1 + $0x2e0] sm:$0xff] }
  0x2a   :  { %786 = vmatpush3.bf16.msra.mxu0 %v785_v1  ;;  %v799_v25 = vpack.c.bf16 %v117_v23, %v116_v22  ;;  %v101_v27 = vld [vmem:[%s1255_s1 + $0x258] sm:$0xff]  ;;  %v119_v29 = vld [vmem:[%s1255_s1 + $0x2e8] sm:$0xff]  ;;  %v102_v32 = vld [vmem:[%s1255_s1 + $0x260] sm:$0xff] }
  0x2b   :  { %788 = vmatprep.subr.bf16.mxu0 %v787_v4  ;;  %816 = vmatpush3.bf16.msra.mxu1 %v815_v7  ;;  %v801_v30 = vpack.c.bf16 %v101_v27, %v100_v26  ;;  %v803_v31 = vpack.c.bf16 %v119_v29, %v118_v28  ;;  %v103_v33 = vld [vmem:[%s1255_s1 + $0x268] sm:$0xff]  ;;  %v120_v34 = vld [vmem:[%s1255_s1 + $0x2f0] sm:$0xff]  ;;  %v121_v35 = vld [vmem:[%s1255_s1 + $0x2f8] sm:$0xff] }
  0x2c   :  { %817 = vmatprep.subr.bf16.mxu1 %v857_v61  ;;  %v805_v36 = vpack.c.bf16 %v103_v33, %v102_v32  ;;  %v807_v37 = vpack.c.bf16 %v121_v35, %v120_v34  ;;  %v104_v38 = vld [vmem:[%s1255_s1 + $0x270] sm:$0xff]  ;;  %v105_v39 = vld [vmem:[%s1255_s1 + $0x278] sm:$0xff]  ;;  %v472_v41 = vld [vmem:[%s1258_s4] sm:$0xff] }
  0x2d   :  { %v809_v40 = vpack.c.bf16 %v105_v39, %v104_v38  ;;  %v473_v42 = vld [vmem:[%s1258_s4 + $0x8] sm:$0xff]  ;;  %v474_v43 = vld [vmem:[%s1258_s4 + $0x10] sm:$0xff]  ;;  %v475_v45 = vld [vmem:[%s1258_s4 + $0x18] sm:$0xff] }
  0x2e   :  { %790 = vmatpush3.bf16.msra.mxu0 %v789_v11  ;;  %702 = vmatmul.mubr.msk.f32.vlgmr.msra.gmra.mrb[2].mxu1 %vm167_vm1, %v159_v12  ;;  %v818_v44 = vpack.c.bf16 %v473_v42, %v472_v41  ;;  %v821_v46 = vpack.c.bf16 %v475_v45, %v474_v43  ;;  %v573_v60 = vld [vmem:[%s1256_s2] ss:$0 sm:$0xff]  ;;  %s860_s2 = smov [#allocation2]  }
  0x2f   :  { %792 = vmatprep.subr.bf16.mxu0 %v791_v14  ;;  %712 = vmatprep.mubr.msk.f32.mxu1 %vm858_vm0, %v859_v10  ;;  %v576_v6 = vld [vmem:[%s1259_s5] ss:$0 sm:$0xff]  ;;  %s564_s18 = sshll.u32 %s860_s2, 4  ;;  %s565_s18 = int_to_ptr.vmem [resolvable:$true] %s564_s18 }
  0x30   :  { %819 = vmatpush3.bf16.msra.mxu1 %v818_v44  ;;  %p837_p1 = scmp.lt.s32.totalorder %s565_s18, %s565_s18 }
  0x31   :  { %820 = vmatprep.subr.bf16.mxu1 %v857_v61  ;;  %v574_v61 = vld [vmem:[%s1257_s3] ss:$0 sm:$0xff]  ;;  %s832_s3 = scalar_lea.vmem %s565_s18, 32 }
  0x32   :  { %794 = vmatpush3.bf16.msra.mxu0 %v793_v18  ;;  %p833_p0 = scmp.ne.s32.totalorder %s565_s18, %s832_s3  ;;  %p838_p2 = scmp.lt.s32.totalorder %s832_s3, %s832_s3 }
  0x33   :  { %796 = vmatprep.subr.bf16.mxu0 %v795_v19 }
  0x34   :  { %822 = vmatpush3.bf16.msra.mxu1 %v821_v46  ;;  %p839_p3 = por %p838_p2, %p837_p1 }
  0x36   :  { %798 = vmatpush3.bf16.msra.mxu0 %v797_v24  ;;  %p840_p4 = pnand %p839_p3, %p833_p0 }
  0x37   :  { %800 = vmatprep.subr.bf16.mxu0 %v799_v25 }
  0x3a   :  { %802 = vmatpush3.bf16.msra.mxu0 %v801_v30 }
  0x3b   :  { %804 = vmatprep.subr.bf16.mxu0 %v803_v31 }
  0x3e   :  { %806 = vmatpush3.bf16.msra.mxu0 %v805_v36 }
  0x3f   :  { %808 = vmatprep.subr.bf16.mxu0 %v807_v37 }
  0x42   :  { %810 = vmatpush3.bf16.msra.mxu0 %v809_v40 }
  0x45   :  { %375 = vmatmul.mubr.f32.vlgmr.msra.gmra.mrb[2].mxu0 %v1136_v62 }
  0xf8   :  { %v610_v47 = vpop.f32.mrb[0].mxu0 }
  0xf9   :  { %v645_v48 = vpop.f32.mrb[0].mxu1  ;;  %v611_v49 = vpop.f32.mrb[1].mxu0 }
  0xfa   :  { %v612_v50 = vadd.f32 %v611_v49, %v610_v47  ;;  %v646_v51 = vpop.f32.mrb[1].mxu1 }
  0xfb   :  { %v647_v52 = vadd.f32 %v646_v51, %v645_v48 }
  0xfd   :  { %v307_v53 = vadd.f32 %v647_v52, %v612_v50 }
 0x101   :  { %v446_v54 = vpop.f32.mrb[2].mxu1 }
 0x102   :  { %v703_v55 = vpop.f32.mrb[3].mxu1 }
 0x118   :  { %v680_v56 = vpop.f32.mrb[2].mxu0 }
 0x119   :  { %v681_v57 = vpop.f32.mrb[3].mxu0 }
 0x11a   :  { %v682_v58 = vadd.f32 %v681_v57, %v680_v56 }
 0x11c   :  { %v377_v59 = vadd.f32 %v682_v58, %v307_v53 }
 0x11e   :  { %v447_v62 = vadd.f32 %v446_v54, %v377_v59 }
 0x120   :  { %v457_v63 = vmul.f32 %v573_v60, %v447_v62 }
 0x122   :  { %v465_v0 = vadd.f32 %v574_v61, %v457_v63 }
 0x124   :  { %v467_v1 = vmin.f32 %v465_v0, 0.0  ;;  %vm466_vm2 = vcmp.gt.f32.partialorder %v465_v0, 0.0 }
 0x126   :  { %v468_v2 = vmul.f32 1.442695, %v467_v1 }
 0x128   :  { %830 = vpow2.f32 %v468_v2 }
 0x132   :  { %v831_v3 = vpop.eup %830 }
 0x133   :  { %v575_v4 = vadd.f32 -1.0, %v831_v3 }
 0x135   :  { %v471_v5 = vsel %vm466_vm2, %v465_v0, %v575_v4 }
 0x136   :  { %713 = vmatmul.mubr.msk.f32.vlgmr.msra.gmra.mrb[4].mxu1 %vm167_vm1, %v471_v5 }
 0x209   :  { %v552_v7 = vpop.f32.mrb[4].mxu1 }
 0x20a   :  { %v553_v8 = vadd.f32 %v576_v6, %v552_v7  ;;  %v714_v9 = vpop.f32.mrb[5].mxu1 }
 0x20c   :  { %557 = vst.msk [vmem:[#allocation2] sm:$0x3] %vm556_vm3, %v553_v8 }
 0x20d   :  { %843 = shalt.err (!%p840_p4)
}
 0x20e   :  { %s844_s21 = scalar_lea.hbm %s1260_s6, 32 }
 0x20f   :  { %p845_p5 = scmp.ne.s32.totalorder %s1260_s6, %s844_s21  ;;  %p848_p6 = scmp.lt.u32.totalorder %s844_s21, %s1260_s6 }
 0x211   :  { %p850_p7 = pnand %p848_p6, %p845_p5 }
 0x213   :  { %853 = shalt.err (!%p850_p7)
}
 0x214   :  { %567 = dma.vmem_to_hbm [thread:$0]  %s565_s18, 32, %s1260_s6, [#allocation3]  }
 0x215   :  { %854 = dma.done.wait [#allocation3], 32  }
 0x216   :  { %855 = vsyncadd [#allocation3], 4294967264 }
 0x217   :  { %571 = vsyncpa [#allocation3], 1 }

// kernel: forward.3
= control target key start
LH: loop header
LB: loop body
LE: loop exit
PB: predicated region body
PF: predicated region fallthrough
CT: control target
= control target key end

     0   :  { %s2049_s25 = smov 0   ;;  %s2350_s0 = inlined_call_operand.vmem [shape: f32[2,12,200], index: 0, kind: input, shape index: {}]   ;;  %s2351_s1 = inlined_call_operand.vmem [shape: f32[8,12], index: 1, kind: input, shape index: {}]   ;;  %s2352_s2 = inlined_call_operand.vmem [shape: f32[8,1], index: 2, kind: input, shape index: {}]   ;;  %s2353_s3 = inlined_call_operand.vmem [shape: f32[8,1], index: 3, kind: input, shape index: {}]   ;;  %s2354_s4 = inlined_call_operand.vmem [shape: f32[200,102], index: 4, kind: input, shape index: {}]   ;;  %s2355_s5 = inlined_call_operand.vmem [shape: f32[3,16,8], index: 5, kind: input, shape index: {}]   ;;  %s2356_s6 = inlined_call_operand.vmem [shape: f32[16,1], index: 6, kind: input, shape index: {}]   ;;  %s2357_s7 = inlined_call_operand.vmem [shape: f32[16,1], index: 7, kind: input, shape index: {}]   ;;  %s2358_s8 = inlined_call_operand.vmem [shape: f32[100,52], index: 8, kind: input, shape index: {}]   ;;  %s2359_s9 = inlined_call_operand.vmem [shape: f32[3,32,16], index: 9, kind: input, shape index: {}]   ;;  %s2360_s10 = inlined_call_operand.vmem [shape: f32[32,1], index: 10, kind: input, shape index: {}]   ;;  %s2361_s11 = inlined_call_operand.vmem [shape: f32[32,1], index: 11, kind: input, shape index: {}]   ;;  %s2362_s12 = inlined_call_operand.vmem [shape: f32[50,25], index: 12, kind: input, shape index: {}]   ;;  %s2363_s13 = inlined_call_operand.vmem [shape: f32[2,32,25], index: 13, kind: output, shape index: {}]  }
   0x1 LB: > { %s1623_s26 = sadd.s32 4294967295, %s1971_s25   ;;  %p1627_p0 = scmp.ge.s32.totalorder %s1971_s25, 1  ;;  %s1971_s25 = sphi %s2049_s25, %s23_s25  }
   0x2   : > { %p387_p1 = scmp.lt.s32.totalorder %s1971_s25, 3 }
   0x4   : > { %p388_p2 = pnand %p1627_p0, %p387_p1 }
   0x5   : > { %p431_p3 = scmp.lt.s32.totalorder (!%p388_p2), %s1623_s26, 1  ;;  %v1973_v0 = vmov (!%p388_p2), 0.0   ;;  %v528_v1 = vld [vmem:[%s2352_s2] sm:$0xff] (!%p388_p2)  ;;  %vm450_vm0 = vcmask (!%p388_p2), 1043456   ;;  %v1974_v2 = vmov (!%p388_p2), 0   ;;  %v1975_v3 = vmov (!%p388_p2), 0.0|0.0  }
   0x6   : > { %391 = sbr.rel (%p388_p2) target bundleno = 1648 (0x670), region = 72  ;;  %521 = vmatprep.mubr.f32.mxu0 (!%p388_p2), %v1973_v0  ;;  %1937 = vset.pattern.permute.xlu0 (!%p388_p2), %v1974_v2  ;;  %v556_v4 = vld [vmem:[%s2354_s4] sm:$0xff] (!%p388_p2)  ;;  %v557_v5 = vld [vmem:[%s2354_s4 + $0x8] sm:$0xff] (!%p388_p2)  ;;  %v558_v6 = vld [vmem:[%s2354_s4 + $0x10] sm:$0xff] (!%p388_p2)  ;;  %vm1976_vm1 = vmmov (!%p388_p2), 1   ;;  %vm446_vm3 = vcmask (!%p388_p2), 97280  }
   0x7   : > { %1827 = vmatprep.subr.bf16.mxu1 (!%p388_p2), %v1975_v3  ;;  %531 = vperm.xlu0 (!%p388_p2), %1937, %v528_v1   ;;  %v559_v7 = vld [vmem:[%s2354_s4 + $0x18] sm:$0xff] (!%p388_p2)  ;;  %v536_v8 = vld [vmem:[%s2353_s3] sm:$0xff] (!%p388_p2)  ;;  %v1828_v9 = vpack.c.bf16 (!%p388_p2), %v557_v5, %v556_v4  ;;  %vm1822_vm2 = vmpackc.low (!%p388_p2), %vm450_vm0, %vm1976_vm1  ;;  %vm581_vm4 = vcmask (!%p388_p2), 588800   ;;  %vm682_vm7 = vcmask (!%p388_p2), 64512   ;;  %s1977_s19 = smov (!%p388_p2), 127   ;;  %s1978_s21 = smov (!%p388_p2), 126  }
   0x8   : > { %1938 = vset.pattern.permute.xlu1 (!%p388_p2), %v1974_v2  ;;  %v1831_v13 = vpack.c.bf16 (!%p388_p2), %v559_v7, %v558_v6  ;;  %v560_v16 = vld [vmem:[%s2354_s4 + $0x20] sm:$0xff] (!%p388_p2)  ;;  %v561_v17 = vld [vmem:[%s2354_s4 + $0x28] sm:$0xff] (!%p388_p2)  ;;  %v562_v22 = vld [vmem:[%s2354_s4 + $0x30] sm:$0xff] (!%p388_p2)  ;;  %vm967_vm8 = vcmask (!%p388_p2), 818176   ;;  %vm1087_vm11 = vcmask (!%p388_p2), 130048   ;;  %vm1474_vm12 = vcmask (!%p388_p2), 1041408  }
   0x9   : > { %1829 = vmatpush1.bf16.msra.mxu1 (!%p388_p2), %v1828_v9  ;;  %v661_v19 = vld [vmem:[%s2356_s6] sm:$0xff] (!%p388_p2)  ;;  %v1834_v21 = vpack.c.bf16 (!%p388_p2), %v561_v17, %v560_v16  ;;  %v563_v23 = vld [vmem:[%s2354_s4 + $0x38] sm:$0xff] (!%p388_p2)  ;;  %v565_v27 = vld [vmem:[%s2354_s4 + $0x48] sm:$0xff] (!%p388_p2)  ;;  %vm1461_vm13 = vcmask (!%p388_p2), 408576  }
   0xa   : > { %1830 = vmatprep.subr.bf16.mxu1 (!%p388_p2), %v1975_v3  ;;  %v441_v20 = vld [vmem:[%s2351_s1] sm:$0xff] (!%p388_p2)  ;;  %v1837_v25 = vpack.c.bf16 (!%p388_p2), %v563_v23, %v562_v22  ;;  %v566_v29 = vld [vmem:[%s2354_s4 + $0x50] sm:$0xff] (!%p388_p2)  ;;  %v567_v30 = vld [vmem:[%s2354_s4 + $0x58] sm:$0xff] (!%p388_p2) }
   0xb   : > { %539 = vperm.xlu0 (!%p388_p2), %1937, %v536_v8   ;;  %v663_v24 = vld [vmem:[%s2357_s7] sm:$0xff] (!%p388_p2)  ;;  %v1843_v31 = vpack.c.bf16 (!%p388_p2), %v567_v30, %v566_v29  ;;  %v569_v33 = vld [vmem:[%s2354_s4 + $0x68] sm:$0xff] (!%p388_p2)  ;;  %v570_v35 = vld [vmem:[%s2354_s4 + $0x70] sm:$0xff] (!%p388_p2) }
   0xc   : > { %v564_v26 = vld [vmem:[%s2354_s4 + $0x40] sm:$0xff] (!%p388_p2)  ;;  %v571_v36 = vld [vmem:[%s2354_s4 + $0x78] sm:$0xff] (!%p388_p2)  ;;  %v573_v39 = vld [vmem:[%s2354_s4 + $0x88] sm:$0xff] (!%p388_p2) }
   0xd   : > { %s2365_s26 = smov (!%p431_p3, %s1623_s26), 1  ;;  %1832 = vmatpush1.bf16.msra.mxu1 %v1831_v13  ;;  %v1840_v28 = vpack.c.bf16 %v565_v27, %v564_v26  ;;  %v568_v32 = vld [vmem:[%s2354_s4 + $0x60] sm:$0xff]  ;;  %v1849_v37 = vpack.c.bf16 %v571_v36, %v570_v35  ;;  %v574_v41 = vld [vmem:[%s2354_s4 + $0x90] sm:$0xff]  ;;  %v575_v42 = vld [vmem:[%s2354_s4 + $0x98] sm:$0xff] }
   0xe   : > { %s1672_s20 = sshll.u32 %s2365_s26, 5  ;;  %1833 = vmatprep.subr.bf16.mxu1 %v1975_v3  ;;  %v1846_v34 = vpack.c.bf16 %v569_v33, %v568_v32  ;;  %v572_v38 = vld [vmem:[%s2354_s4 + $0x80] sm:$0xff]  ;;  %v1855_v44 = vpack.c.bf16 %v575_v42, %v574_v41  ;;  %v577_v45 = vld [vmem:[%s2354_s4 + $0xa8] sm:$0xff]  ;;  %v578_v47 = vld [vmem:[%s2354_s4 + $0xb0] sm:$0xff] }
   0xf   : > { %s435_s27 = scalar_lea.vmem %s2350_s0, %s1672_s20  ;;  %933 = vperm.xlu0 %1937, %v661_v19   ;;  %v1852_v40 = vpack.c.bf16 %v573_v39, %v572_v38  ;;  %v576_v43 = vld [vmem:[%s2354_s4 + $0xa0] sm:$0xff]  ;;  %v579_v48 = vld [vmem:[%s2354_s4 + $0xb8] sm:$0xff]  ;;  %v657_v5 = vld [vmem:[%s2355_s5 + $0x10] sm:$0xff]  ;;  %s440_s28 = scalar_lea.vmem %s2363_s13, %s1672_s20 }
  0x10   : > { %v443_v10 = vld [vmem:[%s435_s27 + $0x8] sm:$0xff]  ;;  %v445_v11 = vld [vmem:[%s435_s27 + $0x18] sm:$0xf]  ;;  %v442_v12 = vld [vmem:[%s435_s27] sm:$0xff]  ;;  %v1858_v46 = vpack.c.bf16 %v577_v45, %v576_v43  ;;  %v1861_v49 = vpack.c.bf16 %v579_v48, %v578_v47 }
  0x11   : > { %v1821_v14 = vpack.c.bf16 %v445_v11, %v443_v10  ;;  %v444_v15 = vld [vmem:[%s435_s27 + $0x10] sm:$0xf]  ;;  %1835 = vmatpush1.bf16.msra.mxu1 %v1834_v21  ;;  %v580_v50 = vld [vmem:[%s2354_s4 + $0xc0] sm:$0xff]  ;;  %v662_v8 = vld [vmem:[%s2356_s6 + $0x8] sm:$0xff] }
  0x12   : > { %v1824_v18 = vpack.c.bf16 %v444_v15, %v442_v12  ;;  %1836 = vmatprep.subr.bf16.mxu1 %v1975_v3  ;;  %v664_v9 = vld [vmem:[%s2357_s7 + $0x8] sm:$0xff]  ;;  %v658_v11 = vld [vmem:[%s2355_s5 + $0x18] sm:$0xff]  ;;  %v655_v12 = vld [vmem:[%s2355_s5] sm:$0xff] }
  0x13   : > { %1823 = vmatprep.subr.msk.bf16.mxu0 %vm1822_vm2, %v1821_v14  ;;  %945 = vperm.xlu0 %1937, %v663_v24   ;;  %v665_v14 = vld [vmem:[%s2358_s8] sm:$0xff]  ;;  %v666_v15 = vld [vmem:[%s2358_s8 + $0x8] sm:$0xff]  ;;  %v668_v21 = vld [vmem:[%s2358_s8 + $0x18] sm:$0xff] }
  0x14   : > { %1826 = vmatpush1.bf16.msk.msra.mxu0 %vm1822_vm2, %v1824_v18  ;;  %v656_v16 = vld [vmem:[%s2355_s5 + $0x8] sm:$0xff]  ;;  %v659_v17 = vld [vmem:[%s2355_s5 + $0x20] sm:$0xff]  ;;  %v1863_v18 = vpack.c.bf16 %v666_v15, %v665_v14  ;;  %v671_v26 = vld [vmem:[%s2358_s8 + $0x30] sm:$0xff]  ;;  %vm1563_vm2 = vcmask 203776  }
  0x15   : > { %1838 = vmatpush1.bf16.msra.mxu1 %v1837_v25  ;;  %v660_v19 = vld [vmem:[%s2355_s5 + $0x28] sm:$0xff]  ;;  %v669_v23 = vld [vmem:[%s2358_s8 + $0x20] sm:$0xff]  ;;  %v672_v27 = vld [vmem:[%s2358_s8 + $0x38] sm:$0xff] }
  0x16   : > { %1839 = vmatprep.subr.bf16.mxu1 %v1975_v3  ;;  %v670_v24 = vld [vmem:[%s2358_s8 + $0x28] sm:$0xff]  ;;  %v673_v29 = vld [vmem:[%s2358_s8 + $0x40] sm:$0xff]  ;;  %v675_v32 = vld [vmem:[%s2358_s8 + $0x50] sm:$0xff] }
  0x17   : > { %1634 = vmatmul.mubr.msk.f32.vlgmr.msra.gmra.mrb[0].mxu0 %vm446_vm3, %v441_v20  ;;  %v667_v20 = vld [vmem:[%s2358_s8 + $0x10] sm:$0xff]  ;;  %v1871_v25 = vpack.c.bf16 %v670_v24, %v669_v23  ;;  %v674_v30 = vld [vmem:[%s2358_s8 + $0x48] sm:$0xff]  ;;  %v676_v33 = vld [vmem:[%s2358_s8 + $0x58] sm:$0xff] }
  0x18   : > { %1729 = vmatprep.mubr.msk.f32.mxu0 %vm682_vm7, %v657_v5  ;;  %v1867_v22 = vpack.c.bf16 %v668_v21, %v667_v20  ;;  %v677_v35 = vld [vmem:[%s2358_s8 + $0x60] sm:$0xf]  ;;  %v1059_v15 = vld [vmem:[%s2359_s9 + $0x38] sm:$0xff]  ;;  %v1061_v21 = vld [vmem:[%s2359_s9 + $0x48] sm:$0xff] }
  0x19   : > { %1841 = vmatpush1.bf16.msra.mxu1 %v1840_v28  ;;  %v1875_v28 = vpack.c.bf16 %v672_v27, %v671_v26  ;;  %v1060_v20 = vld [vmem:[%s2359_s9 + $0x40] sm:$0xff]  ;;  %v1063_v23 = vld [vmem:[%s2359_s9 + $0x58] sm:$0xff]  ;;  %v1074_v27 = vld [vmem:[%s2362_s12 + $0x10] sm:$0xff] }
  0x1a   : > { %1842 = vmatprep.subr.bf16.mxu1 %v1975_v3  ;;  %v1072_v24 = vld [vmem:[%s2362_s12] sm:$0xff] }
  0x1d   : > { %1844 = vmatpush1.bf16.msra.mxu1 %v1843_v31  ;;  %v1879_v31 = vpack.c.bf16 %v674_v30, %v673_v29  ;;  %v1076_v30 = vld [vmem:[%s2362_s12 + $0x20] sm:$0xff] }
  0x1e   : > { %1845 = vmatprep.subr.bf16.mxu1 %v1975_v3 }
  0x21   : > { %1847 = vmatpush1.bf16.msra.mxu1 %v1846_v34  ;;  %v1883_v34 = vpack.c.bf16 %v676_v33, %v675_v32  ;;  %v1078_v33 = vld [vmem:[%s2362_s12 + $0x30] sm:$0x3] }
  0x22   : > { %1848 = vmatprep.subr.bf16.mxu1 %v1975_v3 }
  0x25   : > { %1850 = vmatpush1.bf16.msra.mxu1 %v1849_v37 }
  0x26   : > { %1851 = vmatprep.subr.bf16.mxu1 %v1975_v3 }
  0x29   : > { %1853 = vmatpush1.bf16.msra.mxu1 %v1852_v40 }
  0x2a   : > { %1854 = vmatprep.subr.bf16.mxu1 %v1975_v3 }
  0x2d   : > { %1856 = vmatpush1.bf16.msra.mxu1 %v1855_v44 }
  0x2e   : > { %1857 = vmatprep.subr.bf16.mxu1 %v1975_v3 }
  0x31   : > { %1859 = vmatpush1.bf16.msra.mxu1 %v1858_v46 }
  0x32   : > { %1860 = vmatprep.subr.bf16.mxu1 %v1975_v3 }
  0x35   : > { %1862 = vmatpush1.bf16.msra.mxu1 %v1861_v49 }
  0x36   : > { %633 = vmatprep.subr.mxu1 %v1973_v0 }
  0x39   : > { %634 = vmatpush1.msra.mxu1 %v580_v50 }
  0x86   : > { %v532_v51 = vpop.permute.xlu0 %531 }
  0x8a   : > { %v540_v55 = vpop.permute.xlu0 %539 }
  0x8e   : > { %v934_v37 = vpop.permute.xlu0 %933 }
  0x92   : > { %v946_v43 = vpop.permute.xlu0 %945 }
  0xea   : > { %v523_v52 = vpop.f32.mrb[0].mxu0 }
  0xeb   : > { %v534_v53 = vmul.f32 %v532_v51, %v523_v52  ;;  %v525_v54 = vpop.f32.mrb[1].mxu0 }
  0xec   : > { %v535_v56 = vmul.f32 %v532_v51, %v525_v54 }
  0xed   : > { %v542_v57 = vadd.f32 %v540_v55, %v534_v53 }
  0xee   : > { %v543_v58 = vadd.f32 %v540_v55, %v535_v56  ;;  %v1056_v56 = vld [vmem:[%s2359_s9 + $0x20] sm:$0xff] }
  0xef   : > { %v546_v59 = vmin.f32 %v542_v57, 0.0  ;;  %vm544_vm6 = vcmp.gt.f32.partialorder %v542_v57, 0.0 }
  0xf0   : > { %v547_v60 = vmin.f32 %v543_v58, 0.0  ;;  %vm545_vm5 = vcmp.gt.f32.partialorder %v543_v58, 0.0 }
  0xf1   : > { %v548_v61 = vmul.f32 1.442695, %v546_v59 }
  0xf2   : > { %v550_v62 = vmul.f32 1.442695, %v547_v60 }
  0xf3   : > { %1949 = vpow2.f32 %v548_v61  ;;  %v1065_v61 = vld [vmem:[%s2360_s10 + $0x8] sm:$0xff] }
  0xf4   : > { %1951 = vpow2.f32 %v550_v62  ;;  %v1064_v62 = vld [vmem:[%s2360_s10] sm:$0xff] }
  0xfd   : > { %v1950_v63 = vpop.eup %1949 }
  0xfe   : > { %v1952_v0 = vpop.eup %1951  ;;  %v1635_v1 = vadd.f32 -1.0, %v1950_v63  ;;  %v1069_v63 = vld [vmem:[%s2361_s11 + $0x8] sm:$0xff] }
  0xff   : > { %v1636_v2 = vadd.f32 -1.0, %v1952_v0  ;;  %v1068_v0 = vld [vmem:[%s2361_s11] sm:$0xff] }
 0x100   : > { %v554_v4 = vsel %vm544_vm6, %v542_v57, %v1635_v1  ;;  %v1067_v1 = vld [vmem:[%s2360_s10 + $0x18] sm:$0xff] }
 0x101   : > { %v555_v3 = vsel %vm545_vm5, %v543_v58, %v1636_v2  ;;  %v1066_v2 = vld [vmem:[%s2360_s10 + $0x10] sm:$0xff] }
 0x102   : > { %1637 = vmatprep.mubr.msk.f32.mxu1 %vm581_vm4, %v555_v3  ;;  %v1071_v3 = vld [vmem:[%s2361_s11 + $0x18] sm:$0xff] }
 0x103   : > { %650 = vmatmul.mubr.f32.vlgmr.msra.gmra.mrb[0].mxu1 %v554_v4  ;;  %v1070_v4 = vld [vmem:[%s2361_s11 + $0x10] sm:$0xff] }
 0x1d6   : > { %v651_v6 = vpop.f32.mrb[0].mxu1 }
 0x1d7   : > { %679 = vrot.lane.b32.xlu1 %v651_v6, %s1977_s19  ;;  %v653_v7 = vpop.f32.mrb[1].mxu1 }
 0x1db   : > { %845 = vrot.lane.b32.xlu1 %v651_v6, %s1978_s21 }
 0x1df   : > { %938 = vperm.xlu1 %1938, %v662_v8  }
 0x1e3   : > { %950 = vperm.xlu1 %1938, %v664_v9  }
 0x249   : > { %v680_v10 = vpop.permute.xlu1 %679 }
 0x24a   : > { %1727 = vmatprep.subr.mxu0 %v680_v10 }
 0x24b   : > { %1728 = vmatpush3.msra.mxu0 %v680_v10 }
 0x24c   : > { %1730 = vmatmul.mubr.msk.f32.vlgmr.msra.gmra.mrb[2].mxu0 %vm682_vm7, %v658_v11  ;;  %1732 = vmatprep.subr.mxu0 %v651_v6 }
 0x24d   : > { %1733 = vmatpush3.msra.mxu0 %v651_v6  ;;  %v846_v13 = vpop.permute.xlu1 %845  ;;  %1734 = vmatprep.mubr.msk.f32.mxu0 %vm682_vm7, %v655_v12  ;;  %v1057_v12 = vld [vmem:[%s2359_s9 + $0x28] sm:$0xff] }
 0x24e   : > { %1737 = vmatprep.subr.mxu0 %v846_v13 }
 0x254   : > { %1735 = vmatmul.mubr.msk.f32.vlgmr.msra.gmra.mrb[2].mxu0 %vm682_vm7, %v656_v16  ;;  %v1052_v16 = vld [vmem:[%s2359_s9] sm:$0xff] }
 0x255   : > { %1738 = vmatpush3.msra.mxu0 %v846_v13  ;;  %1739 = vmatprep.mubr.msk.f32.mxu0 %vm682_vm7, %v659_v17  ;;  %v1058_v13 = vld [vmem:[%s2359_s9 + $0x30] sm:$0xff]  ;;  %v1053_v17 = vld [vmem:[%s2359_s9 + $0x8] sm:$0xff] }
 0x256   : > { %1864 = vmatprep.subr.bf16.mxu0 %v1863_v18 }
 0x25c   : > { %1740 = vmatmul.mubr.msk.f32.vlgmr.msra.gmra.mrb[2].mxu0 %vm682_vm7, %v660_v19  ;;  %v1055_v19 = vld [vmem:[%s2359_s9 + $0x18] sm:$0xff] }
 0x25d   : > { %1866 = vmatpush3.bf16.msra.mxu0 %v1863_v18  ;;  %v1054_v18 = vld [vmem:[%s2359_s9 + $0x10] sm:$0xff] }
 0x25e   : > { %1868 = vmatprep.subr.bf16.mxu0 %v1867_v22  ;;  %v939_v36 = vpop.permute.xlu1 %938 }
 0x261   : > { %1870 = vmatpush3.bf16.msra.mxu0 %v1867_v22  ;;  %v1062_v22 = vld [vmem:[%s2359_s9 + $0x50] sm:$0xff] }
 0x262   : > { %1872 = vmatprep.subr.bf16.mxu0 %v1871_v25  ;;  %v951_v42 = vpop.permute.xlu1 %950 }
 0x265   : > { %1874 = vmatpush3.bf16.msra.mxu0 %v1871_v25  ;;  %v1073_v25 = vld [vmem:[%s2362_s12 + $0x8] sm:$0xff] }
 0x266   : > { %1876 = vmatprep.subr.bf16.mxu0 %v1875_v28  ;;  %v1899_v26 = vpack.c.bf16 %v1073_v25, %v1072_v24 }
 0x268   : > { %1900 = vmatprep.subr.bf16.mxu1 %v1899_v26 }
 0x269   : > { %1878 = vmatpush3.bf16.msra.mxu0 %v1875_v28  ;;  %1902 = vmatpush3.bf16.msra.mxu1 %v1899_v26  ;;  %v1075_v28 = vld [vmem:[%s2362_s12 + $0x18] sm:$0xff] }
 0x26a   : > { %1880 = vmatprep.subr.bf16.mxu0 %v1879_v31  ;;  %v1903_v29 = vpack.c.bf16 %v1075_v28, %v1074_v27 }
 0x26c   : > { %1904 = vmatprep.subr.bf16.mxu1 %v1903_v29 }
 0x26d   : > { %1882 = vmatpush3.bf16.msra.mxu0 %v1879_v31  ;;  %v1077_v31 = vld [vmem:[%s2362_s12 + $0x28] sm:$0xff]  ;;  %1906 = vmatpush3.bf16.msra.mxu1 %v1903_v29 }
 0x26e   : > { %1884 = vmatprep.subr.bf16.mxu0 %v1883_v34  ;;  %v1907_v32 = vpack.c.bf16 %v1077_v31, %v1076_v30 }
 0x270   : > { %1908 = vmatprep.subr.bf16.mxu1 %v1907_v32 }
 0x271   : > { %1886 = vmatpush3.bf16.msra.mxu0 %v1883_v34  ;;  %1910 = vmatpush3.bf16.msra.mxu1 %v1907_v32 }
 0x272   : > { %1766 = vmatprep.subr.msk.mxu0 %vm450_vm0, %v677_v35  ;;  %1813 = vmatprep.subr.msk.mxu1 %vm1474_vm12, %v1078_v33 }
 0x275   : > { %1767 = vmatpush3.msk.msra.mxu0 %vm450_vm0, %v677_v35  ;;  %1814 = vmatpush3.msk.msra.mxu1 %vm1474_vm12, %v1078_v33 }
 0x32f   : > { %v1741_v38 = vpop.f32.mrb[2].mxu0 }
 0x330   : > { %v942_v39 = vmul.f32 %v1741_v38, %v939_v36  ;;  %v920_v40 = vpop.f32.mrb[3].mxu0 }
 0x331   : > { %v941_v41 = vmul.f32 %v934_v37, %v920_v40 }
 0x332   : > { %v954_v44 = vadd.f32 %v951_v42, %v942_v39 }
 0x333   : > { %v953_v45 = vadd.f32 %v946_v43, %v941_v41 }
 0x334   : > { %v958_v46 = vmin.f32 %v954_v44, 0.0  ;;  %vm956_vm10 = vcmp.gt.f32.partialorder %v954_v44, 0.0 }
 0x335   : > { %v957_v47 = vmin.f32 %v953_v45, 0.0  ;;  %vm955_vm9 = vcmp.gt.f32.partialorder %v953_v45, 0.0 }
 0x336   : > { %v961_v48 = vmul.f32 1.442695, %v958_v46 }
 0x337   : > { %v959_v49 = vmul.f32 1.442695, %v957_v47 }
 0x338   : > { %1953 = vpow2.f32 %v961_v48 }
 0x339   : > { %1955 = vpow2.f32 %v959_v49 }
 0x342   : > { %v1954_v50 = vpop.eup %1953 }
 0x343   : > { %v1956_v51 = vpop.eup %1955  ;;  %v1645_v52 = vadd.f32 -1.0, %v1954_v50 }
 0x344   : > { %v1644_v53 = vadd.f32 -1.0, %v1956_v51 }
 0x345   : > { %v966_v55 = vsel %vm956_vm10, %v954_v44, %v1645_v52 }
 0x346   : > { %v965_v54 = vsel %vm955_vm9, %v953_v45, %v1644_v53 }
 0x347   : > { %1768 = vmatprep.mubr.msk.f32.mxu0 %vm967_vm8, %v965_v54 }
 0x348   : > { %1769 = vmatmul.mubr.msk.f32.vlgmr.msra.gmra.mrb[4].mxu0 %vm967_vm8, %v966_v55 }
 0x349   : > { %1775 = vmatprep.mubr.msk.f32.mxu0 %vm1087_vm11, %v1056_v56 }
 0x41b   : > { %v1770_v57 = vpop.f32.mrb[4].mxu0 }
 0x41c   : > { %v1043_v58 = vpop.f32.mrb[5].mxu0 }
 0x41d   : > { %v1944_v59 = vpack.i.bf16 %v1770_v57, %v1043_v58  ;;  %v1891_v60 = vpack.c.bf16 %v1770_v57, %v1043_v58 }
 0x41f   : > { %1945 = vrot.lane.b32.xlu1 %v1944_v59, %s1978_s21  ;;  %1940 = vrot.lane.b32.xlu0 %v1944_v59, %s1977_s19 }
 0x423   : > { %1396 = vperm.xlu1 %1938, %v1065_v61   ;;  %1391 = vperm.xlu0 %1937, %v1064_v62  }
 0x427   : > { %1420 = vperm.xlu1 %1938, %v1069_v63   ;;  %1415 = vperm.xlu0 %1937, %v1068_v0  }
 0x42b   : > { %1406 = vperm.xlu1 %1938, %v1067_v1   ;;  %1401 = vperm.xlu0 %1937, %v1066_v2  }
 0x42f   : > { %1430 = vperm.xlu1 %1938, %v1071_v3   ;;  %1425 = vperm.xlu0 %1937, %v1070_v4  }
 0x491   : > { %v1941_v5 = vpop.permute.xlu0 %1940  ;;  %v1946_v8 = vpop.permute.xlu1 %1945 }
 0x492   : > { %v1943_v6 = vunpack.i.h.bf16 %v1941_v5  ;;  %v1942_v7 = vunpack.i.l.bf16 %v1941_v5  ;;  %v1948_v10 = vunpack.i.h.bf16 %v1946_v8  ;;  %v1947_v11 = vunpack.i.l.bf16 %v1946_v8 }
 0x494   : > { %v1887_v9 = vpack.c.bf16 %v1943_v6, %v1942_v7  ;;  %v1895_v14 = vpack.c.bf16 %v1948_v10, %v1947_v11 }
 0x496   : > { %1888 = vmatprep.subr.bf16.mxu0 %v1887_v9 }
 0x497   : > { %1890 = vmatpush3.bf16.msra.mxu0 %v1887_v9 }
 0x498   : > { %1892 = vmatprep.subr.bf16.mxu0 %v1891_v60 }
 0x49a   : > { %1776 = vmatmul.mubr.msk.f32.vlgmr.msra.gmra.mrb[6].mxu0 %vm1087_vm11, %v1057_v12 }
 0x49b   : > { %1894 = vmatpush3.bf16.msra.mxu0 %v1891_v60  ;;  %1778 = vmatprep.mubr.msk.f32.mxu0 %vm1087_vm11, %v1058_v13 }
 0x49c   : > { %1896 = vmatprep.subr.bf16.mxu0 %v1895_v14 }
 0x49e   : > { %1779 = vmatmul.mubr.msk.f32.gmra.mrb[8].mxu0 %vm1087_vm11, %v1059_v15 }
 0x49f   : > { %1785 = vmatprep.mubr.msk.f32.mxu0 %vm1087_vm11, %v1052_v16 }
 0x4a2   : > { %1786 = vmatmul.mubr.msk.f32.vlgmr.msra.gmra.mrb[6].mxu0 %vm1087_vm11, %v1053_v17  ;;  %v1397_v34 = vpop.permute.xlu1 %1396  ;;  %v1392_v35 = vpop.permute.xlu0 %1391 }
 0x4a3   : > { %1898 = vmatpush3.bf16.msra.mxu0 %v1895_v14  ;;  %1788 = vmatprep.mubr.msk.f32.mxu0 %vm1087_vm11, %v1054_v18 }
 0x4a6   : > { %1789 = vmatmul.mubr.msk.f32.gmra.mrb[8].mxu0 %vm1087_vm11, %v1055_v19  ;;  %v1421_v36 = vpop.permute.xlu1 %1420  ;;  %v1416_v37 = vpop.permute.xlu0 %1415 }
 0x4a7   : > { %1795 = vmatprep.mubr.msk.f32.mxu0 %vm1087_vm11, %v1060_v20 }
 0x4aa   : > { %1796 = vmatmul.mubr.msk.f32.vlgmr.msra.gmra.mrb[6].mxu0 %vm1087_vm11, %v1061_v21  ;;  %v1407_v38 = vpop.permute.xlu1 %1406  ;;  %v1402_v40 = vpop.permute.xlu0 %1401 }
 0x4ab   : > { %1798 = vmatprep.mubr.msk.f32.mxu0 %vm1087_vm11, %v1062_v22 }
 0x4ae   : > { %1799 = vmatmul.mubr.msk.f32.gmra.mrb[8].mxu0 %vm1087_vm11, %v1063_v23  ;;  %v1431_v50 = vpop.permute.xlu1 %1430  ;;  %v1426_v53 = vpop.permute.xlu0 %1425 }
 0x57d   : > { %v1797_v39 = vpop.f32.mrb[6].mxu0 }
 0x57e   : > { %v1410_v41 = vmul.f32 %v1797_v39, %v1397_v34  ;;  %v1366_v42 = vpop.f32.mrb[7].mxu0 }
 0x57f   : > { %v1409_v43 = vmul.f32 %v1392_v35, %v1366_v42 }
 0x580   : > { %v1434_v44 = vadd.f32 %v1421_v36, %v1410_v41 }
 0x581   : > { %v1433_v45 = vadd.f32 %v1416_v37, %v1409_v43  ;;  %v1800_v46 = vpop.f32.mrb[8].mxu0 }
 0x582   : > { %v1442_v47 = vmin.f32 %v1434_v44, 0.0  ;;  %v1412_v48 = vmul.f32 %v1800_v46, %v1407_v38  ;;  %v1376_v49 = vpop.f32.mrb[9].mxu0  ;;  %vm1438_vm15 = vcmp.gt.f32.partialorder %v1434_v44, 0.0 }
 0x583   : > { %v1441_v51 = vmin.f32 %v1433_v45, 0.0  ;;  %v1411_v52 = vmul.f32 %v1402_v40, %v1376_v49  ;;  %vm1437_vm14 = vcmp.gt.f32.partialorder %v1433_v45, 0.0 }
 0x584   : > { %v1447_v54 = vmul.f32 1.442695, %v1442_v47  ;;  %v1436_v55 = vadd.f32 %v1431_v50, %v1412_v48 }
 0x585   : > { %v1445_v56 = vmul.f32 1.442695, %v1441_v51  ;;  %v1435_v57 = vadd.f32 %v1426_v53, %v1411_v52 }
 0x586   : > { %1957 = vpow2.f32 %v1447_v54  ;;  %v1444_v58 = vmin.f32 %v1436_v55, 0.0  ;;  %vm1440_vm1 = vcmp.gt.f32.partialorder %v1436_v55, 0.0 }
 0x587   : > { %1959 = vpow2.f32 %v1445_v56  ;;  %v1443_v59 = vmin.f32 %v1435_v57, 0.0  ;;  %vm1439_vm0 = vcmp.gt.f32.partialorder %v1435_v57, 0.0 }
 0x588   : > { %v1451_v60 = vmul.f32 1.442695, %v1444_v58 }
 0x589   : > { %v1449_v61 = vmul.f32 1.442695, %v1443_v59 }
 0x58a   : > { %1961 = vpow2.f32 %v1451_v60 }
 0x58b   : > { %1963 = vpow2.f32 %v1449_v61 }
 0x590   : > { %v1958_v62 = vpop.eup %1957 }
 0x591   : > { %v1960_v63 = vpop.eup %1959  ;;  %v1662_v0 = vadd.f32 -1.0, %v1958_v62 }
 0x592   : > { %v1661_v1 = vadd.f32 -1.0, %v1960_v63 }
 0x593   : > { %v1458_v5 = vsel %vm1438_vm15, %v1434_v44, %v1662_v0 }
 0x594   : > { %v1962_v2 = vpop.eup %1961  ;;  %v1457_v3 = vsel %vm1437_vm14, %v1433_v45, %v1661_v1 }
 0x595   : > { %v1964_v4 = vpop.eup %1963  ;;  %1815 = vmatprep.mubr.msk.f32.mxu1 %vm1461_vm13, %v1457_v3  ;;  %v1664_v6 = vadd.f32 -1.0, %v1962_v2 }
 0x596   : > { %1816 = vmatmul.mubr.msk.f32.vlgmr.msra.gmra.mrb[2].mxu1 %vm1461_vm13, %v1458_v5  ;;  %v1663_v7 = vadd.f32 -1.0, %v1964_v4 }
 0x597   : > { %v1460_v9 = vsel %vm1440_vm1, %v1436_v55, %v1664_v6 }
 0x598   : > { %v1459_v8 = vsel %vm1439_vm0, %v1435_v57, %v1663_v7 }
 0x599   : > { %1818 = vmatprep.mubr.msk.f32.mxu1 %vm1461_vm13, %v1459_v8 }
 0x59a   : > { %1819 = vmatmul.mubr.msk.f32.gmra.mrb[4].mxu1 %vm1461_vm13, %v1460_v9 }
 0x669   : > { %v1817_v10 = vpop.f32.mrb[2].mxu1 }
 0x66a   : > { %1565 = vst.msk [vmem:[%s440_s28 + $0x8] sm:$0xff] %vm1563_vm2, %v1817_v10  ;;  %v1544_v11 = vpop.f32.mrb[3].mxu1 }
 0x66b   : > { %1564 = vst.msk [vmem:[%s440_s28] sm:$0xff] %vm1563_vm2, %v1544_v11 }
 0x66d   : > { %v1820_v12 = vpop.f32.mrb[4].mxu1 }
 0x66e   : > { %1567 = vst.msk [vmem:[%s440_s28 + $0x18] sm:$0xff] %vm1563_vm2, %v1820_v12  ;;  %v1554_v13 = vpop.f32.mrb[5].mxu1 }
 0x66f   : > { %1566 = vst.msk [vmem:[%s440_s28 + $0x10] sm:$0xff] %vm1563_vm2, %v1554_v13 }
 0x670 PF: > { %s23_s25 = sadd.s32 1, %s1971_s25  }
 0x671   : > { %p20_p4 = scmp.ge.s32.totalorder %s23_s25, 4  }
 0x673   :  { %22 = sbr.rel (!%p20_p4) target bundleno = 1 (0x1), region = 102 }

// kernel: forward.4
= control target key start
LH: loop header
LB: loop body
LE: loop exit
PB: predicated region body
PF: predicated region fallthrough
CT: control target
= control target key end

     0   :  { %vm327_vm0 = vcmask 1041409   ;;  %vm330_vm1 = vcmask 1042434   ;;  %vm333_vm2 = vcmask 1043459   ;;  %vm336_vm3 = vcmask 1044484   ;;  %s9223_s29 = smov 96   ;;  %s9224_s30 = smov 64   ;;  %s13806_s2 = inlined_call_operand.vmem [shape: f32[32,96], index: 2, kind: input, shape index: {}]   ;;  %s13807_s0 = inlined_call_operand.vmem [shape: f32[25,2,32], index: 0, kind: input, shape index: {}]   ;;  %s13808_s1 = inlined_call_operand.vmem [shape: f32[25,32], index: 1, kind: input, shape index: {}]   ;;  %s13809_s3 = inlined_call_operand.vmem [shape: f32[1,96], index: 3, kind: input, shape index: {}]   ;;  %s13810_s4 = inlined_call_operand.vmem [shape: f32[32,32], index: 4, kind: input, shape index: {}]   ;;  %s13811_s5 = inlined_call_operand.vmem [shape: f32[1,32], index: 5, kind: input, shape index: {}]   ;;  %s13812_s8 = inlined_call_operand.vmem [shape: f32[32,800], index: 8, kind: input, shape index: {}]   ;;  %s13813_s6 = inlined_call_operand.vmem [shape: f32[1,32], index: 6, kind: input, shape index: {}]   ;;  %s13814_s7 = inlined_call_operand.vmem [shape: f32[1,32], index: 7, kind: input, shape index: {}]   ;;  %s13815_s10 = inlined_call_operand.vmem [shape: f32[800,32], index: 10, kind: input, shape index: {}]   ;;  %s13816_s9 = inlined_call_operand.vmem [shape: f32[1,800], index: 9, kind: input, shape index: {}]   ;;  %s13817_s11 = inlined_call_operand.vmem [shape: f32[1,32], index: 11, kind: input, shape index: {}]   ;;  %s13818_s12 = inlined_call_operand.vmem [shape: f32[1,32], index: 12, kind: input, shape index: {}]   ;;  %s13819_s13 = inlined_call_operand.vmem [shape: f32[1,32], index: 13, kind: input, shape index: {}]   ;;  %s13820_s14 = inlined_call_operand.vmem [shape: f32[25,2,32], index: 14, kind: output, shape index: {}]  }
   0x1   :  { %v51_v0 = vld [vmem:[%s13806_s2] sm:$0xff]  ;;  %v52_v1 = vld [vmem:[%s13806_s2 + $0x8] sm:$0xff]  ;;  %v53_v2 = vld [vmem:[%s13806_s2 + $0x10] sm:$0xff]  ;;  %vm339_vm4 = vcmask 1045509   ;;  %vm342_vm5 = vcmask 1046534   ;;  %vm345_vm6 = vcmask 1047559  }
   0x2   :  { %v9323_v3 = vpack.c.bf16 %v52_v1, %v51_v0  ;;  %v54_v4 = vld [vmem:[%s13806_s2 + $0x18] sm:$0xff]  ;;  %v9331_v5 = vld [vmem:[%s13808_s1] sm:$0xff]  ;;  %v199_v11 = vld [vmem:[%s13807_s0 + $0x8] sm:$0x1]  ;;  %vm375_vm7 = vcmask 261120   ;;  %vm481_vm8 = vcmask 64512  }
   0x3   :  { %v195_v6 = vld [vmem:[%s13807_s0] sm:$0x1]  ;;  %v9336_v7 = vpack.c.bf16 %v54_v4, %v53_v2  ;;  %v196_v8 = vld [vmem:[%s13807_s0 + $0x2] sm:$0x1]  ;;  %v197_v9 = vld [vmem:[%s13807_s0 + $0x4] sm:$0x1] }
   0x4   :  { %14067 = vst [vmem:[#allocation2_spill] sm:$0xff] %v9323_v3  ;;  %v198_v10 = vld [vmem:[%s13807_s0 + $0x6] sm:$0x1]  ;;  %8287 = vmatprep.subr.bf16.mxu0 %v9323_v3  ;;  %v200_v12 = vld [vmem:[%s13807_s0 + $0xa] sm:$0x1]  ;;  %v13834_v15 = vrot.slane %v9331_v5, 1  ;;  %v9370_v22 = vadd.f32 %v195_v6, %v9331_v5  ;;  %vm9620_vm9 = vmpackc.low %vm481_vm8, %vm481_vm8 }
   0x5   :  { %14068 = vst [vmem:[#allocation3_spill] sm:$0xff] %v9336_v7  ;;  %v201_v13 = vld [vmem:[%s13807_s0 + $0xc] sm:$0x1]  ;;  %8289 = vmatpush3.bf16.msra.mxu0 %v9323_v3  ;;  %v202_v14 = vld [vmem:[%s13807_s0 + $0xe] sm:$0x1]  ;;  %v13833_v16 = vrot.slane %v9331_v5, 2 }
   0x6   :  { %v13832_v17 = vrot.slane %v9331_v5, 3  ;;  %v13831_v18 = vrot.slane %v9331_v5, 4  ;;  %8291 = vmatprep.subr.bf16.mxu0 %v9336_v7  ;;  %v13830_v19 = vrot.slane %v9331_v5, 5  ;;  %v13829_v20 = vrot.slane %v9331_v5, 6  ;;  %v203_v23 = vld [vmem:[%s13807_s0 + $0x10] sm:$0x1] }
   0x7   :  { %v13828_v21 = vrot.slane %v9331_v5, 7  ;;  %v9377_v24 = vadd.f32 %v13834_v15, %v196_v8  ;;  %v9381_v25 = vadd.f32 %v13833_v16, %v197_v9  ;;  %v9394_v28 = vld [vmem:[%s13808_s1 + $0x8] sm:$0xff]  ;;  %v204_v32 = vld [vmem:[%s13807_s0 + $0x12] sm:$0x1]  ;;  %v205_v33 = vld [vmem:[%s13807_s0 + $0x14] sm:$0x1] }
   0x8   :  { %v9385_v26 = vadd.f32 %v13832_v17, %v198_v10  ;;  %v9389_v27 = vadd.f32 %v13831_v18, %v199_v11  ;;  %v9398_v29 = vadd.f32 %v13830_v19, %v200_v12  ;;  %v9402_v30 = vadd.f32 %v13829_v20, %v201_v13  ;;  %v206_v34 = vld [vmem:[%s13807_s0 + $0x16] sm:$0x1]  ;;  %v207_v40 = vld [vmem:[%s13807_s0 + $0x18] sm:$0x1]  ;;  %v208_v44 = vld [vmem:[%s13807_s0 + $0x1a] sm:$0x1] }
   0x9   :  { %v9406_v31 = vadd.f32 %v13828_v21, %v202_v14  ;;  %v9418_v35 = vadd.f32 %v203_v23, %v9394_v28  ;;  %8293 = vmatpush3.bf16.msra.mxu0 %v9336_v7  ;;  %v326_v36 = vrot.slane %v9377_v24, 7  ;;  %v329_v37 = vrot.slane %v9381_v25, 6  ;;  %v209_v47 = vld [vmem:[%s13807_s0 + $0x1c] sm:$0x1]  ;;  %v210_v52 = vld [vmem:[%s13807_s0 + $0x1e] sm:$0x1] }
   0xa   :  { %v332_v38 = vrot.slane %v9385_v26, 5  ;;  %v335_v39 = vrot.slane %v9389_v27, 4  ;;  %v338_v41 = vrot.slane %v9398_v29, 3  ;;  %v341_v42 = vrot.slane %v9402_v30, 2  ;;  %v9493_v13 = vld [vmem:[%s13808_s1 + $0x10] sm:$0xff]  ;;  %s9225_s15 = smov 88  }
   0xb   :  { %v344_v43 = vrot.slane %v9406_v31, 1  ;;  %v13841_v45 = vrot.slane %v9394_v28, 1  ;;  %v328_v46 = vsel %vm327_vm0, %v326_v36, %v9370_v22  ;;  %v13840_v48 = vrot.slane %v9394_v28, 2  ;;  %14069 = vst [vmem:[#allocation4_spill] sm:$0xff] %v9493_v13  ;;  %s9226_s16 = smov 120   ;;  %s9227_s17 = smov 80  }
   0xc   :  { %v13839_v49 = vrot.slane %v9394_v28, 3  ;;  %v13838_v50 = vrot.slane %v9394_v28, 4  ;;  %v331_v51 = vsel %vm330_vm1, %v329_v37, %v328_v46  ;;  %v13837_v53 = vrot.slane %v9394_v28, 5  ;;  %v213_v37 = vld [vmem:[%s13807_s0 + $0x24] sm:$0x1]  ;;  %s9228_s18 = smov 112  }
   0xd   :  { %v13836_v54 = vrot.slane %v9394_v28, 6  ;;  %v13835_v55 = vrot.slane %v9394_v28, 7  ;;  %v334_v56 = vsel %vm333_vm2, %v332_v38, %v331_v51  ;;  %v9453_v57 = vadd.f32 %v13841_v45, %v204_v32  ;;  %v211_v32 = vld [vmem:[%s13807_s0 + $0x20] sm:$0x1]  ;;  %v214_v38 = vld [vmem:[%s13807_s0 + $0x26] sm:$0x1] }
   0xe   :  { %v9457_v58 = vadd.f32 %v13840_v48, %v205_v33  ;;  %v9461_v59 = vadd.f32 %v13839_v49, %v206_v34  ;;  %v337_v60 = vsel %vm336_vm3, %v335_v39, %v334_v56  ;;  %v9466_v61 = vadd.f32 %v13838_v50, %v207_v40  ;;  %v212_v33 = vld [vmem:[%s13807_s0 + $0x22] sm:$0x1]  ;;  %v215_v40 = vld [vmem:[%s13807_s0 + $0x28] sm:$0x1]  ;;  %v217_v46 = vld [vmem:[%s13807_s0 + $0x2c] sm:$0x1] }
   0xf   :  { %v9470_v62 = vadd.f32 %v13837_v53, %v208_v44  ;;  %v9474_v63 = vadd.f32 %v13836_v54, %v209_v47  ;;  %v340_v0 = vsel %vm339_vm4, %v338_v41, %v337_v60  ;;  %v9479_v1 = vadd.f32 %v13835_v55, %v210_v52  ;;  %v216_v41 = vld [vmem:[%s13807_s0 + $0x2a] sm:$0x1]  ;;  %v218_v60 = vld [vmem:[%s13807_s0 + $0x2e] sm:$0x1]  ;;  %s9230_s19 = smov 56   ;;  %s13884_s20 = smov 48  }
  0x10   :  { %v347_v2 = vrot.slane %v9453_v57, 7  ;;  %v349_v4 = vrot.slane %v9457_v58, 6  ;;  %v343_v6 = vsel %vm342_vm5, %v341_v42, %v340_v0  ;;  %v351_v8 = vrot.slane %v9461_v59, 5  ;;  %s13850_s21 = smov 104   ;;  %s13852_s22 = smov 72  }
  0x11   :  { %v353_v9 = vrot.slane %v9466_v61, 4  ;;  %v346_v10 = vsel %vm345_vm6, %v344_v43, %v343_v6  ;;  %v355_v12 = vrot.slane %v9470_v62, 3  ;;  %v357_v23 = vrot.slane %v9474_v63, 2  ;;  %s13848_s23 = smov 40   ;;  %s13846_s24 = smov 8  }
  0x12   :  { %v348_v11 = vsel %vm327_vm0, %v347_v2, %v9418_v35  ;;  %7958 = vmatprep.mubr.msk.f32.mxu0 %vm375_vm7, %v346_v10  ;;  %v359_v36 = vrot.slane %v9479_v1, 1  ;;  %v13827_v42 = vrot.slane %v9493_v13, 1  ;;  %v13826_v43 = vrot.slane %v9493_v13, 2  ;;  %s13856_s25 = smov 16   ;;  %s13854_s26 = smov 24  }
  0x13   :  { %v350_v14 = vsel %vm330_vm1, %v349_v4, %v348_v11  ;;  %v13825_v47 = vrot.slane %v9493_v13, 3  ;;  %v13824_v51 = vrot.slane %v9493_v13, 4  ;;  %v13823_v52 = vrot.slane %v9493_v13, 5 }
  0x14   :  { %v352_v34 = vsel %vm333_vm2, %v351_v8, %v350_v14  ;;  %v13822_v0 = vrot.slane %v9493_v13, 6  ;;  %v13821_v2 = vrot.slane %v9493_v13, 7  ;;  %v9535_v4 = vadd.f32 %v211_v32, %v9493_v13 }
  0x15   :  { %v354_v39 = vsel %vm336_vm3, %v353_v9, %v352_v34  ;;  %v9540_v8 = vadd.f32 %v13827_v42, %v212_v33  ;;  %v9544_v9 = vadd.f32 %v13826_v43, %v213_v37  ;;  %v9548_v10 = vadd.f32 %v13825_v47, %v214_v38 }
  0x16   :  { %v356_v44 = vsel %vm339_vm4, %v355_v12, %v354_v39  ;;  %v9553_v11 = vadd.f32 %v13824_v51, %v215_v40  ;;  %v9557_v12 = vadd.f32 %v13823_v52, %v216_v41  ;;  %v9561_v14 = vadd.f32 %v13822_v0, %v217_v46  ;;  %v50_v41 = vld [vmem:[%s13808_s1 + $0x18] sm:$0x1] }
  0x17   :  { %v358_v56 = vsel %vm342_vm5, %v357_v23, %v356_v44  ;;  %v9565_v23 = vadd.f32 %v13821_v2, %v218_v60  ;;  %v361_v32 = vrot.slane %v9540_v8, 7  ;;  %v363_v33 = vrot.slane %v9544_v9, 6  ;;  %v219_v44 = vld [vmem:[%s13807_s0 + $0x30] sm:$0x1] }
  0x18   :  { %v360_v6 = vsel %vm345_vm6, %v359_v36, %v358_v56  ;;  %v365_v34 = vrot.slane %v9548_v10, 5  ;;  %v367_v36 = vrot.slane %v9553_v11, 4  ;;  %v369_v38 = vrot.slane %v9557_v12, 3 }
  0x19   :  { %7959 = vmatmul.mubr.msk.f32.vlgmr.msra.gmra.mrb[0].mxu0 %vm375_vm7, %v360_v6  ;;  %v362_v37 = vsel %vm327_vm0, %v361_v32, %v9535_v4  ;;  %v371_v40 = vrot.slane %v9561_v14, 2  ;;  %v373_v56 = vrot.slane %v9565_v23, 1  ;;  %v9586_v32 = vadd.f32 %v219_v44, %v50_v41 }
  0x1a   :  { %v364_v39 = vsel %vm330_vm1, %v363_v33, %v362_v37  ;;  %vm583_vm10 = vcmask 203776   ;;  %vm593_vm11 = vcmask 196608   ;;  %vm652_vm12 = vcmask 1040384  }
  0x1b   :  { %v366_v46 = vsel %vm333_vm2, %v365_v34, %v364_v39  ;;  %v7327_v34 = vld [vmem:[%s13809_s3] ss:$0 sm:$0xff]  ;;  %vm9229_vm13 = vmmov 1   ;;  %vm1605_vm15 = vcmask 130048  }
  0x1c   :  { %v368_v60 = vsel %vm336_vm3, %v367_v36, %v366_v46  ;;  %vm9669_vm14 = vmpackc.low %vm652_vm12, %vm9229_vm13  ;;  %vm1610_vm12 = vcmask 195584   ;;  %vm1873_vm13 = vcmask 253952  }
  0x1d   :  { %v370_v6 = vsel %vm339_vm4, %v369_v38, %v368_v60 }
  0x1e   :  { %v372_v33 = vsel %vm342_vm5, %v371_v40, %v370_v6 }
  0x1f   :  { %v374_v37 = vsel %vm345_vm6, %v373_v56, %v372_v33 }
  0x20   :  { %7961 = vmatprep.mubr.msk.f32.mxu0 %vm375_vm7, %v374_v37 }
  0x21   :  { %7962 = vmatmul.mubr.msk.f32.gmra.mrb[2].mxu0 %vm375_vm7, %v9586_v32 }
  0xec   :  { %v7960_v39 = vpop.f32.mrb[0].mxu0 }
  0xed   :  { %v9596_v2 = vadd.f32 %v7960_v39, %v7327_v34  ;;  %v450_v36 = vpop.f32.mrb[1].mxu0  ;;  %v14070_v39 = vmov 0 }
  0xee   :  { %v9598_v38 = vadd.f32 %v7327_v34, %v450_v36  ;;  %v14071_v39 = vsel %vm9620_vm9, 4294967295, %v14070_v39 }
  0xef   :  { %14072 = vst [vmem:[#allocation5_spill] sm:$0xff] %v14071_v39 }
  0xf0   :  { %7972 = vmatprep.mubr.msk.f32.mxu1 %vm481_vm8, %v9598_v38  ;;  %v9604_v40 = vpack.i.bf16 %v9596_v2, %v9598_v38 }
  0xf2   :  { %8783 = vrot.lane.b32.xlu0 %v9604_v40, %s9223_s29 }
  0xf4   :  { %v7963_v41 = vpop.f32.mrb[2].mxu0 }
  0xf5   :  { %v9608_v44 = vadd.f32 %v7963_v41, %v7327_v34  ;;  %v460_v46 = vpop.f32.mrb[3].mxu0 }
  0xf6   :  { %v9610_v56 = vadd.f32 %v7327_v34, %v460_v46 }
  0xf8   :  { %v9614_v60 = vpack.i.bf16 %v9608_v44, %v9610_v56 }
  0xfa   :  { %8788 = vrot.lane.b32.xlu0 %v9614_v60, %s9223_s29 }
 0x164   :  { %v8784_v6 = vpop.permute.xlu0 %8783 }
 0x165   :  { %v8786_v33 = vunpack.i.h.bf16 %v8784_v6  ;;  %v8785_v37 = vunpack.i.l.bf16 %v8784_v6 }
 0x167   :  { %v8294_v36 = vpack.c.bf16 %v8786_v33, %v8785_v37 }
 0x169   :  { %8296 = vmatprep.subr.msk.bf16.mxu1 %vm9620_vm9, %v8294_v36 }
 0x16a   :  { %8299 = vmatpush3.bf16.xpose.msk.msra.mxu1 %vm9620_vm9, %v8294_v36 }
 0x16c   :  { %v8789_v34 = vpop.permute.xlu0 %8788 }
 0x16d   :  { %v8791_v41 = vunpack.i.h.bf16 %v8789_v34  ;;  %v8790_v46 = vunpack.i.l.bf16 %v8789_v34 }
 0x16f   :  { %v8300_v0 = vpack.c.bf16 %v8791_v41, %v8790_v46 }
 0x171   :  { %8302 = vmatprep.subr.msk.bf16.mxu1 %vm9620_vm9, %v8300_v0 }
 0x172   :  { %8305 = vmatpush3.bf16.xpose.msk.msra.mxu1 %vm9620_vm9, %v8300_v0 }
 0x179   :  { %7973 = vmatmul.mubr.msk.f32.vlgmr.msra.gmra.mrb[0].mxu1 %vm481_vm8, %v9596_v2 }
 0x17a   :  { %7975 = vmatprep.mubr.msk.f32.mxu1 %vm481_vm8, %v9610_v56 }
 0x17d   :  { %7976 = vmatmul.mubr.msk.f32.gmra.mrb[2].mxu1 %vm481_vm8, %v9608_v44 }
 0x24c   :  { %v7974_v6 = vpop.f32.mrb[0].mxu1 }
 0x24d   :  { %v564_v33 = vpop.f32.mrb[1].mxu1  ;;  %v587_v37 = vsel %vm583_vm10, %v7974_v6, -inf }
 0x24e   :  { %588 = vmax.xlane.f32.xlu1 %v587_v37  ;;  %v584_v0 = vsel %vm583_vm10, %v564_v33, -inf }
 0x250   :  { %v9639_v36 = vpop.f32.mrb[2].mxu1 }
 0x251   :  { %v9641_v34 = vpop.f32.mrb[3].mxu1  ;;  %v594_v46 = vsel %vm593_vm11, %v9639_v36, -inf }
 0x252   :  { %585 = vmax.xlane.f32.xlu1 %v584_v0  ;;  %v590_v41 = vsel %vm583_vm10, %v9641_v34, -inf }
 0x253   :  { %591 = vmax.xlane.f32.xlu0 %v590_v41 }
 0x256   :  { %595 = vmax.xlane.f32.xlu1 %v594_v46 }
 0x267   :  { %8793 = vrot.lane.b32.xlu1 %v9604_v40, %s9224_s30 }
 0x269   :  { %8798 = vrot.lane.b32.xlu0 %v9614_v60, %s9224_s30 }
 0x26b   :  { %8803 = vrot.lane.b32.xlu1 %v9604_v40, %s9225_s15 }
 0x26d   :  { %742 = vrot.lane.b32.xlu0 %v9596_v2, %s9226_s16 }
 0x26f   :  { %8808 = vrot.lane.b32.xlu1 %v9614_v60, %s9225_s15 }
 0x271   :  { %744 = vrot.lane.b32.xlu0 %v9610_v56, %s9226_s16 }
 0x273   :  { %8813 = vrot.lane.b32.xlu1 %v9604_v40, %s9227_s17 }
 0x275   :  { %1011 = vrot.lane.b32.xlu0 %v9598_v38, %s9228_s18 }
 0x279   :  { %1015 = vrot.lane.b32.xlu0 %v9610_v56, %s9228_s18 }
 0x2db   :  { %v589_v37 = vpop.xlane.xlu1 %588 }
 0x2dc   :  { %v598_v0 = vsub.f32 %v7974_v6, %v589_v37 }
 0x2de   :  { %v603_v41 = vmul.f32 1.442695, %v598_v0 }
 0x2df   :  { %v586_v46 = vpop.xlane.xlu1 %585 }
 0x2e0   :  { %8942 = vpow2.f32 %v603_v41  ;;  %v597_v52 = vsub.f32 %v564_v33, %v586_v46  ;;  %v592_v51 = vpop.xlane.xlu0 %591  ;;  %v14073_v33 = vmov 0 }
 0x2e1   :  { %v14074_v33 = vsel %vm9669_vm14, 4294967295, %v14073_v33 }
 0x2e2   :  { %v601_v47 = vmul.f32 1.442695, %v597_v52  ;;  %14075 = vst [vmem:[#allocation6_spill] sm:$0xff] %v14074_v33 }
 0x2e3   :  { %v596_v43 = vpop.xlane.xlu1 %595 }
 0x2e4   :  { %8944 = vpow2.f32 %v601_v47  ;;  %v8799_v42 = vpop.permute.xlu0 %8798 }
 0x2e5   :  { %v8801_v20 = vunpack.i.h.bf16 %v8799_v42  ;;  %v8800_v19 = vunpack.i.l.bf16 %v8799_v42 }
 0x2e7   :  { %v8794_v21 = vpop.permute.xlu1 %8793  ;;  %v8310_v47 = vpack.c.bf16 %v8801_v20, %v8800_v19 }
 0x2e8   :  { %v8796_v18 = vunpack.i.h.bf16 %v8794_v21  ;;  %v8795_v17 = vunpack.i.l.bf16 %v8794_v21  ;;  %v9666_v16 = vpop.permute.xlu0 %742 }
 0x2ea   :  { %v8943_v15 = vpop.eup %8942  ;;  %v8306_v55 = vpack.c.bf16 %v8796_v18, %v8795_v17 }
 0x2eb   :  { %v8804_v6 = vpop.permute.xlu1 %8803  ;;  %v612_v37 = vsel %vm583_vm10, %v8943_v15, 0.0 }
 0x2ec   :  { %v8806_v52 = vunpack.i.h.bf16 %v8804_v6  ;;  %v8805_v0 = vunpack.i.l.bf16 %v8804_v6  ;;  %613 = vadd.xlane.f32.xlu1 %v612_v37  ;;  %8307 = vmatprep.subr.bf16.mxu0 %v8306_v55  ;;  %v9673_v42 = vpop.permute.xlu0 %744  ;;  %v600_v37 = vsub.f32 %v9639_v36, %v596_v43 }
 0x2ed   :  { %8309 = vmatpush3.bf16.msra.mxu0 %v8306_v55 }
 0x2ee   :  { %v8945_v21 = vpop.eup %8944  ;;  %8312 = vmatprep.subr.msk.bf16.mxu0 %vm9669_vm14, %v8310_v47  ;;  %v8316_v41 = vpack.c.bf16 %v8806_v52, %v8805_v0  ;;  %v607_v52 = vmul.f32 1.442695, %v600_v37 }
 0x2ef   :  { %v8809_v17 = vpop.permute.xlu1 %8808  ;;  %v609_v18 = vsel %vm583_vm10, %v8945_v21, 0.0 }
 0x2f0   :  { %610 = vadd.xlane.f32.xlu1 %v609_v18  ;;  %v1012_v46 = vpop.permute.xlu0 %1011  ;;  %8946 = vpow2.f32 %v607_v52 }
 0x2f1   :  { %8315 = vmatpush3.bf16.msk.msra.mxu0 %vm9669_vm14, %v8310_v47  ;;  %8028 = vmatprep.mubr.msk.f32.mxu1 %vm481_vm8, %v1012_v46  ;;  %v599_v47 = vsub.f32 %v9641_v34, %v592_v51 }
 0x2f2   :  { %8318 = vmatprep.subr.msk.bf16.mxu0 %vm9620_vm9, %v8316_v41 }
 0x2f3   :  { %v8814_v19 = vpop.permute.xlu1 %8813  ;;  %v605_v0 = vmul.f32 1.442695, %v599_v47 }
 0x2f4   :  { %v8816_v20 = vunpack.i.h.bf16 %v8814_v19  ;;  %v8815_v55 = vunpack.i.l.bf16 %v8814_v19 }
 0x2f5   :  { %8948 = vpow2.f32 %v605_v0 }
 0x2f6   :  { %v8338_v6 = vpack.c.bf16 %v8816_v20, %v8815_v55  ;;  %v8811_v55 = vunpack.i.h.bf16 %v8809_v17 }
 0x2f8   :  { %8340 = vmatprep.subr.msk.bf16.mxu1 %vm9620_vm9, %v8338_v6 }
 0x2f9   :  { %8343 = vmatpush3.bf16.xpose.msk.msra.mxu1 %vm9620_vm9, %v8338_v6  ;;  %v8810_v6 = vunpack.i.l.bf16 %v8809_v17 }
 0x2fa   :  { %v8947_v18 = vpop.eup %8946 }
 0x2fb   :  { %v618_v46 = vsel %vm593_vm11, %v8947_v18, 0.0  ;;  %v8322_v52 = vpack.c.bf16 %v8811_v55, %v8810_v6 }
 0x2ff   :  { %v8949_v19 = vpop.eup %8948 }
 0x300   :  { %v615_v20 = vsel %vm583_vm10, %v8949_v19, 0.0 }
 0x301   :  { %740 = vrot.lane.b32.xlu1 %v9598_v38, %s9226_s16 }
 0x325   :  { %619 = vadd.xlane.f32.xlu1 %v618_v46 }
 0x329   :  { %616 = vadd.xlane.f32.xlu1 %v615_v20 }
 0x33a   :  { %8818 = vrot.lane.b32.xlu1 %v9614_v60, %s9227_s17 }
 0x33e   :  { %746 = vrot.lane.b32.xlu1 %v9608_v44, %s9226_s16 }
 0x342   :  { %1013 = vrot.lane.b32.xlu1 %v9596_v2, %s9228_s18 }
 0x346   :  { %1017 = vrot.lane.b32.xlu1 %v9608_v44, %s9228_s18 }
 0x379   :  { %v614_v43 = vpop.xlane.xlu1 %613 }
 0x37a   :  { %8950 = vrcp.f32 %v614_v43 }
 0x37d   :  { %v611_v51 = vpop.xlane.xlu1 %610 }
 0x37e   :  { %8952 = vrcp.f32 %v611_v51 }
 0x381   :  { %v741_v0 = vpop.permute.xlu1 %740 }
 0x384   :  { %v8951_v36 = vpop.eup %8950 }
 0x385   :  { %v626_v47 = vmul.f32 %v8951_v36, %v8943_v15 }
 0x388   :  { %v8953_v34 = vpop.eup %8952 }
 0x389   :  { %v625_v37 = vmul.f32 %v8953_v34, %v8945_v21 }
 0x38b   :  { %7986 = vmatprep.mubr.msk.f32.mxu0 %vm583_vm10, %v625_v37  ;;  %v1016_v37 = vpop.permute.xlu0 %1015 }
 0x38c   :  { %7987 = vmatmul.mubr.msk.f32.vlgmr.msra.gmra.mrb[4].mxu0 %vm583_vm10, %v626_v47 }
 0x38d   :  { %8321 = vmatpush3.bf16.xpose.msk.msra.mxu0 %vm9620_vm9, %v8316_v41 }
 0x38e   :  { %8324 = vmatprep.subr.msk.bf16.mxu0 %vm9620_vm9, %v8322_v52 }
 0x395   :  { %8327 = vmatpush3.bf16.xpose.msk.msra.mxu0 %vm9620_vm9, %v8322_v52 }
 0x3b2   :  { %v620_v46 = vpop.xlane.xlu1 %619 }
 0x3b3   :  { %8954 = vrcp.f32 %v620_v46 }
 0x3b6   :  { %v617_v17 = vpop.xlane.xlu1 %616 }
 0x3b7   :  { %8956 = vrcp.f32 %v617_v17 }
 0x3ba   :  { %v8819_v15 = vpop.permute.xlu1 %8818 }
 0x3bb   :  { %v8821_v21 = vunpack.i.h.bf16 %v8819_v15  ;;  %v8820_v20 = vunpack.i.l.bf16 %v8819_v15 }
 0x3bd   :  { %v8344_v43 = vpack.c.bf16 %v8821_v21, %v8820_v20  ;;  %v8955_v41 = vpop.eup %8954 }
 0x3be   :  { %v747_v51 = vpop.permute.xlu1 %746  ;;  %v628_v55 = vmul.f32 %v8955_v41, %v8947_v18 }
 0x3bf   :  { %8346 = vmatprep.subr.msk.bf16.mxu1 %vm9620_vm9, %v8344_v43 }
 0x3c0   :  { %8349 = vmatpush3.bf16.xpose.msk.msra.mxu1 %vm9620_vm9, %v8344_v43 }
 0x3c1   :  { %v8957_v36 = vpop.eup %8956 }
 0x3c2   :  { %v627_v34 = vmul.f32 %v8957_v36, %v8949_v19  ;;  %v1014_v6 = vpop.permute.xlu1 %1013 }
 0x3c4   :  { %7989 = vmatprep.mubr.msk.f32.mxu0 %vm583_vm10, %v627_v34 }
 0x3c5   :  { %7990 = vmatmul.mubr.msk.f32.gmra.mrb[6].mxu0 %vm583_vm10, %v628_v55 }
 0x3c6   :  { %8000 = vmatprep.mubr.msk.f32.mxu0 %vm481_vm8, %v741_v0  ;;  %v1018_v47 = vpop.permute.xlu1 %1017 }
 0x3c7   :  { %8029 = vmatmul.mubr.msk.f32.vlgmr.msra.gmra.mrb[4].mxu1 %vm481_vm8, %v1014_v6 }
 0x3c8   :  { %8031 = vmatprep.mubr.msk.f32.mxu1 %vm481_vm8, %v1016_v37 }
 0x3c9   :  { %8001 = vmatmul.mubr.msk.f32.vlgmr.msra.gmra.mrb[8].mxu0 %vm481_vm8, %v9666_v16 }
 0x3ca   :  { %8003 = vmatprep.mubr.msk.f32.mxu0 %vm481_vm8, %v9673_v42 }
 0x3cb   :  { %8032 = vmatmul.mubr.msk.f32.gmra.mrb[6].mxu1 %vm481_vm8, %v1018_v47 }
 0x3cd   :  { %8004 = vmatmul.mubr.msk.f32.gmra.mrb[10].mxu0 %vm481_vm8, %v747_v51 }
 0x45f   :  { %v9724_v18 = vpop.f32.mrb[4].mxu0 }
 0x460   :  { %v9726_v19 = vpop.f32.mrb[5].mxu0 }
 0x498   :  { %v9728_v52 = vpop.f32.mrb[6].mxu0 }
 0x499   :  { %v9730_v0 = vpop.f32.mrb[7].mxu0 }
 0x49a   :  { %v8030_v46 = vpop.f32.mrb[4].mxu1 }
 0x49b   :  { %v1109_v17 = vpop.f32.mrb[5].mxu1  ;;  %v1131_v37 = vsel %vm583_vm10, %v8030_v46, -inf }
 0x49c   :  { %v8002_v15 = vpop.f32.mrb[8].mxu0  ;;  %v1128_v36 = vsel %vm583_vm10, %v1109_v17, -inf }
 0x49d   :  { %v9732_v16 = vpop.f32.mrb[9].mxu0  ;;  %v860_v21 = vsel %vm583_vm10, %v8002_v15, -inf }
 0x49e   :  { %v8033_v42 = vpop.f32.mrb[6].mxu1  ;;  %861 = vmax.xlane.f32.xlu1 %v860_v21  ;;  %v857_v20 = vsel %vm583_vm10, %v9732_v16, -inf }
 0x49f   :  { %v1119_v43 = vpop.f32.mrb[7].mxu1  ;;  %858 = vmax.xlane.f32.xlu0 %v857_v20  ;;  %v1137_v47 = vsel %vm593_vm11, %v8033_v42, -inf }
 0x4a0   :  { %v8005_v51 = vpop.f32.mrb[10].mxu0  ;;  %v1134_v55 = vsel %vm583_vm10, %v1119_v43, -inf }
 0x4a1   :  { %v9737_v41 = vpop.f32.mrb[11].mxu0  ;;  %v866_v6 = vsel %vm593_vm11, %v8005_v51, -inf }
 0x4a2   :  { %1129 = vmax.xlane.f32.xlu1 %v1128_v36  ;;  %v863_v34 = vsel %vm583_vm10, %v9737_v41, -inf }
 0x4a3   :  { %864 = vmax.xlane.f32.xlu0 %v863_v34 }
 0x4a6   :  { %1135 = vmax.xlane.f32.xlu1 %v1134_v55 }
 0x4a7   :  { %867 = vmax.xlane.f32.xlu0 %v866_v6 }
 0x4ab   :  { %1132 = vmax.xlane.f32.xlu0 %v1131_v37 }
 0x4af   :  { %1138 = vmax.xlane.f32.xlu0 %v1137_v47 }
 0x52b   :  { %v862_v21 = vpop.xlane.xlu1 %861 }
 0x52c   :  { %v859_v20 = vpop.xlane.xlu0 %858 }
 0x52f   :  { %v1130_v54 = vpop.xlane.xlu1 %1129 }
 0x530   :  { %v1140_v36 = vsub.f32 %v1109_v17, %v1130_v54  ;;  %v865_v53 = vpop.xlane.xlu0 %864  ;;  %v870_v17 = vsub.f32 %v8002_v15, %v862_v21 }
 0x532   :  { %v1144_v50 = vmul.f32 1.442695, %v1140_v36 }
 0x534   :  { %8958 = vpow2.f32 %v1144_v50  ;;  %v868_v34 = vpop.xlane.xlu0 %867  ;;  %v1136_v50 = vpop.xlane.xlu1 %1135 }
 0x538   :  { %v1133_v49 = vpop.xlane.xlu0 %1132 }
 0x539   :  { %v1141_v48 = vsub.f32 %v8030_v46, %v1133_v49  ;;  %v1142_v49 = vsub.f32 %v1119_v43, %v1136_v50 }
 0x53b   :  { %v1146_v55 = vmul.f32 1.442695, %v1141_v48  ;;  %v1148_v48 = vmul.f32 1.442695, %v1142_v49  ;;  %v871_v49 = vsub.f32 %v9737_v41, %v865_v53 }
 0x53c   :  { %v1139_v54 = vpop.xlane.xlu0 %1138 }
 0x53d   :  { %8960 = vpow2.f32 %v1146_v55  ;;  %v1143_v46 = vsub.f32 %v8033_v42, %v1139_v54  ;;  %v875_v55 = vmul.f32 1.442695, %v870_v17 }
 0x53e   :  { %v9746_v45 = vpop.eup %8958  ;;  %8962 = vpow2.f32 %v1148_v48  ;;  %v877_v48 = vmul.f32 1.442695, %v871_v49 }
 0x53f   :  { %v1152_v6 = vsel %vm583_vm10, %v9746_v45, 0.0  ;;  %v1150_v36 = vmul.f32 1.442695, %v1143_v46 }
 0x540   :  { %1153 = vadd.xlane.f32.xlu1 %v1152_v6  ;;  %v872_v6 = vsub.f32 %v8005_v51, %v868_v34 }
 0x541   :  { %8964 = vpow2.f32 %v1150_v36 }
 0x542   :  { %8966 = vpow2.f32 %v875_v55 }
 0x547   :  { %v9750_v37 = vpop.eup %8960 }
 0x548   :  { %v1155_v47 = vsel %vm583_vm10, %v9750_v37, 0.0  ;;  %v9758_v7 = vpop.eup %8962 }
 0x549   :  { %1156 = vadd.xlane.f32.xlu0 %v1155_v47  ;;  %v879_v47 = vmul.f32 1.442695, %v872_v6  ;;  %v1158_v3 = vsel %vm583_vm10, %v9758_v7, 0.0 }
 0x54b   :  { %8968 = vpow2.f32 %v879_v47  ;;  %v9762_v43 = vpop.eup %8964 }
 0x54c   :  { %v1161_v50 = vsel %vm593_vm11, %v9762_v43, 0.0  ;;  %v9766_v42 = vpop.eup %8966 }
 0x54d   :  { %v884_v15 = vsel %vm583_vm10, %v9766_v42, 0.0 }
 0x551   :  { %8823 = vrot.lane.b32.xlu1 %v9604_v40, %s9230_s19 }
 0x555   :  { %v9770_v51 = vpop.eup %8968 }
 0x556   :  { %v890_v21 = vsel %vm593_vm11, %v9770_v51, 0.0 }
 0x55f   :  { %8828 = vrot.lane.b32.xlu0 %v9614_v60, %s9230_s19 }
 0x575   :  { %1159 = vadd.xlane.f32.xlu1 %v1158_v3  ;;  %v869_v3 = vsub.f32 %v9732_v16, %v859_v20 }
 0x577   :  { %v873_v34 = vmul.f32 1.442695, %v869_v3 }
 0x579   :  { %8970 = vpow2.f32 %v873_v34 }
 0x57a   :  { %8972 = vpow2.f32 %v877_v48 }
 0x57e   :  { %1162 = vadd.xlane.f32.xlu0 %v1161_v50 }
 0x582   :  { %885 = vadd.xlane.f32.xlu0 %v884_v15 }
 0x583   :  { %v8971_v54 = vpop.eup %8970 }
 0x584   :  { %v881_v46 = vsel %vm583_vm10, %v8971_v54, 0.0  ;;  %v8973_v16 = vpop.eup %8972 }
 0x585   :  { %v887_v53 = vsel %vm583_vm10, %v8973_v16, 0.0 }
 0x586   :  { %8833 = vrot.lane.b32.xlu1 %v9604_v40, %s13884_s20  ;;  %891 = vadd.xlane.f32.xlu0 %v890_v21 }
 0x59c   :  { %8838 = vrot.lane.b32.xlu0 %v9614_v60, %s13884_s20 }
 0x5a0   :  { %1282 = vrot.lane.b32.xlu0 %v9598_v38, %s13850_s21 }
 0x5a4   :  { %1286 = vrot.lane.b32.xlu0 %v9610_v56, %s13850_s21 }
 0x5aa   :  { %882 = vadd.xlane.f32.xlu1 %v881_v46 }
 0x5ae   :  { %888 = vadd.xlane.f32.xlu1 %v887_v53 }
 0x5bf   :  { %8843 = vrot.lane.b32.xlu1 %v9604_v40, %s13852_s22 }
 0x5c3   :  { %8848 = vrot.lane.b32.xlu1 %v9614_v60, %s13852_s22 }
 0x5c7   :  { %1284 = vrot.lane.b32.xlu1 %v9596_v2, %s13850_s21 }
 0x5cb   :  { %1288 = vrot.lane.b32.xlu1 %v9608_v44, %s13850_s21 }
 0x5cd   :  { %v1154_v38 = vpop.xlane.xlu1 %1153 }
 0x5d1   :  { %v8824_v56 = vpop.permute.xlu1 %8823 }
 0x5d2   :  { %v8826_v41 = vunpack.i.h.bf16 %v8824_v56  ;;  %v8825_v20 = vunpack.i.l.bf16 %v8824_v56 }
 0x5d4   :  { %v8328_v17 = vpack.c.bf16 %v8826_v41, %v8825_v20 }
 0x5d6   :  { %8329 = vmatprep.subr.bf16.mxu0 %v8328_v17  ;;  %v1157_v36 = vpop.xlane.xlu0 %1156 }
 0x5d7   :  { %8331 = vmatpush3.bf16.msra.mxu0 %v8328_v17 }
 0x5da   :  { %v8829_v55 = vpop.permute.xlu0 %8828 }
 0x5db   :  { %v8831_v6 = vunpack.i.h.bf16 %v8829_v55  ;;  %v8830_v47 = vunpack.i.l.bf16 %v8829_v55 }
 0x5dd   :  { %v8332_v50 = vpack.c.bf16 %v8831_v6, %v8830_v47 }
 0x5df   :  { %8334 = vmatprep.subr.msk.bf16.mxu0 %vm9669_vm14, %v8332_v50 }
 0x5e0   :  { %8337 = vmatpush3.bf16.msk.msra.mxu0 %vm9669_vm14, %v8332_v50 }
 0x602   :  { %v1160_v2 = vpop.xlane.xlu1 %1159 }
 0x606   :  { %v8834_v44 = vpop.permute.xlu1 %8833 }
 0x607   :  { %v8836_v15 = vunpack.i.h.bf16 %v8834_v44  ;;  %v8835_v21 = vunpack.i.l.bf16 %v8834_v44 }
 0x609   :  { %v8350_v3 = vpack.c.bf16 %v8836_v15, %v8835_v21 }
 0x60b   :  { %8351 = vmatprep.subr.bf16.mxu0 %v8350_v3  ;;  %v1163_v34 = vpop.xlane.xlu0 %1162 }
 0x60f   :  { %v886_v49 = vpop.xlane.xlu0 %885 }
 0x610   :  { %8974 = vrcp.f32 %v886_v49 }
 0x613   :  { %v892_v46 = vpop.xlane.xlu0 %891 }
 0x617   :  { %v8839_v56 = vpop.permute.xlu0 %8838 }
 0x618   :  { %v8841_v17 = vunpack.i.h.bf16 %v8839_v56  ;;  %v8840_v55 = vunpack.i.l.bf16 %v8839_v56 }
 0x61a   :  { %v8975_v41 = vpop.eup %8974  ;;  %v8354_v21 = vpack.c.bf16 %v8841_v17, %v8840_v55 }
 0x61b   :  { %v898_v44 = vmul.f32 %v8975_v41, %v9766_v42 }
 0x637   :  { %v883_v48 = vpop.xlane.xlu1 %882 }
 0x638   :  { %8976 = vrcp.f32 %v883_v48 }
 0x639   :  { %8978 = vrcp.f32 %v1154_v38 }
 0x63a   :  { %8980 = vrcp.f32 %v892_v46 }
 0x63b   :  { %v889_v53 = vpop.xlane.xlu1 %888 }
 0x63c   :  { %8982 = vrcp.f32 %v889_v53 }
 0x63d   :  { %8984 = vrcp.f32 %v1157_v36 }
 0x63e   :  { %8986 = vrcp.f32 %v1160_v2 }
 0x63f   :  { %8988 = vrcp.f32 %v1163_v34  ;;  %v8844_v6 = vpop.permute.xlu1 %8843 }
 0x640   :  { %v8846_v49 = vunpack.i.h.bf16 %v8844_v6  ;;  %v8845_v48 = vunpack.i.l.bf16 %v8844_v6 }
 0x642   :  { %v8977_v20 = vpop.eup %8976  ;;  %v8360_v46 = vpack.c.bf16 %v8846_v49, %v8845_v48 }
 0x643   :  { %v897_v47 = vmul.f32 %v8977_v20, %v8971_v54  ;;  %v8979_v50 = vpop.eup %8978  ;;  %v1283_v20 = vpop.permute.xlu0 %1282 }
 0x644   :  { %v8981_v15 = vpop.eup %8980  ;;  %v1168_v42 = vmul.f32 %v8979_v50, %v9746_v45 }
 0x645   :  { %8014 = vmatprep.mubr.msk.f32.mxu0 %vm583_vm10, %v897_v47  ;;  %v900_v2 = vmul.f32 %v8981_v15, %v9770_v51 }
 0x646   :  { %v8983_v38 = vpop.eup %8982  ;;  %8015 = vmatmul.mubr.msk.f32.vlgmr.msra.gmra.mrb[12].mxu0 %vm583_vm10, %v898_v44 }
 0x647   :  { %8353 = vmatpush3.bf16.msra.mxu0 %v8350_v3  ;;  %v899_v36 = vmul.f32 %v8983_v38, %v8973_v16  ;;  %v8985_v54 = vpop.eup %8984  ;;  %v8849_v3 = vpop.permute.xlu1 %8848 }
 0x648   :  { %8356 = vmatprep.subr.msk.bf16.mxu0 %vm9669_vm14, %v8354_v21  ;;  %v8987_v34 = vpop.eup %8986  ;;  %v1169_v16 = vmul.f32 %v8985_v54, %v9750_v37  ;;  %v8851_v45 = vunpack.i.h.bf16 %v8849_v3  ;;  %v8850_v56 = vunpack.i.l.bf16 %v8849_v3  ;;  %v1287_v37 = vpop.permute.xlu0 %1286 }
 0x649   :  { %8017 = vmatprep.mubr.msk.f32.mxu0 %vm583_vm10, %v899_v36  ;;  %v8989_v51 = vpop.eup %8988  ;;  %v1170_v53 = vmul.f32 %v8987_v34, %v9758_v7 }
 0x64a   :  { %8018 = vmatmul.mubr.msk.f32.gmra.mrb[14].mxu0 %vm583_vm10, %v900_v2  ;;  %v1171_v41 = vmul.f32 %v8989_v51, %v9762_v43  ;;  %v8366_v17 = vpack.c.bf16 %v8851_v45, %v8850_v56 }
 0x64b   :  { %8359 = vmatpush3.bf16.msk.msra.mxu0 %vm9669_vm14, %v8354_v21  ;;  %8042 = vmatprep.mubr.msk.f32.mxu0 %vm583_vm10, %v1168_v42  ;;  %v1285_v7 = vpop.permute.xlu1 %1284 }
 0x64c   :  { %8362 = vmatprep.subr.msk.bf16.mxu0 %vm9620_vm9, %v8360_v46 }
 0x64e   :  { %8043 = vmatmul.mubr.msk.f32.vlgmr.msra.gmra.mrb[16].mxu0 %vm583_vm10, %v1169_v16 }
 0x64f   :  { %8045 = vmatprep.mubr.msk.f32.mxu0 %vm583_vm10, %v1170_v53  ;;  %v1289_v43 = vpop.permute.xlu1 %1288 }
 0x652   :  { %8046 = vmatmul.mubr.msk.f32.gmra.mrb[18].mxu0 %vm583_vm10, %v1171_v41 }
 0x653   :  { %8056 = vmatprep.mubr.msk.f32.mxu0 %vm481_vm8, %v1283_v20 }
 0x654   :  { %8365 = vmatpush3.bf16.xpose.msk.msra.mxu0 %vm9620_vm9, %v8360_v46 }
 0x655   :  { %8368 = vmatprep.subr.msk.bf16.mxu0 %vm9620_vm9, %v8366_v17 }
 0x65c   :  { %8371 = vmatpush3.bf16.xpose.msk.msra.mxu0 %vm9620_vm9, %v8366_v17 }
 0x663   :  { %8057 = vmatmul.mubr.msk.f32.vlgmr.msra.gmra.mrb[20].mxu0 %vm481_vm8, %v1285_v7 }
 0x664   :  { %8059 = vmatprep.mubr.msk.f32.mxu0 %vm481_vm8, %v1287_v37 }
 0x667   :  { %8060 = vmatmul.mubr.msk.f32.gmra.mrb[22].mxu0 %vm481_vm8, %v1289_v43 }
 0x719   :  { %v8016_v55 = vpop.f32.mrb[12].mxu0 }
 0x71a   :  { %v992_v6 = vpop.f32.mrb[13].mxu0 }
 0x71d   :  { %v8019_v47 = vpop.f32.mrb[14].mxu0 }
 0x71e   :  { %v1002_v50 = vpop.f32.mrb[15].mxu0 }
 0x721   :  { %v8044_v44 = vpop.f32.mrb[16].mxu0 }
 0x722   :  { %v1263_v15 = vpop.f32.mrb[17].mxu0 }
 0x725   :  { %v9828_v38 = vpop.f32.mrb[18].mxu0 }
 0x726   :  { %v9830_v21 = vpop.f32.mrb[19].mxu0 }
 0x736   :  { %v8058_v49 = vpop.f32.mrb[20].mxu0 }
 0x737   :  { %v1380_v48 = vpop.f32.mrb[21].mxu0  ;;  %v1402_v36 = vsel %vm583_vm10, %v8058_v49, -inf }
 0x738   :  { %1403 = vmax.xlane.f32.xlu1 %v1402_v36  ;;  %v1399_v2 = vsel %vm583_vm10, %v1380_v48, -inf }
 0x739   :  { %1400 = vmax.xlane.f32.xlu0 %v1399_v2 }
 0x73a   :  { %v8061_v54 = vpop.f32.mrb[22].mxu0 }
 0x73b   :  { %v1390_v42 = vpop.f32.mrb[23].mxu0  ;;  %v1408_v46 = vsel %vm593_vm11, %v8061_v54, -inf }
 0x73c   :  { %v1405_v34 = vsel %vm583_vm10, %v1390_v42, -inf }
 0x73d   :  { %1406 = vmax.xlane.f32.xlu0 %v1405_v34 }
 0x741   :  { %1409 = vmax.xlane.f32.xlu0 %v1408_v46 }
 0x7c5   :  { %v1404_v16 = vpop.xlane.xlu1 %1403 }
 0x7c6   :  { %v1412_v3 = vsub.f32 %v8058_v49, %v1404_v16  ;;  %v1401_v51 = vpop.xlane.xlu0 %1400 }
 0x7c7   :  { %v1411_v53 = vsub.f32 %v1380_v48, %v1401_v51 }
 0x7c8   :  { %v1417_v45 = vmul.f32 1.442695, %v1412_v3 }
 0x7c9   :  { %v1415_v56 = vmul.f32 1.442695, %v1411_v53 }
 0x7ca   :  { %8990 = vpow2.f32 %v1417_v45  ;;  %v1407_v41 = vpop.xlane.xlu0 %1406 }
 0x7cb   :  { %8992 = vpow2.f32 %v1415_v56  ;;  %v1413_v20 = vsub.f32 %v1390_v42, %v1407_v41 }
 0x7cd   :  { %v1419_v17 = vmul.f32 1.442695, %v1413_v20 }
 0x7ce   :  { %v1410_v7 = vpop.xlane.xlu0 %1409 }
 0x7cf   :  { %8994 = vpow2.f32 %v1419_v17  ;;  %v1414_v37 = vsub.f32 %v8061_v54, %v1410_v7 }
 0x7d1   :  { %v1421_v43 = vmul.f32 1.442695, %v1414_v37 }
 0x7d3   :  { %8996 = vpow2.f32 %v1421_v43 }
 0x7d4   :  { %v8991_v36 = vpop.eup %8990 }
 0x7d5   :  { %v8993_v2 = vpop.eup %8992  ;;  %v1426_v34 = vsel %vm583_vm10, %v8991_v36, 0.0 }
 0x7d6   :  { %1427 = vadd.xlane.f32.xlu0 %v1426_v34  ;;  %v1423_v49 = vsel %vm583_vm10, %v8993_v2, 0.0  ;;  %v57_v34 = vld [vmem:[%s13810_s4 + $0x8] sm:$0xff] }
 0x7d7   :  { %1424 = vadd.xlane.f32.xlu1 %v1423_v49 }
 0x7d9   :  { %v8995_v48 = vpop.eup %8994 }
 0x7da   :  { %v1429_v46 = vsel %vm583_vm10, %v8995_v48, 0.0 }
 0x7db   :  { %1430 = vadd.xlane.f32.xlu1 %v1429_v46 }
 0x7dd   :  { %v8997_v16 = vpop.eup %8996 }
 0x7de   :  { %v1432_v42 = vsel %vm593_vm11, %v8997_v16, 0.0 }
 0x7df   :  { %1433 = vadd.xlane.f32.xlu0 %v1432_v42 }
 0x7ec   :  { %8853 = vrot.lane.b32.xlu1 %v9604_v40, %s13848_s23 }
 0x7f0   :  { %1557 = vrot.lane.b32.xlu1 %v992_v6, %s13846_s24 }
 0x7f4   :  { %1559 = vrot.lane.b32.xlu1 %v8016_v55, %s13846_s24 }
 0x7f5   :  { %8858 = vrot.lane.b32.xlu0 %v9614_v60, %s13848_s23 }
 0x7f8   :  { %1575 = vrot.lane.b32.xlu1 %v8044_v44, %s13856_s25 }
 0x7f9   :  { %1573 = vrot.lane.b32.xlu0 %v1263_v15, %s13856_s25 }
 0x7fc   :  { %1563 = vrot.lane.b32.xlu1 %v8019_v47, %s13846_s24 }
 0x7fd   :  { %1561 = vrot.lane.b32.xlu0 %v1002_v50, %s13846_s24 }
 0x863   :  { %v1428_v40 = vpop.xlane.xlu0 %1427 }
 0x864   :  { %v1425_v54 = vpop.xlane.xlu1 %1424 }
 0x865   :  { %8998 = vrcp.f32 %v1425_v54 }
 0x866   :  { %9000 = vrcp.f32 %v1428_v40 }
 0x868   :  { %v1431_v3 = vpop.xlane.xlu1 %1430 }
 0x869   :  { %9002 = vrcp.f32 %v1431_v3 }
 0x86c   :  { %v8854_v6 = vpop.permute.xlu1 %8853  ;;  %v1434_v55 = vpop.xlane.xlu0 %1433 }
 0x86d   :  { %v8856_v51 = vunpack.i.h.bf16 %v8854_v6  ;;  %v8855_v53 = vunpack.i.l.bf16 %v8854_v6  ;;  %9004 = vrcp.f32 %v1434_v55 }
 0x86f   :  { %v8999_v60 = vpop.eup %8998  ;;  %v8372_v45 = vpack.c.bf16 %v8856_v51, %v8855_v53 }
 0x870   :  { %v8859_v44 = vpop.permute.xlu0 %8858  ;;  %v1439_v56 = vmul.f32 %v8999_v60, %v8993_v2  ;;  %v9001_v50 = vpop.eup %9000  ;;  %v56_v2 = vld [vmem:[%s13810_s4] sm:$0xff] }
 0x871   :  { %v8861_v15 = vunpack.i.h.bf16 %v8859_v44  ;;  %v8860_v41 = vunpack.i.l.bf16 %v8859_v44  ;;  %8373 = vmatprep.subr.bf16.mxu1 %v8372_v45  ;;  %v1440_v17 = vmul.f32 %v9001_v50, %v8991_v36  ;;  %v58_v36 = vld [vmem:[%s13810_s4 + $0x10] sm:$0xff]  ;;  %v9867_v49 = vpack.c.bf16 %v57_v34, %v56_v2  ;;  %v1558_v3 = vpop.permute.xlu1 %1557 }
 0x872   :  { %8375 = vmatpush3.bf16.msra.mxu1 %v8372_v45  ;;  %8070 = vmatprep.mubr.msk.f32.mxu1 %vm583_vm10, %v1439_v56  ;;  %v1601_v45 = vsel %vm481_vm8, %v9726_v19, %v1558_v3 }
 0x873   :  { %v8376_v47 = vpack.c.bf16 %v8861_v15, %v8860_v41  ;;  %v9003_v20 = vpop.eup %9002  ;;  %14076 = vst [vmem:[#allocation7_spill] sm:$0xff] %v9867_v49 }
 0x874   :  { %v1441_v37 = vmul.f32 %v9003_v20, %v8995_v48  ;;  %v59_v48 = vld [vmem:[%s13810_s4 + $0x18] sm:$0xff]  ;;  %v1574_v51 = vpop.permute.xlu0 %1573 }
 0x875   :  { %8378 = vmatprep.subr.msk.bf16.mxu1 %vm9669_vm14, %v8376_v47  ;;  %v9872_v46 = vpack.c.bf16 %v59_v48, %v58_v36  ;;  %v1560_v6 = vpop.permute.xlu1 %1559 }
 0x876   :  { %8381 = vmatpush3.bf16.msk.msra.mxu1 %vm9669_vm14, %v8376_v47  ;;  %v1602_v44 = vsel %vm481_vm8, %v9724_v18, %v1560_v6 }
 0x877   :  { %v9005_v7 = vpop.eup %9004  ;;  %14077 = vst [vmem:[#allocation8_spill] sm:$0xff] %v9872_v46  ;;  %8383 = vmatprep.subr.bf16.mxu1 %v9867_v49 }
 0x878   :  { %v1442_v43 = vmul.f32 %v9005_v7, %v8997_v16  ;;  %v1562_v60 = vpop.permute.xlu0 %1561 }
 0x879   :  { %8071 = vmatmul.mubr.msk.f32.vlgmr.msra.gmra.mrb[8].mxu1 %vm583_vm10, %v1440_v17  ;;  %v1576_v55 = vpop.permute.xlu1 %1575  ;;  %v1603_v19 = vsel %vm481_vm8, %v9730_v0, %v1562_v60  ;;  %v9909_v0 = vld [vmem:[%s13811_s5] ss:$0 sm:$0xff] }
 0x87a   :  { %8073 = vmatprep.mubr.msk.f32.mxu1 %vm583_vm10, %v1441_v37  ;;  %8385 = vmatpush3.bf16.msra.mxu1 %v9867_v49  ;;  %v1607_v15 = vsel %vm1605_vm15, %v1602_v44, %v1576_v55  ;;  %v14190_v49 = vrot.slane %v9331_v5, 5 }
 0x87b   :  { %8387 = vmatprep.subr.bf16.mxu1 %v9872_v46 }
 0x87d   :  { %8074 = vmatmul.mubr.msk.f32.gmra.mrb[10].mxu1 %vm583_vm10, %v1442_v43  ;;  %v1564_v53 = vpop.permute.xlu1 %1563 }
 0x87e   :  { %8389 = vmatpush3.bf16.msra.mxu1 %v9872_v46  ;;  %v1604_v18 = vsel %vm481_vm8, %v9728_v52, %v1564_v53 }
 0x94c   :  { %v8072_v16 = vpop.f32.mrb[8].mxu1 }
 0x94d   :  { %1591 = vrot.lane.b32.xlu1 %v8072_v16, %s13854_s26  ;;  %v1534_v42 = vpop.f32.mrb[9].mxu1 }
 0x94e   :  { %1589 = vrot.lane.b32.xlu0 %v1534_v42, %s13854_s26 }
 0x950   :  { %v8075_v54 = vpop.f32.mrb[10].mxu1 }
 0x951   :  { %1579 = vrot.lane.b32.xlu1 %v9828_v38, %s13856_s25  ;;  %v1544_v40 = vpop.f32.mrb[11].mxu1 }
 0x952   :  { %1577 = vrot.lane.b32.xlu0 %v9830_v21, %s13856_s25  ;;  %v1606_v21 = vsel %vm1605_vm15, %v1601_v45, %v1574_v51 }
 0x955   :  { %1595 = vrot.lane.b32.xlu1 %v8075_v54, %s13854_s26 }
 0x956   :  { %1593 = vrot.lane.b32.xlu0 %v1544_v40, %s13854_s26 }
 0x9bf   :  { %v1592_v38 = vpop.permute.xlu1 %1591 }
 0x9c0   :  { %v1590_v56 = vpop.permute.xlu0 %1589  ;;  %v1612_v47 = vsel %vm1610_vm12, %v1607_v15, %v1592_v38 }
 0x9c1   :  { %v1611_v41 = vsel %vm1610_vm12, %v1606_v21, %v1590_v56 }
 0x9c2   :  { %8084 = vmatprep.mubr.msk.f32.mxu1 %vm375_vm7, %v1611_v41 }
 0x9c3   :  { %v1580_v50 = vpop.permute.xlu1 %1579  ;;  %8085 = vmatmul.mubr.msk.f32.vlgmr.msra.gmra.mrb[12].mxu1 %vm375_vm7, %v1612_v47 }
 0x9c4   :  { %v1578_v20 = vpop.permute.xlu0 %1577  ;;  %v1609_v43 = vsel %vm1605_vm15, %v1604_v18, %v1580_v50 }
 0x9c5   :  { %v1608_v7 = vsel %vm1605_vm15, %v1603_v19, %v1578_v20 }
 0x9c7   :  { %v1596_v17 = vpop.permute.xlu1 %1595 }
 0x9c8   :  { %v1594_v37 = vpop.permute.xlu0 %1593  ;;  %v1614_v34 = vsel %vm1610_vm12, %v1609_v43, %v1596_v17 }
 0x9c9   :  { %v1613_v2 = vsel %vm1610_vm12, %v1608_v7, %v1594_v37 }
 0x9ca   :  { %8087 = vmatprep.mubr.msk.f32.mxu1 %vm375_vm7, %v1613_v2 }
 0x9cb   :  { %8088 = vmatmul.mubr.msk.f32.gmra.mrb[14].mxu1 %vm375_vm7, %v1614_v34 }
 0xa96   :  { %v8086_v36 = vpop.f32.mrb[12].mxu1 }
 0xa97   :  { %v1705_v52 = vadd.f32 %v8086_v36, %v9909_v0  ;;  %v1699_v48 = vpop.f32.mrb[13].mxu1 }
 0xa98   :  { %v1700_v16 = vadd.f32 %v9909_v0, %v1699_v48 }
 0xa99   :  { %v1729_v42 = vrot.slane %v1705_v52, 1  ;;  %v1730_v54 = vrot.slane %v1705_v52, 2  ;;  %v1731_v40 = vrot.slane %v1705_v52, 3  ;;  %v1732_v3 = vrot.slane %v1705_v52, 4 }
 0xa9a   :  { %v1733_v6 = vrot.slane %v1705_v52, 5  ;;  %v1734_v55 = vrot.slane %v1705_v52, 6  ;;  %v1735_v51 = vrot.slane %v1705_v52, 7  ;;  %v9932_v56 = vadd.f32 %v1705_v52, %v9418_v35 }
 0xa9b   :  { %v9914_v53 = vadd.f32 %v1729_v42, %v9453_v57  ;;  %v9917_v60 = vadd.f32 %v1730_v54, %v9457_v58  ;;  %v9920_v45 = vadd.f32 %v1731_v40, %v9461_v59  ;;  %v9923_v38 = vadd.f32 %v1732_v3, %v9466_v61 }
 0xa9c   :  { %v9926_v44 = vadd.f32 %v1733_v6, %v9470_v62  ;;  %v9929_v21 = vadd.f32 %v1734_v55, %v9474_v63  ;;  %v1722_v15 = vrot.slane %v1700_v16, 1  ;;  %v9939_v59 = vadd.f32 %v1735_v51, %v9479_v1 }
 0xa9d   :  { %v1832_v57 = vrot.slane %v9914_v53, 7  ;;  %v1834_v58 = vrot.slane %v9917_v60, 6  ;;  %v1836_v61 = vrot.slane %v9920_v45, 5  ;;  %v1838_v62 = vrot.slane %v9923_v38, 4 }
 0xa9e   :  { %v9936_v41 = vpop.f32.mrb[14].mxu1  ;;  %v1723_v47 = vrot.slane %v1700_v16, 2  ;;  %v1840_v50 = vrot.slane %v9926_v44, 3  ;;  %v1724_v20 = vrot.slane %v1700_v16, 3  ;;  %v1725_v19 = vrot.slane %v1700_v16, 4 }
 0xa9f   :  { %v1709_v63 = vpop.f32.mrb[15].mxu1  ;;  %v1833_v35 = vsel %vm327_vm0, %v1832_v57, %v9932_v56  ;;  %v1842_v18 = vrot.slane %v9929_v21, 2  ;;  %v1726_v7 = vrot.slane %v1700_v16, 5  ;;  %v1727_v1 = vrot.slane %v1700_v16, 6 }
 0xaa0   :  { %v1835_v17 = vsel %vm330_vm1, %v1834_v58, %v1833_v35  ;;  %v1710_v37 = vadd.f32 %v9909_v0, %v1709_v63  ;;  %v1728_v2 = vrot.slane %v1700_v16, 7  ;;  %v9951_v34 = vadd.f32 %v1722_v15, %v9377_v24 }
 0xaa1   :  { %v1837_v43 = vsel %vm333_vm2, %v1836_v61, %v1835_v17  ;;  %v9955_v52 = vadd.f32 %v1723_v47, %v9381_v25  ;;  %v9958_v48 = vadd.f32 %v1724_v20, %v9385_v26  ;;  %v9961_v42 = vadd.f32 %v1725_v19, %v9389_v27 }
 0xaa2   :  { %v1839_v36 = vsel %vm336_vm3, %v1838_v62, %v1837_v43  ;;  %v1844_v40 = vrot.slane %v9939_v59, 1  ;;  %v9966_v3 = vadd.f32 %v1700_v16, %v9370_v22  ;;  %v9969_v24 = vadd.f32 %v1726_v7, %v9398_v29 }
 0xaa3   :  { %v1841_v54 = vsel %vm339_vm4, %v1840_v50, %v1839_v36  ;;  %v9973_v25 = vadd.f32 %v1727_v1, %v9402_v30  ;;  %v1818_v26 = vrot.slane %v9951_v34, 7  ;;  %v1820_v27 = vrot.slane %v9955_v52, 6 }
 0xaa4   :  { %v1843_v6 = vsel %vm342_vm5, %v1842_v18, %v1841_v54  ;;  %v9979_v51 = vadd.f32 %v1728_v2, %v9406_v31  ;;  %v1822_v22 = vrot.slane %v9958_v48, 5  ;;  %v1824_v16 = vrot.slane %v9961_v42, 4 }
 0xaa5   :  { %v1845_v55 = vsel %vm345_vm6, %v1844_v40, %v1843_v6  ;;  %v1819_v57 = vsel %vm327_vm0, %v1818_v26, %v9966_v3  ;;  %v1826_v30 = vrot.slane %v9969_v24, 3  ;;  %v1736_v58 = vrot.slane %v1710_v37, 1 }
 0xaa6   :  { %v1867_v29 = vsel %vm375_vm7, %v1845_v55, 0.0  ;;  %v1821_v15 = vsel %vm330_vm1, %v1820_v27, %v1819_v57  ;;  %v1737_v61 = vrot.slane %v1710_v37, 2  ;;  %v1738_v62 = vrot.slane %v1710_v37, 3 }
 0xaa7   :  { %1868 = vadd.xlane.f32.xlu1 %v1867_v29  ;;  %v1739_v47 = vrot.slane %v1710_v37, 4  ;;  %v1823_v31 = vsel %vm333_vm2, %v1822_v22, %v1821_v15  ;;  %v1828_v63 = vrot.slane %v9973_v25, 2  ;;  %v1740_v35 = vrot.slane %v1710_v37, 5 }
 0xaa8   :  { %v1741_v50 = vrot.slane %v1710_v37, 6  ;;  %v1825_v20 = vsel %vm336_vm3, %v1824_v16, %v1823_v31  ;;  %v1742_v19 = vrot.slane %v1710_v37, 7  ;;  %v9992_v17 = vadd.f32 %v1736_v58, %v9540_v8 }
 0xaa9   :  { %v9995_v18 = vadd.f32 %v1737_v61, %v9544_v9  ;;  %v1827_v7 = vsel %vm339_vm4, %v1826_v30, %v1825_v20  ;;  %v1830_v1 = vrot.slane %v9979_v51, 1  ;;  %v10000_v43 = vadd.f32 %v1738_v62, %v9548_v10 }
 0xaaa   :  { %v10003_v2 = vadd.f32 %v1739_v47, %v9553_v11  ;;  %v1829_v36 = vsel %vm342_vm5, %v1828_v63, %v1827_v7  ;;  %v10007_v54 = vadd.f32 %v1710_v37, %v9535_v4  ;;  %v10010_v8 = vadd.f32 %v1740_v35, %v9557_v12 }
 0xaab   :  { %v1846_v9 = vrot.slane %v9992_v17, 7  ;;  %v1831_v40 = vsel %vm345_vm6, %v1830_v1, %v1829_v36  ;;  %v10015_v6 = vadd.f32 %v1741_v50, %v9561_v14  ;;  %v1848_v10 = vrot.slane %v9995_v18, 6 }
 0xaac   :  { %v1864_v11 = vsel %vm375_vm7, %v1831_v40, 0.0  ;;  %v10020_v26 = vadd.f32 %v1742_v19, %v9565_v23  ;;  %v1850_v12 = vrot.slane %v10000_v43, 5  ;;  %v1852_v27 = vrot.slane %v10003_v2, 4 }
 0xaad   :  { %v1847_v4 = vsel %vm327_vm0, %v1846_v9, %v10007_v54  ;;  %1865 = vadd.xlane.f32.xlu0 %v1864_v11  ;;  %v1854_v55 = vrot.slane %v10010_v8, 3  ;;  %v1715_v22 = vadd.f32 %v9936_v41, %v9909_v0  ;;  %v1856_v16 = vrot.slane %v10015_v6, 2 }
 0xaae   :  { %v1849_v37 = vsel %vm330_vm1, %v1848_v10, %v1847_v4  ;;  %v1858_v57 = vrot.slane %v10020_v26, 1 }
 0xaaf   :  { %v1851_v14 = vsel %vm333_vm2, %v1850_v12, %v1849_v37  ;;  %v10039_v61 = vadd.f32 %v1715_v22, %v9586_v32 }
 0xab0   :  { %v1853_v23 = vsel %vm336_vm3, %v1852_v27, %v1851_v14 }
 0xab1   :  { %v1855_v29 = vsel %vm339_vm4, %v1854_v55, %v1853_v23  ;;  %v1874_v0 = vsel %vm1873_vm13, %v10039_v61, 0.0 }
 0xab2   :  { %v1857_v30 = vsel %vm342_vm5, %v1856_v16, %v1855_v29 }
 0xab3   :  { %v1859_v58 = vsel %vm345_vm6, %v1858_v57, %v1857_v30 }
 0xab4   :  { %v1870_v15 = vsel %vm375_vm7, %v1859_v58, 0.0 }
 0xab5   :  { %1871 = vadd.xlane.f32.xlu0 %v1870_v15 }
 0xab9   :  { %1875 = vadd.xlane.f32.xlu0 %v1874_v0 }
 0xb34   :  { %v1869_v41 = vpop.xlane.xlu1 %1868 }
 0xb35   :  { %v1879_v62 = vmul.f32 0.03125, %v1869_v41 }
 0xb37   :  { %v1893_v47 = vrot.slane %v1879_v62, 1  ;;  %v1894_v31 = vrot.slane %v1879_v62, 2  ;;  %v1895_v63 = vrot.slane %v1879_v62, 3  ;;  %v1896_v35 = vrot.slane %v1879_v62, 4 }
 0xb38   :  { %v1897_v50 = vrot.slane %v1879_v62, 5  ;;  %v1898_v20 = vrot.slane %v1879_v62, 6  ;;  %v1899_v19 = vrot.slane %v1879_v62, 7  ;;  %v10044_v7 = vsub.f32 %v9932_v56, %v1879_v62 }
 0xb39   :  { %v10047_v32 = vsub.f32 %v9914_v53, %v1893_v47  ;;  %v10050_v1 = vsub.f32 %v9917_v60, %v1894_v31  ;;  %v10053_v36 = vsub.f32 %v9920_v45, %v1895_v63  ;;  %v10056_v9 = vsub.f32 %v9923_v38, %v1896_v35 }
 0xb3a   :  { %v10059_v40 = vsub.f32 %v9926_v44, %v1897_v50  ;;  %v10062_v10 = vsub.f32 %v9929_v21, %v1898_v20  ;;  %v10065_v56 = vsub.f32 %v9939_v59, %v1899_v19  ;;  %v1965_v53 = vmul.f32 %v10044_v7, %v10044_v7  ;;  %v1866_v60 = vpop.xlane.xlu0 %1865 }
 0xb3b   :  { %v1966_v45 = vmul.f32 %v10047_v32, %v10047_v32  ;;  %v1967_v38 = vmul.f32 %v10050_v1, %v10050_v1  ;;  %v1968_v44 = vmul.f32 %v10053_v36, %v10053_v36  ;;  %v1969_v21 = vmul.f32 %v10056_v9, %v10056_v9 }
 0xb3c   :  { %v1878_v11 = vmul.f32 0.03125, %v1866_v60  ;;  %v1970_v59 = vmul.f32 %v10059_v40, %v10059_v40  ;;  %v1971_v4 = vmul.f32 %v10062_v10, %v10062_v10  ;;  %v1972_v12 = vmul.f32 %v10065_v56, %v10065_v56 }
 0xb3d   :  { %v2021_v37 = vrot.slane %v1966_v45, 7  ;;  %v2023_v27 = vrot.slane %v1967_v38, 6  ;;  %v2025_v14 = vrot.slane %v1968_v44, 5  ;;  %v2027_v55 = vrot.slane %v1969_v21, 4 }
 0xb3e   :  { %v2029_v22 = vrot.slane %v1970_v59, 3  ;;  %v2031_v23 = vrot.slane %v1971_v4, 2  ;;  %v2033_v16 = vrot.slane %v1972_v12, 1  ;;  %v1886_v29 = vrot.slane %v1878_v11, 1 }
 0xb3f   :  { %v2022_v57 = vsel %vm327_vm0, %v2021_v37, %v1965_v53  ;;  %v1887_v30 = vrot.slane %v1878_v11, 2  ;;  %v1888_v58 = vrot.slane %v1878_v11, 3  ;;  %v1889_v15 = vrot.slane %v1878_v11, 4 }
 0xb40   :  { %v2024_v0 = vsel %vm330_vm1, %v2023_v27, %v2022_v57  ;;  %v1890_v41 = vrot.slane %v1878_v11, 5  ;;  %v1891_v62 = vrot.slane %v1878_v11, 6  ;;  %v1892_v47 = vrot.slane %v1878_v11, 7 }
 0xb41   :  { %v2026_v31 = vsel %vm333_vm2, %v2025_v14, %v2024_v0  ;;  %v10087_v63 = vsub.f32 %v9966_v3, %v1878_v11  ;;  %v10090_v35 = vsub.f32 %v9951_v34, %v1886_v29  ;;  %v10093_v50 = vsub.f32 %v9955_v52, %v1887_v30 }
 0xb42   :  { %v1872_v20 = vpop.xlane.xlu0 %1871  ;;  %v2028_v19 = vsel %vm336_vm3, %v2027_v55, %v2026_v31  ;;  %v10097_v53 = vsub.f32 %v9958_v48, %v1888_v58  ;;  %v10100_v60 = vsub.f32 %v9961_v42, %v1889_v15  ;;  %v10103_v45 = vsub.f32 %v9969_v24, %v1890_v41 }
 0xb43   :  { %v1880_v3 = vmul.f32 0.03125, %v1872_v20  ;;  %v2030_v38 = vsel %vm339_vm4, %v2029_v22, %v2028_v19  ;;  %v10107_v34 = vsub.f32 %v9973_v25, %v1891_v62  ;;  %v10110_v52 = vsub.f32 %v9979_v51, %v1892_v47 }
 0xb44   :  { %v2032_v44 = vsel %vm342_vm5, %v2031_v23, %v2030_v38  ;;  %v1957_v48 = vmul.f32 %v10087_v63, %v10087_v63  ;;  %v1958_v42 = vmul.f32 %v10090_v35, %v10090_v35  ;;  %v1959_v24 = vmul.f32 %v10093_v50, %v10093_v50 }
 0xb45   :  { %v2034_v21 = vsel %vm345_vm6, %v2033_v16, %v2032_v44  ;;  %v1960_v25 = vmul.f32 %v10097_v53, %v10097_v53  ;;  %v1961_v51 = vmul.f32 %v10100_v60, %v10100_v60  ;;  %v1962_v11 = vmul.f32 %v10103_v45, %v10103_v45 }
 0xb46   :  { %v1876_v59 = vpop.xlane.xlu0 %1875  ;;  %v2056_v4 = vsel %vm375_vm7, %v2034_v21, 0.0  ;;  %v1963_v12 = vmul.f32 %v10107_v34, %v10107_v34  ;;  %v1964_v37 = vmul.f32 %v10110_v52, %v10110_v52  ;;  %v2007_v27 = vrot.slane %v1958_v42, 7 }
 0xb47   :  { %v1881_v14 = vmul.f32 0.03125, %v1876_v59  ;;  %2057 = vadd.xlane.f32.xlu0 %v2056_v4  ;;  %v2009_v55 = vrot.slane %v1959_v24, 6  ;;  %v2011_v22 = vrot.slane %v1960_v25, 5  ;;  %v2013_v23 = vrot.slane %v1961_v51, 4 }
 0xb48   :  { %v2008_v16 = vsel %vm327_vm0, %v2007_v27, %v1957_v48  ;;  %v2015_v29 = vrot.slane %v1962_v11, 3  ;;  %v2017_v57 = vrot.slane %v1963_v12, 2  ;;  %v2019_v30 = vrot.slane %v1964_v37, 1 }
 0xb49   :  { %v10133_v58 = vsub.f32 %v10039_v61, %v1881_v14  ;;  %v2010_v15 = vsel %vm330_vm1, %v2009_v55, %v2008_v16  ;;  %v1900_v0 = vrot.slane %v1880_v3, 1  ;;  %v1901_v41 = vrot.slane %v1880_v3, 2 }
 0xb4a   :  { %v2012_v62 = vsel %vm333_vm2, %v2011_v22, %v2010_v15  ;;  %v1902_v47 = vrot.slane %v1880_v3, 3  ;;  %v1903_v31 = vrot.slane %v1880_v3, 4  ;;  %v1904_v20 = vrot.slane %v1880_v3, 5 }
 0xb4b   :  { %v2014_v19 = vsel %vm336_vm3, %v2013_v23, %v2012_v62  ;;  %v1981_v38 = vmul.f32 %v10133_v58, %v10133_v58  ;;  %v1905_v44 = vrot.slane %v1880_v3, 6  ;;  %v1906_v48 = vrot.slane %v1880_v3, 7 }
 0xb4c   :  { %v2016_v42 = vsel %vm339_vm4, %v2015_v29, %v2014_v19  ;;  %v10142_v61 = vsub.f32 %v10007_v54, %v1880_v3  ;;  %v10145_v24 = vsub.f32 %v9992_v17, %v1900_v0  ;;  %v10148_v21 = vsub.f32 %v9995_v18, %v1901_v41  ;;  %v64_v19 = vld [vmem:[%s13812_s8 + $0x8] sm:$0xff] }
 0xb4d   :  { %v2018_v25 = vsel %vm342_vm5, %v2017_v57, %v2016_v42  ;;  %v2062_v51 = vsel %vm1873_vm13, %v1981_v38, 0.0  ;;  %v10153_v11 = vsub.f32 %v10000_v43, %v1902_v47  ;;  %v10156_v59 = vsub.f32 %v10003_v2, %v1903_v31  ;;  %v71_v38 = vld [vmem:[%s13812_s8 + $0x40] sm:$0xff] }
 0xb4e   :  { %v2020_v4 = vsel %vm345_vm6, %v2019_v30, %v2018_v25  ;;  %2063 = vadd.xlane.f32.xlu0 %v2062_v51  ;;  %v10160_v54 = vsub.f32 %v10010_v8, %v1904_v20  ;;  %v10163_v17 = vsub.f32 %v10015_v6, %v1905_v44  ;;  %v10167_v3 = vsub.f32 %v10020_v26, %v1906_v48  ;;  %v66_v44 = vld [vmem:[%s13812_s8 + $0x18] sm:$0xff]  ;;  %v73_v25 = vld [vmem:[%s13812_s8 + $0x50] sm:$0xff]  ;;  %v63_v51 = vld [vmem:[%s13812_s8] sm:$0xff] }
 0xb4f   :  { %v2053_v18 = vsel %vm375_vm7, %v2020_v4, 0.0  ;;  %v1974_v43 = vmul.f32 %v10145_v24, %v10145_v24  ;;  %v1975_v2 = vmul.f32 %v10148_v21, %v10148_v21  ;;  %v1976_v12 = vmul.f32 %v10153_v11, %v10153_v11  ;;  %v70_v4 = vld [vmem:[%s13812_s8 + $0x38] sm:$0xff] }
 0xb50   :  { %2054 = vadd.xlane.f32.xlu1 %v2053_v18  ;;  %v1977_v8 = vmul.f32 %v10156_v59, %v10156_v59  ;;  %v1973_v6 = vmul.f32 %v10142_v61, %v10142_v61  ;;  %v1978_v26 = vmul.f32 %v10160_v54, %v10160_v54  ;;  %v1979_v14 = vmul.f32 %v10163_v17, %v10163_v17 }
 0xb51   :  { %v2035_v37 = vrot.slane %v1974_v43, 7  ;;  %v2037_v27 = vrot.slane %v1975_v2, 6  ;;  %v1980_v55 = vmul.f32 %v10167_v3, %v10167_v3  ;;  %v2039_v23 = vrot.slane %v1976_v12, 5  ;;  %v65_v2 = vld [vmem:[%s13812_s8 + $0x10] sm:$0xff]  ;;  %v72_v12 = vld [vmem:[%s13812_s8 + $0x48] sm:$0xff] }
 0xb52   :  { %v2041_v29 = vrot.slane %v1977_v8, 4  ;;  %v2043_v30 = vrot.slane %v1978_v26, 3  ;;  %v2045_v0 = vrot.slane %v1979_v14, 2  ;;  %v13858_v48 = vmov 0.0   ;;  %v78_v8 = vld [vmem:[%s13812_s8 + $0x78] sm:$0xff]  ;;  %v85_v26 = vld [vmem:[%s13812_s8 + $0xb0] sm:$0xff] }
 0xb53   :  { %v2036_v22 = vsel %vm327_vm0, %v2035_v37, %v1973_v6  ;;  %v2047_v62 = vrot.slane %v1980_v55, 1  ;;  %2389 = vmatprep.mubr.f32.mxu0 %v13858_v48  ;;  %2478 = vmatprep.mubr.f32.mxu1 %v13858_v48  ;;  %v10204_v42 = vpack.c.bf16 %v71_v38, %v64_v19  ;;  %v10215_v18 = vpack.c.bf16 %v73_v25, %v66_v44  ;;  %v80_v37 = vld [vmem:[%s13812_s8 + $0x88] sm:$0xff] }
 0xb54   :  { %v2038_v16 = vsel %vm330_vm1, %v2037_v27, %v2036_v22  ;;  %v10217_v43 = vpack.c.bf16 %v70_v4, %v63_v51  ;;  %v10229_v6 = vpack.c.bf16 %v72_v12, %v65_v2  ;;  %v87_v27 = vld [vmem:[%s13812_s8 + $0xc0] sm:$0xff]  ;;  %v10242_v14 = vpack.c.bf16 %v85_v26, %v78_v8  ;;  %v77_v22 = vld [vmem:[%s13812_s8 + $0x70] sm:$0xff]  ;;  %v90_v8 = vld [vmem:[%s13812_s8 + $0xd8] sm:$0xff] }
 0xb55   :  { %v2040_v57 = vsel %vm333_vm2, %v2039_v23, %v2038_v16  ;;  %14078 = vst [vmem:[#allocation9_spill] sm:$0xff] %v10204_v42  ;;  %14079 = vst [vmem:[#allocation10_spill] sm:$0xff] %v10215_v18  ;;  %8391 = vmatprep.subr.bf16.mxu0 %v10204_v42  ;;  %8399 = vmatprep.subr.bf16.mxu1 %v10215_v18  ;;  %v10244_v55 = vpack.c.bf16 %v87_v27, %v80_v37  ;;  %v84_v23 = vld [vmem:[%s13812_s8 + $0xa8] sm:$0xff]  ;;  %v79_v16 = vld [vmem:[%s13812_s8 + $0x80] sm:$0xff]  ;;  %v14200_v42 = vrot.slane %v9493_v13, 1 }
 0xb56   :  { %v2042_v15 = vsel %vm336_vm3, %v2041_v29, %v2040_v57  ;;  %14080 = vst [vmem:[#allocation11_spill] sm:$0xff] %v10217_v43  ;;  %14081 = vst [vmem:[#allocation12_spill] sm:$0xff] %v10229_v6  ;;  %8393 = vmatpush1.bf16.msra.mxu0 %v10217_v43  ;;  %8401 = vmatpush1.bf16.msra.mxu1 %v10229_v6  ;;  %v10256_v29 = vpack.c.bf16 %v84_v23, %v77_v22  ;;  %v86_v57 = vld [vmem:[%s13812_s8 + $0xb8] sm:$0xff]  ;;  %v83_v2 = vld [vmem:[%s13812_s8 + $0xa0] sm:$0xff] }
 0xb57   :  { %v2044_v41 = vsel %vm339_vm4, %v2043_v30, %v2042_v15  ;;  %14082 = vst [vmem:[#allocation13_spill] sm:$0xff] %v10242_v14  ;;  %14083 = vst [vmem:[#allocation14_spill] sm:$0xff] %v10244_v55  ;;  %8395 = vmatprep.subr.bf16.mxu0 %v10242_v14  ;;  %8403 = vmatprep.subr.bf16.mxu1 %v10244_v55  ;;  %v10263_v30 = vpack.c.bf16 %v86_v57, %v79_v16  ;;  %v69_v15 = vld [vmem:[%s13812_s8 + $0x30] sm:$0xff]  ;;  %v67_v26 = vld [vmem:[%s13812_s8 + $0x20] sm:$0xff] }
 0xb58   :  { %v2046_v47 = vsel %vm342_vm5, %v2045_v0, %v2044_v41  ;;  %14084 = vst [vmem:[#allocation15_spill] sm:$0xff] %v10256_v29  ;;  %v76_v0 = vld [vmem:[%s13812_s8 + $0x68] sm:$0xff]  ;;  %v74_v37 = vld [vmem:[%s13812_s8 + $0x58] sm:$0xff]  ;;  %v10297_v23 = vpack.c.bf16 %v90_v8, %v83_v2  ;;  %v10304_v57 = vld [vmem:[%s13813_s6] ss:$0 sm:$0xff] }
 0xb59   :  { %v2048_v31 = vsel %vm345_vm6, %v2047_v62, %v2046_v47  ;;  %14085 = vst [vmem:[#allocation16_spill] sm:$0xff] %v10263_v30  ;;  %v10273_v41 = vpack.c.bf16 %v76_v0, %v69_v15  ;;  %v68_v62 = vld [vmem:[%s13812_s8 + $0x28] sm:$0xff]  ;;  %v75_v47 = vld [vmem:[%s13812_s8 + $0x60] sm:$0xff]  ;;  %v10299_v16 = vpack.c.bf16 %v74_v37, %v67_v26 }
 0xb5a   :  { %v2059_v20 = vsel %vm375_vm7, %v2048_v31, 0.0  ;;  %8397 = vmatpush1.bf16.msra.mxu0 %v10256_v29  ;;  %8405 = vmatpush1.bf16.msra.mxu1 %v10263_v30  ;;  %v10282_v31 = vpack.c.bf16 %v75_v47, %v68_v62  ;;  %14088 = vst [vmem:[#allocation19_spill] sm:$0xff] %v10297_v23 }
 0xb5b   :  { %2060 = vadd.xlane.f32.xlu1 %v2059_v20  ;;  %14086 = vst [vmem:[#allocation17_spill] sm:$0xff] %v10273_v41  ;;  %8415 = vmatprep.subr.bf16.mxu1 %v10273_v41  ;;  %14089 = vst [vmem:[#allocation20_spill] sm:$0xff] %v10299_v16 }
 0xb5c   :  { %14087 = vst [vmem:[#allocation18_spill] sm:$0xff] %v10282_v31  ;;  %8407 = vmatprep.subr.bf16.mxu0 %v10282_v31 }
 0xbd4   :  { %v2058_v20 = vpop.xlane.xlu0 %2057 }
 0xbd5   :  { %v2066_v19 = vmul.f32 0.03125, %v2058_v20 }
 0xbd7   :  { %v2070_v38 = vadd.f32 1e-05, %v2066_v19 }
 0xbd9   :  { %9006 = vrsqrt.f32 %v2070_v38 }
 0xbdb   :  { %v2064_v44 = vpop.xlane.xlu0 %2063 }
 0xbdc   :  { %v2068_v4 = vmul.f32 0.03125, %v2064_v44 }
 0xbdd   :  { %v2055_v25 = vpop.xlane.xlu1 %2054 }
 0xbde   :  { %v2065_v51 = vmul.f32 0.03125, %v2055_v25  ;;  %v2072_v22 = vadd.f32 1e-05, %v2068_v4 }
 0xbe0   :  { %v2069_v12 = vadd.f32 1e-05, %v2065_v51 }
 0xbe2   :  { %9008 = vrsqrt.f32 %v2069_v12  ;;  %v10314_v12 = vld [vmem:[%s13814_s7] ss:$0 sm:$0xff] }
 0xbe3   :  { %v9007_v27 = vpop.eup %9006  ;;  %9010 = vrsqrt.f32 %v2072_v22 }
 0xbe4   :  { %v2088_v15 = vrot.slane %v9007_v27, 1  ;;  %v2089_v0 = vrot.slane %v9007_v27, 2  ;;  %v2090_v62 = vrot.slane %v9007_v27, 3  ;;  %v2091_v47 = vrot.slane %v9007_v27, 4 }
 0xbe5   :  { %v2092_v20 = vrot.slane %v9007_v27, 5  ;;  %v2093_v19 = vrot.slane %v9007_v27, 6  ;;  %v2094_v38 = vrot.slane %v9007_v27, 7  ;;  %v2135_v44 = vmul.f32 %v9007_v27, %v10044_v7 }
 0xbe6   :  { %v2136_v25 = vmul.f32 %v2088_v15, %v10047_v32  ;;  %v2137_v51 = vmul.f32 %v2089_v0, %v10050_v1  ;;  %v2138_v4 = vmul.f32 %v2090_v62, %v10053_v36  ;;  %v2139_v2 = vmul.f32 %v2091_v47, %v10056_v9  ;;  %v82_v32 = vld [vmem:[%s13812_s8 + $0x98] sm:$0xff]  ;;  %v89_v1 = vld [vmem:[%s13812_s8 + $0xd0] sm:$0xff] }
 0xbe7   :  { %v2140_v8 = vmul.f32 %v2092_v20, %v10059_v40  ;;  %v2141_v26 = vmul.f32 %v2093_v19, %v10062_v10  ;;  %v2142_v37 = vmul.f32 %v2094_v38, %v10065_v56  ;;  %v2166_v7 = vmul.f32 %v10304_v57, %v2135_v44 }
 0xbe8   :  { %v2061_v36 = vpop.xlane.xlu1 %2060  ;;  %v2167_v9 = vmul.f32 %v10304_v57, %v2136_v25  ;;  %v2168_v27 = vmul.f32 %v10304_v57, %v2137_v51  ;;  %v2169_v40 = vmul.f32 %v10304_v57, %v2138_v4  ;;  %v2170_v10 = vmul.f32 %v10304_v57, %v2139_v2 }
 0xbe9   :  { %v2067_v56 = vmul.f32 0.03125, %v2061_v36  ;;  %v2171_v15 = vmul.f32 %v10304_v57, %v2140_v8  ;;  %v2172_v0 = vmul.f32 %v10304_v57, %v2141_v26  ;;  %v2173_v62 = vmul.f32 %v10304_v57, %v2142_v37 }
 0xbea   :  { %v10334_v47 = vadd.f32 %v10314_v12, %v2166_v7  ;;  %v10337_v20 = vadd.f32 %v10314_v12, %v2167_v9  ;;  %v10339_v19 = vpack.c.bf16 %v89_v1, %v82_v32  ;;  %v10342_v44 = vadd.f32 %v10314_v12, %v2168_v27 }
 0xbeb   :  { %v2071_v38 = vadd.f32 1e-05, %v2067_v56  ;;  %v10345_v25 = vadd.f32 %v10314_v12, %v2169_v40  ;;  %v10348_v51 = vadd.f32 %v10314_v12, %v2170_v10  ;;  %v10351_v22 = vadd.f32 %v10314_v12, %v2171_v15 }
 0xbec   :  { %14090 = vst [vmem:[#allocation21_spill] sm:$0xff] %v10334_v47  ;;  %14091 = vst [vmem:[#allocation22_spill] sm:$0xff] %v10337_v20  ;;  %v9009_v4 = vpop.eup %9008  ;;  %v10354_v2 = vadd.f32 %v10314_v12, %v2172_v0  ;;  %v10357_v8 = vadd.f32 %v10314_v12, %v2173_v62  ;;  %v2289_v26 = vrot.slane %v10337_v20, 7 }
 0xbed   :  { %14092 = vst [vmem:[#allocation23_spill] sm:$0xff] %v10339_v19  ;;  %14093 = vst [vmem:[#allocation24_spill] sm:$0xff] %v10342_v44  ;;  %9012 = vrsqrt.f32 %v2071_v38  ;;  %v2081_v37 = vrot.slane %v9009_v4, 1  ;;  %v2082_v7 = vrot.slane %v9009_v4, 2  ;;  %v2083_v32 = vrot.slane %v9009_v4, 3 }
 0xbee   :  { %14094 = vst [vmem:[#allocation25_spill] sm:$0xff] %v10345_v25  ;;  %14095 = vst [vmem:[#allocation26_spill] sm:$0xff] %v10348_v51  ;;  %v2084_v1 = vrot.slane %v9009_v4, 4  ;;  %v2085_v36 = vrot.slane %v9009_v4, 5  ;;  %v2086_v9 = vrot.slane %v9009_v4, 6  ;;  %v2087_v27 = vrot.slane %v9009_v4, 7 }
 0xbef   :  { %14096 = vst [vmem:[#allocation27_spill] sm:$0xff] %v10351_v22  ;;  %14097 = vst [vmem:[#allocation28_spill] sm:$0xff] %v10354_v2  ;;  %v2127_v40 = vmul.f32 %v9009_v4, %v10087_v63  ;;  %v2128_v10 = vmul.f32 %v2081_v37, %v10090_v35  ;;  %v2129_v56 = vmul.f32 %v2082_v7, %v10093_v50  ;;  %v2291_v37 = vrot.slane %v10342_v44, 6  ;;  %v10386_v7 = vpop.eup %9010 }
 0xbf0   :  { %14098 = vst [vmem:[#allocation29_spill] sm:$0xff] %v10357_v8  ;;  %v2130_v15 = vmul.f32 %v2083_v32, %v10097_v53  ;;  %v2131_v0 = vmul.f32 %v2084_v1, %v10100_v60  ;;  %v2132_v62 = vmul.f32 %v2085_v36, %v10103_v45  ;;  %v2133_v38 = vmul.f32 %v2086_v9, %v10107_v34 }
 0xbf1   :  { %v2134_v48 = vmul.f32 %v2087_v27, %v10110_v52  ;;  %v2158_v20 = vmul.f32 %v10304_v57, %v2127_v40  ;;  %v2159_v30 = vmul.f32 %v10304_v57, %v2128_v10  ;;  %v2160_v63 = vmul.f32 %v10304_v57, %v2129_v56 }
 0xbf2   :  { %v2161_v35 = vmul.f32 %v10304_v57, %v2130_v15  ;;  %v2162_v50 = vmul.f32 %v10304_v57, %v2131_v0  ;;  %v2163_v53 = vmul.f32 %v10304_v57, %v2132_v62  ;;  %v2164_v60 = vmul.f32 %v10304_v57, %v2133_v38 }
 0xbf3   :  { %v2165_v45 = vmul.f32 %v10304_v57, %v2134_v48  ;;  %v10377_v34 = vadd.f32 %v10314_v12, %v2159_v30  ;;  %v10380_v52 = vadd.f32 %v10314_v12, %v2160_v63  ;;  %v10401_v36 = vadd.f32 %v10314_v12, %v2158_v20 }
 0xbf4   :  { %v10383_v4 = vadd.f32 %v10314_v12, %v2161_v35  ;;  %v10389_v32 = vadd.f32 %v10314_v12, %v2162_v50  ;;  %v10392_v1 = vadd.f32 %v10314_v12, %v2163_v53  ;;  %v10395_v48 = vadd.f32 %v10314_v12, %v2164_v60 }
 0xbf5   :  { %14099 = vst [vmem:[#allocation30_spill] sm:$0xff] %v10377_v34  ;;  %14100 = vst [vmem:[#allocation31_spill] sm:$0xff] %v10380_v52  ;;  %v10398_v30 = vadd.f32 %v10314_v12, %v2165_v45  ;;  %v2275_v9 = vrot.slane %v10377_v34, 7  ;;  %v2277_v27 = vrot.slane %v10380_v52, 6  ;;  %v2290_v40 = vsel %vm327_vm0, %v2289_v26, %v10334_v47 }
 0xbf6   :  { %14101 = vst [vmem:[#allocation32_spill] sm:$0xff] %v10383_v4  ;;  %14102 = vst [vmem:[#allocation33_spill] sm:$0xff] %v10389_v32  ;;  %v2279_v10 = vrot.slane %v10383_v4, 5  ;;  %v2281_v56 = vrot.slane %v10389_v32, 4  ;;  %v2283_v15 = vrot.slane %v10392_v1, 3  ;;  %v2285_v0 = vrot.slane %v10395_v48, 2 }
 0xbf7   :  { %14103 = vst [vmem:[#allocation34_spill] sm:$0xff] %v10392_v1  ;;  %14104 = vst [vmem:[#allocation35_spill] sm:$0xff] %v10395_v48  ;;  %v9013_v62 = vpop.eup %9012  ;;  %v2276_v20 = vsel %vm327_vm0, %v2275_v9, %v10401_v36  ;;  %v2287_v38 = vrot.slane %v10398_v30, 1  ;;  %v2292_v63 = vsel %vm330_vm1, %v2291_v37, %v2290_v40  ;;  %v2293_v35 = vrot.slane %v10345_v25, 5  ;;  %v140_v37 = vld [vmem:[%s13815_s10 + $0x180] sm:$0xff] }
 0xbf8   :  { %14105 = vst [vmem:[#allocation36_spill] sm:$0xff] %v10398_v30  ;;  %14106 = vst [vmem:[#allocation37_spill] sm:$0xff] %v10401_v36  ;;  %v2278_v26 = vsel %vm330_vm1, %v2277_v27, %v2276_v20  ;;  %v2295_v50 = vrot.slane %v10348_v51, 4  ;;  %v2297_v53 = vrot.slane %v10351_v22, 3  ;;  %v2299_v60 = vrot.slane %v10354_v2, 2  ;;  %v141_v27 = vld [vmem:[%s13815_s10 + $0x188] sm:$0xff] }
 0xbf9   :  { %v2280_v45 = vsel %vm333_vm2, %v2279_v10, %v2278_v26  ;;  %v2294_v48 = vsel %vm333_vm2, %v2293_v35, %v2292_v63  ;;  %v2095_v1 = vrot.slane %v9013_v62, 1  ;;  %v2096_v9 = vrot.slane %v9013_v62, 2  ;;  %v183_v51 = vld [vmem:[%s13815_s10 + $0x2d8] sm:$0xff]  ;;  %v9214_v25 = vld [vmem:[%s13808_s1] sm:$0xff] }
 0xbfa   :  { %v2282_v40 = vsel %vm336_vm3, %v2281_v56, %v2280_v45  ;;  %v2296_v20 = vsel %vm336_vm3, %v2295_v50, %v2294_v48  ;;  %v2097_v30 = vrot.slane %v9013_v62, 3  ;;  %v2098_v32 = vrot.slane %v9013_v62, 4 }
 0xbfb   :  { %v2284_v10 = vsel %vm339_vm4, %v2283_v15, %v2282_v40  ;;  %v2298_v63 = vsel %vm339_vm4, %v2297_v53, %v2296_v20  ;;  %v2099_v35 = vrot.slane %v9013_v62, 5  ;;  %v2100_v26 = vrot.slane %v9013_v62, 6 }
 0xbfc   :  { %v2286_v4 = vsel %vm342_vm5, %v2285_v0, %v2284_v10  ;;  %v2101_v2 = vrot.slane %v9013_v62, 7  ;;  %v2143_v36 = vmul.f32 %v9013_v62, %v10142_v61  ;;  %v10434_v22 = vpack.c.bf16 %v141_v27, %v140_v37  ;;  %v109_v37 = vld [vmem:[%s13815_s10 + $0x88] sm:$0xff] }
 0xbfd   :  { %v10437_v52 = vsel %vm345_vm6, %v2287_v38, %v2286_v4  ;;  %v2300_v48 = vsel %vm342_vm5, %v2299_v60, %v2298_v63  ;;  %v2144_v56 = vmul.f32 %v2095_v1, %v10145_v24  ;;  %v2145_v15 = vmul.f32 %v2096_v9, %v10148_v21  ;;  %v108_v9 = vld [vmem:[%s13815_s10 + $0x80] sm:$0xff] }
 0xbfe   :  { %14107 = vst [vmem:[#allocation38_spill] sm:$0xff] %v10434_v22  ;;  %7391 = vmatmul.mubr.msk.f32.vlgmr.msra.gmra.mrb[24].mxu0 %vm375_vm7, %v10437_v52  ;;  %7395 = vmatmul.mubr.msk.f32.vlgmr.msra.gmra.mrb[16].mxu1 %vm375_vm7, %v10437_v52  ;;  %v2146_v0 = vmul.f32 %v2097_v30, %v10153_v11  ;;  %v2147_v61 = vmul.f32 %v2098_v32, %v10156_v59  ;;  %v14108_v4 = vmov 0.0   ;;  %v2301_v24 = vrot.slane %v10357_v8, 1  ;;  %v81_v30 = vld [vmem:[%s13812_s8 + $0x90] sm:$0xff]  ;;  %v164_v8 = vld [vmem:[%s13815_s10 + $0x240] sm:$0xff] }
 0xbff   :  { %v2148_v62 = vmul.f32 %v2099_v35, %v10160_v54  ;;  %8417 = vmatpush3.bf16.msra.mxu1 %v10273_v41  ;;  %2395 = vmatprep.mubr.f32.mxu0 %v14108_v4  ;;  %v2149_v21 = vmul.f32 %v2100_v26, %v10163_v17  ;;  %v2150_v1 = vmul.f32 %v2101_v2, %v10167_v3  ;;  %v88_v17 = vld [vmem:[%s13812_s8 + $0xc8] sm:$0xff]  ;;  %v14178_v34 = vrot.slane %v9331_v5, 2 }
 0xc00   :  { %v2174_v38 = vmul.f32 %v10304_v57, %v2143_v36  ;;  %2484 = vmatprep.mubr.f32.mxu1 %v14108_v4  ;;  %v2175_v11 = vmul.f32 %v10304_v57, %v2144_v56  ;;  %v2176_v59 = vmul.f32 %v10304_v57, %v2145_v15  ;;  %v2177_v54 = vmul.f32 %v10304_v57, %v2146_v0  ;;  %v3836_v41 = vld [vmem:[%s13807_s0 + $0xb] sm:$0x1] }
 0xc01   :  { %v2178_v32 = vmul.f32 %v10304_v57, %v2147_v61  ;;  %v10467_v3 = vsel %vm345_vm6, %v2301_v24, %v2300_v48  ;;  %v2179_v2 = vmul.f32 %v10304_v57, %v2148_v62  ;;  %v2180_v36 = vmul.f32 %v10304_v57, %v2149_v21  ;;  %8419 = vmatprep.subr.bf16.mxu1 %v10297_v23 }
 0xc02   :  { %v2181_v50 = vmul.f32 %v10304_v57, %v2150_v1  ;;  %7392 = vmatmul.mubr.msk.f32.gmra.mrb[26].mxu0 %vm375_vm7, %v10467_v3  ;;  %7396 = vmatmul.mubr.msk.f32.gmra.mrb[18].mxu1 %vm375_vm7, %v10467_v3  ;;  %v10478_v53 = vadd.f32 %v10314_v12, %v2175_v11  ;;  %v10481_v60 = vadd.f32 %v10314_v12, %v2176_v59 }
 0xc03   :  { %v10484_v45 = vadd.f32 %v10314_v12, %v2177_v54  ;;  %2401 = vmatprep.mubr.f32.mxu0 %v14108_v4  ;;  %2490 = vmatprep.mubr.f32.mxu1 %v14108_v4  ;;  %v10495_v27 = vadd.f32 %v10314_v12, %v2178_v32  ;;  %v10497_v40 = vpack.c.bf16 %v88_v17, %v81_v30  ;;  %v92_v17 = vld [vmem:[%s13815_s10] sm:$0xff] }
 0xc04   :  { %14109 = vst [vmem:[#allocation39_spill] sm:$0xff] %v10478_v53  ;;  %14110 = vst [vmem:[#allocation40_spill] sm:$0xff] %v10481_v60  ;;  %v10500_v20 = vadd.f32 %v10314_v12, %v2174_v38  ;;  %v10503_v10 = vadd.f32 %v10314_v12, %v2179_v2  ;;  %v2303_v63 = vrot.slane %v10478_v53, 7  ;;  %v2305_v35 = vrot.slane %v10481_v60, 6  ;;  %8409 = vmatpush1.bf16.msra.mxu0 %v10299_v16  ;;  %v124_v2 = vld [vmem:[%s13815_s10 + $0x100] sm:$0xff]  ;;  %v161_v16 = vld [vmem:[%s13815_s10 + $0x228] sm:$0xff] }
 0xc05   :  { %14111 = vst [vmem:[#allocation41_spill] sm:$0xff] %v10484_v45  ;;  %14112 = vst [vmem:[#allocation42_spill] sm:$0xff] %v10495_v27  ;;  %8421 = vmatpush3.bf16.msra.mxu1 %v10297_v23  ;;  %v10510_v26 = vadd.f32 %v10314_v12, %v2180_v36  ;;  %8411 = vmatprep.subr.bf16.mxu0 %v10339_v19  ;;  %v10513_v48 = vpack.c.bf16 %v109_v37, %v108_v9  ;;  %v2307_v0 = vrot.slane %v10484_v45, 5  ;;  %v125_v36 = vld [vmem:[%s13815_s10 + $0x108] sm:$0xff]  ;;  %v94_v37 = vld [vmem:[%s13815_s10 + $0x10] sm:$0xff] }
 0xc06   :  { %14113 = vst [vmem:[#allocation43_spill] sm:$0xff] %v10497_v40  ;;  %14114 = vst [vmem:[#allocation44_spill] sm:$0xff] %v10500_v20  ;;  %8455 = vmatprep.subr.bf16.mxu1 %v10434_v22  ;;  %v10517_v56 = vadd.f32 %v10314_v12, %v2181_v50  ;;  %v2304_v15 = vsel %vm327_vm0, %v2303_v63, %v10500_v20  ;;  %v2151_v61 = vmul.f32 %v10386_v7, %v10133_v58  ;;  %v95_v63 = vld [vmem:[%s13815_s10 + $0x18] sm:$0xff]  ;;  %v160_v19 = vld [vmem:[%s13815_s10 + $0x220] sm:$0xff] }
 0xc07   :  { %14115 = vst [vmem:[#allocation45_spill] sm:$0xff] %v10503_v10  ;;  %14116 = vst [vmem:[#allocation46_spill] sm:$0xff] %v10510_v26  ;;  %v2306_v62 = vsel %vm330_vm1, %v2305_v35, %v2304_v15  ;;  %v2309_v24 = vrot.slane %v10495_v27, 4  ;;  %v2311_v1 = vrot.slane %v10503_v10, 3  ;;  %v2313_v11 = vrot.slane %v10510_v26, 2  ;;  %v142_v35 = vld [vmem:[%s13815_s10 + $0x190] sm:$0xff] }
 0xc08   :  { %14117 = vst [vmem:[#allocation47_spill] sm:$0xff] %v10513_v48  ;;  %14118 = vst [vmem:[#allocation48_spill] sm:$0xff] %v10517_v56  ;;  %v2308_v21 = vsel %vm333_vm2, %v2307_v0, %v2306_v62  ;;  %8413 = vmatpush1.bf16.msra.mxu0 %v10497_v40  ;;  %v2315_v58 = vrot.slane %v10517_v56, 1  ;;  %v2182_v54 = vmul.f32 %v10304_v57, %v2151_v61  ;;  %v93_v57 = vld [vmem:[%s13815_s10 + $0x8] sm:$0xff]  ;;  %v143_v0 = vld [vmem:[%s13815_s10 + $0x198] sm:$0xff]  ;;  %v14153_v22 = vrot.slane %v9394_v28, 2 }
 0xc09   :  { %v2310_v38 = vsel %vm336_vm3, %v2309_v24, %v2308_v21  ;;  %8423 = vmatprep.subr.bf16.mxu0 %v10513_v48  ;;  %v10565_v50 = vpack.c.bf16 %v125_v36, %v124_v2  ;;  %v10601_v15 = vpack.c.bf16 %v95_v63, %v94_v37  ;;  %v126_v61 = vld [vmem:[%s13815_s10 + $0x110] sm:$0xff]  ;;  %v127_v62 = vld [vmem:[%s13815_s10 + $0x118] sm:$0xff]  ;;  %v10613_v24 = vpack.c.bf16 %v143_v0, %v142_v35  ;;  %v181_v53 = vld [vmem:[%s13815_s10 + $0x2c8] sm:$0xff] }
 0xc0a   :  { %v2312_v59 = vsel %vm339_vm4, %v2311_v1, %v2310_v38  ;;  %v10542_v30 = vadd.f32 %v10314_v12, %v2182_v54  ;;  %v10563_v12 = vpack.c.bf16 %v93_v57, %v92_v17  ;;  %v10615_v21 = vpack.c.bf16 %v127_v62, %v126_v61  ;;  %v112_v1 = vld [vmem:[%s13815_s10 + $0xa0] sm:$0xff]  ;;  %v113_v38 = vld [vmem:[%s13815_s10 + $0xa8] sm:$0xff]  ;;  %v98_v63 = vld [vmem:[%s13815_s10 + $0x30] sm:$0xff] }
 0xc0b   :  { %v2314_v7 = vsel %vm342_vm5, %v2313_v11, %v2312_v59  ;;  %14121 = vst [vmem:[#allocation51_spill] sm:$0xff] %v10565_v50  ;;  %14123 = vst [vmem:[#allocation53_spill] sm:$0xff] %v10601_v15  ;;  %v10625_v11 = vpack.c.bf16 %v113_v38, %v112_v1  ;;  %v96_v59 = vld [vmem:[%s13815_s10 + $0x20] sm:$0xff]  ;;  %v129_v57 = vld [vmem:[%s13815_s10 + $0x128] sm:$0xff]  ;;  %v14155_v40 = vrot.slane %v9394_v28, 3  ;;  %v14163_v26 = vrot.slane %v9394_v28, 7 }
 0xc0c   :  { %v2316_v32 = vsel %vm345_vm6, %v2315_v58, %v2314_v7  ;;  %14119 = vst [vmem:[#allocation49_spill] sm:$0xff] %v10542_v30  ;;  %14120 = vst [vmem:[#allocation50_spill] sm:$0xff] %v10563_v12  ;;  %v97_v58 = vld [vmem:[%s13815_s10 + $0x28] sm:$0xff]  ;;  %v144_v7 = vld [vmem:[%s13815_s10 + $0x1a0] sm:$0xff]  ;;  %v11092_v31 = vadd.f32 %v3836_v41, %v14190_v49 }
 0xc0d   :  { %7393 = vmatmul.mubr.msk.f32.gmra.mrb[28].mxu0 %vm375_vm7, %v2316_v32  ;;  %7397 = vmatmul.mubr.msk.f32.gmra.mrb[20].mxu1 %vm375_vm7, %v2316_v32  ;;  %14124 = vst [vmem:[#allocation54_spill] sm:$0xff] %v10613_v24  ;;  %14125 = vst [vmem:[#allocation55_spill] sm:$0xff] %v10615_v21  ;;  %v10637_v54 = vpack.c.bf16 %v97_v58, %v96_v59  ;;  %v128_v17 = vld [vmem:[%s13815_s10 + $0x120] sm:$0xff]  ;;  %v99_v35 = vld [vmem:[%s13815_s10 + $0x38] sm:$0xff] }
 0xc0e   :  { %2407 = vmatprep.mubr.f32.mxu0 %v14108_v4  ;;  %2496 = vmatprep.mubr.f32.mxu1 %v14108_v4  ;;  %14126 = vst [vmem:[#allocation56_spill] sm:$0xff] %v10625_v11  ;;  %v10651_v36 = vpack.c.bf16 %v129_v57, %v128_v17  ;;  %v146_v0 = vld [vmem:[%s13815_s10 + $0x1b0] sm:$0xff]  ;;  %v10673_v61 = vpack.c.bf16 %v99_v35, %v98_v63  ;;  %v147_v62 = vld [vmem:[%s13815_s10 + $0x1b8] sm:$0xff]  ;;  %v100_v57 = vld [vmem:[%s13815_s10 + $0x40] sm:$0xff] }
 0xc0f   :  { %14127 = vst [vmem:[#allocation57_spill] sm:$0xff] %v10637_v54  ;;  %v130_v1 = vld [vmem:[%s13815_s10 + $0x130] sm:$0xff]  ;;  %v131_v38 = vld [vmem:[%s13815_s10 + $0x138] sm:$0xff]  ;;  %v10685_v59 = vpack.c.bf16 %v147_v62, %v146_v0  ;;  %v149_v35 = vld [vmem:[%s13815_s10 + $0x1c8] sm:$0xff] }
 0xc10   :  { %14129 = vst [vmem:[#allocation59_spill] sm:$0xff] %v10651_v36  ;;  %14131 = vst [vmem:[#allocation61_spill] sm:$0xff] %v10673_v61  ;;  %v10687_v58 = vpack.c.bf16 %v131_v38, %v130_v1  ;;  %v132_v0 = vld [vmem:[%s13815_s10 + $0x140] sm:$0xff]  ;;  %v133_v62 = vld [vmem:[%s13815_s10 + $0x148] sm:$0xff] }
 0xc11   :  { %7394 = vmatmul.mubr.msk.f32.gmra.mrb[30].mxu0 %vm375_vm7, %v10542_v30  ;;  %7398 = vmatmul.mubr.msk.f32.gmra.mrb[22].mxu1 %vm375_vm7, %v10542_v30  ;;  %14132 = vst [vmem:[#allocation62_spill] sm:$0xff] %v10685_v59  ;;  %v10723_v38 = vpack.c.bf16 %v133_v62, %v132_v0  ;;  %v151_v62 = vld [vmem:[%s13815_s10 + $0x1d8] sm:$0xff]  ;;  %14191 = vst [vmem:[#allocation109_spill] sm:$0xff] %v11092_v31  ;;  %v168_v41 = vld [vmem:[%s13815_s10 + $0x260] sm:$0xff] }
 0xc12   :  { %8098 = vmatprep.mubr.msk.f32.mxu1 %vm375_vm7, %v10437_v52  ;;  %2567 = vmatprep.mubr.f32.mxu0 %v14108_v4  ;;  %14133 = vst [vmem:[#allocation63_spill] sm:$0xff] %v10687_v58  ;;  %v191_v27 = vld [vmem:[%s13815_s10 + $0x318] sm:$0xff] }
 0xc13   :  { %14137 = vst [vmem:[#allocation67_spill] sm:$0xff] %v10723_v38 }
 0xc15   :  { %7399 = vmatmul.mubr.msk.f32.vlgmr.msra.gmra.mrb[32].mxu0 %vm375_vm7, %v10437_v52  ;;  %8099 = vmatmul.mubr.msk.f32.vlgmr.msra.gmra.mrb[24].mxu1 %vm375_vm7, %v10467_v3  ;;  %v110_v52 = vld [vmem:[%s13815_s10 + $0x90] sm:$0xff] }
 0xc16   :  { %8101 = vmatprep.mubr.msk.f32.mxu1 %vm375_vm7, %v2316_v32  ;;  %2573 = vmatprep.mubr.f32.mxu0 %v14108_v4 }
 0xc17   :  { %8425 = vmatpush3.bf16.msra.mxu0 %v10563_v12  ;;  %8457 = vmatpush3.bf16.msra.mxu1 %v10565_v50  ;;  %v14151_v50 = vrot.slane %v9394_v28, 1 }
 0xc18   :  { %8459 = vmatprep.subr.bf16.mxu1 %v10613_v24  ;;  %v177_v24 = vld [vmem:[%s13815_s10 + $0x2a8] sm:$0xff] }
 0xc19   :  { %7400 = vmatmul.mubr.msk.f32.gmra.mrb[34].mxu0 %vm375_vm7, %v10467_v3  ;;  %8102 = vmatmul.mubr.msk.f32.gmra.mrb[26].mxu1 %vm375_vm7, %v10542_v30  ;;  %v111_v3 = vld [vmem:[%s13815_s10 + $0x98] sm:$0xff] }
 0xc1a   :  { %2579 = vmatprep.mubr.f32.mxu0 %v14108_v4  ;;  %v10590_v9 = vpack.c.bf16 %v111_v3, %v110_v52  ;;  %v114_v52 = vld [vmem:[%s13815_s10 + $0xb0] sm:$0xff]  ;;  %v115_v3 = vld [vmem:[%s13815_s10 + $0xb8] sm:$0xff] }
 0xc1b   :  { %8461 = vmatpush3.bf16.msra.mxu1 %v10615_v21  ;;  %v10661_v37 = vpack.c.bf16 %v115_v3, %v114_v52  ;;  %v101_v52 = vld [vmem:[%s13815_s10 + $0x48] sm:$0xff]  ;;  %v148_v3 = vld [vmem:[%s13815_s10 + $0x1c0] sm:$0xff]  ;;  %v159_v21 = vld [vmem:[%s13815_s10 + $0x218] sm:$0xff] }
 0xc1c   :  { %14122 = vst [vmem:[#allocation52_spill] sm:$0xff] %v10590_v9  ;;  %8427 = vmatprep.subr.bf16.mxu0 %v10590_v9  ;;  %v10709_v63 = vpack.c.bf16 %v101_v52, %v100_v57  ;;  %v10721_v1 = vpack.c.bf16 %v149_v35, %v148_v3  ;;  %v102_v52 = vld [vmem:[%s13815_s10 + $0x50] sm:$0xff]  ;;  %v103_v3 = vld [vmem:[%s13815_s10 + $0x58] sm:$0xff]  ;;  %v3832_v9 = vld [vmem:[%s13807_s0 + $0x3] sm:$0x1] }
 0xc1d   :  { %7401 = vmatmul.mubr.msk.f32.gmra.mrb[36].mxu0 %vm375_vm7, %v2316_v32  ;;  %v145_v32 = vld [vmem:[%s13815_s10 + $0x1a8] sm:$0xff]  ;;  %14130 = vst [vmem:[#allocation60_spill] sm:$0xff] %v10661_v37  ;;  %v150_v35 = vld [vmem:[%s13815_s10 + $0x1d0] sm:$0xff]  ;;  %v10745_v0 = vpack.c.bf16 %v103_v3, %v102_v52  ;;  %v120_v52 = vld [vmem:[%s13815_s10 + $0xe0] sm:$0xff] }
 0xc1e   :  { %2585 = vmatprep.mubr.f32.mxu0 %v14108_v4  ;;  %8429 = vmatpush3.bf16.msra.mxu0 %v10601_v15  ;;  %v10649_v2 = vpack.c.bf16 %v145_v32, %v144_v7  ;;  %v116_v7 = vld [vmem:[%s13815_s10 + $0xc0] sm:$0xff]  ;;  %v117_v32 = vld [vmem:[%s13815_s10 + $0xc8] sm:$0xff]  ;;  %14135 = vst [vmem:[#allocation65_spill] sm:$0xff] %v10709_v63  ;;  %14136 = vst [vmem:[#allocation66_spill] sm:$0xff] %v10721_v1 }
 0xc1f   :  { %8431 = vmatprep.subr.bf16.mxu0 %v10625_v11  ;;  %v10697_v17 = vpack.c.bf16 %v117_v32, %v116_v7  ;;  %v118_v7 = vld [vmem:[%s13815_s10 + $0xd0] sm:$0xff]  ;;  %v119_v32 = vld [vmem:[%s13815_s10 + $0xd8] sm:$0xff]  ;;  %14139 = vst [vmem:[#allocation69_spill] sm:$0xff] %v10745_v0  ;;  %v121_v3 = vld [vmem:[%s13815_s10 + $0xe8] sm:$0xff] }
 0xc20   :  { %14128 = vst [vmem:[#allocation58_spill] sm:$0xff] %v10649_v2  ;;  %8463 = vmatprep.subr.bf16.mxu1 %v10649_v2  ;;  %v10733_v57 = vpack.c.bf16 %v119_v32, %v118_v7  ;;  %v134_v7 = vld [vmem:[%s13815_s10 + $0x150] sm:$0xff]  ;;  %v135_v32 = vld [vmem:[%s13815_s10 + $0x158] sm:$0xff]  ;;  %v176_v15 = vld [vmem:[%s13815_s10 + $0x2a0] sm:$0xff] }
 0xc21   :  { %7402 = vmatmul.mubr.msk.f32.gmra.mrb[38].mxu0 %vm375_vm7, %v10542_v30  ;;  %8465 = vmatpush3.bf16.msra.mxu1 %v10651_v36  ;;  %14134 = vst [vmem:[#allocation64_spill] sm:$0xff] %v10697_v17  ;;  %v10757_v30 = vpack.c.bf16 %v151_v62, %v150_v35  ;;  %v104_v35 = vld [vmem:[%s13815_s10 + $0x60] sm:$0xff]  ;;  %v105_v62 = vld [vmem:[%s13815_s10 + $0x68] sm:$0xff]  ;;  %v174_v2 = vld [vmem:[%s13815_s10 + $0x290] sm:$0xff] }
 0xc22   :  { %8433 = vmatpush3.bf16.msra.mxu0 %v10637_v54  ;;  %8467 = vmatprep.subr.bf16.mxu1 %v10685_v59  ;;  %14138 = vst [vmem:[#allocation68_spill] sm:$0xff] %v10733_v57  ;;  %v156_v36 = vld [vmem:[%s13815_s10 + $0x200] sm:$0xff]  ;;  %v157_v54 = vld [vmem:[%s13815_s10 + $0x208] sm:$0xff]  ;;  %v175_v11 = vld [vmem:[%s13815_s10 + $0x298] sm:$0xff] }
 0xc23   :  { %8435 = vmatprep.subr.bf16.mxu0 %v10661_v37  ;;  %14140 = vst [vmem:[#allocation70_spill] sm:$0xff] %v10757_v30 }
 0xc25   :  { %8469 = vmatpush3.bf16.msra.mxu1 %v10687_v58 }
 0xc26   :  { %8437 = vmatpush3.bf16.msra.mxu0 %v10673_v61  ;;  %8471 = vmatprep.subr.bf16.mxu1 %v10721_v1 }
 0xc27   :  { %8439 = vmatprep.subr.bf16.mxu0 %v10697_v17 }
 0xc29   :  { %8473 = vmatpush3.bf16.msra.mxu1 %v10723_v38  ;;  %v10769_v38 = vpack.c.bf16 %v121_v3, %v120_v52  ;;  %v153_v52 = vld [vmem:[%s13815_s10 + $0x1e8] sm:$0xff]  ;;  %v136_v3 = vld [vmem:[%s13815_s10 + $0x160] sm:$0xff] }
 0xc2a   :  { %8441 = vmatpush3.bf16.msra.mxu0 %v10709_v63  ;;  %v10759_v63 = vpack.c.bf16 %v135_v32, %v134_v7  ;;  %8475 = vmatprep.subr.bf16.mxu1 %v10757_v30  ;;  %v152_v7 = vld [vmem:[%s13815_s10 + $0x1e0] sm:$0xff]  ;;  %v10781_v32 = vpack.c.bf16 %v105_v62, %v104_v35  ;;  %v122_v35 = vld [vmem:[%s13815_s10 + $0xf0] sm:$0xff]  ;;  %v123_v62 = vld [vmem:[%s13815_s10 + $0xf8] sm:$0xff] }
 0xc2b   :  { %8443 = vmatprep.subr.bf16.mxu0 %v10733_v57  ;;  %14142 = vst [vmem:[#allocation72_spill] sm:$0xff] %v10769_v38  ;;  %v10793_v30 = vpack.c.bf16 %v153_v52, %v152_v7  ;;  %v106_v7 = vld [vmem:[%s13815_s10 + $0x70] sm:$0xff] }
 0xc2c   :  { %14141 = vst [vmem:[#allocation71_spill] sm:$0xff] %v10759_v63  ;;  %14143 = vst [vmem:[#allocation73_spill] sm:$0xff] %v10781_v32  ;;  %v154_v52 = vld [vmem:[%s13815_s10 + $0x1f0] sm:$0xff] }
 0xc2d   :  { %8477 = vmatpush3.bf16.msra.mxu1 %v10759_v63  ;;  %14144 = vst [vmem:[#allocation74_spill] sm:$0xff] %v10793_v30  ;;  %v10805_v63 = vpack.c.bf16 %v123_v62, %v122_v35  ;;  %v155_v35 = vld [vmem:[%s13815_s10 + $0x1f8] sm:$0xff]  ;;  %v138_v62 = vld [vmem:[%s13815_s10 + $0x170] sm:$0xff] }
 0xc2e   :  { %8445 = vmatpush3.bf16.msra.mxu0 %v10745_v0  ;;  %v137_v0 = vld [vmem:[%s13815_s10 + $0x168] sm:$0xff]  ;;  %8479 = vmatprep.subr.bf16.mxu1 %v10793_v30  ;;  %v10829_v30 = vpack.c.bf16 %v155_v35, %v154_v52 }
 0xc2f   :  { %8447 = vmatprep.subr.bf16.mxu0 %v10769_v38  ;;  %v10795_v57 = vpack.c.bf16 %v137_v0, %v136_v3  ;;  %14146 = vst [vmem:[#allocation76_spill] sm:$0xff] %v10805_v63  ;;  %v107_v0 = vld [vmem:[%s13815_s10 + $0x78] sm:$0xff]  ;;  %v189_v52 = vld [vmem:[%s13815_s10 + $0x308] sm:$0xff] }
 0xc30   :  { %v10817_v3 = vpack.c.bf16 %v107_v0, %v106_v7  ;;  %14148 = vst [vmem:[#allocation78_spill] sm:$0xff] %v10829_v30  ;;  %v172_v7 = vld [vmem:[%s13815_s10 + $0x280] sm:$0xff]  ;;  %v173_v0 = vld [vmem:[%s13815_s10 + $0x288] sm:$0xff] }
 0xc31   :  { %14145 = vst [vmem:[#allocation75_spill] sm:$0xff] %v10795_v57  ;;  %8481 = vmatpush3.bf16.msra.mxu1 %v10795_v57  ;;  %v10842_v57 = vpack.c.bf16 %v173_v0, %v172_v7  ;;  %v3840_v7 = vld [vmem:[%s13807_s0 + $0x13] sm:$0x1]  ;;  %v3841_v0 = vld [vmem:[%s13807_s0 + $0x15] sm:$0x1] }
 0xc32   :  { %8449 = vmatpush3.bf16.msra.mxu0 %v10781_v32  ;;  %14147 = vst [vmem:[#allocation77_spill] sm:$0xff] %v10817_v3  ;;  %v139_v32 = vld [vmem:[%s13815_s10 + $0x178] sm:$0xff]  ;;  %8483 = vmatprep.subr.bf16.mxu1 %v10829_v30  ;;  %v10907_v12 = vadd.f32 %v3840_v7, %v14151_v50  ;;  %v10911_v48 = vadd.f32 %v3841_v0, %v14153_v22  ;;  %v190_v50 = vld [vmem:[%s13815_s10 + $0x310] sm:$0xff]  ;;  %v14157_v7 = vrot.slane %v9394_v28, 4  ;;  %v14159_v0 = vrot.slane %v9394_v28, 5 }
 0xc33   :  { %8451 = vmatprep.subr.bf16.mxu0 %v10805_v63  ;;  %v10831_v38 = vpack.c.bf16 %v139_v32, %v138_v62  ;;  %14150 = vst [vmem:[#allocation80_spill] sm:$0xff] %v10842_v57  ;;  %v188_v32 = vld [vmem:[%s13815_s10 + $0x300] sm:$0xff]  ;;  %v2215_v62 = vlaneseq }
 0xc34   :  { %v10851_v35 = vpack.c.bf16 %v189_v52, %v188_v32  ;;  %v3843_v32 = vld [vmem:[%s13807_s0 + $0x19] sm:$0x1]  ;;  %v3844_v52 = vld [vmem:[%s13807_s0 + $0x1b] sm:$0x1]  ;;  %v91_v63 = vld [vmem:[%s13816_s9] sm:$0x7f] }
 0xc35   :  { %14149 = vst [vmem:[#allocation79_spill] sm:$0xff] %v10831_v38  ;;  %8485 = vmatpush3.bf16.msra.mxu1 %v10831_v38  ;;  %v2216_v38 = vshrl.u32 %v2215_v62, 7  ;;  %v3845_v62 = vld [vmem:[%s13807_s0 + $0x1d] sm:$0x1]  ;;  %14152 = vst [vmem:[#allocation81_spill] sm:$0xff] %v10907_v12  ;;  %v10928_v22 = vadd.f32 %v3843_v32, %v14157_v7  ;;  %v178_v32 = vld [vmem:[%s13815_s10 + $0x2b0] sm:$0xff] }
 0xc36   :  { %8453 = vmatpush3.bf16.msra.mxu0 %v10817_v3  ;;  %8519 = vmatprep.subr.bf16.mxu1 %v10851_v35  ;;  %v3846_v3 = vld [vmem:[%s13807_s0 + $0x1f] sm:$0x1]  ;;  %14154 = vst [vmem:[#allocation82_spill] sm:$0xff] %v10911_v48  ;;  %v3922_v29 = vrot.slane %v10911_v48, 6 }
 0xc37   :  { %8487 = vmatprep.subr.bf16.mxu0 %v10842_v57  ;;  %v3842_v57 = vld [vmem:[%s13807_s0 + $0x17] sm:$0x1]  ;;  %v2217_v30 = vsub.s32 0, %v2216_v38  ;;  %v2225_v1 = vsub.s32 2, %v2216_v38  ;;  %v2221_v17 = vsub.s32 1, %v2216_v38  ;;  %v2229_v58 = vsub.s32 3, %v2216_v38 }
 0xc38   :  { %v2233_v61 = vsub.s32 4, %v2216_v38  ;;  %v2241_v59 = vsub.s32 6, %v2216_v38  ;;  %v2237_v37 = vsub.s32 5, %v2216_v38  ;;  %v158_v38 = vld [vmem:[%s13815_s10 + $0x210] sm:$0xff]  ;;  %v10915_v23 = vadd.f32 %v3842_v57, %v14155_v40  ;;  %14158 = vst [vmem:[#allocation84_spill] sm:$0xff] %v10928_v22 }
 0xc39   :  { %v10932_v40 = vadd.f32 %v3844_v52, %v14159_v0  ;;  %v14161_v57 = vrot.slane %v9394_v28, 6  ;;  %v10940_v10 = vadd.f32 %v3846_v3, %v14163_v26  ;;  %v179_v52 = vld [vmem:[%s13815_s10 + $0x2b8] sm:$0xff]  ;;  %v10951_v7 = vrot.slane %v91_v63, %v2217_v30  ;;  %v162_v28 = vld [vmem:[%s13815_s10 + $0x230] sm:$0xff]  ;;  %v180_v3 = vld [vmem:[%s13815_s10 + $0x2c0] sm:$0xff] }
 0xc3a   :  { %14156 = vst [vmem:[#allocation83_spill] sm:$0xff] %v10915_v23  ;;  %v10955_v0 = vrot.slane %v91_v63, %v2221_v17  ;;  %v163_v26 = vld [vmem:[%s13815_s10 + $0x238] sm:$0xff]  ;;  %v3833_v30 = vld [vmem:[%s13807_s0 + $0x5] sm:$0x1]  ;;  %v10975_v45 = vrot.slane %v91_v63, %v2233_v61  ;;  %v10977_v20 = vrot.slane %v91_v63, %v2241_v59  ;;  %v10979_v60 = vrot.slane %v91_v63, %v2237_v37 }
 0xc3b   :  { %14160 = vst [vmem:[#allocation85_spill] sm:$0xff] %v10932_v40  ;;  %v10936_v56 = vadd.f32 %v3845_v62, %v14161_v57  ;;  %14164 = vst [vmem:[#allocation87_spill] sm:$0xff] %v10940_v10  ;;  %v10953_v62 = vrot.slane %v91_v63, %v2225_v1  ;;  %v14168_v1 = vrot.slane %v9331_v5, 1  ;;  %v10973_v57 = vrot.slane %v91_v63, %v2229_v58  ;;  %v165_v63 = vld [vmem:[%s13815_s10 + $0x248] sm:$0xff] }
 0xc3c   :  { %14165 = vst [vmem:[#allocation88_spill] sm:$0xff] %v10951_v7  ;;  %14167 = vst [vmem:[#allocation90_spill] sm:$0xff] %v10955_v0  ;;  %v10990_v58 = vpack.c.bf16 %v157_v54, %v156_v36  ;;  %v10992_v61 = vpack.c.bf16 %v175_v11, %v174_v2  ;;  %v10994_v59 = vpack.c.bf16 %v159_v21, %v158_v38  ;;  %v167_v2 = vld [vmem:[%s13815_s10 + $0x258] sm:$0xff]  ;;  %v3834_v38 = vld [vmem:[%s13807_s0 + $0x7] sm:$0x1] }
 0xc3d   :  { %14162 = vst [vmem:[#allocation86_spill] sm:$0xff] %v10936_v56  ;;  %14166 = vst [vmem:[#allocation89_spill] sm:$0xff] %v10953_v62  ;;  %v10971_v17 = vadd.f32 %v3832_v9, %v14168_v1  ;;  %v3831_v9 = vld [vmem:[%s13807_s0 + $0x1] sm:$0x1]  ;;  %v10996_v37 = vpack.c.bf16 %v177_v24, %v176_v15  ;;  %v182_v1 = vld [vmem:[%s13815_s10 + $0x2d0] sm:$0xff]  ;;  %v11007_v11 = vpack.c.bf16 %v161_v16, %v160_v19 }
 0xc3e   :  { %14170 = vst [vmem:[#allocation92_spill] sm:$0xff] %v10973_v57  ;;  %14171 = vst [vmem:[#allocation93_spill] sm:$0xff] %v10975_v45  ;;  %v11009_v21 = vpack.c.bf16 %v191_v27, %v190_v50  ;;  %v11011_v15 = vpack.c.bf16 %v179_v52, %v178_v32  ;;  %v166_v24 = vld [vmem:[%s13815_s10 + $0x250] sm:$0xff]  ;;  %v11024_v16 = vadd.f32 %v3833_v30, %v14178_v34  ;;  %v3835_v52 = vld [vmem:[%s13807_s0 + $0x9] sm:$0x1] }
 0xc3f   :  { %14169 = vst [vmem:[#allocation91_spill] sm:$0xff] %v10971_v17  ;;  %14172 = vst [vmem:[#allocation94_spill] sm:$0xff] %v10977_v20  ;;  %v11038_v47 = vadd.f32 %v9214_v25, %v3831_v9  ;;  %v3906_v34 = vrot.slane %v10971_v17, 7  ;;  %v11041_v30 = vpack.c.bf16 %v163_v26, %v162_v28  ;;  %v11047_v44 = vpack.c.bf16 %v183_v51, %v182_v1  ;;  %v184_v25 = vld [vmem:[%s13815_s10 + $0x2e0] sm:$0xff]  ;;  %v3838_v51 = vld [vmem:[%s13807_s0 + $0xf] sm:$0x1] }
 0xc40   :  { %14173 = vst [vmem:[#allocation95_spill] sm:$0xff] %v10979_v60  ;;  %14174 = vst [vmem:[#allocation96_spill] sm:$0xff] %v10994_v59  ;;  %v11054_v6 = vpack.c.bf16 %v167_v2, %v166_v24  ;;  %v3920_v26 = vrot.slane %v10907_v12, 7  ;;  %v185_v24 = vld [vmem:[%s13815_s10 + $0x2e8] sm:$0xff]  ;;  %v14188_v2 = vrot.slane %v9331_v5, 4 }
 0xc41   :  { %14175 = vst [vmem:[#allocation97_spill] sm:$0xff] %v10996_v37  ;;  %14176 = vst [vmem:[#allocation98_spill] sm:$0xff] %v11007_v11  ;;  %v11108_v14 = vpack.c.bf16 %v185_v24, %v184_v25 }
 0xc42   :  { %14177 = vst [vmem:[#allocation99_spill] sm:$0xff] %v11011_v15  ;;  %14179 = vst [vmem:[#allocation100_spill] sm:$0xff] %v11024_v16  ;;  %v11080_v17 = vadd.f32 %v3835_v52, %v14188_v2  ;;  %v3907_v52 = vsel %vm327_vm0, %v3906_v34, %v11038_v47  ;;  %v169_v34 = vld [vmem:[%s13815_s10 + $0x268] sm:$0xff] }
 0xc43   :  { %14180 = vst [vmem:[#allocation101_spill] sm:$0xff] %v11038_v47  ;;  %14181 = vst [vmem:[#allocation102_spill] sm:$0xff] %v11041_v30  ;;  %v11138_v48 = vpack.c.bf16 %v169_v34, %v168_v41  ;;  %v3848_v41 = vld [vmem:[%s13807_s0 + $0x23] sm:$0x1] }
 0xc44   :  { %14184 = vst [vmem:[#allocation105_spill] sm:$0xff] %v11047_v44  ;;  %14185 = vst [vmem:[#allocation106_spill] sm:$0xff] %v11054_v6  ;;  %v11177_v33 = vadd.f32 %v3848_v41, %v14200_v42 }
 0xc45   :  { %14189 = vst [vmem:[#allocation108_spill] sm:$0xff] %v11080_v17  ;;  %14196 = vst [vmem:[#allocation112_spill] sm:$0xff] %v11108_v14 }
 0xc46   :  { %14199 = vst [vmem:[#allocation115_spill] sm:$0xff] %v11138_v48 }
 0xcd1   :  { %v2391_v54 = vpop.f32.mrb[24].mxu0  ;;  %v2480_v36 = vpop.f32.mrb[16].mxu1 }
 0xcd2   :  { %v11027_v19 = vadd.f32 %v2391_v54, %v10951_v7  ;;  %v11030_v27 = vadd.f32 %v2480_v36, %v10953_v62  ;;  %v2393_v50 = vpop.f32.mrb[25].mxu0  ;;  %v2482_v32 = vpop.f32.mrb[17].mxu1  ;;  %v11043_v54 = vpack.c.bf16 %v181_v53, %v180_v3  ;;  %v11045_v36 = vpack.c.bf16 %v165_v63, %v164_v8  ;;  %v3837_v8 = vld [vmem:[%s13807_s0 + $0xd] sm:$0x1] }
 0xcd3   :  { %v14186_v53 = vrot.slane %v9331_v5, 3  ;;  %v11073_v9 = vadd.f32 %v2393_v50, %v10955_v0  ;;  %v11088_v50 = vadd.f32 %v2482_v32, %v10973_v57 }
 0xcd4   :  { %14182 = vst [vmem:[#allocation103_spill] sm:$0xff] %v11043_v54  ;;  %14183 = vst [vmem:[#allocation104_spill] sm:$0xff] %v11045_v36  ;;  %v2705_v55 = vmul.f32 %v11027_v19, %v11027_v19  ;;  %v2707_v3 = vmul.f32 %v11030_v27, %v11030_v27 }
 0xcd5   :  { %v11067_v28 = vadd.f32 %v3834_v38, %v14186_v53  ;;  %v2397_v63 = vpop.f32.mrb[26].mxu0  ;;  %v2486_v1 = vpop.f32.mrb[18].mxu1  ;;  %v3908_v38 = vrot.slane %v11024_v16, 6  ;;  %v3839_v53 = vld [vmem:[%s13807_s0 + $0x11] sm:$0x1]  ;;  %v14192_v16 = vrot.slane %v9331_v5, 6  ;;  %v2708_v47 = vmul.f32 %v11088_v50, %v11088_v50 }
 0xcd6   :  { %v2733_v12 = vmul.f32 %v2705_v55, %v11027_v19  ;;  %v2399_v18 = vpop.f32.mrb[27].mxu0  ;;  %v2488_v46 = vpop.f32.mrb[19].mxu1  ;;  %v11097_v2 = vadd.f32 %v2397_v63, %v10951_v7  ;;  %v14194_v55 = vrot.slane %v9331_v5, 7  ;;  %v9215_v5 = vld [vmem:[%s13808_s1 + $0x8] sm:$0xff]  ;;  %v2735_v25 = vmul.f32 %v2707_v3, %v11030_v27 }
 0xcd7   :  { %14187 = vst [vmem:[#allocation107_spill] sm:$0xff] %v11067_v28  ;;  %v11101_v4 = vadd.f32 %v3837_v8, %v14192_v16  ;;  %v3910_v49 = vrot.slane %v11067_v28, 5  ;;  %v11120_v16 = vadd.f32 %v9215_v5, %v3839_v53  ;;  %v3924_v8 = vrot.slane %v10915_v23, 5  ;;  %v3847_v23 = vld [vmem:[%s13807_s0 + $0x21] sm:$0x1] }
 0xcd8   :  { %v11105_v32 = vadd.f32 %v3838_v51, %v14194_v55  ;;  %v2706_v51 = vmul.f32 %v11073_v9, %v11073_v9  ;;  %v11127_v63 = vadd.f32 %v2486_v1, %v10953_v62  ;;  %v3909_v24 = vsel %vm330_vm1, %v3908_v38, %v3907_v52 }
 0xcd9   :  { %14193 = vst [vmem:[#allocation110_spill] sm:$0xff] %v11101_v4  ;;  %14197 = vst [vmem:[#allocation113_spill] sm:$0xff] %v11120_v16  ;;  %v2761_v55 = vmul.f32 0.044715, %v2733_v12  ;;  %v3912_v28 = vrot.slane %v11080_v17, 4  ;;  %v3914_v53 = vrot.slane %v11092_v31, 3  ;;  %v2712_v5 = vmul.f32 %v11097_v2, %v11097_v2 }
 0xcda   :  { %14195 = vst [vmem:[#allocation111_spill] sm:$0xff] %v11105_v32  ;;  %14198 = vst [vmem:[#allocation114_spill] sm:$0xff] %v11127_v63  ;;  %v11141_v1 = vadd.f32 %v2399_v18, %v10955_v0  ;;  %v11144_v12 = vadd.f32 %v2488_v46, %v10973_v57  ;;  %v3911_v38 = vsel %vm333_vm2, %v3910_v49, %v3909_v24  ;;  %v186_v31 = vld [vmem:[%s13815_s10 + $0x2f0] sm:$0xff]  ;;  %v2763_v34 = vmul.f32 0.044715, %v2735_v25 }
 0xcdb   :  { %v3921_v52 = vsel %vm327_vm0, %v3920_v26, %v11120_v16  ;;  %v2734_v18 = vmul.f32 %v2706_v51, %v11073_v9  ;;  %v2714_v46 = vmul.f32 %v11127_v63, %v11127_v63  ;;  %v187_v26 = vld [vmem:[%s13815_s10 + $0x2f8] sm:$0xff]  ;;  %v3849_v49 = vld [vmem:[%s13807_s0 + $0x25] sm:$0x1]  ;;  %v2789_v24 = vadd.f32 %v2761_v55, %v11027_v19 }
 0xcdc   :  { %v2736_v3 = vmul.f32 %v2708_v47, %v11088_v50  ;;  %v2740_v17 = vmul.f32 %v2712_v5, %v11097_v2  ;;  %v3913_v16 = vsel %vm336_vm3, %v3912_v28, %v3911_v38  ;;  %v3923_v43 = vsel %vm330_vm1, %v3922_v29, %v3921_v52  ;;  %v3850_v28 = vld [vmem:[%s13807_s0 + $0x27] sm:$0x1] }
 0xcdd   :  { %v2713_v47 = vmul.f32 %v11141_v1, %v11141_v1  ;;  %v2715_v55 = vmul.f32 %v11144_v12, %v11144_v12  ;;  %v11183_v39 = vpack.c.bf16 %v187_v26, %v186_v31  ;;  %v14202_v29 = vrot.slane %v9493_v13, 2  ;;  %v9216_v31 = vld [vmem:[%s13808_s1 + $0x10] sm:$0xff] }
 0xcde   :  { %v2791_v42 = vadd.f32 %v2763_v34, %v11030_v27  ;;  %v2762_v38 = vmul.f32 0.044715, %v2734_v18  ;;  %v2742_v52 = vmul.f32 %v2714_v46, %v11127_v63  ;;  %v11197_v26 = vadd.f32 %v9216_v31, %v3847_v23  ;;  %v3851_v34 = vld [vmem:[%s13807_s0 + $0x29] sm:$0x1] }
 0xcdf   :  { %14201 = vst [vmem:[#allocation116_spill] sm:$0xff] %v11183_v39  ;;  %v11190_v5 = vadd.f32 %v3849_v49, %v14202_v29  ;;  %v2817_v10 = vmul.f32 0.7978846, %v2789_v24  ;;  %v2764_v32 = vmul.f32 0.044715, %v2736_v3  ;;  %v11200_v40 = vsel %vm339_vm4, %v3914_v53, %v3913_v16 }
 0xce0   :  { %v2403_v51 = vpop.f32.mrb[28].mxu0  ;;  %v2492_v25 = vpop.f32.mrb[20].mxu1  ;;  %14204 = vst [vmem:[#allocation118_spill] sm:$0xff] %v11200_v40  ;;  %v11203_v49 = vsel %vm333_vm2, %v3924_v8, %v3923_v43  ;;  %v2768_v18 = vmul.f32 0.044715, %v2740_v17  ;;  %v14207_v29 = vrot.slane %v9493_v13, 3  ;;  %v2741_v16 = vmul.f32 %v2713_v47, %v11141_v1 }
 0xce1   :  { %14203 = vst [vmem:[#allocation117_spill] sm:$0xff] %v11190_v5  ;;  %v2405_v41 = vpop.f32.mrb[29].mxu0  ;;  %v2494_v56 = vpop.f32.mrb[21].mxu1  ;;  %14205 = vst [vmem:[#allocation119_spill] sm:$0xff] %v11203_v49  ;;  %v11209_v46 = vadd.f32 %v2403_v51, %v10951_v7  ;;  %v2743_v53 = vmul.f32 %v2715_v55, %v11144_v12  ;;  %v11219_v43 = vadd.f32 %v2492_v25, %v10953_v62  ;;  %v3852_v17 = vld [vmem:[%s13807_s0 + $0x2b] sm:$0x1]  ;;  %9014 = vtanh.f32 %v2817_v10 }
 0xce2   :  { %v11213_v23 = vadd.f32 %v3850_v28, %v14207_v29  ;;  %v2819_v31 = vmul.f32 0.7978846, %v2791_v42  ;;  %v2790_v28 = vadd.f32 %v2762_v38, %v11073_v9  ;;  %v2770_v29 = vmul.f32 0.044715, %v2742_v52 }
 0xce3   :  { %14206 = vst [vmem:[#allocation120_spill] sm:$0xff] %v11209_v46  ;;  %14209 = vst [vmem:[#allocation122_spill] sm:$0xff] %v11219_v43  ;;  %v14210_v47 = vrot.slane %v9493_v13, 4  ;;  %v2792_v25 = vadd.f32 %v2764_v32, %v11088_v50  ;;  %v11232_v40 = vadd.f32 %v2405_v41, %v10955_v0  ;;  %v11235_v22 = vadd.f32 %v2494_v56, %v10973_v57 }
 0xce4   :  { %14208 = vst [vmem:[#allocation121_spill] sm:$0xff] %v11213_v23  ;;  %v2409_v8 = vpop.f32.mrb[30].mxu0  ;;  %v2498_v24 = vpop.f32.mrb[22].mxu1  ;;  %v11238_v42 = vmul.f32 0.5, %v11027_v19  ;;  %v11241_v38 = vmul.f32 0.5, %v11030_v27  ;;  %v2796_v52 = vadd.f32 %v2768_v18, %v11097_v2  ;;  %v2721_v32 = vmul.f32 %v11219_v43, %v11219_v43 }
 0xce5   :  { %v2411_v3 = vpop.f32.mrb[31].mxu0  ;;  %v2500_v4 = vpop.f32.mrb[23].mxu1  ;;  %v11228_v55 = vadd.f32 %v3851_v34, %v14210_v47  ;;  %14212 = vst [vmem:[#allocation124_spill] sm:$0xff] %v11235_v22  ;;  %v2719_v34 = vmul.f32 %v11209_v46, %v11209_v46  ;;  %v2769_v10 = vmul.f32 0.044715, %v2741_v16  ;;  %v14213_v56 = vrot.slane %v9493_v13, 5 }
 0xce6   :  { %v2771_v47 = vmul.f32 0.044715, %v2743_v53  ;;  %9016 = vtanh.f32 %v2819_v31  ;;  %v2818_v19 = vmul.f32 0.7978846, %v2790_v28  ;;  %v2798_v27 = vadd.f32 %v2770_v29, %v11127_v63 }
 0xce7   :  { %14211 = vst [vmem:[#allocation123_spill] sm:$0xff] %v11228_v55  ;;  %v11250_v49 = vadd.f32 %v3852_v17, %v14213_v56  ;;  %v11256_v48 = vmul.f32 0.5, %v11073_v9  ;;  %v2820_v16 = vmul.f32 0.7978846, %v2792_v25  ;;  %v2720_v53 = vmul.f32 %v11232_v40, %v11232_v40 }
 0xce8   :  { %v2569_v41 = vpop.f32.mrb[32].mxu0  ;;  %v8100_v51 = vpop.f32.mrb[24].mxu1  ;;  %v2722_v14 = vmul.f32 %v11235_v22, %v11235_v22  ;;  %v11263_v17 = vmul.f32 0.5, %v11088_v50  ;;  %v2824_v31 = vmul.f32 0.7978846, %v2796_v52  ;;  %v2747_v28 = vmul.f32 %v2719_v34, %v11209_v46 }
 0xce9   :  { %14214 = vst [vmem:[#allocation125_spill] sm:$0xff] %v11250_v49  ;;  %v11253_v39 = vpop.f32.mrb[33].mxu0  ;;  %v2658_v18 = vpop.f32.mrb[25].mxu1  ;;  %v11267_v29 = vadd.f32 %v2409_v8, %v10951_v7  ;;  %v11270_v56 = vmul.f32 0.5, %v11141_v1  ;;  %v2797_v9 = vadd.f32 %v2769_v10, %v11141_v1  ;;  %v2799_v25 = vadd.f32 %v2771_v47, %v11144_v12 }
 0xcea   :  { %v2749_v49 = vmul.f32 %v2721_v32, %v11219_v43  ;;  %v11276_v13 = vadd.f32 %v2498_v24, %v10953_v62  ;;  %v11278_v50 = vmul.f32 0.7978846, %v2798_v27  ;;  %v11281_v52 = vadd.f32 %v2411_v3, %v10955_v0 }
 0xceb   :  { %v11284_v8 = vadd.f32 %v2569_v41, %v10975_v45  ;;  %9018 = vtanh.f32 %v2818_v19  ;;  %v2748_v1 = vmul.f32 %v2720_v53, %v11232_v40  ;;  %v2750_v10 = vmul.f32 %v2722_v14, %v11235_v22  ;;  %v9015_v19 = vpop.eup %9014 }
 0xcec   :  { %14215 = vst [vmem:[#allocation126_spill] sm:$0xff] %v11276_v13  ;;  %v11286_v34 = vpop.f32.mrb[34].mxu0  ;;  %v8103_v7 = vpop.f32.mrb[26].mxu1  ;;  %v11291_v47 = vadd.f32 %v8100_v51, %v10977_v20  ;;  %v11294_v24 = vadd.f32 %v2658_v18, %v10977_v20  ;;  %v2775_v27 = vmul.f32 0.044715, %v2747_v28  ;;  %v2726_v41 = vmul.f32 %v11267_v29, %v11267_v29 }
 0xced   :  { %14216 = vst [vmem:[#allocation127_spill] sm:$0xff] %v11284_v8  ;;  %v2577_v32 = vpop.f32.mrb[35].mxu0  ;;  %v2668_v3 = vpop.f32.mrb[27].mxu1  ;;  %v2709_v0 = vmul.f32 %v11284_v8, %v11284_v8  ;;  %9020 = vtanh.f32 %v2820_v16  ;;  %v2777_v53 = vmul.f32 0.044715, %v2749_v49  ;;  %v2728_v14 = vmul.f32 %v11276_v13, %v11276_v13 }
 0xcee   :  { %14217 = vst [vmem:[#allocation128_spill] sm:$0xff] %v11291_v47  ;;  %v11303_v51 = vadd.f32 %v2500_v4, %v10973_v57  ;;  %v2718_v18 = vmul.f32 %v11291_v47, %v11291_v47  ;;  %v2825_v28 = vmul.f32 0.7978846, %v2797_v9  ;;  %v11309_v6 = vmul.f32 0.7978846, %v2799_v25 }
 0xcef   :  { %v2727_v44 = vmul.f32 %v11281_v52, %v11281_v52  ;;  %v2737_v16 = vmul.f32 %v2709_v0, %v11284_v8  ;;  %v2776_v36 = vmul.f32 0.044715, %v2748_v1  ;;  %v2778_v5 = vmul.f32 0.044715, %v2750_v10 }
 0xcf0   :  { %v11307_v62 = vpop.f32.mrb[36].mxu0  ;;  %v2711_v4 = vmul.f32 %v11294_v24, %v11294_v24  ;;  %v11317_v57 = vmul.f32 0.5, %v11097_v2  ;;  %v9017_v54 = vpop.eup %9016  ;;  %v2873_v63 = vadd.f32 1.0, %v9015_v19  ;;  %v2803_v9 = vadd.f32 %v2775_v27, %v11209_v46 }
 0xcf1   :  { %v2583_v49 = vpop.f32.mrb[37].mxu0  ;;  %v2754_v25 = vmul.f32 %v2726_v41, %v11267_v29  ;;  %9022 = vtanh.f32 %v2824_v31  ;;  %v2805_v55 = vadd.f32 %v2777_v53, %v11219_v43  ;;  %v2756_v0 = vmul.f32 %v2728_v14, %v11276_v13 }
 0xcf2   :  { %v2729_v1 = vmul.f32 %v11303_v51, %v11303_v51  ;;  %v2746_v10 = vmul.f32 %v2718_v18, %v11291_v47  ;;  %v2755_v2 = vmul.f32 %v2727_v44, %v11281_v52  ;;  %v2765_v23 = vmul.f32 0.044715, %v2737_v16 }
 0xcf3   :  { %v2739_v19 = vmul.f32 %v2711_v4, %v11294_v24  ;;  %9024 = vtanh.f32 %v2825_v28  ;;  %v2875_v27 = vadd.f32 1.0, %v9017_v54  ;;  %v2804_v31 = vadd.f32 %v2776_v36, %v11232_v40 }
 0xcf4   :  { %v2587_v30 = vpop.f32.mrb[38].mxu0  ;;  %v2806_v41 = vadd.f32 %v2778_v5, %v11235_v22  ;;  %v11331_v53 = vadd.f32 %v2668_v3, %v10977_v20  ;;  %v2901_v43 = vmul.f32 %v2873_v63, %v11238_v42  ;;  %v11334_v18 = vmul.f32 0.7978846, %v2803_v9 }
 0xcf5   :  { %v2589_v15 = vpop.f32.mrb[39].mxu0  ;;  %v9019_v14 = vpop.eup %9018  ;;  %v2782_v46 = vmul.f32 0.044715, %v2754_v25  ;;  %v11338_v44 = vadd.f32 %v11253_v39, %v10979_v60  ;;  %v11340_v16 = vmul.f32 0.7978846, %v2805_v55  ;;  %v2757_v36 = vmul.f32 %v2729_v1, %v11303_v51 }
 0xcf6   :  { %v2784_v54 = vmul.f32 0.044715, %v2756_v0  ;;  %v2774_v28 = vmul.f32 0.044715, %v2746_v10  ;;  %v2783_v4 = vmul.f32 0.044715, %v2755_v2  ;;  %v2793_v3 = vadd.f32 %v2765_v23, %v11284_v8 }
 0xcf7   :  { %v9021_v5 = vpop.eup %9020  ;;  %v2767_v22 = vmul.f32 0.044715, %v2739_v19  ;;  %v11345_v63 = vadd.f32 %v8103_v7, %v10977_v20  ;;  %v2903_v42 = vmul.f32 %v2875_v27, %v11241_v38  ;;  %v11348_v9 = vmul.f32 0.7978846, %v2804_v31 }
 0xcf8   :  { %v11351_v39 = vadd.f32 %v2577_v32, %v10979_v60  ;;  %v2725_v55 = vmul.f32 %v11331_v53, %v11331_v53  ;;  %v11355_v25 = vmul.f32 0.7978846, %v2806_v41  ;;  %v11358_v0 = vadd.f32 %v2782_v46, %v11267_v29 }
 0xcf9   :  { %v2710_v23 = vmul.f32 %v11338_v44, %v11338_v44  ;;  %v11364_v7 = vadd.f32 %v11286_v34, %v10975_v45  ;;  %v11367_v38 = vadd.f32 %v2784_v54, %v11276_v13  ;;  %v2785_v32 = vmul.f32 0.044715, %v2757_v36 }
 0xcfa   :  { %v2802_v1 = vadd.f32 %v2774_v28, %v11291_v47  ;;  %v2753_v10 = vmul.f32 %v2725_v55, %v11331_v53  ;;  %v2811_v19 = vadd.f32 %v2783_v4, %v11281_v52  ;;  %v2821_v46 = vmul.f32 0.7978846, %v2793_v3 }
 0xcfb   :  { %v9023_v2 = vpop.eup %9022  ;;  %v2795_v27 = vadd.f32 %v2767_v22, %v11294_v24  ;;  %v2732_v31 = vmul.f32 %v11345_v63, %v11345_v63  ;;  %v2717_v34 = vmul.f32 %v11351_v39, %v11351_v39  ;;  %v11378_v54 = vadd.f32 %v2583_v49, %v10979_v60 }
 0xcfc   :  { %v2781_v41 = vmul.f32 0.044715, %v2753_v10  ;;  %v2874_v36 = vadd.f32 1.0, %v9019_v14  ;;  %v2738_v55 = vmul.f32 %v2710_v23, %v11338_v44  ;;  %v2716_v4 = vmul.f32 %v11364_v7, %v11364_v7 }
 0xcfd   :  { %v9025_v28 = vpop.eup %9024  ;;  %v11385_v22 = vadd.f32 %v11307_v62, %v10975_v45  ;;  %v11388_v3 = vadd.f32 %v2587_v30, %v10975_v45  ;;  %v2830_v20 = vmul.f32 0.7978846, %v2802_v1  ;;  %v11392_v49 = vadd.f32 %v2589_v15, %v10979_v60 }
 0xcfe   :  { %v2809_v10 = vadd.f32 %v2781_v41, %v11331_v53  ;;  %v2902_v14 = vmul.f32 %v2874_v36, %v11256_v48  ;;  %9026 = vtanh.f32 %v2821_v46  ;;  %v2823_v23 = vmul.f32 0.7978846, %v2795_v27 }
 0xcff   :  { %v2760_v8 = vmul.f32 %v2732_v31, %v11345_v63  ;;  %v2876_v47 = vadd.f32 1.0, %v9021_v5  ;;  %v2745_v13 = vmul.f32 %v2717_v34, %v11351_v39  ;;  %v2724_v30 = vmul.f32 %v11378_v54, %v11378_v54 }
 0xd00   :  { %v2837_v62 = vmul.f32 0.7978846, %v2809_v10  ;;  %3005 = vmatprep.mubr.f32.mxu0 %v2902_v14  ;;  %v2881_v1 = vadd.f32 1.0, %v9025_v28  ;;  %v2723_v41 = vmul.f32 %v11385_v22, %v11385_v22  ;;  %v2730_v15 = vmul.f32 %v11388_v3, %v11388_v3 }
 0xd01   :  { %v2904_v48 = vmul.f32 %v2876_v47, %v11263_v17  ;;  %3006 = vmatmul.mubr.f32.vlgmr.msra.gmra.mrb[40].mxu0 %v2901_v43  ;;  %9028 = vtanh.f32 %v11309_v6  ;;  %v2813_v5 = vadd.f32 %v2785_v32, %v11303_v51  ;;  %v2766_v46 = vmul.f32 0.044715, %v2738_v55 }
 0xd02   :  { %9030 = vtanh.f32 %v2830_v20  ;;  %v2731_v27 = vmul.f32 %v11392_v49, %v11392_v49  ;;  %8489 = vmatpush3.bf16.msra.mxu0 %v10990_v58  ;;  %v2744_v31 = vmul.f32 %v2716_v4, %v11364_v7  ;;  %v2788_v34 = vmul.f32 0.044715, %v2760_v8 }
 0xd03   :  { %9032 = vtanh.f32 %v2823_v23  ;;  %3090 = vmatprep.mubr.f32.mxu1 %v2904_v48  ;;  %v2909_v36 = vmul.f32 %v2881_v1, %v11270_v56  ;;  %8491 = vmatprep.subr.bf16.mxu0 %v10992_v61  ;;  %v2773_v43 = vmul.f32 0.044715, %v2745_v13  ;;  %v2752_v6 = vmul.f32 %v2724_v30, %v11378_v54  ;;  %v14220_v1 = vld [vmem:[#allocation99_spill] sm:$0xff] }
 0xd04   :  { %9034 = vtanh.f32 %v2837_v62  ;;  %3091 = vmatmul.mubr.f32.vlgmr.msra.gmra.mrb[28].mxu1 %v2903_v42  ;;  %v2880_v20 = vadd.f32 1.0, %v9023_v2  ;;  %v2839_v17 = vmul.f32 0.7978846, %v2811_v19  ;;  %v2751_v47 = vmul.f32 %v2723_v41, %v11385_v22 }
 0xd05   :  { %v2758_v32 = vmul.f32 %v2730_v15, %v11388_v3  ;;  %8521 = vmatpush3.bf16.msra.mxu1 %v10851_v35  ;;  %3010 = vmatprep.mubr.f32.mxu0 %v2909_v36  ;;  %9036 = vtanh.f32 %v11278_v50  ;;  %v2794_v56 = vadd.f32 %v2766_v46, %v11338_v44  ;;  %v2759_v8 = vmul.f32 %v2731_v27, %v11392_v49 }
 0xd06   :  { %v2908_v13 = vmul.f32 %v2880_v20, %v11317_v57  ;;  %8493 = vmatpush3.bf16.msra.mxu0 %v10994_v59  ;;  %9038 = vtanh.f32 %v11348_v9  ;;  %8523 = vmatprep.subr.bf16.mxu1 %v11009_v21  ;;  %v2841_v42 = vmul.f32 0.7978846, %v2813_v5  ;;  %v2772_v2 = vmul.f32 0.044715, %v2744_v31  ;;  %v14222_v20 = vld [vmem:[#allocation102_spill] sm:$0xff] }
 0xd07   :  { %v2816_v19 = vadd.f32 %v2788_v34, %v11345_v63  ;;  %9040 = vtanh.f32 %v11355_v25  ;;  %8495 = vmatprep.subr.bf16.mxu0 %v10996_v37  ;;  %v2838_v50 = vmul.f32 0.7978846, %v11358_v0  ;;  %v2801_v28 = vadd.f32 %v2773_v43, %v11351_v39  ;;  %v14218_v0 = vld [vmem:[#allocation2_spill] sm:$0xff]  ;;  %v14221_v34 = vld [vmem:[#allocation121_spill] sm:$0xff] }
 0xd08   :  { %v2780_v55 = vmul.f32 0.044715, %v2752_v6  ;;  %3011 = vmatmul.mubr.f32.gmra.mrb[42].mxu0 %v2908_v13  ;;  %9042 = vtanh.f32 %v11334_v18  ;;  %v11429_v57 = vpop.eup %9026  ;;  %v2840_v9 = vmul.f32 0.7978846, %v11367_v38  ;;  %v2779_v4 = vmul.f32 0.044715, %v2751_v47 }
 0xd09   :  { %v2786_v10 = vmul.f32 0.044715, %v2758_v32  ;;  %9044 = vtanh.f32 %v11340_v16  ;;  %8525 = vmatpush3.bf16.msra.mxu1 %v11009_v21  ;;  %v2822_v25 = vmul.f32 0.7978846, %v2794_v56  ;;  %v2787_v14 = vmul.f32 0.044715, %v2759_v8 }
 0xd0a   :  { %8497 = vmatpush3.bf16.msra.mxu0 %v11007_v11  ;;  %9046 = vtanh.f32 %v2839_v17  ;;  %8527 = vmatprep.subr.bf16.mxu1 %v14218_v0  ;;  %v14219_v18 = vrot.slane %v11177_v33, 7  ;;  %v2800_v38 = vadd.f32 %v2772_v2, %v11364_v7  ;;  %v2844_v30 = vmul.f32 0.7978846, %v2816_v19  ;;  %v14223_v17 = vld [vmem:[#allocation123_spill] sm:$0xff]  ;;  %v14224_v8 = vld [vmem:[#allocation114_spill] sm:$0xff]  ;;  %v14226_v2 = vld [vmem:[#allocation117_spill] sm:$0xff] }
 0xd0b   :  { %v9029_v62 = vpop.eup %9028  ;;  %v2687_v16 = vmul.f32 0.5, %v11144_v12  ;;  %9048 = vtanh.f32 %v2841_v42  ;;  %8499 = vmatprep.subr.bf16.mxu0 %v14220_v1  ;;  %v2829_v15 = vmul.f32 0.7978846, %v2801_v28  ;;  %v2808_v48 = vadd.f32 %v2780_v55, %v11378_v54  ;;  %v14225_v42 = vld [vmem:[#allocation103_spill] sm:$0xff]  ;;  %v14231_v47 = vld [vmem:[#allocation105_spill] sm:$0xff] }
 0xd0c   :  { %v3935_v23 = vsel %vm327_vm0, %v14219_v18, %v11197_v26  ;;  %v11443_v41 = vpop.eup %9030  ;;  %v2883_v5 = vadd.f32 1.0, %v9029_v62  ;;  %9050 = vtanh.f32 %v2838_v50  ;;  %v2807_v27 = vadd.f32 %v2779_v4, %v11385_v22 }
 0xd0d   :  { %v9033_v46 = vpop.eup %9032  ;;  %v2814_v31 = vadd.f32 %v2786_v10, %v11388_v3  ;;  %9052 = vtanh.f32 %v2840_v9  ;;  %v3938_v36 = vrot.slane %v14221_v34, 5  ;;  %v2815_v12 = vadd.f32 %v2787_v14, %v11392_v49 }
 0xd0e   :  { %v11449_v43 = vpop.eup %9034  ;;  %v2911_v6 = vmul.f32 %v2883_v5, %v2687_v16  ;;  %8501 = vmatpush3.bf16.msra.mxu0 %v14222_v20  ;;  %9054 = vtanh.f32 %v2822_v25  ;;  %v2828_v56 = vmul.f32 0.7978846, %v2800_v38  ;;  %v2686_v13 = vmul.f32 0.5, %v14224_v8  ;;  %v14228_v5 = vld [vmem:[#allocation124_spill] sm:$0xff] }
 0xd0f   :  { %v9037_v32 = vpop.eup %9036  ;;  %9056 = vtanh.f32 %v2844_v30  ;;  %8503 = vmatprep.subr.bf16.mxu0 %v14225_v42  ;;  %v14227_v19 = vrot.slane %v14226_v2, 6  ;;  %v2683_v55 = vmul.f32 0.5, %v11294_v24  ;;  %v2836_v9 = vmul.f32 0.7978846, %v2808_v48 }
 0xd10   :  { %v9039_v28 = vpop.eup %9038  ;;  %3095 = vmatprep.mubr.f32.mxu1 %v2911_v6  ;;  %v2882_v4 = vadd.f32 1.0, %v9037_v32  ;;  %9058 = vtanh.f32 %v2829_v15  ;;  %v2835_v25 = vmul.f32 0.7978846, %v2807_v27  ;;  %v11462_v14 = vmul.f32 0.7978846, %v2814_v31  ;;  %v14230_v6 = vld [vmem:[#allocation120_spill] sm:$0xff] }
 0xd11   :  { %v11459_v50 = vsel %vm330_vm1, %v14227_v19, %v3935_v23  ;;  %v9041_v10 = vpop.eup %9040  ;;  %v2692_v18 = vmul.f32 0.5, %v11232_v40  ;;  %v2888_v62 = vadd.f32 1.0, %v9039_v28  ;;  %v2843_v30 = vmul.f32 0.7978846, %v2815_v12  ;;  %v14229_v19 = vld [vmem:[#allocation104_spill] sm:$0xff]  ;;  %v14232_v31 = vld [vmem:[#allocation122_spill] sm:$0xff] }
 0xd12   :  { %v9043_v38 = vpop.eup %9042  ;;  %v2910_v16 = vmul.f32 %v2882_v4, %v2686_v13  ;;  %v2694_v23 = vmul.f32 0.5, %v14228_v5  ;;  %v2890_v8 = vadd.f32 1.0, %v9041_v10  ;;  %8505 = vmatpush3.bf16.msra.mxu0 %v14229_v19  ;;  %v2691_v32 = vmul.f32 0.5, %v14230_v6 }
 0xd13   :  { %v9045_v24 = vpop.eup %9044  ;;  %v2916_v48 = vmul.f32 %v2888_v62, %v2692_v18  ;;  %v2887_v15 = vadd.f32 1.0, %v9043_v38  ;;  %8507 = vmatprep.subr.bf16.mxu0 %v14231_v47  ;;  %9060 = vtanh.f32 %v2828_v56  ;;  %v2693_v28 = vmul.f32 0.5, %v14232_v31  ;;  %v3853_v31 = vld [vmem:[%s13807_s0 + $0x2d] sm:$0x1] }
 0xd14   :  { %v9047_v27 = vpop.eup %9046  ;;  %3096 = vmatmul.mubr.f32.gmra.mrb[30].mxu1 %v2910_v16  ;;  %v2918_v40 = vmul.f32 %v2890_v8, %v2694_v23  ;;  %v2889_v12 = vadd.f32 1.0, %v9045_v24  ;;  %9062 = vtanh.f32 %v2836_v9  ;;  %v2699_v10 = vmul.f32 0.5, %v11281_v52  ;;  %v14233_v23 = vld [vmem:[#allocation106_spill] sm:$0xff]  ;;  %v170_v52 = vld [vmem:[%s13815_s10 + $0x270] sm:$0xff] }
 0xd15   :  { %v9049_v13 = vpop.eup %9048  ;;  %3015 = vmatprep.mubr.f32.mxu0 %v2916_v48  ;;  %v2915_v4 = vmul.f32 %v2887_v15, %v2691_v32  ;;  %v2895_v5 = vadd.f32 1.0, %v9047_v27  ;;  %v2879_v18 = vadd.f32 1.0, %v9033_v46  ;;  %v2701_v6 = vmul.f32 0.5, %v11303_v51  ;;  %v14234_v48 = vld [vmem:[#allocation126_spill] sm:$0xff]  ;;  %v14235_v15 = vld [vmem:[#allocation112_spill] sm:$0xff]  ;;  %v171_v51 = vld [vmem:[%s13815_s10 + $0x278] sm:$0xff] }
 0xd16   :  { %v9051_v62 = vpop.eup %9050  ;;  %3100 = vmatprep.mubr.f32.mxu1 %v2918_v40  ;;  %v2917_v38 = vmul.f32 %v2889_v12, %v2693_v28  ;;  %v2897_v56 = vadd.f32 1.0, %v9049_v13  ;;  %v2698_v16 = vmul.f32 0.5, %v11267_v29  ;;  %8509 = vmatpush3.bf16.msra.mxu0 %v14233_v23  ;;  %v2700_v32 = vmul.f32 0.5, %v14234_v48 }
 0xd17   :  { %v9053_v8 = vpop.eup %9052  ;;  %3016 = vmatmul.mubr.f32.gmra.mrb[44].mxu0 %v2915_v4  ;;  %v2923_v9 = vmul.f32 %v2895_v5, %v2699_v10  ;;  %v2894_v24 = vadd.f32 1.0, %v9051_v62  ;;  %8511 = vmatprep.subr.bf16.mxu0 %v14235_v15  ;;  %9064 = vtanh.f32 %v2835_v25  ;;  %v2682_v40 = vmul.f32 0.5, %v11338_v44 }
 0xd18   :  { %v9055_v29 = vpop.eup %9054  ;;  %3101 = vmatmul.mubr.f32.gmra.mrb[32].mxu1 %v2917_v38  ;;  %v2925_v46 = vmul.f32 %v2897_v56, %v2701_v6  ;;  %v2896_v27 = vadd.f32 1.0, %v9053_v8  ;;  %9066 = vtanh.f32 %v2843_v30  ;;  %v2907_v4 = vmul.f32 %v2879_v18, %v2683_v55  ;;  %v14236_v38 = vld [vmem:[#allocation115_spill] sm:$0xff]  ;;  %v14238_v18 = vld [vmem:[#allocation116_spill] sm:$0xff] }
 0xd19   :  { %v9057_v28 = vpop.eup %9056  ;;  %3020 = vmatprep.mubr.f32.mxu0 %v2923_v9  ;;  %v2922_v12 = vmul.f32 %v2894_v24, %v2698_v16  ;;  %v2878_v13 = vadd.f32 1.0, %v9055_v29  ;;  %v2893_v10 = vadd.f32 1.0, %v11449_v43  ;;  %v2886_v25 = vadd.f32 1.0, %v11443_v41  ;;  %v3854_v41 = vld [vmem:[%s13807_s0 + $0x2f] sm:$0x1]  ;;  %v14239_v43 = vld [vmem:[#allocation4_spill] sm:$0xff] }
 0xd1a   :  { %v9059_v5 = vpop.eup %9058  ;;  %3105 = vmatprep.mubr.f32.mxu1 %v2925_v46  ;;  %v2924_v62 = vmul.f32 %v2896_v27, %v2700_v32  ;;  %8513 = vmatpush3.bf16.msra.mxu0 %v14236_v38  ;;  %v3939_v44 = vsel %vm333_vm2, %v3938_v36, %v11459_v50  ;;  %v11493_v30 = vpack.c.bf16 %v171_v51, %v170_v52  ;;  %v2697_v6 = vmul.f32 0.5, %v11331_v53  ;;  %v14241_v50 = vld [vmem:[#allocation128_spill] sm:$0xff]  ;;  %v14242_v53 = vld [vmem:[#allocation119_spill] sm:$0xff]  ;;  %v14245_v32 = vld [vmem:[#allocation125_spill] sm:$0xff] }
 0xd1b   :  { %3021 = vmatmul.mubr.f32.gmra.mrb[46].mxu0 %v2922_v12  ;;  %v2906_v55 = vmul.f32 %v2878_v13, %v2682_v40  ;;  %8515 = vmatprep.subr.bf16.mxu0 %v14238_v18  ;;  %v14240_v56 = vrot.slane %v14239_v43, 6  ;;  %9068 = vtanh.f32 %v11462_v14  ;;  %v2877_v36 = vadd.f32 1.0, %v11429_v57  ;;  %v14243_v9 = vld [vmem:[#allocation84_spill] sm:$0xff]  ;;  %v14246_v46 = vld [vmem:[#allocation118_spill] sm:$0xff] }
 0xd1c   :  { %14237 = vst [vmem:[#allocation2_spill] sm:$0xff] %v11493_v30  ;;  %v2690_v8 = vmul.f32 0.5, %v14241_v50  ;;  %3106 = vmatmul.mubr.f32.gmra.mrb[34].mxu1 %v2924_v62  ;;  %v14244_v24 = vrot.slane %v14243_v9, 4  ;;  %v3942_v52 = vrot.slane %v14245_v32, 3  ;;  %v2921_v29 = vmul.f32 %v2893_v10, %v2697_v6  ;;  %v14247_v27 = vld [vmem:[#allocation110_spill] sm:$0xff]  ;;  %v14250_v62 = vld [vmem:[#allocation127_spill] sm:$0xff] }
 0xd1d   :  { %v11502_v16 = vadd.f32 %v3853_v31, %v14240_v56  ;;  %v9061_v51 = vpop.eup %9060  ;;  %3175 = vmatprep.mubr.f32.mxu0 %v2906_v55  ;;  %8112 = vmatprep.mubr.msk.f32.mxu1 %vm375_vm7, %v2907_v4  ;;  %v14248_v14 = vrot.slane %v14247_v27, 2  ;;  %v14249_v40 = vrot.slane %v14223_v17, 4  ;;  %v2885_v12 = vadd.f32 1.0, %v9059_v5  ;;  %v14252_v4 = vld [vmem:[#allocation85_spill] sm:$0xff] }
 0xd1e   :  { %v3927_v48 = vsel %vm336_vm3, %v14244_v24, %v14242_v53  ;;  %v9063_v13 = vpop.eup %9062  ;;  %v2681_v56 = vmul.f32 0.5, %v14250_v62  ;;  %v2914_v50 = vmul.f32 %v2886_v25, %v2690_v8  ;;  %v2900_v53 = vadd.f32 1.0, %v9057_v28  ;;  %8517 = vmatpush3.bf16.msra.mxu0 %v11493_v30 }
 0xd1f   :  { %v3917_v57 = vsel %vm342_vm5, %v14248_v14, %v14246_v46  ;;  %v3941_v31 = vsel %vm336_vm3, %v14249_v40, %v3939_v44  ;;  %v14251_v55 = vrot.slane %v14239_v43, 7  ;;  %v14253_v10 = vrot.slane %v14252_v4, 3  ;;  %v14254_v43 = vld [vmem:[#allocation111_spill] sm:$0xff] }
 0xd20   :  { %v3944_v46 = vrot.slane %v11502_v16, 2  ;;  %v2689_v44 = vmul.f32 0.5, %v11351_v39  ;;  %v2905_v5 = vmul.f32 %v2877_v36, %v2681_v56  ;;  %v2704_v14 = vmul.f32 0.5, %v11345_v63  ;;  %8113 = vmatmul.mubr.msk.f32.vlgmr.msra.gmra.mrb[36].mxu1 %vm375_vm7, %v2914_v50  ;;  %v14256_v40 = vld [vmem:[#allocation87_spill] sm:$0xff]  ;;  %v14258_v50 = vld [vmem:[#allocation86_spill] sm:$0xff] }
 0xd21   :  { %v11523_v24 = vadd.f32 %v3854_v41, %v14251_v55  ;;  %v3929_v6 = vsel %vm339_vm4, %v14253_v10, %v3927_v48  ;;  %v3943_v28 = vsel %vm339_vm4, %v3942_v52, %v3941_v31  ;;  %v2884_v25 = vadd.f32 1.0, %v9061_v51  ;;  %v9065_v41 = vpop.eup %9064  ;;  %8529 = vmatpush3.bf16.msra.mxu1 %v14218_v0  ;;  %8115 = vmatprep.mubr.msk.f32.mxu1 %vm375_vm7, %v2921_v29  ;;  %v14257_v55 = vld [vmem:[#allocation3_spill] sm:$0xff] }
 0xd22   :  { %v14255_v8 = vrot.slane %v14254_v43, 1  ;;  %v3932_v62 = vrot.slane %v14256_v40, 1  ;;  %v2913_v39 = vmul.f32 %v2885_v12, %v2689_v44  ;;  %v2892_v36 = vadd.f32 1.0, %v9063_v13  ;;  %v9067_v56 = vpop.eup %9066  ;;  %8531 = vmatprep.subr.bf16.mxu1 %v14257_v55  ;;  %3176 = vmatmul.mubr.f32.vlgmr.msra.gmra.mrb[48].mxu0 %v2905_v5 }
 0xd23   :  { %v2928_v63 = vmul.f32 %v2900_v53, %v2704_v14  ;;  %v14259_v52 = vrot.slane %v14258_v50, 2  ;;  %v3946_v0 = vrot.slane %v11523_v24, 1  ;;  %v2688_v29 = vmul.f32 0.5, %v11364_v7  ;;  %v3855_v7 = vld [vmem:[%s13807_s0 + $0x31] sm:$0x1] }
 0xd24   :  { %v3919_v48 = vsel %vm345_vm6, %v14255_v8, %v3917_v57  ;;  %v3945_v31 = vsel %vm342_vm5, %v3944_v46, %v3943_v28  ;;  %3180 = vmatprep.mubr.f32.mxu0 %v2913_v39  ;;  %v2696_v57 = vmul.f32 0.5, %v11378_v54  ;;  %v2891_v13 = vadd.f32 1.0, %v9065_v41  ;;  %v9217_v14 = vld [vmem:[%s13808_s1 + $0x18] sm:$0x1] }
 0xd25   :  { %v3931_v51 = vsel %vm342_vm5, %v14259_v52, %v3929_v6  ;;  %8116 = vmatmul.mubr.msk.f32.gmra.mrb[38].mxu1 %vm375_vm7, %v2928_v63  ;;  %v2912_v12 = vmul.f32 %v2884_v25, %v2688_v29  ;;  %v9069_v53 = vpop.eup %9068  ;;  %v2899_v46 = vadd.f32 1.0, %v9067_v56  ;;  %v3947_v44 = vsel %vm345_vm6, %v3946_v0, %v3945_v31 }
 0xd26   :  { %8533 = vmatpush3.bf16.msra.mxu1 %v14257_v55  ;;  %8126 = vmatprep.mubr.msk.f32.mxu1 %vm375_vm7, %v3919_v48  ;;  %v3933_v10 = vsel %vm345_vm6, %v3932_v62, %v3931_v51  ;;  %v2920_v6 = vmul.f32 %v2892_v36, %v2696_v57  ;;  %v2695_v54 = vmul.f32 0.5, %v11385_v22  ;;  %v2703_v5 = vmul.f32 0.5, %v11392_v49 }
 0xd27   :  { %3181 = vmatmul.mubr.f32.gmra.mrb[50].mxu0 %v2912_v12  ;;  %v11562_v28 = vadd.f32 %v9217_v14, %v3855_v7  ;;  %v2898_v41 = vadd.f32 1.0, %v9069_v53  ;;  %v2702_v48 = vmul.f32 0.5, %v11388_v3 }
 0xd28   :  { %3185 = vmatprep.mubr.f32.mxu0 %v2920_v6  ;;  %v2919_v25 = vmul.f32 %v2891_v13, %v2695_v54  ;;  %v2927_v8 = vmul.f32 %v2899_v46, %v2703_v5 }
 0xd29   :  { %8127 = vmatmul.mubr.msk.f32.vlgmr.msra.gmra.mrb[40].mxu1 %vm375_vm7, %v3933_v10  ;;  %v2926_v22 = vmul.f32 %v2898_v41, %v2702_v48 }
 0xd2a   :  { %8129 = vmatprep.mubr.msk.f32.mxu1 %vm375_vm7, %v3947_v44 }
 0xd2b   :  { %3186 = vmatmul.mubr.f32.gmra.mrb[52].mxu0 %v2919_v25 }
 0xd2c   :  { %3190 = vmatprep.mubr.f32.mxu0 %v2927_v8 }
 0xd2d   :  { %8130 = vmatmul.mubr.msk.f32.gmra.mrb[42].mxu1 %vm375_vm7, %v11562_v28 }
 0xd2f   :  { %3191 = vmatmul.mubr.f32.gmra.mrb[54].mxu0 %v2926_v22 }
 0xdd4   :  { %v7614_v49 = vpop.f32.mrb[40].mxu0 }
 0xdd5   :  { %v7615_v62 = vpop.f32.mrb[41].mxu0 }
 0xdd6   :  { %v7616_v39 = vadd.f32 %v7615_v62, %v7614_v49 }
 0xdd7   :  { %v7658_v36 = vpop.f32.mrb[28].mxu1 }
 0xdd8   :  { %v7659_v56 = vpop.f32.mrb[29].mxu1 }
 0xdd9   :  { %v7660_v63 = vadd.f32 %v7659_v56, %v7658_v36 }
 0xddb   :  { %v3093_v55 = vadd.f32 %v7660_v63, %v7616_v39  ;;  %v7617_v52 = vpop.f32.mrb[42].mxu0 }
 0xddc   :  { %v7618_v51 = vpop.f32.mrb[43].mxu0 }
 0xddd   :  { %v7619_v0 = vadd.f32 %v7618_v51, %v7617_v52 }
 0xde7   :  { %v7661_v29 = vpop.f32.mrb[30].mxu1 }
 0xde8   :  { %v7662_v31 = vpop.f32.mrb[31].mxu1 }
 0xde9   :  { %v7663_v57 = vadd.f32 %v7662_v31, %v7661_v29 }
 0xdea   :  { %v7620_v3 = vpop.f32.mrb[44].mxu0 }
 0xdeb   :  { %v3098_v12 = vadd.f32 %v7663_v57, %v7619_v0  ;;  %v7664_v13 = vpop.f32.mrb[32].mxu1  ;;  %v7621_v53 = vpop.f32.mrb[45].mxu0  ;;  %v9218_v57 = vld [vmem:[%s13809_s3] ss:$0 sm:$0xff]  ;;  %s14263_s3 = smov 48  }
 0xdec   :  { %v7622_v10 = vadd.f32 %v7621_v53, %v7620_v3  ;;  %v7665_v7 = vpop.f32.mrb[33].mxu1 }
 0xded   :  { %v7666_v6 = vadd.f32 %v7665_v7, %v7664_v13 }
 0xdee   :  { %v7623_v46 = vpop.f32.mrb[46].mxu0 }
 0xdef   :  { %v3103_v44 = vadd.f32 %v7666_v6, %v7622_v10  ;;  %v7667_v54 = vpop.f32.mrb[34].mxu1  ;;  %v7624_v5 = vpop.f32.mrb[47].mxu0 }
 0xdf0   :  { %v7625_v14 = vadd.f32 %v7624_v5, %v7623_v46  ;;  %v7668_v25 = vpop.f32.mrb[35].mxu1 }
 0xdf1   :  { %v7669_v41 = vadd.f32 %v7668_v25, %v7667_v54 }
 0xdf3   :  { %v3108_v8 = vadd.f32 %v7669_v41, %v7625_v14  ;;  %v8114_v48 = vpop.f32.mrb[36].mxu1 }
 0xdf4   :  { %v3262_v22 = vpop.f32.mrb[37].mxu1 }
 0xdf5   :  { %v7702_v49 = vpop.f32.mrb[48].mxu0 }
 0xdf6   :  { %v7703_v62 = vpop.f32.mrb[49].mxu0 }
 0xdf7   :  { %v7704_v36 = vadd.f32 %v7703_v62, %v7702_v49 }
 0xdf8   :  { %v8117_v39 = vpop.f32.mrb[38].mxu1 }
 0xdf9   :  { %v3272_v56 = vpop.f32.mrb[39].mxu1  ;;  %v3178_v63 = vadd.f32 %v7704_v36, %v3093_v55 }
 0xdfa   :  { %v7705_v52 = vpop.f32.mrb[50].mxu0 }
 0xdfb   :  { %v7706_v51 = vpop.f32.mrb[51].mxu0  ;;  %v11568_v29 = vadd.f32 %v3262_v22, %v3178_v63 }
 0xdfc   :  { %v8128_v0 = vpop.f32.mrb[40].mxu1  ;;  %v7707_v31 = vadd.f32 %v7706_v51, %v7705_v52 }
 0xdfd   :  { %v11573_v3 = vadd.f32 %v9218_v57, %v8128_v0  ;;  %v4022_v13 = vpop.f32.mrb[41].mxu1 }
 0xdfe   :  { %v11575_v53 = vadd.f32 %v9218_v57, %v4022_v13  ;;  %v3183_v10 = vadd.f32 %v7707_v31, %v3098_v12  ;;  %v7708_v7 = vpop.f32.mrb[52].mxu0 }
 0xdff   :  { %v7709_v6 = vpop.f32.mrb[53].mxu0 }
 0xe00   :  { %v8131_v46 = vpop.f32.mrb[42].mxu1  ;;  %8140 = vmatprep.mubr.msk.f32.mxu1 %vm481_vm8, %v11575_v53  ;;  %v11581_v55 = vpack.i.bf16 %v11573_v3, %v11575_v53  ;;  %v11583_v54 = vadd.f32 %v8114_v48, %v3183_v10  ;;  %v7710_v5 = vadd.f32 %v7709_v6, %v7708_v7 }
 0xe01   :  { %v11585_v14 = vadd.f32 %v9218_v57, %v8131_v46  ;;  %v4032_v25 = vpop.f32.mrb[43].mxu1 }
 0xe02   :  { %v11587_v41 = vadd.f32 %v9218_v57, %v4032_v25  ;;  %8863 = vrot.lane.b32.xlu1 %v11581_v55, %s9223_s29  ;;  %v3188_v12 = vadd.f32 %v7710_v5, %v3103_v44  ;;  %v7711_v22 = vpop.f32.mrb[54].mxu0 }
 0xe03   :  { %v7712_v49 = vpop.f32.mrb[55].mxu0 }
 0xe04   :  { %v11593_v62 = vpack.i.bf16 %v11585_v14, %v11587_v41  ;;  %v11595_v36 = vadd.f32 %v3272_v56, %v3188_v12  ;;  %v7713_v48 = vadd.f32 %v7712_v49, %v7711_v22 }
 0xe06   :  { %8868 = vrot.lane.b32.xlu0 %v11593_v62, %s9223_s29  ;;  %8873 = vrot.lane.b32.xlu1 %v11581_v55, %s9225_s15  ;;  %v3193_v63 = vadd.f32 %v7713_v48, %v3108_v8  ;;  %s14264_s29 = smov 72  }
 0xe08   :  { %v11601_v52 = vadd.f32 %v8117_v39, %v3193_v63 }
 0xe0a   :  { %14260 = vst [vmem:[#allocation121_spill] sm:$0xff] %v11601_v52  ;;  %4308 = vrot.lane.b32.xlu0 %v11575_v53, %s9226_s16  ;;  %8878 = vrot.lane.b32.xlu1 %v11593_v62, %s9225_s15  ;;  %s14272_s15 = smov 40  }
 0xe0e   :  { %4312 = vrot.lane.b32.xlu0 %v11587_v41, %s9226_s16  ;;  %4310 = vrot.lane.b32.xlu1 %v11573_v3, %s9226_s16 }
 0xe12   :  { %4314 = vrot.lane.b32.xlu1 %v11585_v14, %s9226_s16  ;;  %s14273_s16 = smov 8  }
 0xe16   :  { %8883 = vrot.lane.b32.xlu1 %v11581_v55, %s9224_s30 }
 0xe74   :  { %v8864_v44 = vpop.permute.xlu1 %8863 }
 0xe75   :  { %v8866_v8 = vunpack.i.h.bf16 %v8864_v44  ;;  %v8865_v39 = vunpack.i.l.bf16 %v8864_v44 }
 0xe77   :  { %v8534_v56 = vpack.c.bf16 %v8866_v8, %v8865_v39 }
 0xe78   :  { %v8869_v51 = vpop.permute.xlu0 %8868  ;;  %v8874_v0 = vpop.permute.xlu1 %8873 }
 0xe79   :  { %v8871_v31 = vunpack.i.h.bf16 %v8869_v51  ;;  %v8870_v57 = vunpack.i.l.bf16 %v8869_v51  ;;  %8536 = vmatprep.subr.msk.bf16.mxu1 %vm9620_vm9, %v8534_v56  ;;  %v8876_v6 = vunpack.i.h.bf16 %v8874_v0  ;;  %v8875_v46 = vunpack.i.l.bf16 %v8874_v0 }
 0xe7a   :  { %8539 = vmatpush3.bf16.xpose.msk.msra.mxu1 %vm9620_vm9, %v8534_v56 }
 0xe7b   :  { %v8540_v10 = vpack.c.bf16 %v8871_v31, %v8870_v57  ;;  %v8556_v25 = vpack.c.bf16 %v8876_v6, %v8875_v46 }
 0xe7c   :  { %v8879_v7 = vpop.permute.xlu1 %8878  ;;  %v4309_v56 = vpop.permute.xlu0 %4308 }
 0xe7d   :  { %8542 = vmatprep.subr.msk.bf16.mxu1 %vm9620_vm9, %v8540_v10  ;;  %v8881_v22 = vunpack.i.h.bf16 %v8879_v7  ;;  %v8880_v49 = vunpack.i.l.bf16 %v8879_v7 }
 0xe7f   :  { %v8562_v63 = vpack.c.bf16 %v8881_v22, %v8880_v49 }
 0xe80   :  { %v4311_v5 = vpop.permute.xlu1 %4310  ;;  %v4313_v51 = vpop.permute.xlu0 %4312 }
 0xe82   :  { %8545 = vmatpush3.bf16.xpose.msk.msra.mxu1 %vm9620_vm9, %v8540_v10 }
 0xe83   :  { %8558 = vmatprep.subr.msk.bf16.mxu1 %vm9620_vm9, %v8556_v25 }
 0xe84   :  { %v4315_v12 = vpop.permute.xlu1 %4314 }
 0xe88   :  { %v8884_v48 = vpop.permute.xlu1 %8883 }
 0xe89   :  { %v8886_v44 = vunpack.i.h.bf16 %v8884_v48  ;;  %v8885_v8 = vunpack.i.l.bf16 %v8884_v48  ;;  %8141 = vmatmul.mubr.msk.f32.vlgmr.msra.gmra.mrb[44].mxu1 %vm481_vm8, %v11573_v3 }
 0xe8a   :  { %8143 = vmatprep.mubr.msk.f32.mxu1 %vm481_vm8, %v11587_v41  ;;  %8561 = vmatpush3.bf16.xpose.msk.msra.mxu1 %vm9620_vm9, %v8556_v25 }
 0xe8b   :  { %v8546_v39 = vpack.c.bf16 %v8886_v44, %v8885_v8  ;;  %8564 = vmatprep.subr.msk.bf16.mxu1 %vm9620_vm9, %v8562_v63 }
 0xe8d   :  { %8144 = vmatmul.mubr.msk.f32.gmra.mrb[46].mxu1 %vm481_vm8, %v11585_v14  ;;  %8547 = vmatprep.subr.bf16.mxu0 %v8546_v39 }
 0xe8e   :  { %8549 = vmatpush3.bf16.msra.mxu0 %v8546_v39  ;;  %8168 = vmatprep.mubr.msk.f32.mxu1 %vm481_vm8, %v4309_v56 }
 0xe92   :  { %8567 = vmatpush3.bf16.xpose.msk.msra.mxu1 %vm9620_vm9, %v8562_v63 }
 0xe99   :  { %8169 = vmatmul.mubr.msk.f32.vlgmr.msra.gmra.mrb[48].mxu1 %vm481_vm8, %v4311_v5 }
 0xe9a   :  { %8171 = vmatprep.mubr.msk.f32.mxu1 %vm481_vm8, %v4313_v51 }
 0xe9d   :  { %8172 = vmatmul.mubr.msk.f32.gmra.mrb[50].mxu1 %vm481_vm8, %v4315_v12 }
 0xf5c   :  { %v8142_v0 = vpop.f32.mrb[44].mxu1 }
 0xf5d   :  { %v4135_v31 = vpop.f32.mrb[45].mxu1  ;;  %v4157_v57 = vsel %vm583_vm10, %v8142_v0, -inf }
 0xf5e   :  { %4158 = vmax.xlane.f32.xlu1 %v4157_v57  ;;  %v4154_v10 = vsel %vm583_vm10, %v4135_v31, -inf }
 0xf5f   :  { %4155 = vmax.xlane.f32.xlu0 %v4154_v10 }
 0xf60   :  { %v8145_v7 = vpop.f32.mrb[46].mxu1 }
 0xf61   :  { %v4145_v6 = vpop.f32.mrb[47].mxu1  ;;  %v4163_v46 = vsel %vm593_vm11, %v8145_v7, -inf }
 0xf62   :  { %v4160_v25 = vsel %vm583_vm10, %v4145_v6, -inf }
 0xf63   :  { %4164 = vmax.xlane.f32.xlu0 %v4163_v46 }
 0xf67   :  { %4161 = vmax.xlane.f32.xlu0 %v4160_v25 }
 0xf6c   :  { %v8170_v5 = vpop.f32.mrb[48].mxu1 }
 0xf6d   :  { %v11645_v22 = vpop.f32.mrb[49].mxu1  ;;  %v4428_v12 = vsel %vm583_vm10, %v8170_v5, -inf }
 0xf6e   :  { %4429 = vmax.xlane.f32.xlu0 %v4428_v12  ;;  %v4425_v49 = vsel %vm583_vm10, %v11645_v22, -inf }
 0xf6f   :  { %4426 = vmax.xlane.f32.xlu1 %v4425_v49 }
 0xf70   :  { %v8173_v48 = vpop.f32.mrb[50].mxu1 }
 0xf71   :  { %v11650_v63 = vpop.f32.mrb[51].mxu1  ;;  %v4434_v44 = vsel %vm593_vm11, %v8173_v48, -inf }
 0xf72   :  { %4435 = vmax.xlane.f32.xlu0 %v4434_v44  ;;  %v4431_v8 = vsel %vm583_vm10, %v11650_v63, -inf }
 0xf80   :  { %8893 = vrot.lane.b32.xlu1 %v11581_v55, %s9230_s19 }
 0xf88   :  { %8888 = vrot.lane.b32.xlu0 %v11593_v62, %s9224_s30  ;;  %s14265_s30 = smov 104  }
 0xfa4   :  { %4432 = vmax.xlane.f32.xlu1 %v4431_v8 }
 0xfeb   :  { %v4159_v39 = vpop.xlane.xlu1 %4158 }
 0xfec   :  { %v4167_v56 = vsub.f32 %v8142_v0, %v4159_v39  ;;  %v4156_v51 = vpop.xlane.xlu0 %4155 }
 0xfed   :  { %v4166_v57 = vsub.f32 %v4135_v31, %v4156_v51 }
 0xfee   :  { %v4172_v10 = vmul.f32 1.442695, %v4167_v56 }
 0xfef   :  { %v4170_v46 = vmul.f32 1.442695, %v4166_v57 }
 0xff0   :  { %9070 = vpow2.f32 %v4172_v10  ;;  %v4165_v25 = vpop.xlane.xlu0 %4164 }
 0xff1   :  { %9072 = vpow2.f32 %v4170_v46  ;;  %v4169_v12 = vsub.f32 %v8145_v7, %v4165_v25 }
 0xff3   :  { %v4176_v49 = vmul.f32 1.442695, %v4169_v12 }
 0xff4   :  { %v4162_v44 = vpop.xlane.xlu0 %4161 }
 0xff5   :  { %9074 = vpow2.f32 %v4176_v49  ;;  %v4168_v52 = vsub.f32 %v4145_v6, %v4162_v44 }
 0xff7   :  { %v4174_v60 = vmul.f32 1.442695, %v4168_v52 }
 0xff9   :  { %9076 = vpow2.f32 %v4174_v60 }
 0xffa   :  { %v11659_v30 = vpop.eup %9070 }
 0xffb   :  { %v11661_v18 = vpop.eup %9072  ;;  %v4430_v8 = vpop.xlane.xlu0 %4429  ;;  %v4181_v0 = vsel %vm583_vm10, %v11659_v30, 0.0 }
 0xffc   :  { %v4438_v31 = vsub.f32 %v8170_v5, %v4430_v8  ;;  %v4427_v39 = vpop.xlane.xlu1 %4426  ;;  %4182 = vadd.xlane.f32.xlu0 %v4181_v0  ;;  %v4178_v7 = vsel %vm583_vm10, %v11661_v18, 0.0 }
 0xffd   :  { %4179 = vadd.xlane.f32.xlu1 %v4178_v7 }
 0xffe   :  { %v4443_v56 = vmul.f32 1.442695, %v4438_v31 }
 0xfff   :  { %v11667_v51 = vpop.eup %9074  ;;  %v4436_v52 = vpop.xlane.xlu0 %4435 }
0x1000   :  { %9078 = vpow2.f32 %v4443_v56  ;;  %v8894_v60 = vpop.permute.xlu1 %8893  ;;  %v4187_v6 = vsel %vm593_vm11, %v11667_v51, 0.0  ;;  %v4437_v56 = vsub.f32 %v11645_v22, %v4427_v39 }
0x1001   :  { %4188 = vadd.xlane.f32.xlu0 %v4187_v6  ;;  %v8896_v10 = vunpack.i.h.bf16 %v8894_v60  ;;  %v8895_v46 = vunpack.i.l.bf16 %v8894_v60  ;;  %v4440_v6 = vsub.f32 %v8173_v48, %v4436_v52 }
0x1002   :  { %v4441_v60 = vmul.f32 1.442695, %v4437_v56 }
0x1003   :  { %v11671_v57 = vpop.eup %9076  ;;  %v8889_v5 = vpop.permute.xlu0 %8888  ;;  %v8568_v8 = vpack.c.bf16 %v8896_v10, %v8895_v46  ;;  %v4447_v10 = vmul.f32 1.442695, %v4440_v6 }
0x1004   :  { %v8891_v25 = vunpack.i.h.bf16 %v8889_v5  ;;  %v8890_v12 = vunpack.i.l.bf16 %v8889_v5  ;;  %v4184_v49 = vsel %vm583_vm10, %v11671_v57, 0.0  ;;  %9080 = vpow2.f32 %v4441_v60 }
0x1005   :  { %4185 = vadd.xlane.f32.xlu1 %v4184_v49  ;;  %9082 = vpow2.f32 %v4447_v10 }
0x1006   :  { %v8550_v44 = vpack.c.bf16 %v8891_v25, %v8890_v12 }
0x1008   :  { %8552 = vmatprep.subr.msk.bf16.mxu0 %vm9669_vm14, %v8550_v44 }
0x1009   :  { %8555 = vmatpush3.bf16.msk.msra.mxu0 %vm9669_vm14, %v8550_v44 }
0x100a   :  { %v11679_v31 = vpop.eup %9078  ;;  %8569 = vmatprep.subr.bf16.mxu0 %v8568_v8 }
0x100b   :  { %v4452_v7 = vsel %vm583_vm10, %v11679_v31, 0.0 }
0x100c   :  { %4453 = vadd.xlane.f32.xlu0 %v4452_v7 }
0x100e   :  { %v9081_v5 = vpop.eup %9080 }
0x100f   :  { %v4449_v46 = vsel %vm583_vm10, %v9081_v5, 0.0  ;;  %v11689_v25 = vpop.eup %9082 }
0x1010   :  { %v4458_v12 = vsel %vm593_vm11, %v11689_v25, 0.0 }
0x1016   :  { %8903 = vrot.lane.b32.xlu1 %v11581_v55, %s9227_s17 }
0x1022   :  { %8898 = vrot.lane.b32.xlu0 %v11593_v62, %s9230_s19 }
0x1031   :  { %v4433_v49 = vpop.xlane.xlu1 %4432 }
0x1032   :  { %v4439_v22 = vsub.f32 %v11650_v63, %v4433_v49 }
0x1034   :  { %v4445_v48 = vmul.f32 1.442695, %v4439_v22 }
0x1036   :  { %9084 = vpow2.f32 %v4445_v48 }
0x103a   :  { %4450 = vadd.xlane.f32.xlu1 %v4449_v46 }
0x1040   :  { %v9085_v39 = vpop.eup %9084 }
0x1041   :  { %4459 = vadd.xlane.f32.xlu0 %v4458_v12  ;;  %v4455_v52 = vsel %vm583_vm10, %v9085_v39, 0.0 }
0x104b   :  { %8908 = vrot.lane.b32.xlu1 %v11593_v62, %s9227_s17  ;;  %s14274_s17 = smov 16  }
0x1057   :  { %4579 = vrot.lane.b32.xlu0 %v11575_v53, %s9228_s18 }
0x105b   :  { %4583 = vrot.lane.b32.xlu0 %v11587_v41, %s9228_s18 }
0x106f   :  { %4456 = vadd.xlane.f32.xlu1 %v4455_v52 }
0x1080   :  { %4581 = vrot.lane.b32.xlu1 %v11573_v3, %s9228_s18 }
0x1084   :  { %4585 = vrot.lane.b32.xlu1 %v11585_v14, %s9228_s18  ;;  %s14278_s18 = smov 24  }
0x1089   :  { %v4183_v44 = vpop.xlane.xlu0 %4182 }
0x108a   :  { %9086 = vrcp.f32 %v4183_v44  ;;  %v4180_v7 = vpop.xlane.xlu1 %4179 }
0x108b   :  { %9088 = vrcp.f32 %v4180_v7 }
0x108e   :  { %v4189_v63 = vpop.xlane.xlu0 %4188 }
0x108f   :  { %9090 = vrcp.f32 %v4189_v63 }
0x1092   :  { %v4186_v56 = vpop.xlane.xlu1 %4185 }
0x1093   :  { %9092 = vrcp.f32 %v4186_v56 }
0x1094   :  { %v9087_v60 = vpop.eup %9086 }
0x1095   :  { %v9089_v6 = vpop.eup %9088  ;;  %v4195_v46 = vmul.f32 %v9087_v60, %v11659_v30 }
0x1096   :  { %v4194_v10 = vmul.f32 %v9089_v6, %v11661_v18  ;;  %v8904_v49 = vpop.permute.xlu1 %8903 }
0x1097   :  { %v8906_v52 = vunpack.i.h.bf16 %v8904_v49  ;;  %v8905_v7 = vunpack.i.l.bf16 %v8904_v49 }
0x1098   :  { %8154 = vmatprep.mubr.msk.f32.mxu0 %vm583_vm10, %v4194_v10 }
0x1099   :  { %v4454_v12 = vpop.xlane.xlu0 %4453  ;;  %8155 = vmatmul.mubr.msk.f32.vlgmr.msra.gmra.mrb[56].mxu0 %vm583_vm10, %v4195_v46  ;;  %v9091_v22 = vpop.eup %9090  ;;  %v8578_v30 = vpack.c.bf16 %v8906_v52, %v8905_v7 }
0x109a   :  { %8571 = vmatpush3.bf16.msra.mxu0 %v8568_v8  ;;  %v4197_v18 = vmul.f32 %v9091_v22, %v11667_v51  ;;  %9094 = vrcp.f32 %v4454_v12 }
0x109d   :  { %v9093_v48 = vpop.eup %9092  ;;  %v8899_v44 = vpop.permute.xlu0 %8898 }
0x109e   :  { %v8901_v63 = vunpack.i.h.bf16 %v8899_v44  ;;  %v8900_v56 = vunpack.i.l.bf16 %v8899_v44  ;;  %v4196_v38 = vmul.f32 %v9093_v48, %v11671_v57 }
0x10a0   :  { %v8572_v6 = vpack.c.bf16 %v8901_v63, %v8900_v56  ;;  %8157 = vmatprep.mubr.msk.f32.mxu0 %vm583_vm10, %v4196_v38 }
0x10a1   :  { %8158 = vmatmul.mubr.msk.f32.gmra.mrb[58].mxu0 %vm583_vm10, %v4197_v18 }
0x10a2   :  { %8574 = vmatprep.subr.msk.bf16.mxu0 %vm9669_vm14, %v8572_v6 }
0x10a3   :  { %8577 = vmatpush3.bf16.msk.msra.mxu0 %vm9669_vm14, %v8572_v6 }
0x10a4   :  { %8580 = vmatprep.subr.msk.bf16.mxu0 %vm9620_vm9, %v8578_v30  ;;  %v9095_v51 = vpop.eup %9094 }
0x10a5   :  { %v4466_v49 = vmul.f32 %v9095_v51, %v11679_v31 }
0x10c7   :  { %v4451_v8 = vpop.xlane.xlu1 %4450 }
0x10c8   :  { %9096 = vrcp.f32 %v4451_v8 }
0x10cb   :  { %v8909_v57 = vpop.permute.xlu1 %8908 }
0x10cc   :  { %v8911_v10 = vunpack.i.h.bf16 %v8909_v57  ;;  %v8910_v38 = vunpack.i.l.bf16 %v8909_v57 }
0x10ce   :  { %v8584_v22 = vpack.c.bf16 %v8911_v10, %v8910_v38  ;;  %v4460_v12 = vpop.xlane.xlu0 %4459 }
0x10cf   :  { %9098 = vrcp.f32 %v4460_v12 }
0x10d2   :  { %v9097_v60 = vpop.eup %9096  ;;  %v4580_v44 = vpop.permute.xlu0 %4579 }
0x10d3   :  { %v4465_v46 = vmul.f32 %v9097_v60, %v9081_v5 }
0x10d5   :  { %8182 = vmatprep.mubr.msk.f32.mxu0 %vm583_vm10, %v4465_v46 }
0x10d6   :  { %8183 = vmatmul.mubr.msk.f32.vlgmr.msra.gmra.mrb[60].mxu0 %vm583_vm10, %v4466_v49  ;;  %v4584_v56 = vpop.permute.xlu0 %4583 }
0x10d7   :  { %8583 = vmatpush3.bf16.xpose.msk.msra.mxu0 %vm9620_vm9, %v8578_v30 }
0x10d8   :  { %8586 = vmatprep.subr.msk.bf16.mxu0 %vm9620_vm9, %v8584_v22 }
0x10d9   :  { %v9099_v5 = vpop.eup %9098 }
0x10da   :  { %v4468_v7 = vmul.f32 %v9099_v5, %v11689_v25 }
0x10df   :  { %8589 = vmatpush3.bf16.xpose.msk.msra.mxu0 %vm9620_vm9, %v8584_v22 }
0x10fc   :  { %v4457_v48 = vpop.xlane.xlu1 %4456 }
0x10fd   :  { %9100 = vrcp.f32 %v4457_v48 }
0x1100   :  { %v4582_v63 = vpop.permute.xlu1 %4581 }
0x1104   :  { %v4586_v18 = vpop.permute.xlu1 %4585 }
0x1107   :  { %v9101_v31 = vpop.eup %9100 }
0x1108   :  { %v4467_v52 = vmul.f32 %v9101_v31, %v9085_v39 }
0x110a   :  { %8185 = vmatprep.mubr.msk.f32.mxu0 %vm583_vm10, %v4467_v52 }
0x110b   :  { %8186 = vmatmul.mubr.msk.f32.gmra.mrb[62].mxu0 %vm583_vm10, %v4468_v7 }
0x110c   :  { %8196 = vmatprep.mubr.msk.f32.mxu0 %vm481_vm8, %v4580_v44 }
0x110f   :  { %8197 = vmatmul.mubr.msk.f32.vlgmr.msra.gmra.mrb[64].mxu0 %vm481_vm8, %v4582_v63 }
0x1110   :  { %8199 = vmatprep.mubr.msk.f32.mxu0 %vm481_vm8, %v4584_v56 }
0x1113   :  { %8200 = vmatmul.mubr.msk.f32.gmra.mrb[66].mxu0 %vm481_vm8, %v4586_v18 }
0x116c   :  { %v11735_v6 = vpop.f32.mrb[56].mxu0 }
0x116d   :  { %v11737_v39 = vpop.f32.mrb[57].mxu0 }
0x1174   :  { %v11739_v25 = vpop.f32.mrb[58].mxu0 }
0x1175   :  { %v11741_v30 = vpop.f32.mrb[59].mxu0 }
0x11a9   :  { %v11743_v8 = vpop.f32.mrb[60].mxu0 }
0x11aa   :  { %v11745_v57 = vpop.f32.mrb[61].mxu0 }
0x11de   :  { %v11747_v51 = vpop.f32.mrb[62].mxu0 }
0x11df   :  { %v11749_v60 = vpop.f32.mrb[63].mxu0 }
0x11e2   :  { %v8198_v10 = vpop.f32.mrb[64].mxu0 }
0x11e3   :  { %v4677_v38 = vpop.f32.mrb[65].mxu0  ;;  %v4699_v46 = vsel %vm583_vm10, %v8198_v10, -inf }
0x11e4   :  { %4700 = vmax.xlane.f32.xlu1 %v4699_v46  ;;  %v4696_v49 = vsel %vm583_vm10, %v4677_v38, -inf }
0x11e5   :  { %4697 = vmax.xlane.f32.xlu0 %v4696_v49 }
0x11e6   :  { %v8201_v22 = vpop.f32.mrb[66].mxu0 }
0x11e7   :  { %v4687_v12 = vpop.f32.mrb[67].mxu0  ;;  %v4705_v5 = vsel %vm593_vm11, %v8201_v22, -inf }
0x11e8   :  { %v4702_v48 = vsel %vm583_vm10, %v4687_v12, -inf }
0x11e9   :  { %4703 = vmax.xlane.f32.xlu0 %v4702_v48 }
0x11ed   :  { %4706 = vmax.xlane.f32.xlu0 %v4705_v5 }
0x11f5   :  { %8913 = vrot.lane.b32.xlu1 %v11581_v55, %s14263_s3 }
0x11f9   :  { %8923 = vrot.lane.b32.xlu1 %v11581_v55, %s14264_s29 }
0x1271   :  { %v4701_v31 = vpop.xlane.xlu1 %4700 }
0x1272   :  { %v4709_v52 = vsub.f32 %v8198_v10, %v4701_v31  ;;  %v4698_v44 = vpop.xlane.xlu0 %4697 }
0x1273   :  { %v4708_v7 = vsub.f32 %v4677_v38, %v4698_v44 }
0x1274   :  { %v4714_v63 = vmul.f32 1.442695, %v4709_v52 }
0x1275   :  { %v4712_v56 = vmul.f32 1.442695, %v4708_v7  ;;  %v8914_v18 = vpop.permute.xlu1 %8913 }
0x1276   :  { %9102 = vpow2.f32 %v4714_v63  ;;  %v8916_v46 = vunpack.i.h.bf16 %v8914_v18  ;;  %v8915_v49 = vunpack.i.l.bf16 %v8914_v18  ;;  %v4704_v10 = vpop.xlane.xlu0 %4703 }
0x1277   :  { %9104 = vpow2.f32 %v4712_v56  ;;  %v4710_v52 = vsub.f32 %v4687_v12, %v4704_v10 }
0x1278   :  { %v8590_v48 = vpack.c.bf16 %v8916_v46, %v8915_v49 }
0x1279   :  { %v4716_v7 = vmul.f32 1.442695, %v4710_v52 }
0x127a   :  { %8591 = vmatprep.subr.bf16.mxu1 %v8590_v48  ;;  %v4707_v38 = vpop.xlane.xlu0 %4706 }
0x127b   :  { %8593 = vmatpush3.bf16.msra.mxu1 %v8590_v48  ;;  %v4711_v31 = vsub.f32 %v8201_v22, %v4707_v38  ;;  %v8924_v22 = vpop.permute.xlu1 %8923 }
0x127c   :  { %v8926_v49 = vunpack.i.h.bf16 %v8924_v22  ;;  %v8925_v48 = vunpack.i.l.bf16 %v8924_v22  ;;  %v14266_v22 = vld [vmem:[#allocation9_spill] sm:$0xff] }
0x127d   :  { %v4718_v44 = vmul.f32 1.442695, %v4711_v31 }
0x127e   :  { %v8600_v31 = vpack.c.bf16 %v8926_v49, %v8925_v48 }
0x127f   :  { %9106 = vpow2.f32 %v4718_v44 }
0x1280   :  { %v9103_v5 = vpop.eup %9102  ;;  %9108 = vpow2.f32 %v4716_v7 }
0x1281   :  { %v9105_v45 = vpop.eup %9104  ;;  %v4723_v15 = vsel %vm583_vm10, %v9103_v5, 0.0 }
0x1282   :  { %4724 = vadd.xlane.f32.xlu0 %v4723_v15  ;;  %v4720_v23 = vsel %vm583_vm10, %v9105_v45, 0.0 }
0x1283   :  { %4721 = vadd.xlane.f32.xlu1 %v4720_v23 }
0x1289   :  { %v9107_v63 = vpop.eup %9106 }
0x128a   :  { %v9109_v56 = vpop.eup %9108  ;;  %v4729_v15 = vsel %vm593_vm11, %v9107_v63, 0.0 }
0x128b   :  { %v4726_v23 = vsel %vm583_vm10, %v9109_v56, 0.0 }
0x1294   :  { %8928 = vrot.lane.b32.xlu1 %v11593_v62, %s14264_s29 }
0x1298   :  { %8918 = vrot.lane.b32.xlu0 %v11593_v62, %s14263_s3 }
0x12b7   :  { %4730 = vadd.xlane.f32.xlu0 %v4729_v15 }
0x12b8   :  { %4727 = vadd.xlane.f32.xlu1 %v4726_v23 }
0x12c9   :  { %4852 = vrot.lane.b32.xlu1 %v11573_v3, %s14265_s30 }
0x12cd   :  { %4856 = vrot.lane.b32.xlu1 %v11585_v14, %s14265_s30  ;;  %4850 = vrot.lane.b32.xlu0 %v11575_v53, %s14265_s30 }
0x12d1   :  { %4854 = vrot.lane.b32.xlu0 %v11587_v41, %s14265_s30 }
0x130f   :  { %v4725_v12 = vpop.xlane.xlu0 %4724 }
0x1310   :  { %9110 = vrcp.f32 %v4725_v12  ;;  %v4722_v18 = vpop.xlane.xlu1 %4721 }
0x1311   :  { %9112 = vrcp.f32 %v4722_v18 }
0x1313   :  { %v8919_v46 = vpop.permute.xlu0 %8918 }
0x1314   :  { %v8921_v10 = vunpack.i.h.bf16 %v8919_v46  ;;  %v8920_v38 = vunpack.i.l.bf16 %v8919_v46  ;;  %v8929_v14 = vpop.permute.xlu1 %8928 }
0x1315   :  { %v8931_v7 = vunpack.i.h.bf16 %v8929_v14  ;;  %v8930_v15 = vunpack.i.l.bf16 %v8929_v14 }
0x1316   :  { %v8594_v3 = vpack.c.bf16 %v8921_v10, %v8920_v38  ;;  %v14267_v38 = vld [vmem:[#allocation11_spill] sm:$0xff] }
0x1317   :  { %v8606_v23 = vpack.c.bf16 %v8931_v7, %v8930_v15 }
0x1318   :  { %8596 = vmatprep.subr.msk.bf16.mxu1 %vm9669_vm14, %v8594_v3 }
0x1319   :  { %8599 = vmatpush3.bf16.msk.msra.mxu1 %vm9669_vm14, %v8594_v3  ;;  %v14268_v3 = vld [vmem:[#allocation13_spill] sm:$0xff] }
0x131a   :  { %v9111_v53 = vpop.eup %9110  ;;  %8602 = vmatprep.subr.msk.bf16.mxu1 %vm9620_vm9, %v8600_v31 }
0x131b   :  { %v9113_v41 = vpop.eup %9112  ;;  %v4737_v44 = vmul.f32 %v9111_v53, %v9103_v5  ;;  %v14271_v53 = vld [vmem:[#allocation18_spill] sm:$0xff] }
0x131c   :  { %v4736_v52 = vmul.f32 %v9113_v41, %v9105_v45 }
0x131e   :  { %8210 = vmatprep.mubr.msk.f32.mxu1 %vm583_vm10, %v4736_v52 }
0x131f   :  { %8211 = vmatmul.mubr.msk.f32.vlgmr.msra.gmra.mrb[52].mxu1 %vm583_vm10, %v4737_v44 }
0x1322   :  { %8605 = vmatpush3.bf16.xpose.msk.msra.mxu1 %vm9620_vm9, %v8600_v31 }
0x1323   :  { %8608 = vmatprep.subr.msk.bf16.mxu1 %vm9620_vm9, %v8606_v23 }
0x132a   :  { %8611 = vmatpush3.bf16.xpose.msk.msra.mxu1 %vm9620_vm9, %v8606_v23 }
0x132b   :  { %8631 = vmatprep.subr.bf16.mxu1 %v14266_v22 }
0x1344   :  { %v4731_v45 = vpop.xlane.xlu0 %4730 }
0x1345   :  { %9114 = vrcp.f32 %v4731_v45  ;;  %v4728_v5 = vpop.xlane.xlu1 %4727 }
0x1346   :  { %9116 = vrcp.f32 %v4728_v5 }
0x1348   :  { %v4851_v49 = vpop.permute.xlu0 %4850 }
0x1349   :  { %v4853_v10 = vpop.permute.xlu1 %4852 }
0x134c   :  { %v4855_v13 = vpop.permute.xlu0 %4854 }
0x134d   :  { %v4857_v31 = vpop.permute.xlu1 %4856 }
0x134f   :  { %v9115_v12 = vpop.eup %9114 }
0x1350   :  { %v9117_v18 = vpop.eup %9116  ;;  %v4739_v48 = vmul.f32 %v9115_v12, %v9107_v63  ;;  %v14269_v63 = vld [vmem:[#allocation15_spill] sm:$0xff] }
0x1351   :  { %v4738_v46 = vmul.f32 %v9117_v18, %v9109_v56  ;;  %v14270_v56 = vmov 0.0  }
0x1353   :  { %8213 = vmatprep.mubr.msk.f32.mxu1 %vm583_vm10, %v4738_v46 }
0x1354   :  { %8214 = vmatmul.mubr.msk.f32.gmra.mrb[54].mxu1 %vm583_vm10, %v4739_v48 }
0x1355   :  { %8224 = vmatprep.mubr.msk.f32.mxu1 %vm481_vm8, %v4851_v49 }
0x1358   :  { %8225 = vmatmul.mubr.msk.f32.vlgmr.msra.gmra.mrb[56].mxu1 %vm481_vm8, %v4853_v10 }
0x1359   :  { %8227 = vmatprep.mubr.msk.f32.mxu1 %vm481_vm8, %v4855_v13  ;;  %8633 = vmatpush1.bf16.msra.mxu1 %v14267_v38 }
0x135a   :  { %8635 = vmatprep.subr.bf16.mxu1 %v14268_v3 }
0x135c   :  { %8228 = vmatmul.mubr.msk.f32.gmra.mrb[58].mxu1 %vm481_vm8, %v4857_v31 }
0x135d   :  { %8637 = vmatpush1.bf16.msra.mxu1 %v14269_v63  ;;  %5899 = vmatprep.mubr.f32.mxu1 %v14270_v56 }
0x135e   :  { %8647 = vmatprep.subr.bf16.mxu1 %v14271_v53 }
0x13f2   :  { %v8212_v14 = vpop.f32.mrb[52].mxu1 }
0x13f3   :  { %v4831_v41 = vpop.f32.mrb[53].mxu1 }
0x1427   :  { %v11801_v52 = vpop.f32.mrb[54].mxu1 }
0x1428   :  { %v11803_v44 = vpop.f32.mrb[55].mxu1 }
0x142b   :  { %v8226_v7 = vpop.f32.mrb[56].mxu1 }
0x142c   :  { %v4948_v15 = vpop.f32.mrb[57].mxu1  ;;  %v4970_v23 = vsel %vm583_vm10, %v8226_v7, -inf }
0x142d   :  { %4971 = vmax.xlane.f32.xlu1 %v4970_v23  ;;  %v4967_v22 = vsel %vm583_vm10, %v4948_v15, -inf }
0x142e   :  { %4968 = vmax.xlane.f32.xlu0 %v4967_v22 }
0x142f   :  { %v8229_v45 = vpop.f32.mrb[58].mxu1 }
0x1430   :  { %v4958_v5 = vpop.f32.mrb[59].mxu1  ;;  %v4976_v18 = vsel %vm593_vm11, %v8229_v45, -inf }
0x1431   :  { %v4973_v12 = vsel %vm583_vm10, %v4958_v5, -inf }
0x1432   :  { %4974 = vmax.xlane.f32.xlu0 %v4973_v12 }
0x1436   :  { %4977 = vmax.xlane.f32.xlu0 %v4976_v18 }
0x14ba   :  { %v4972_v46 = vpop.xlane.xlu1 %4971 }
0x14bb   :  { %v4980_v49 = vsub.f32 %v8226_v7, %v4972_v46  ;;  %v4969_v48 = vpop.xlane.xlu0 %4968 }
0x14bc   :  { %v4979_v10 = vsub.f32 %v4948_v15, %v4969_v48 }
0x14bd   :  { %v4985_v13 = vmul.f32 1.442695, %v4980_v49 }
0x14be   :  { %v4983_v38 = vmul.f32 1.442695, %v4979_v10 }
0x14bf   :  { %9118 = vpow2.f32 %v4985_v13  ;;  %v4975_v23 = vpop.xlane.xlu0 %4974 }
0x14c0   :  { %9120 = vpow2.f32 %v4983_v38  ;;  %v4981_v22 = vsub.f32 %v4958_v5, %v4975_v23 }
0x14c2   :  { %v4987_v18 = vmul.f32 1.442695, %v4981_v22  ;;  %v14276_v22 = vld [vmem:[#allocation8_spill] sm:$0xff] }
0x14c3   :  { %v4978_v7 = vpop.xlane.xlu0 %4977 }
0x14c4   :  { %v4982_v15 = vsub.f32 %v8229_v45, %v4978_v7 }
0x14c6   :  { %v4989_v12 = vmul.f32 1.442695, %v4982_v15  ;;  %v14275_v15 = vld [vmem:[#allocation7_spill] sm:$0xff] }
0x14c8   :  { %9122 = vpow2.f32 %v4989_v12  ;;  %v14277_v12 = vld [vmem:[#allocation10_spill] sm:$0xff] }
0x14c9   :  { %v9119_v3 = vpop.eup %9118  ;;  %9124 = vpow2.f32 %v4987_v18 }
0x14ca   :  { %v9121_v31 = vpop.eup %9120  ;;  %v4994_v63 = vsel %vm583_vm10, %v9119_v3, 0.0 }
0x14cb   :  { %4995 = vadd.xlane.f32.xlu0 %v4994_v63  ;;  %v4991_v53 = vsel %vm583_vm10, %v9121_v31, 0.0 }
0x14cc   :  { %4992 = vadd.xlane.f32.xlu1 %v4991_v53 }
0x14d2   :  { %v9123_v46 = vpop.eup %9122 }
0x14d3   :  { %v9125_v49 = vpop.eup %9124  ;;  %v5000_v48 = vsel %vm593_vm11, %v9123_v46, 0.0 }
0x14d4   :  { %v4997_v10 = vsel %vm583_vm10, %v9125_v49, 0.0 }
0x14dd   :  { %8933 = vrot.lane.b32.xlu1 %v11581_v55, %s14272_s15 }
0x14e1   :  { %8938 = vrot.lane.b32.xlu0 %v11593_v62, %s14272_s15 }
0x1500   :  { %5001 = vadd.xlane.f32.xlu0 %v5000_v48 }
0x1501   :  { %4998 = vadd.xlane.f32.xlu1 %v4997_v10 }
0x1512   :  { %5125 = vrot.lane.b32.xlu1 %v11745_v57, %s14273_s16 }
0x1516   :  { %5141 = vrot.lane.b32.xlu1 %v4831_v41, %s14274_s17  ;;  %5127 = vrot.lane.b32.xlu0 %v11743_v8, %s14273_s16 }
0x151a   :  { %5143 = vrot.lane.b32.xlu1 %v8212_v14, %s14274_s17 }
0x1558   :  { %v4996_v55 = vpop.xlane.xlu0 %4995 }
0x1559   :  { %v4993_v62 = vpop.xlane.xlu1 %4992 }
0x155a   :  { %9126 = vrcp.f32 %v4993_v62 }
0x155b   :  { %9128 = vrcp.f32 %v4996_v55 }
0x155c   :  { %v8939_v45 = vpop.permute.xlu0 %8938 }
0x155d   :  { %v8934_v5 = vpop.permute.xlu1 %8933  ;;  %v8941_v13 = vunpack.i.h.bf16 %v8939_v45  ;;  %v8940_v38 = vunpack.i.l.bf16 %v8939_v45 }
0x155e   :  { %v8936_v63 = vunpack.i.h.bf16 %v8934_v5  ;;  %v8935_v53 = vunpack.i.l.bf16 %v8934_v5 }
0x155f   :  { %v8616_v7 = vpack.c.bf16 %v8941_v13, %v8940_v38 }
0x1560   :  { %v8612_v23 = vpack.c.bf16 %v8936_v63, %v8935_v53 }
0x1562   :  { %8613 = vmatprep.subr.bf16.mxu0 %v8612_v23 }
0x1563   :  { %8615 = vmatpush3.bf16.msra.mxu0 %v8612_v23 }
0x1564   :  { %v9127_v57 = vpop.eup %9126  ;;  %8618 = vmatprep.subr.msk.bf16.mxu0 %vm9669_vm14, %v8616_v7 }
0x1565   :  { %v9129_v8 = vpop.eup %9128  ;;  %v5007_v14 = vmul.f32 %v9127_v57, %v9121_v31  ;;  %v14279_v57 = vld [vmem:[#allocation12_spill] sm:$0xff] }
0x1566   :  { %v5008_v41 = vmul.f32 %v9129_v8, %v9119_v3  ;;  %v14281_v8 = vld [vmem:[#allocation16_spill] sm:$0xff] }
0x1567   :  { %8621 = vmatpush3.bf16.msk.msra.mxu0 %vm9669_vm14, %v8616_v7  ;;  %8238 = vmatprep.mubr.msk.f32.mxu0 %vm583_vm10, %v5007_v14 }
0x1568   :  { %8623 = vmatprep.subr.bf16.mxu0 %v14275_v15 }
0x156a   :  { %8239 = vmatmul.mubr.msk.f32.vlgmr.msra.gmra.mrb[68].mxu0 %vm583_vm10, %v5008_v41 }
0x156b   :  { %8625 = vmatpush3.bf16.msra.mxu0 %v14275_v15 }
0x156c   :  { %8627 = vmatprep.subr.bf16.mxu0 %v14276_v22 }
0x156f   :  { %8629 = vmatpush3.bf16.msra.mxu0 %v14276_v22 }
0x1570   :  { %8639 = vmatprep.subr.bf16.mxu0 %v14277_v12 }
0x158d   :  { %v5002_v18 = vpop.xlane.xlu0 %5001 }
0x158e   :  { %9130 = vrcp.f32 %v5002_v18  ;;  %v4999_v31 = vpop.xlane.xlu1 %4998 }
0x158f   :  { %9132 = vrcp.f32 %v4999_v31 }
0x1591   :  { %v5128_v38 = vpop.permute.xlu0 %5127 }
0x1592   :  { %v5126_v45 = vpop.permute.xlu1 %5125 }
0x1596   :  { %v5142_v5 = vpop.permute.xlu1 %5141 }
0x1598   :  { %v9131_v0 = vpop.eup %9130 }
0x1599   :  { %v9133_v48 = vpop.eup %9132  ;;  %v5010_v3 = vmul.f32 %v9131_v0, %v9123_v46 }
0x159a   :  { %v5009_v10 = vmul.f32 %v9133_v48, %v9125_v49  ;;  %v5144_v13 = vpop.permute.xlu1 %5143 }
0x159c   :  { %8241 = vmatprep.mubr.msk.f32.mxu0 %vm583_vm10, %v5009_v10 }
0x159d   :  { %8242 = vmatmul.mubr.msk.f32.gmra.mrb[70].mxu0 %vm583_vm10, %v5010_v3 }
0x163d   :  { %v8240_v55 = vpop.f32.mrb[68].mxu0 }
0x163e   :  { %5159 = vrot.lane.b32.xlu1 %v8240_v55, %s14278_s18  ;;  %v5102_v62 = vpop.f32.mrb[69].mxu0 }
0x163f   :  { %5157 = vrot.lane.b32.xlu0 %v5102_v62, %s14278_s18 }
0x1642   :  { %5131 = vrot.lane.b32.xlu1 %v11747_v51, %s14273_s16  ;;  %v5169_v51 = vsel %vm481_vm8, %v11737_v39, %v5126_v45  ;;  %v14280_v39 = vld [vmem:[#allocation14_spill] sm:$0xff] }
0x1643   :  { %5129 = vrot.lane.b32.xlu0 %v11749_v60, %s14273_s16  ;;  %v5173_v63 = vsel %vm1605_vm15, %v5169_v51, %v5142_v5 }
0x1646   :  { %5147 = vrot.lane.b32.xlu1 %v11801_v52, %s14274_s17  ;;  %v5170_v52 = vsel %vm481_vm8, %v11735_v6, %v5128_v38  ;;  %v14282_v6 = vld [vmem:[#allocation17_spill] sm:$0xff] }
0x1647   :  { %5145 = vrot.lane.b32.xlu0 %v11803_v44, %s14274_s17  ;;  %v5174_v53 = vsel %vm1605_vm15, %v5170_v52, %v5144_v13 }
0x1670   :  { %v8243_v46 = vpop.f32.mrb[70].mxu0 }
0x1671   :  { %5163 = vrot.lane.b32.xlu1 %v8243_v46, %s14278_s18  ;;  %v5112_v49 = vpop.f32.mrb[71].mxu0 }
0x1672   :  { %5161 = vrot.lane.b32.xlu0 %v5112_v49, %s14278_s18 }
0x16b0   :  { %v5160_v60 = vpop.permute.xlu1 %5159 }
0x16b1   :  { %v5158_v44 = vpop.permute.xlu0 %5157  ;;  %v5178_v7 = vsel %vm1610_vm12, %v5174_v53, %v5160_v60  ;;  %v14284_v53 = vld [vmem:[#allocation82_spill] sm:$0xff] }
0x16b2   :  { %v5177_v23 = vsel %vm1610_vm12, %v5173_v63, %v5158_v44  ;;  %v14283_v63 = vld [vmem:[#allocation81_spill] sm:$0xff] }
0x16b3   :  { %8252 = vmatprep.mubr.msk.f32.mxu0 %vm375_vm7, %v5177_v23 }
0x16b4   :  { %8253 = vmatmul.mubr.msk.f32.vlgmr.msra.gmra.mrb[72].mxu0 %vm375_vm7, %v5178_v7  ;;  %v5132_v14 = vpop.permute.xlu1 %5131  ;;  %v14285_v7 = vld [vmem:[#allocation83_spill] sm:$0xff] }
0x16b5   :  { %8641 = vmatpush1.bf16.msra.mxu0 %v14279_v57  ;;  %v5130_v41 = vpop.permute.xlu0 %5129  ;;  %v5172_v31 = vsel %vm481_vm8, %v11739_v25, %v5132_v14  ;;  %v11876_v25 = vld [vmem:[%s13811_s5] ss:$0 sm:$0xff] }
0x16b6   :  { %8643 = vmatprep.subr.bf16.mxu0 %v14280_v39  ;;  %v5171_v12 = vsel %vm481_vm8, %v11741_v30, %v5130_v41 }
0x16b8   :  { %v5148_v15 = vpop.permute.xlu1 %5147 }
0x16b9   :  { %8645 = vmatpush1.bf16.msra.mxu0 %v14281_v8  ;;  %v5146_v22 = vpop.permute.xlu0 %5145  ;;  %v5176_v10 = vsel %vm1605_vm15, %v5172_v31, %v5148_v15  ;;  %v14286_v8 = vld [vmem:[#allocation113_spill] sm:$0xff] }
0x16ba   :  { %8655 = vmatprep.subr.bf16.mxu0 %v14282_v6  ;;  %v5175_v0 = vsel %vm1605_vm15, %v5171_v12, %v5146_v22 }
0x16e3   :  { %v5164_v18 = vpop.permute.xlu1 %5163 }
0x16e4   :  { %v5162_v48 = vpop.permute.xlu0 %5161  ;;  %v5180_v55 = vsel %vm1610_vm12, %v5176_v10, %v5164_v18 }
0x16e5   :  { %v5179_v3 = vsel %vm1610_vm12, %v5175_v0, %v5162_v48 }
0x16e6   :  { %8255 = vmatprep.mubr.msk.f32.mxu0 %vm375_vm7, %v5179_v3 }
0x16e7   :  { %8256 = vmatmul.mubr.msk.f32.gmra.mrb[74].mxu0 %vm375_vm7, %v5180_v55 }
0x16e8   :  { %5988 = vmatprep.mubr.f32.mxu0 %v14270_v56 }
0x1787   :  { %v8254_v30 = vpop.f32.mrb[72].mxu0 }
0x1788   :  { %v5265_v62 = vadd.f32 %v11876_v25, %v8254_v30  ;;  %v5259_v46 = vpop.f32.mrb[73].mxu0 }
0x1789   :  { %v5260_v49 = vadd.f32 %v11876_v25, %v5259_v46 }
0x178a   :  { %v5289_v45 = vrot.slane %v5265_v62, 1  ;;  %v5290_v5 = vrot.slane %v5265_v62, 2  ;;  %v5291_v13 = vrot.slane %v5265_v62, 3  ;;  %v5292_v38 = vrot.slane %v5265_v62, 4 }
0x178b   :  { %v5293_v51 = vrot.slane %v5265_v62, 5  ;;  %v5294_v60 = vrot.slane %v5265_v62, 6  ;;  %v5295_v52 = vrot.slane %v5265_v62, 7  ;;  %v11893_v14 = vadd.f32 %v5265_v62, %v14286_v8 }
0x178c   :  { %v11881_v44 = vadd.f32 %v5289_v45, %v14283_v63  ;;  %v11884_v23 = vadd.f32 %v5290_v5, %v14284_v53  ;;  %v11887_v57 = vadd.f32 %v5291_v13, %v14285_v7  ;;  %v11890_v39 = vadd.f32 %v5292_v38, %v14243_v9  ;;  %v14287_v5 = vld [vmem:[#allocation91_spill] sm:$0xff]  ;;  %v14288_v38 = vld [vmem:[#allocation100_spill] sm:$0xff]  ;;  %v14290_v7 = vld [vmem:[#allocation101_spill] sm:$0xff] }
0x178d   :  { %v11896_v41 = vadd.f32 %v5293_v51, %v14252_v4  ;;  %v11899_v15 = vadd.f32 %v5294_v60, %v14258_v50  ;;  %v11902_v22 = vadd.f32 %v5295_v52, %v14256_v40  ;;  %v5282_v31 = vrot.slane %v5260_v49, 1  ;;  %v14289_v60 = vld [vmem:[#allocation107_spill] sm:$0xff] }
0x178e   :  { %v5392_v12 = vrot.slane %v11881_v44, 7  ;;  %v5394_v18 = vrot.slane %v11884_v23, 6  ;;  %v5396_v9 = vrot.slane %v11887_v57, 5  ;;  %v5398_v0 = vrot.slane %v11890_v39, 4 }
0x178f   :  { %v5400_v48 = vrot.slane %v11896_v41, 3  ;;  %v5283_v10 = vrot.slane %v5260_v49, 2  ;;  %v5284_v50 = vrot.slane %v5260_v49, 3  ;;  %v5285_v3 = vrot.slane %v5260_v49, 4 }
0x1790   :  { %v5393_v4 = vsel %vm327_vm0, %v5392_v12, %v11893_v14  ;;  %v5286_v55 = vrot.slane %v5260_v49, 5  ;;  %v5402_v30 = vrot.slane %v11899_v15, 2  ;;  %v5287_v62 = vrot.slane %v5260_v49, 6  ;;  %v14291_v12 = vld [vmem:[#allocation108_spill] sm:$0xff] }
0x1791   :  { %v5395_v40 = vsel %vm330_vm1, %v5394_v18, %v5393_v4  ;;  %v5288_v46 = vrot.slane %v5260_v49, 7  ;;  %v11915_v13 = vadd.f32 %v5282_v31, %v14287_v5  ;;  %v11918_v51 = vadd.f32 %v5283_v10, %v14288_v38  ;;  %v14292_v31 = vld [vmem:[#allocation109_spill] sm:$0xff] }
0x1792   :  { %v5397_v45 = vsel %vm333_vm2, %v5396_v9, %v5395_v40  ;;  %v11921_v52 = vadd.f32 %v5284_v50, %v14289_v60  ;;  %v5404_v53 = vrot.slane %v11902_v22, 1  ;;  %v11926_v8 = vadd.f32 %v5260_v49, %v14290_v7 }
0x1793   :  { %v5399_v63 = vsel %vm336_vm3, %v5398_v0, %v5397_v45  ;;  %v11929_v18 = vadd.f32 %v5285_v3, %v14291_v12  ;;  %v11933_v4 = vadd.f32 %v5286_v55, %v14292_v31  ;;  %v5378_v10 = vrot.slane %v11915_v13, 7 }
0x1794   :  { %v5401_v9 = vsel %vm339_vm4, %v5400_v48, %v5399_v63  ;;  %v5380_v50 = vrot.slane %v11918_v51, 6  ;;  %v11939_v0 = vadd.f32 %v5287_v62, %v14247_v27  ;;  %v11943_v45 = vadd.f32 %v5288_v46, %v14254_v43 }
0x1795   :  { %v5403_v40 = vsel %vm342_vm5, %v5402_v30, %v5401_v9  ;;  %v5379_v48 = vsel %vm327_vm0, %v5378_v10, %v11926_v8  ;;  %v5382_v3 = vrot.slane %v11921_v52, 5  ;;  %v5384_v38 = vrot.slane %v11929_v18, 4 }
0x1796   :  { %v5405_v49 = vsel %vm345_vm6, %v5404_v53, %v5403_v40  ;;  %v5381_v5 = vsel %vm330_vm1, %v5380_v50, %v5379_v48  ;;  %v5386_v30 = vrot.slane %v11933_v4, 3  ;;  %v5388_v43 = vrot.slane %v11939_v0, 2 }
0x1797   :  { %v5427_v55 = vsel %vm375_vm7, %v5405_v49, 0.0  ;;  %v5383_v27 = vsel %vm333_vm2, %v5382_v3, %v5381_v5  ;;  %v5390_v60 = vrot.slane %v11943_v45, 1 }
0x1798   :  { %5428 = vadd.xlane.f32.xlu1 %v5427_v55  ;;  %v5385_v62 = vsel %vm336_vm3, %v5384_v38, %v5383_v27 }
0x1799   :  { %v5387_v46 = vsel %vm339_vm4, %v5386_v30, %v5385_v62 }
0x179a   :  { %v5389_v63 = vsel %vm342_vm5, %v5388_v43, %v5387_v46 }
0x179b   :  { %v5391_v53 = vsel %vm345_vm6, %v5390_v60, %v5389_v63 }
0x179c   :  { %v5424_v7 = vsel %vm375_vm7, %v5391_v53, 0.0 }
0x179d   :  { %5425 = vadd.xlane.f32.xlu0 %v5424_v7 }
0x17ba   :  { %v8257_v12 = vpop.f32.mrb[74].mxu0 }
0x17bb   :  { %v5269_v9 = vpop.f32.mrb[75].mxu0  ;;  %v5275_v7 = vadd.f32 %v11876_v25, %v8257_v12 }
0x17bc   :  { %v5270_v31 = vadd.f32 %v11876_v25, %v5269_v9 }
0x17be   :  { %v5296_v10 = vrot.slane %v5270_v31, 1  ;;  %v5297_v50 = vrot.slane %v5270_v31, 2  ;;  %v5298_v40 = vrot.slane %v5270_v31, 3  ;;  %v5299_v49 = vrot.slane %v5270_v31, 4 }
0x17bf   :  { %v5300_v48 = vrot.slane %v5270_v31, 5  ;;  %v5301_v3 = vrot.slane %v5270_v31, 6  ;;  %v5302_v55 = vrot.slane %v5270_v31, 7  ;;  %v11974_v62 = vadd.f32 %v5270_v31, %v11197_v26 }
0x17c0   :  { %v11962_v5 = vadd.f32 %v5296_v10, %v11177_v33  ;;  %v11965_v38 = vadd.f32 %v5297_v50, %v14226_v2  ;;  %v11968_v27 = vadd.f32 %v5298_v40, %v14221_v34  ;;  %v11971_v30 = vadd.f32 %v5299_v49, %v14223_v17 }
0x17c1   :  { %v11977_v43 = vadd.f32 %v5300_v48, %v14245_v32  ;;  %v11982_v60 = vadd.f32 %v5301_v3, %v11502_v16  ;;  %v11985_v2 = vadd.f32 %v5302_v55, %v11523_v24  ;;  %v12002_v40 = vadd.f32 %v5275_v7, %v11562_v28 }
0x17c2   :  { %v5406_v46 = vrot.slane %v11962_v5, 7  ;;  %v5408_v33 = vrot.slane %v11965_v38, 6  ;;  %v5410_v17 = vrot.slane %v11968_v27, 5  ;;  %v5412_v32 = vrot.slane %v11971_v30, 4 }
0x17c3   :  { %v5414_v53 = vrot.slane %v11977_v43, 3  ;;  %v5416_v24 = vrot.slane %v11982_v60, 2  ;;  %v5418_v31 = vrot.slane %v11985_v2, 1  ;;  %v5433_v25 = vsel %vm1873_vm13, %v12002_v40, 0.0 }
0x17c4   :  { %v5407_v34 = vsel %vm327_vm0, %v5406_v46, %v11974_v62 }
0x17c5   :  { %v5409_v26 = vsel %vm330_vm1, %v5408_v33, %v5407_v34 }
0x17c6   :  { %v5411_v63 = vsel %vm333_vm2, %v5410_v17, %v5409_v26 }
0x17c7   :  { %v5413_v16 = vsel %vm336_vm3, %v5412_v32, %v5411_v63 }
0x17c8   :  { %v5415_v9 = vsel %vm339_vm4, %v5414_v53, %v5413_v16 }
0x17c9   :  { %v5417_v10 = vsel %vm342_vm5, %v5416_v24, %v5415_v9 }
0x17ca   :  { %v5419_v50 = vsel %vm345_vm6, %v5418_v31, %v5417_v10 }
0x17cb   :  { %v5430_v49 = vsel %vm375_vm7, %v5419_v50, 0.0 }
0x17cc   :  { %5431 = vadd.xlane.f32.xlu0 %v5430_v49 }
0x17d0   :  { %5434 = vadd.xlane.f32.xlu0 %v5433_v25 }
0x1825   :  { %v5429_v12 = vpop.xlane.xlu1 %5428 }
0x1826   :  { %v5437_v48 = vmul.f32 0.03125, %v5429_v12 }
0x1828   :  { %v5451_v3 = vrot.slane %v5437_v48, 1  ;;  %v5452_v55 = vrot.slane %v5437_v48, 2  ;;  %v5453_v46 = vrot.slane %v5437_v48, 3  ;;  %v5454_v33 = vrot.slane %v5437_v48, 4 }
0x1829   :  { %v5455_v34 = vrot.slane %v5437_v48, 5  ;;  %v5456_v17 = vrot.slane %v5437_v48, 6  ;;  %v5457_v26 = vrot.slane %v5437_v48, 7  ;;  %v12008_v32 = vsub.f32 %v11893_v14, %v5437_v48 }
0x182a   :  { %v12011_v28 = vsub.f32 %v11881_v44, %v5451_v3  ;;  %v12014_v63 = vsub.f32 %v11884_v23, %v5452_v55  ;;  %v12017_v53 = vsub.f32 %v11887_v57, %v5453_v46  ;;  %v12020_v7 = vsub.f32 %v11890_v39, %v5454_v33  ;;  %v5426_v16 = vpop.xlane.xlu0 %5425 }
0x182b   :  { %v12023_v24 = vsub.f32 %v11896_v41, %v5455_v34  ;;  %v12026_v9 = vsub.f32 %v11899_v15, %v5456_v17  ;;  %v12029_v14 = vsub.f32 %v11902_v22, %v5457_v26  ;;  %v5436_v44 = vmul.f32 0.03125, %v5426_v16 }
0x182c   :  { %v5524_v23 = vmul.f32 %v12011_v28, %v12011_v28  ;;  %v5525_v57 = vmul.f32 %v12014_v63, %v12014_v63  ;;  %v5526_v39 = vmul.f32 %v12017_v53, %v12017_v53  ;;  %v5523_v41 = vmul.f32 %v12008_v32, %v12008_v32 }
0x182d   :  { %v5527_v15 = vmul.f32 %v12020_v7, %v12020_v7  ;;  %v5528_v22 = vmul.f32 %v12023_v24, %v12023_v24  ;;  %v5529_v31 = vmul.f32 %v12026_v9, %v12026_v9  ;;  %v5530_v10 = vmul.f32 %v12029_v14, %v12029_v14 }
0x182e   :  { %v5579_v50 = vrot.slane %v5524_v23, 7  ;;  %v5581_v49 = vrot.slane %v5525_v57, 6  ;;  %v5444_v25 = vrot.slane %v5436_v44, 1  ;;  %v5583_v12 = vrot.slane %v5526_v39, 5 }
0x182f   :  { %v5585_v48 = vrot.slane %v5527_v15, 4  ;;  %v5587_v3 = vrot.slane %v5528_v22, 3  ;;  %v5589_v55 = vrot.slane %v5529_v31, 2  ;;  %v5445_v33 = vrot.slane %v5436_v44, 2 }
0x1830   :  { %v5580_v46 = vsel %vm327_vm0, %v5579_v50, %v5523_v41  ;;  %v5446_v34 = vrot.slane %v5436_v44, 3  ;;  %v5447_v17 = vrot.slane %v5436_v44, 4  ;;  %v5448_v16 = vrot.slane %v5436_v44, 5 }
0x1831   :  { %v5582_v26 = vsel %vm330_vm1, %v5581_v49, %v5580_v46  ;;  %v5449_v47 = vrot.slane %v5436_v44, 6  ;;  %v5450_v19 = vrot.slane %v5436_v44, 7  ;;  %v12051_v23 = vsub.f32 %v11926_v8, %v5436_v44 }
0x1832   :  { %v5584_v42 = vsel %vm333_vm2, %v5583_v12, %v5582_v26  ;;  %v12054_v57 = vsub.f32 %v11915_v13, %v5444_v25  ;;  %v12057_v39 = vsub.f32 %v11918_v51, %v5445_v33  ;;  %v12061_v15 = vsub.f32 %v11921_v52, %v5446_v34 }
0x1833   :  { %v5586_v41 = vsel %vm336_vm3, %v5585_v48, %v5584_v42  ;;  %v12064_v22 = vsub.f32 %v11929_v18, %v5447_v17  ;;  %v12067_v31 = vsub.f32 %v11933_v4, %v5448_v16  ;;  %v5591_v44 = vrot.slane %v5530_v10, 1  ;;  %v14293_v17 = vld [vmem:[#allocation22_spill] sm:$0xff] }
0x1834   :  { %v5588_v8 = vsel %vm339_vm4, %v5587_v3, %v5586_v41  ;;  %v12071_v13 = vsub.f32 %v11939_v0, %v5449_v47  ;;  %v12074_v51 = vsub.f32 %v11943_v45, %v5450_v19  ;;  %v5516_v52 = vmul.f32 %v12054_v57, %v12054_v57 }
0x1835   :  { %v5590_v42 = vsel %vm342_vm5, %v5589_v55, %v5588_v8  ;;  %v5517_v18 = vmul.f32 %v12057_v39, %v12057_v39  ;;  %v5518_v4 = vmul.f32 %v12061_v15, %v12061_v15  ;;  %v5515_v47 = vmul.f32 %v12051_v23, %v12051_v23 }
0x1836   :  { %v5592_v50 = vsel %vm345_vm6, %v5591_v44, %v5590_v42  ;;  %v5519_v19 = vmul.f32 %v12064_v22, %v12064_v22  ;;  %v3292_v0 = vrot.slane %v11583_v54, 1  ;;  %v5520_v10 = vmul.f32 %v12067_v31, %v12067_v31 }
0x1837   :  { %v5614_v45 = vsel %vm375_vm7, %v5592_v50, 0.0  ;;  %v5565_v49 = vrot.slane %v5516_v52, 7  ;;  %v5567_v25 = vrot.slane %v5517_v18, 6  ;;  %v5521_v12 = vmul.f32 %v12071_v13, %v12071_v13  ;;  %v12106_v18 = vld [vmem:[%s13817_s11] ss:$0 sm:$0xff] }
0x1838   :  { %5615 = vadd.xlane.f32.xlu0 %v5614_v45  ;;  %v5522_v48 = vmul.f32 %v12074_v51, %v12074_v51  ;;  %v5569_v55 = vrot.slane %v5518_v4, 5  ;;  %v3293_v46 = vrot.slane %v11583_v54, 2  ;;  %v5571_v34 = vrot.slane %v5519_v19, 4  ;;  %v14294_v4 = vld [vmem:[#allocation24_spill] sm:$0xff] }
0x1839   :  { %v5566_v3 = vsel %vm327_vm0, %v5565_v49, %v5515_v47  ;;  %v3340_v26 = vadd.f32 %v3292_v0, %v14293_v17  ;;  %v5573_v41 = vrot.slane %v5520_v10, 3  ;;  %v5575_v44 = vrot.slane %v5521_v12, 2  ;;  %v14299_v17 = vld [vmem:[#allocation30_spill] sm:$0xff] }
0x183a   :  { %v5568_v33 = vsel %vm330_vm1, %v5567_v25, %v5566_v3  ;;  %v5577_v52 = vrot.slane %v5522_v48, 1  ;;  %v3341_v50 = vadd.f32 %v3293_v46, %v14294_v4  ;;  %v3294_v19 = vrot.slane %v11583_v54, 3  ;;  %v14296_v25 = vld [vmem:[#allocation21_spill] sm:$0xff] }
0x183b   :  { %v5570_v16 = vsel %vm333_vm2, %v5569_v55, %v5568_v33  ;;  %v12112_v0 = vadd.f32 %v12106_v18, %v3340_v26  ;;  %v3285_v10 = vrot.slane %v11568_v29, 1  ;;  %v3339_v12 = vadd.f32 %v11583_v54, %v14296_v25  ;;  %v14298_v55 = vld [vmem:[#allocation25_spill] sm:$0xff] }
0x183c   :  { %v5572_v8 = vsel %vm336_vm3, %v5571_v34, %v5570_v16  ;;  %v3295_v48 = vrot.slane %v11583_v54, 4  ;;  %v12121_v3 = vadd.f32 %v12106_v18, %v3341_v50  ;;  %v3342_v46 = vadd.f32 %v3294_v19, %v14298_v55  ;;  %v14307_v55 = vld [vmem:[#allocation37_spill] sm:$0xff] }
0x183d   :  { %v5574_v42 = vsel %vm339_vm4, %v5573_v41, %v5572_v8  ;;  %14295 = vst [vmem:[#allocation123_spill] sm:$0xff] %v12112_v0  ;;  %v3426_v33 = vrot.slane %v12112_v0, 7  ;;  %v3286_v34 = vrot.slane %v11568_v29, 2  ;;  %v3332_v26 = vadd.f32 %v3285_v10, %v14299_v17  ;;  %v14301_v8 = vld [vmem:[#allocation26_spill] sm:$0xff]  ;;  %v14305_v10 = vld [vmem:[#allocation27_spill] sm:$0xff] }
0x183e   :  { %v5576_v47 = vsel %vm342_vm5, %v5575_v44, %v5574_v42  ;;  %14297 = vst [vmem:[#allocation114_spill] sm:$0xff] %v12121_v3  ;;  %v3296_v16 = vrot.slane %v11583_v54, 5  ;;  %v12129_v41 = vadd.f32 %v12106_v18, %v3339_v12  ;;  %v3343_v44 = vadd.f32 %v3295_v48, %v14301_v8 }
0x183f   :  { %v5578_v45 = vsel %vm345_vm6, %v5577_v52, %v5576_v47  ;;  %v3428_v42 = vrot.slane %v12121_v3, 6  ;;  %v3297_v52 = vrot.slane %v11583_v54, 6  ;;  %v12135_v4 = vadd.f32 %v12106_v18, %v3342_v46  ;;  %v14303_v47 = vld [vmem:[#allocation31_spill] sm:$0xff] }
0x1840   :  { %v5611_v49 = vsel %vm375_vm7, %v5578_v45, 0.0  ;;  %14300 = vst [vmem:[#allocation117_spill] sm:$0xff] %v12129_v41  ;;  %v3427_v50 = vsel %vm327_vm0, %v3426_v33, %v12129_v41  ;;  %v3333_v19 = vadd.f32 %v3286_v34, %v14303_v47  ;;  %v12141_v45 = vadd.f32 %v12106_v18, %v3332_v26  ;;  %v14308_v33 = vld [vmem:[#allocation28_spill] sm:$0xff] }
0x1841   :  { %5612 = vadd.xlane.f32.xlu1 %v5611_v49  ;;  %14302 = vst [vmem:[#allocation124_spill] sm:$0xff] %v12135_v4  ;;  %v3344_v49 = vadd.f32 %v3296_v16, %v14305_v10  ;;  %v3287_v25 = vrot.slane %v11568_v29, 3  ;;  %v12146_v12 = vadd.f32 %v12106_v18, %v3343_v44  ;;  %v3429_v48 = vsel %vm330_vm1, %v3428_v42, %v3427_v50  ;;  %v14311_v10 = vld [vmem:[#allocation32_spill] sm:$0xff] }
0x1842   :  { %14304 = vst [vmem:[#allocation120_spill] sm:$0xff] %v12141_v45  ;;  %v3331_v46 = vadd.f32 %v11568_v29, %v14307_v55  ;;  %v3298_v17 = vrot.slane %v11583_v54, 7  ;;  %v3345_v8 = vadd.f32 %v3297_v52, %v14308_v33  ;;  %v3430_v34 = vrot.slane %v12135_v4, 5  ;;  %v14313_v33 = vld [vmem:[#allocation29_spill] sm:$0xff] }
0x1843   :  { %14306 = vst [vmem:[#allocation122_spill] sm:$0xff] %v12146_v12  ;;  %v12155_v26 = vadd.f32 %v12106_v18, %v3333_v19  ;;  %v3412_v16 = vrot.slane %v12141_v45, 7  ;;  %v3299_v47 = vrot.slane %v11595_v36, 1  ;;  %v12160_v44 = vadd.f32 %v12106_v18, %v3344_v49  ;;  %v14318_v45 = vld [vmem:[#allocation34_spill] sm:$0xff] }
0x1844   :  { %v3431_v42 = vsel %vm333_vm2, %v3430_v34, %v3429_v48  ;;  %v3288_v50 = vrot.slane %v11568_v29, 4  ;;  %v3334_v54 = vadd.f32 %v3287_v25, %v14311_v10  ;;  %v3432_v52 = vrot.slane %v12146_v12, 4  ;;  %v14315_v12 = vld [vmem:[#allocation39_spill] sm:$0xff] }
0x1845   :  { %14309 = vst [vmem:[#allocation126_spill] sm:$0xff] %v12155_v26  ;;  %14310 = vst [vmem:[#allocation4_spill] sm:$0xff] %v12160_v44  ;;  %v3289_v55 = vrot.slane %v11568_v29, 5  ;;  %v12168_v19 = vadd.f32 %v12106_v18, %v3331_v46  ;;  %v3346_v4 = vadd.f32 %v3298_v17, %v14313_v33  ;;  %v12172_v3 = vadd.f32 %v12106_v18, %v3345_v8  ;;  %v14316_v33 = vld [vmem:[#allocation33_spill] sm:$0xff] }
0x1846   :  { %v3290_v49 = vrot.slane %v11568_v29, 6  ;;  %v3414_v48 = vrot.slane %v12155_v26, 6  ;;  %v3433_v34 = vsel %vm336_vm3, %v3432_v52, %v3431_v42  ;;  %v3300_v10 = vrot.slane %v11595_v36, 2 }
0x1847   :  { %14312 = vst [vmem:[#allocation128_spill] sm:$0xff] %v12168_v19  ;;  %14314 = vst [vmem:[#allocation119_spill] sm:$0xff] %v12172_v3  ;;  %v3413_v25 = vsel %vm327_vm0, %v3412_v16, %v12168_v19  ;;  %v3348_v0 = vadd.f32 %v3299_v47, %v14315_v12  ;;  %v3434_v46 = vrot.slane %v12160_v44, 3  ;;  %v3291_v17 = vrot.slane %v11568_v29, 7  ;;  %v14320_v44 = vld [vmem:[#allocation40_spill] sm:$0xff] }
0x1848   :  { %v3335_v8 = vadd.f32 %v3288_v50, %v14316_v33  ;;  %v12185_v41 = vadd.f32 %v12106_v18, %v3334_v54  ;;  %v3336_v26 = vadd.f32 %v3289_v55, %v14318_v45  ;;  %v12189_v42 = vadd.f32 %v12106_v18, %v3346_v4  ;;  %v14322_v33 = vld [vmem:[#allocation35_spill] sm:$0xff]  ;;  %v14323_v55 = vld [vmem:[#allocation36_spill] sm:$0xff] }
0x1849   :  { %v3435_v16 = vsel %vm339_vm4, %v3434_v46, %v3433_v34  ;;  %v3436_v52 = vrot.slane %v12172_v3, 2  ;;  %v3415_v12 = vsel %vm330_vm1, %v3414_v48, %v3413_v25  ;;  %v3301_v47 = vrot.slane %v11595_v36, 3  ;;  %v14326_v25 = vld [vmem:[#allocation44_spill] sm:$0xff] }
0x184a   :  { %14317 = vst [vmem:[#allocation84_spill] sm:$0xff] %v12185_v41  ;;  %14319 = vst [vmem:[#allocation125_spill] sm:$0xff] %v12189_v42  ;;  %v3302_v29 = vrot.slane %v11595_v36, 4  ;;  %v3349_v50 = vadd.f32 %v3300_v10, %v14320_v44  ;;  %v12198_v54 = vadd.f32 %v12106_v18, %v3348_v0  ;;  %v3337_v45 = vadd.f32 %v3290_v49, %v14322_v33 }
0x184b   :  { %v3338_v4 = vadd.f32 %v3291_v17, %v14323_v55  ;;  %v12203_v19 = vadd.f32 %v12106_v18, %v3335_v8  ;;  %v3416_v34 = vrot.slane %v12185_v41, 5  ;;  %v12207_v48 = vadd.f32 %v12106_v18, %v3336_v26  ;;  %v14327_v17 = vld [vmem:[#allocation41_spill] sm:$0xff]  ;;  %v14328_v8 = vld [vmem:[#allocation42_spill] sm:$0xff] }
0x184c   :  { %14321 = vst [vmem:[#allocation118_spill] sm:$0xff] %v12198_v54  ;;  %v3347_v46 = vadd.f32 %v11595_v36, %v14326_v25  ;;  %v3437_v44 = vsel %vm342_vm5, %v3436_v52, %v3435_v16  ;;  %v3438_v0 = vrot.slane %v12189_v42, 1  ;;  %v3303_v49 = vrot.slane %v11595_v36, 5 }
0x184d   :  { %14324 = vst [vmem:[#allocation110_spill] sm:$0xff] %v12203_v19  ;;  %14325 = vst [vmem:[#allocation127_spill] sm:$0xff] %v12207_v48  ;;  %v3417_v10 = vsel %vm333_vm2, %v3416_v34, %v3415_v12  ;;  %v3350_v33 = vadd.f32 %v3301_v47, %v14327_v17  ;;  %v3351_v55 = vadd.f32 %v3302_v29, %v14328_v8  ;;  %v3440_v26 = vrot.slane %v12198_v54, 7 }
0x184e   :  { %v12218_v3 = vadd.f32 %v12106_v18, %v3349_v50  ;;  %v12222_v41 = vadd.f32 %v12106_v18, %v3337_v45  ;;  %v12225_v16 = vadd.f32 %v12106_v18, %v3338_v4  ;;  %v3418_v52 = vrot.slane %v12203_v19, 4  ;;  %v14331_v4 = vld [vmem:[#allocation45_spill] sm:$0xff] }
0x184f   :  { %v12229_v34 = vsel %vm345_vm6, %v3438_v0, %v3437_v44  ;;  %v3420_v47 = vrot.slane %v12207_v48, 3  ;;  %v3304_v29 = vrot.slane %v11595_v36, 6  ;;  %v12234_v50 = vadd.f32 %v12106_v18, %v3347_v46 }
0x1850   :  { %14329 = vst [vmem:[#allocation85_spill] sm:$0xff] %v12218_v3  ;;  %v3419_v45 = vsel %vm336_vm3, %v3418_v52, %v3417_v10  ;;  %v3305_v17 = vrot.slane %v11595_v36, 7  ;;  %v3352_v8 = vadd.f32 %v3303_v49, %v14331_v4  ;;  %v12240_v54 = vadd.f32 %v12106_v18, %v3350_v33 }
0x1851   :  { %14330 = vst [vmem:[#allocation111_spill] sm:$0xff] %v12234_v50  ;;  %v12243_v44 = vadd.f32 %v12106_v18, %v3351_v55  ;;  %v3441_v0 = vsel %vm327_vm0, %v3440_v26, %v12234_v50  ;;  %v3442_v48 = vrot.slane %v12218_v3, 6  ;;  %v3422_v11 = vrot.slane %v12222_v41, 2 }
0x1852   :  { %14332 = vst [vmem:[#allocation87_spill] sm:$0xff] %v12240_v54 }
0x1859   :  { %v5432_v12 = vpop.xlane.xlu0 %5431 }
0x185a   :  { %v5438_v25 = vmul.f32 0.03125, %v5432_v12 }
0x185c   :  { %v5458_v46 = vrot.slane %v5438_v25, 1  ;;  %v5459_v42 = vrot.slane %v5438_v25, 2  ;;  %v5460_v12 = vrot.slane %v5438_v25, 3  ;;  %v5461_v19 = vrot.slane %v5438_v25, 4 }
0x185d   :  { %v5435_v10 = vpop.xlane.xlu0 %5434  ;;  %v5462_v52 = vrot.slane %v5438_v25, 5  ;;  %v5463_v36 = vrot.slane %v5438_v25, 6  ;;  %v5464_v20 = vrot.slane %v5438_v25, 7  ;;  %v12249_v49 = vsub.f32 %v11974_v62, %v5438_v25 }
0x185e   :  { %v5439_v33 = vmul.f32 0.03125, %v5435_v10  ;;  %v12252_v55 = vsub.f32 %v11962_v5, %v5458_v46  ;;  %v12255_v4 = vsub.f32 %v11965_v38, %v5459_v42  ;;  %v12258_v26 = vsub.f32 %v11968_v27, %v5460_v12 }
0x185f   :  { %v12261_v50 = vsub.f32 %v11971_v30, %v5461_v19  ;;  %v12264_v3 = vsub.f32 %v11977_v43, %v5462_v52  ;;  %v12267_v1 = vsub.f32 %v11982_v60, %v5463_v36  ;;  %v3443_v62 = vsel %vm330_vm1, %v3442_v48, %v3441_v0  ;;  %v14333_v0 = vld [vmem:[#allocation46_spill] sm:$0xff] }
0x1860   :  { %v12271_v5 = vsub.f32 %v12002_v40, %v5439_v33  ;;  %v12274_v38 = vsub.f32 %v11985_v2, %v5464_v20  ;;  %v5532_v27 = vmul.f32 %v12252_v55, %v12252_v55  ;;  %v5533_v30 = vmul.f32 %v12255_v4, %v12255_v4 }
0x1861   :  { %v5531_v43 = vmul.f32 %v12249_v49, %v12249_v49  ;;  %v5534_v60 = vmul.f32 %v12258_v26, %v12258_v26  ;;  %v5535_v19 = vmul.f32 %v12261_v50, %v12261_v50  ;;  %v3444_v40 = vrot.slane %v12240_v54, 5 }
0x1862   :  { %v5539_v20 = vmul.f32 %v12271_v5, %v12271_v5  ;;  %v5536_v2 = vmul.f32 %v12264_v3, %v12264_v3  ;;  %v5593_v42 = vrot.slane %v5532_v27, 7  ;;  %v5595_v48 = vrot.slane %v5533_v30, 6 }
0x1863   :  { %v5537_v25 = vmul.f32 %v12267_v1, %v12267_v1  ;;  %v3353_v46 = vadd.f32 %v3304_v29, %v14333_v0  ;;  %v12295_v12 = vadd.f32 %v12106_v18, %v3352_v8  ;;  %v3445_v10 = vsel %vm333_vm2, %v3444_v40, %v3443_v62  ;;  %v14334_v40 = vld [vmem:[#allocation48_spill] sm:$0xff] }
0x1864   :  { %v5620_v52 = vsel %vm1873_vm13, %v5539_v20, 0.0  ;;  %v5538_v36 = vmul.f32 %v12274_v38, %v12274_v38  ;;  %v5594_v33 = vsel %vm327_vm0, %v5593_v42, %v5531_v43  ;;  %v5597_v54 = vrot.slane %v5534_v60, 5 }
0x1865   :  { %5621 = vadd.xlane.f32.xlu0 %v5620_v52  ;;  %v5596_v27 = vsel %vm330_vm1, %v5595_v48, %v5594_v33  ;;  %v5599_v30 = vrot.slane %v5535_v19, 4  ;;  %v3446_v29 = vrot.slane %v12243_v44, 4  ;;  %v5601_v0 = vrot.slane %v5536_v2, 3 }
0x1866   :  { %v5598_v8 = vsel %vm333_vm2, %v5597_v54, %v5596_v27  ;;  %v3421_v62 = vsel %vm339_vm4, %v3420_v47, %v3419_v45  ;;  %v3354_v20 = vadd.f32 %v3305_v17, %v14334_v40  ;;  %v5603_v59 = vrot.slane %v5537_v25, 2 }
0x1867   :  { %v5600_v37 = vsel %vm336_vm3, %v5599_v30, %v5598_v8  ;;  %v12310_v43 = vadd.f32 %v12106_v18, %v3353_v46  ;;  %v3447_v60 = vsel %vm336_vm3, %v3446_v29, %v3445_v10  ;;  %v3461_v19 = vsel %vm375_vm7, %v12229_v34, 0.0 }
0x1868   :  { %v5602_v42 = vsel %vm339_vm4, %v5601_v0, %v5600_v37  ;;  %v5605_v48 = vrot.slane %v5538_v36, 1  ;;  %v3448_v54 = vrot.slane %v12295_v12, 3  ;;  %v3423_v45 = vsel %vm342_vm5, %v3422_v11, %v3421_v62 }
0x1869   :  { %3462 = vadd.xlane.f32.xlu0 %v3461_v19  ;;  %v5604_v47 = vsel %vm342_vm5, %v5603_v59, %v5602_v42  ;;  %v3424_v2 = vrot.slane %v12225_v16, 1  ;;  %v12322_v25 = vadd.f32 %v12106_v18, %v3354_v20  ;;  %v3450_v37 = vrot.slane %v12310_v43, 2 }
0x186a   :  { %v5606_v17 = vsel %vm345_vm6, %v5605_v48, %v5604_v47  ;;  %v3449_v46 = vsel %vm339_vm4, %v3448_v54, %v3447_v60 }
0x186b   :  { %v5617_v34 = vsel %vm375_vm7, %v5606_v17, 0.0  ;;  %v3425_v10 = vsel %vm345_vm6, %v3424_v2, %v3423_v45  ;;  %v3451_v59 = vsel %vm342_vm5, %v3450_v37, %v3449_v46  ;;  %v3452_v11 = vrot.slane %v12322_v25, 1 }
0x186c   :  { %5618 = vadd.xlane.f32.xlu1 %v5617_v34  ;;  %v3458_v52 = vsel %vm375_vm7, %v3425_v10, 0.0  ;;  %v12343_v10 = vld [vmem:[%s13813_s6] ss:$0 sm:$0xff] }
0x186d   :  { %v3453_v36 = vsel %vm345_vm6, %v3452_v11, %v3451_v59 }
0x186e   :  { %v3464_v18 = vsel %vm375_vm7, %v3453_v36, 0.0 }
0x1870   :  { %3459 = vadd.xlane.f32.xlu1 %v3458_v52 }
0x1874   :  { %3465 = vadd.xlane.f32.xlu1 %v3464_v18 }
0x18c5   :  { %v5616_v33 = vpop.xlane.xlu0 %5615 }
0x18c6   :  { %v5624_v27 = vmul.f32 0.03125, %v5616_v33 }
0x18c8   :  { %v5628_v30 = vadd.f32 1e-05, %v5624_v27 }
0x18ca   :  { %9134 = vrsqrt.f32 %v5628_v30 }
0x18ce   :  { %v5613_v29 = vpop.xlane.xlu1 %5612 }
0x18cf   :  { %v5623_v8 = vmul.f32 0.03125, %v5613_v29 }
0x18d1   :  { %v5627_v0 = vadd.f32 1e-05, %v5623_v8 }
0x18d3   :  { %9136 = vrsqrt.f32 %v5627_v0 }
0x18d4   :  { %v9135_v62 = vpop.eup %9134 }
0x18d5   :  { %v5646_v40 = vrot.slane %v9135_v62, 1  ;;  %v5647_v20 = vrot.slane %v9135_v62, 2  ;;  %v5648_v60 = vrot.slane %v9135_v62, 3  ;;  %v5649_v19 = vrot.slane %v9135_v62, 4 }
0x18d6   :  { %v5650_v42 = vrot.slane %v9135_v62, 5  ;;  %v5651_v48 = vrot.slane %v9135_v62, 6  ;;  %v5693_v54 = vmul.f32 %v9135_v62, %v12008_v32  ;;  %v5652_v2 = vrot.slane %v9135_v62, 7 }
0x18d7   :  { %v5694_v47 = vmul.f32 %v5646_v40, %v12011_v28  ;;  %v5695_v45 = vmul.f32 %v5647_v20, %v12014_v63  ;;  %v5696_v17 = vmul.f32 %v5648_v60, %v12017_v53  ;;  %v5697_v46 = vmul.f32 %v5649_v19, %v12020_v7  ;;  %v12352_v7 = vld [vmem:[%s13814_s7] ss:$0 sm:$0xff] }
0x18d8   :  { %v5698_v34 = vmul.f32 %v5650_v42, %v12023_v24  ;;  %v5699_v37 = vmul.f32 %v5651_v48, %v12026_v9  ;;  %v5718_v32 = vmul.f32 %v12343_v10, %v5693_v54  ;;  %v5700_v9 = vmul.f32 %v5652_v2, %v12029_v14 }
0x18d9   :  { %v5719_v28 = vmul.f32 %v12343_v10, %v5694_v47  ;;  %v5720_v63 = vmul.f32 %v12343_v10, %v5695_v45  ;;  %v5721_v53 = vmul.f32 %v12343_v10, %v5696_v17  ;;  %v5722_v59 = vmul.f32 %v12343_v10, %v5697_v46 }
0x18da   :  { %v5723_v11 = vmul.f32 %v12343_v10, %v5698_v34  ;;  %v5724_v52 = vmul.f32 %v12343_v10, %v5699_v37  ;;  %v12362_v18 = vadd.f32 %v12352_v7, %v5718_v32 }
0x18db   :  { %v12355_v24 = vadd.f32 %v12352_v7, %v5719_v28  ;;  %v12365_v33 = vadd.f32 %v12352_v7, %v5720_v63  ;;  %v12368_v27 = vadd.f32 %v12352_v7, %v5721_v53 }
0x18dc   :  { %v12404_v63 = vadd.f32 %v12352_v7, %v5723_v11  ;;  %v5725_v11 = vmul.f32 %v12343_v10, %v5700_v9  ;;  %v12433_v9 = vadd.f32 %v12352_v7, %v5724_v52 }
0x18dd   :  { %14335 = vst [vmem:[#allocation3_spill] sm:$0xff] %v12355_v24  ;;  %v9137_v36 = vpop.eup %9136  ;;  %14336 = vst [vmem:[#allocation86_spill] sm:$0xff] %v12365_v33  ;;  %v5799_v30 = vrot.slane %v12355_v24, 7 }
0x18de   :  { %14337 = vst [vmem:[#allocation5_spill] sm:$0xff] %v12368_v27  ;;  %v5639_v29 = vrot.slane %v9137_v36, 1  ;;  %v5640_v14 = vrot.slane %v9137_v36, 2  ;;  %v5641_v8 = vrot.slane %v9137_v36, 3  ;;  %v5642_v0 = vrot.slane %v9137_v36, 4  ;;  %14339 = vst [vmem:[#allocation9_spill] sm:$0xff] %v12404_v63 }
0x18df   :  { %v5643_v62 = vrot.slane %v9137_v36, 5  ;;  %v5644_v40 = vrot.slane %v9137_v36, 6  ;;  %v5645_v20 = vrot.slane %v9137_v36, 7  ;;  %v5685_v60 = vmul.f32 %v9137_v36, %v12051_v23  ;;  %14340 = vst [vmem:[#allocation11_spill] sm:$0xff] %v12433_v9 }
0x18e0   :  { %v5686_v19 = vmul.f32 %v5639_v29, %v12054_v57  ;;  %v5687_v42 = vmul.f32 %v5640_v14, %v12057_v39  ;;  %v5688_v48 = vmul.f32 %v5641_v8, %v12061_v15  ;;  %v5689_v54 = vmul.f32 %v5642_v0, %v12064_v22 }
0x18e1   :  { %v5690_v47 = vmul.f32 %v5643_v62, %v12067_v31  ;;  %v5691_v45 = vmul.f32 %v5644_v40, %v12071_v13  ;;  %v5692_v17 = vmul.f32 %v5645_v20, %v12074_v51  ;;  %v5710_v2 = vmul.f32 %v12343_v10, %v5685_v60 }
0x18e2   :  { %v5711_v46 = vmul.f32 %v12343_v10, %v5686_v19  ;;  %v5712_v23 = vmul.f32 %v12343_v10, %v5687_v42  ;;  %v5713_v57 = vmul.f32 %v12343_v10, %v5688_v48  ;;  %v5714_v39 = vmul.f32 %v12343_v10, %v5689_v54 }
0x18e3   :  { %v5715_v15 = vmul.f32 %v12343_v10, %v5690_v47  ;;  %v5716_v22 = vmul.f32 %v12343_v10, %v5691_v45  ;;  %v12387_v31 = vadd.f32 %v12352_v7, %v5722_v59  ;;  %v5801_v13 = vrot.slane %v12365_v33, 6 }
0x18e4   :  { %v5717_v51 = vmul.f32 %v12343_v10, %v5692_v17  ;;  %v12392_v34 = vadd.f32 %v12352_v7, %v5711_v46  ;;  %v12395_v37 = vadd.f32 %v12352_v7, %v5712_v23  ;;  %v12398_v32 = vadd.f32 %v12352_v7, %v5713_v57 }
0x18e5   :  { %14338 = vst [vmem:[#allocation6_spill] sm:$0xff] %v12387_v31  ;;  %v12401_v28 = vadd.f32 %v12352_v7, %v5714_v39  ;;  %v5800_v53 = vsel %vm327_vm0, %v5799_v30, %v12362_v18  ;;  %v5803_v59 = vrot.slane %v12368_v27, 5  ;;  %v12410_v36 = vadd.f32 %v12352_v7, %v5710_v2 }
0x18e6   :  { %v12413_v29 = vadd.f32 %v12352_v7, %v5715_v15  ;;  %v5785_v14 = vrot.slane %v12392_v34, 7  ;;  %v5787_v8 = vrot.slane %v12395_v37, 6  ;;  %v12418_v0 = vadd.f32 %v12352_v7, %v5716_v22 }
0x18e7   :  { %v5802_v62 = vsel %vm330_vm1, %v5801_v13, %v5800_v53  ;;  %v5805_v30 = vrot.slane %v12387_v31, 4  ;;  %v12424_v40 = vadd.f32 %v12352_v7, %v5717_v51  ;;  %v5789_v60 = vrot.slane %v12398_v32, 5 }
0x18e8   :  { %v5786_v20 = vsel %vm327_vm0, %v5785_v14, %v12410_v36  ;;  %v5804_v19 = vsel %vm333_vm2, %v5803_v59, %v5802_v62  ;;  %v5791_v48 = vrot.slane %v12401_v28, 4  ;;  %v5793_v45 = vrot.slane %v12413_v29, 3  ;;  %v14342_v59 = vld [vmem:[#allocation20_spill] sm:$0xff]  ;;  %v14345_v62 = vld [vmem:[#allocation43_spill] sm:$0xff] }
0x18e9   :  { %v5788_v42 = vsel %vm330_vm1, %v5787_v8, %v5786_v20  ;;  %v5806_v54 = vsel %vm336_vm3, %v5805_v30, %v5804_v19  ;;  %v5807_v17 = vrot.slane %v12404_v63, 3  ;;  %v5795_v46 = vrot.slane %v12418_v0, 2  ;;  %v14343_v8 = vld [vmem:[#allocation23_spill] sm:$0xff]  ;;  %v14347_v30 = vld [vmem:[#allocation38_spill] sm:$0xff] }
0x18ea   :  { %v5790_v47 = vsel %vm333_vm2, %v5789_v60, %v5788_v42  ;;  %v5797_v57 = vrot.slane %v12424_v40, 1  ;;  %v12444_v39 = vadd.f32 %v12352_v7, %v5725_v11  ;;  %v5809_v22 = vrot.slane %v12433_v9, 2  ;;  %v14344_v11 = vld [vmem:[#allocation19_spill] sm:$0xff] }
0x18eb   :  { %v5792_v2 = vsel %vm336_vm3, %v5791_v48, %v5790_v47  ;;  %v5808_v52 = vsel %vm339_vm4, %v5807_v17, %v5806_v54 }
0x18ec   :  { %v5794_v23 = vsel %vm339_vm4, %v5793_v45, %v5792_v2  ;;  %14341 = vst [vmem:[#allocation13_spill] sm:$0xff] %v12444_v39  ;;  %v5810_v51 = vsel %vm342_vm5, %v5809_v22, %v5808_v52  ;;  %v5811_v53 = vrot.slane %v12444_v39, 1 }
0x18ed   :  { %v5796_v15 = vsel %vm342_vm5, %v5795_v46, %v5794_v23 }
0x18ee   :  { %v12450_v13 = vsel %vm345_vm6, %v5797_v57, %v5796_v15  ;;  %v12463_v14 = vsel %vm345_vm6, %v5811_v53, %v5810_v51 }
0x18ef   :  { %7474 = vmatmul.mubr.msk.f32.vlgmr.msra.gmra.mrb[60].mxu1 %vm375_vm7, %v12450_v13  ;;  %7478 = vmatmul.mubr.msk.f32.vlgmr.msra.gmra.mrb[76].mxu0 %vm375_vm7, %v12450_v13 }
0x18f0   :  { %5905 = vmatprep.mubr.f32.mxu1 %v14270_v56  ;;  %5994 = vmatprep.mubr.f32.mxu0 %v14270_v56 }
0x18f1   :  { %8649 = vmatpush1.bf16.msra.mxu1 %v14342_v59  ;;  %8657 = vmatpush3.bf16.msra.mxu0 %v14282_v6  ;;  %v14346_v6 = vld [vmem:[#allocation47_spill] sm:$0xff] }
0x18f2   :  { %8651 = vmatprep.subr.bf16.mxu1 %v14343_v8  ;;  %8659 = vmatprep.subr.bf16.mxu0 %v14344_v11  ;;  %v5622_v19 = vpop.xlane.xlu0 %5621 }
0x18f3   :  { %7475 = vmatmul.mubr.msk.f32.gmra.mrb[62].mxu1 %vm375_vm7, %v12463_v14  ;;  %7479 = vmatmul.mubr.msk.f32.gmra.mrb[78].mxu0 %vm375_vm7, %v12463_v14  ;;  %v5626_v48 = vmul.f32 0.03125, %v5622_v19 }
0x18f4   :  { %5911 = vmatprep.mubr.f32.mxu1 %v14270_v56  ;;  %6000 = vmatprep.mubr.f32.mxu0 %v14270_v56 }
0x18f5   :  { %8653 = vmatpush1.bf16.msra.mxu1 %v14345_v62  ;;  %8661 = vmatpush3.bf16.msra.mxu0 %v14344_v11  ;;  %v5630_v54 = vadd.f32 1e-05, %v5626_v48 }
0x18f6   :  { %8663 = vmatprep.subr.bf16.mxu1 %v14346_v6  ;;  %8695 = vmatprep.subr.bf16.mxu0 %v14347_v30 }
0x18f9   :  { %v5619_v20 = vpop.xlane.xlu1 %5618 }
0x18fa   :  { %v5625_v60 = vmul.f32 0.03125, %v5619_v20 }
0x18fc   :  { %v5629_v42 = vadd.f32 1e-05, %v5625_v60 }
0x18fe   :  { %9138 = vrsqrt.f32 %v5629_v42 }
0x18ff   :  { %9140 = vrsqrt.f32 %v5630_v54 }
0x1908   :  { %v9139_v47 = vpop.eup %9138 }
0x1909   :  { %v5653_v45 = vrot.slane %v9139_v47, 1  ;;  %v5654_v17 = vrot.slane %v9139_v47, 2  ;;  %v5655_v2 = vrot.slane %v9139_v47, 3  ;;  %v5656_v46 = vrot.slane %v9139_v47, 4  ;;  %v9141_v19 = vpop.eup %9140 }
0x190a   :  { %v5657_v23 = vrot.slane %v9139_v47, 5  ;;  %v5658_v57 = vrot.slane %v9139_v47, 6  ;;  %v5659_v52 = vrot.slane %v9139_v47, 7  ;;  %v5701_v15 = vmul.f32 %v9139_v47, %v12249_v49 }
0x190b   :  { %v5702_v22 = vmul.f32 %v5653_v45, %v12252_v55  ;;  %v5703_v51 = vmul.f32 %v5654_v17, %v12255_v4  ;;  %v5704_v53 = vmul.f32 %v5655_v2, %v12258_v26  ;;  %v5705_v59 = vmul.f32 %v5656_v46, %v12261_v50 }
0x190c   :  { %v5706_v8 = vmul.f32 %v5657_v23, %v12264_v3  ;;  %v5707_v11 = vmul.f32 %v5658_v57, %v12267_v1  ;;  %v5708_v62 = vmul.f32 %v5659_v52, %v12274_v38  ;;  %v5726_v6 = vmul.f32 %v12343_v10, %v5701_v15 }
0x190d   :  { %v5727_v30 = vmul.f32 %v12343_v10, %v5702_v22  ;;  %v5728_v49 = vmul.f32 %v12343_v10, %v5703_v51  ;;  %v5729_v55 = vmul.f32 %v12343_v10, %v5704_v53  ;;  %v5730_v4 = vmul.f32 %v12343_v10, %v5705_v59 }
0x190e   :  { %v5731_v26 = vmul.f32 %v12343_v10, %v5706_v8  ;;  %v5732_v50 = vmul.f32 %v12343_v10, %v5707_v11  ;;  %v5733_v3 = vmul.f32 %v12343_v10, %v5708_v62  ;;  %v12506_v42 = vadd.f32 %v12352_v7, %v5726_v6 }
0x190f   :  { %v12494_v1 = vadd.f32 %v12352_v7, %v5727_v30  ;;  %v12497_v38 = vadd.f32 %v12352_v7, %v5728_v49  ;;  %v12500_v20 = vadd.f32 %v12352_v7, %v5729_v55  ;;  %v12503_v60 = vadd.f32 %v12352_v7, %v5730_v4  ;;  %v14359_v30 = vld [vmem:[#allocation52_spill] sm:$0xff]  ;;  %v14360_v49 = vld [vmem:[#allocation54_spill] sm:$0xff]  ;;  %v14362_v55 = vld [vmem:[#allocation55_spill] sm:$0xff] }
0x1910   :  { %14352 = vst [vmem:[#allocation10_spill] sm:$0xff] %v12506_v42  ;;  %v12509_v48 = vadd.f32 %v12352_v7, %v5731_v26  ;;  %v12514_v45 = vadd.f32 %v12352_v7, %v5732_v50  ;;  %v12517_v17 = vadd.f32 %v12352_v7, %v5733_v3  ;;  %v5709_v23 = vmul.f32 %v9141_v19, %v12271_v5  ;;  %v14363_v4 = vld [vmem:[#allocation56_spill] sm:$0xff]  ;;  %v14364_v26 = vld [vmem:[#allocation58_spill] sm:$0xff]  ;;  %v14365_v50 = vld [vmem:[#allocation57_spill] sm:$0xff] }
0x1911   :  { %14348 = vst [vmem:[#allocation15_spill] sm:$0xff] %v12494_v1  ;;  %14349 = vst [vmem:[#allocation18_spill] sm:$0xff] %v12497_v38  ;;  %v5813_v54 = vrot.slane %v12494_v1, 7  ;;  %v5815_v47 = vrot.slane %v12497_v38, 6  ;;  %v5817_v46 = vrot.slane %v12500_v20, 5  ;;  %v5819_v52 = vrot.slane %v12503_v60, 4 }
0x1912   :  { %14350 = vst [vmem:[#allocation7_spill] sm:$0xff] %v12500_v20  ;;  %14351 = vst [vmem:[#allocation8_spill] sm:$0xff] %v12503_v60  ;;  %v5821_v22 = vrot.slane %v12509_v48, 3  ;;  %v5823_v53 = vrot.slane %v12514_v45, 2  ;;  %v5825_v8 = vrot.slane %v12517_v17, 1  ;;  %v5734_v5 = vmul.f32 %v12343_v10, %v5709_v23  ;;  %v14357_v10 = vld [vmem:[#allocation50_spill] sm:$0xff] }
0x1913   :  { %14353 = vst [vmem:[#allocation12_spill] sm:$0xff] %v12509_v48  ;;  %14354 = vst [vmem:[#allocation14_spill] sm:$0xff] %v12514_v45  ;;  %v5814_v2 = vsel %vm327_vm0, %v5813_v54, %v12506_v42  ;;  %v14367_v3 = vld [vmem:[#allocation60_spill] sm:$0xff]  ;;  %v14368_v19 = vld [vmem:[#allocation62_spill] sm:$0xff] }
0x1914   :  { %14355 = vst [vmem:[#allocation16_spill] sm:$0xff] %v12517_v17  ;;  %v5816_v57 = vsel %vm330_vm1, %v5815_v47, %v5814_v2  ;;  %v12539_v6 = vadd.f32 %v12352_v7, %v5734_v5  ;;  %v14358_v7 = vld [vmem:[#allocation51_spill] sm:$0xff]  ;;  %v14369_v54 = vld [vmem:[#allocation61_spill] sm:$0xff]  ;;  %v14371_v2 = vld [vmem:[#allocation64_spill] sm:$0xff] }
0x1915   :  { %v5818_v15 = vsel %vm333_vm2, %v5817_v46, %v5816_v57  ;;  %v14370_v47 = vld [vmem:[#allocation63_spill] sm:$0xff]  ;;  %v14372_v46 = vld [vmem:[#allocation66_spill] sm:$0xff]  ;;  %v14375_v57 = vld [vmem:[#allocation68_spill] sm:$0xff] }
0x1916   :  { %v5820_v51 = vsel %vm336_vm3, %v5819_v52, %v5818_v15  ;;  %14356 = vst [vmem:[#allocation17_spill] sm:$0xff] %v12539_v6  ;;  %v14374_v23 = vld [vmem:[#allocation67_spill] sm:$0xff]  ;;  %v14376_v52 = vld [vmem:[#allocation70_spill] sm:$0xff]  ;;  %v14377_v15 = vld [vmem:[#allocation69_spill] sm:$0xff] }
0x1917   :  { %v5822_v59 = vsel %vm339_vm4, %v5821_v22, %v5820_v51  ;;  %v14378_v22 = vld [vmem:[#allocation71_spill] sm:$0xff]  ;;  %v14379_v51 = vld [vmem:[#allocation72_spill] sm:$0xff]  ;;  %v14384_v5 = vld [vmem:[#allocation78_spill] sm:$0xff] }
0x1918   :  { %v5824_v11 = vsel %vm342_vm5, %v5823_v53, %v5822_v59  ;;  %v14380_v53 = vld [vmem:[#allocation74_spill] sm:$0xff]  ;;  %v14381_v59 = vld [vmem:[#allocation73_spill] sm:$0xff] }
0x1919   :  { %v5826_v62 = vsel %vm345_vm6, %v5825_v8, %v5824_v11  ;;  %v14382_v8 = vld [vmem:[#allocation75_spill] sm:$0xff]  ;;  %v14383_v11 = vld [vmem:[#allocation76_spill] sm:$0xff]  ;;  %v14406_v20 = vld [vmem:[#allocation2_spill] sm:$0xff] }
0x191a   :  { %7476 = vmatmul.mubr.msk.f32.gmra.mrb[64].mxu1 %vm375_vm7, %v5826_v62  ;;  %7480 = vmatmul.mubr.msk.f32.gmra.mrb[80].mxu0 %vm375_vm7, %v5826_v62 }
0x191b   :  { %5917 = vmatprep.mubr.f32.mxu1 %v14270_v56  ;;  %6006 = vmatprep.mubr.f32.mxu0 %v14270_v56 }
0x191e   :  { %7477 = vmatmul.mubr.msk.f32.gmra.mrb[66].mxu1 %vm375_vm7, %v12539_v6  ;;  %7481 = vmatmul.mubr.msk.f32.gmra.mrb[82].mxu0 %vm375_vm7, %v12539_v6 }
0x191f   :  { %8266 = vmatprep.mubr.msk.f32.mxu0 %vm375_vm7, %v12450_v13  ;;  %6077 = vmatprep.mubr.f32.mxu1 %v14270_v56 }
0x1922   :  { %7482 = vmatmul.mubr.msk.f32.vlgmr.msra.gmra.mrb[68].mxu1 %vm375_vm7, %v12450_v13  ;;  %8267 = vmatmul.mubr.msk.f32.vlgmr.msra.gmra.mrb[84].mxu0 %vm375_vm7, %v12463_v14  ;;  %v14361_v13 = vld [vmem:[#allocation53_spill] sm:$0xff] }
0x1923   :  { %8269 = vmatprep.mubr.msk.f32.mxu0 %vm375_vm7, %v5826_v62  ;;  %6083 = vmatprep.mubr.f32.mxu1 %v14270_v56 }
0x1924   :  { %8665 = vmatpush3.bf16.msra.mxu1 %v14357_v10  ;;  %8697 = vmatpush3.bf16.msra.mxu0 %v14358_v7  ;;  %v14386_v10 = vld [vmem:[#allocation79_spill] sm:$0xff]  ;;  %v14387_v7 = vld [vmem:[#allocation80_spill] sm:$0xff] }
0x1925   :  { %8667 = vmatprep.subr.bf16.mxu1 %v14359_v30  ;;  %8699 = vmatprep.subr.bf16.mxu0 %v14360_v49 }
0x1926   :  { %7483 = vmatmul.mubr.msk.f32.gmra.mrb[70].mxu1 %vm375_vm7, %v12463_v14  ;;  %8270 = vmatmul.mubr.msk.f32.gmra.mrb[86].mxu0 %vm375_vm7, %v12539_v6  ;;  %v14366_v14 = vld [vmem:[#allocation59_spill] sm:$0xff] }
0x1927   :  { %6089 = vmatprep.mubr.f32.mxu1 %v14270_v56 }
0x1928   :  { %8669 = vmatpush3.bf16.msra.mxu1 %v14361_v13  ;;  %8701 = vmatpush3.bf16.msra.mxu0 %v14362_v55  ;;  %v14388_v13 = vld [vmem:[#allocation88_spill] sm:$0xff] }
0x1929   :  { %8671 = vmatprep.subr.bf16.mxu1 %v14363_v4  ;;  %8703 = vmatprep.subr.bf16.mxu0 %v14364_v26  ;;  %v14389_v4 = vld [vmem:[#allocation89_spill] sm:$0xff] }
0x192a   :  { %7484 = vmatmul.mubr.msk.f32.gmra.mrb[72].mxu1 %vm375_vm7, %v5826_v62  ;;  %v14385_v62 = vld [vmem:[#allocation77_spill] sm:$0xff] }
0x192b   :  { %6095 = vmatprep.mubr.f32.mxu1 %v14270_v56  ;;  %v14373_v56 = vld [vmem:[#allocation65_spill] sm:$0xff] }
0x192c   :  { %8673 = vmatpush3.bf16.msra.mxu1 %v14365_v50  ;;  %8705 = vmatpush3.bf16.msra.mxu0 %v14366_v14 }
0x192d   :  { %8675 = vmatprep.subr.bf16.mxu1 %v14367_v3  ;;  %8707 = vmatprep.subr.bf16.mxu0 %v14368_v19  ;;  %v14390_v3 = vld [vmem:[#allocation90_spill] sm:$0xff] }
0x192e   :  { %7485 = vmatmul.mubr.msk.f32.gmra.mrb[74].mxu1 %vm375_vm7, %v12539_v6 }
0x1930   :  { %8677 = vmatpush3.bf16.msra.mxu1 %v14369_v54  ;;  %8709 = vmatpush3.bf16.msra.mxu0 %v14370_v47  ;;  %v14391_v54 = vld [vmem:[#allocation92_spill] sm:$0xff] }
0x1931   :  { %8679 = vmatprep.subr.bf16.mxu1 %v14371_v2  ;;  %8711 = vmatprep.subr.bf16.mxu0 %v14372_v46 }
0x1934   :  { %8681 = vmatpush3.bf16.msra.mxu1 %v14373_v56  ;;  %8713 = vmatpush3.bf16.msra.mxu0 %v14374_v23 }
0x1935   :  { %8683 = vmatprep.subr.bf16.mxu1 %v14375_v57  ;;  %8715 = vmatprep.subr.bf16.mxu0 %v14376_v52 }
0x1938   :  { %8685 = vmatpush3.bf16.msra.mxu1 %v14377_v15  ;;  %8717 = vmatpush3.bf16.msra.mxu0 %v14378_v22 }
0x1939   :  { %8687 = vmatprep.subr.bf16.mxu1 %v14379_v51  ;;  %8719 = vmatprep.subr.bf16.mxu0 %v14380_v53 }
0x193c   :  { %8689 = vmatpush3.bf16.msra.mxu1 %v14381_v59  ;;  %8721 = vmatpush3.bf16.msra.mxu0 %v14382_v8 }
0x193d   :  { %8691 = vmatprep.subr.bf16.mxu1 %v14383_v11  ;;  %8723 = vmatprep.subr.bf16.mxu0 %v14384_v5 }
0x1940   :  { %8693 = vmatpush3.bf16.msra.mxu1 %v14385_v62  ;;  %8725 = vmatpush3.bf16.msra.mxu0 %v14386_v10 }
0x1941   :  { %8727 = vmatprep.subr.bf16.mxu1 %v14387_v7  ;;  %8759 = vmatprep.subr.bf16.mxu0 %v10851_v35 }
0x19c2   :  { %v5901_v30 = vpop.f32.mrb[60].mxu1  ;;  %v5990_v49 = vpop.f32.mrb[76].mxu0 }
0x19c3   :  { %v12596_v55 = vadd.f32 %v5901_v30, %v14388_v13  ;;  %v12599_v26 = vadd.f32 %v5990_v49, %v14389_v4  ;;  %v5903_v50 = vpop.f32.mrb[61].mxu1  ;;  %v5992_v14 = vpop.f32.mrb[77].mxu0 }
0x19c4   :  { %v12602_v19 = vadd.f32 %v5903_v50, %v14390_v3  ;;  %v12605_v47 = vadd.f32 %v5992_v14, %v14391_v54 }
0x19c5   :  { %v6215_v2 = vmul.f32 %v12596_v55, %v12596_v55  ;;  %v6217_v46 = vmul.f32 %v12599_v26, %v12599_v26 }
0x19c6   :  { %v6216_v56 = vmul.f32 %v12602_v19, %v12602_v19  ;;  %v6218_v23 = vmul.f32 %v12605_v47, %v12605_v47  ;;  %v5907_v57 = vpop.f32.mrb[62].mxu1  ;;  %v5996_v52 = vpop.f32.mrb[78].mxu0 }
0x19c7   :  { %v6243_v15 = vmul.f32 %v6215_v2, %v12596_v55  ;;  %v6245_v22 = vmul.f32 %v6217_v46, %v12599_v26  ;;  %v12618_v51 = vadd.f32 %v5907_v57, %v14388_v13  ;;  %v12621_v53 = vadd.f32 %v5996_v52, %v14389_v4  ;;  %v5909_v59 = vpop.f32.mrb[63].mxu1  ;;  %v5998_v8 = vpop.f32.mrb[79].mxu0 }
0x19c8   :  { %v6244_v11 = vmul.f32 %v6216_v56, %v12602_v19  ;;  %v6246_v5 = vmul.f32 %v6218_v23, %v12605_v47  ;;  %v12626_v62 = vadd.f32 %v5909_v59, %v14390_v3  ;;  %v12629_v10 = vadd.f32 %v5998_v8, %v14391_v54 }
0x19c9   :  { %v6271_v7 = vmul.f32 0.044715, %v6243_v15  ;;  %v6273_v30 = vmul.f32 0.044715, %v6245_v22  ;;  %v6222_v49 = vmul.f32 %v12618_v51, %v12618_v51  ;;  %v6224_v50 = vmul.f32 %v12621_v53, %v12621_v53 }
0x19ca   :  { %v6272_v14 = vmul.f32 0.044715, %v6244_v11  ;;  %v6274_v2 = vmul.f32 0.044715, %v6246_v5  ;;  %v6223_v46 = vmul.f32 %v12626_v62, %v12626_v62  ;;  %v6225_v56 = vmul.f32 %v12629_v10, %v12629_v10 }
0x19cb   :  { %v6299_v23 = vadd.f32 %v6271_v7, %v12596_v55  ;;  %v6301_v57 = vadd.f32 %v6273_v30, %v12599_v26  ;;  %v6250_v52 = vmul.f32 %v6222_v49, %v12618_v51  ;;  %v6252_v15 = vmul.f32 %v6224_v50, %v12621_v53 }
0x19cc   :  { %v6300_v22 = vadd.f32 %v6272_v14, %v12602_v19  ;;  %v6302_v59 = vadd.f32 %v6274_v2, %v12605_v47  ;;  %v6251_v8 = vmul.f32 %v6223_v46, %v12626_v62  ;;  %v6253_v11 = vmul.f32 %v6225_v56, %v12629_v10 }
0x19cd   :  { %v6327_v5 = vmul.f32 0.7978846, %v6299_v23  ;;  %v6329_v6 = vmul.f32 0.7978846, %v6301_v57  ;;  %v6278_v17 = vmul.f32 0.044715, %v6250_v52 }
0x19ce   :  { %v6328_v45 = vmul.f32 0.7978846, %v6300_v22  ;;  %v6330_v48 = vmul.f32 0.7978846, %v6302_v59  ;;  %v6280_v7 = vmul.f32 0.044715, %v6252_v15 }
0x19cf   :  { %9142 = vtanh.f32 %v6327_v5  ;;  %v6306_v30 = vadd.f32 %v6278_v17, %v12618_v51  ;;  %v6279_v49 = vmul.f32 0.044715, %v6251_v8  ;;  %v6281_v60 = vmul.f32 0.044715, %v6253_v11 }
0x19d0   :  { %9144 = vtanh.f32 %v6329_v6  ;;  %v6308_v50 = vadd.f32 %v6280_v7, %v12621_v53  ;;  %v6188_v8 = vmul.f32 0.5, %v12602_v19  ;;  %v6195_v19 = vmul.f32 0.5, %v12626_v62 }
0x19d1   :  { %v6334_v14 = vmul.f32 0.7978846, %v6306_v30  ;;  %v6307_v2 = vadd.f32 %v6279_v49, %v12626_v62  ;;  %v6309_v46 = vadd.f32 %v6281_v60, %v12629_v10  ;;  %9146 = vtanh.f32 %v6328_v45 }
0x19d2   :  { %v6336_v56 = vmul.f32 0.7978846, %v6308_v50  ;;  %9148 = vtanh.f32 %v6330_v48  ;;  %v6187_v60 = vmul.f32 0.5, %v12596_v55  ;;  %v6190_v48 = vmul.f32 0.5, %v12605_v47 }
0x19d3   :  { %v6335_v23 = vmul.f32 0.7978846, %v6307_v2  ;;  %v6337_v57 = vmul.f32 0.7978846, %v6309_v46  ;;  %9150 = vtanh.f32 %v6334_v14  ;;  %v6189_v30 = vmul.f32 0.5, %v12599_v26 }
0x19d4   :  { %9152 = vtanh.f32 %v6336_v56  ;;  %v6197_v55 = vmul.f32 0.5, %v12629_v10  ;;  %v14393_v10 = vld [vmem:[#allocation97_spill] sm:$0xff] }
0x19d5   :  { %9154 = vtanh.f32 %v6335_v23 }
0x19d6   :  { %9156 = vtanh.f32 %v6337_v57 }
0x19d9   :  { %v9143_v17 = vpop.eup %9142 }
0x19da   :  { %v9145_v52 = vpop.eup %9144  ;;  %v6383_v6 = vadd.f32 1.0, %v9143_v17 }
0x19db   :  { %v9147_v15 = vpop.eup %9146  ;;  %v6385_v59 = vadd.f32 1.0, %v9145_v52  ;;  %v6194_v52 = vmul.f32 0.5, %v12618_v51  ;;  %v14392_v51 = vld [vmem:[#allocation96_spill] sm:$0xff] }
0x19dc   :  { %v9149_v22 = vpop.eup %9148  ;;  %v6384_v11 = vadd.f32 1.0, %v9147_v15  ;;  %v6411_v14 = vmul.f32 %v6383_v6, %v6187_v60  ;;  %v6196_v15 = vmul.f32 0.5, %v12621_v53  ;;  %v14395_v53 = vld [vmem:[#allocation99_spill] sm:$0xff]  ;;  %v14396_v60 = vld [vmem:[#allocation102_spill] sm:$0xff] }
0x19dd   :  { %v9151_v5 = vpop.eup %9150  ;;  %v6386_v45 = vadd.f32 1.0, %v9149_v22  ;;  %v6413_v23 = vmul.f32 %v6385_v59, %v6189_v30 }
0x19de   :  { %v9153_v7 = vpop.eup %9152  ;;  %v6412_v49 = vmul.f32 %v6384_v11, %v6188_v8  ;;  %v6390_v46 = vadd.f32 1.0, %v9151_v5 }
0x19df   :  { %v9155_v50 = vpop.eup %9154  ;;  %v6414_v2 = vmul.f32 %v6386_v45, %v6190_v48  ;;  %v6392_v17 = vadd.f32 1.0, %v9153_v7  ;;  %v14397_v45 = vld [vmem:[#allocation103_spill] sm:$0xff] }
0x19e0   :  { %v9157_v56 = vpop.eup %9156  ;;  %6515 = vmatprep.mubr.f32.mxu1 %v6412_v49  ;;  %v6391_v57 = vadd.f32 1.0, %v9155_v50  ;;  %v6418_v22 = vmul.f32 %v6390_v46, %v6194_v52 }
0x19e1   :  { %6600 = vmatprep.mubr.f32.mxu0 %v6414_v2  ;;  %6516 = vmatmul.mubr.f32.vlgmr.msra.gmra.mrb[76].mxu1 %v6411_v14  ;;  %v6393_v47 = vadd.f32 1.0, %v9157_v56  ;;  %v6420_v62 = vmul.f32 %v6392_v17, %v6196_v15 }
0x19e2   :  { %6601 = vmatmul.mubr.f32.vlgmr.msra.gmra.mrb[88].mxu0 %v6413_v23  ;;  %v6419_v26 = vmul.f32 %v6391_v57, %v6195_v19  ;;  %8729 = vmatpush3.bf16.msra.mxu1 %v10990_v58  ;;  %v14394_v58 = vld [vmem:[#allocation98_spill] sm:$0xff]  ;;  %v14398_v23 = vld [vmem:[#allocation104_spill] sm:$0xff]  ;;  %v14399_v19 = vld [vmem:[#allocation105_spill] sm:$0xff] }
0x19e3   :  { %v6421_v6 = vmul.f32 %v6393_v47, %v6197_v55  ;;  %8731 = vmatprep.subr.bf16.mxu1 %v10992_v61  ;;  %8761 = vmatpush3.bf16.msra.mxu0 %v10851_v35 }
0x19e4   :  { %6520 = vmatprep.mubr.f32.mxu1 %v6419_v26  ;;  %8763 = vmatprep.subr.bf16.mxu0 %v11009_v21 }
0x19e5   :  { %6605 = vmatprep.mubr.f32.mxu0 %v6421_v6  ;;  %6521 = vmatmul.mubr.f32.gmra.mrb[78].mxu1 %v6418_v22 }
0x19e6   :  { %6606 = vmatmul.mubr.f32.gmra.mrb[90].mxu0 %v6420_v62  ;;  %8733 = vmatpush3.bf16.msra.mxu1 %v14392_v51 }
0x19e7   :  { %8735 = vmatprep.subr.bf16.mxu1 %v14393_v10  ;;  %8765 = vmatpush3.bf16.msra.mxu0 %v11009_v21 }
0x19ea   :  { %8737 = vmatpush3.bf16.msra.mxu1 %v14394_v58  ;;  %v14400_v58 = vld [vmem:[#allocation106_spill] sm:$0xff] }
0x19eb   :  { %8739 = vmatprep.subr.bf16.mxu1 %v14395_v53 }
0x19ed   :  { %v5913_v61 = vpop.f32.mrb[64].mxu1  ;;  %v6002_v59 = vpop.f32.mrb[80].mxu0 }
0x19ee   :  { %v12669_v35 = vadd.f32 %v5913_v61, %v14388_v13  ;;  %v12672_v8 = vadd.f32 %v6002_v59, %v14389_v4  ;;  %v5915_v11 = vpop.f32.mrb[65].mxu1  ;;  %v6004_v5 = vpop.f32.mrb[81].mxu0  ;;  %8741 = vmatpush3.bf16.msra.mxu1 %v14396_v60  ;;  %v14402_v59 = vld [vmem:[#allocation93_spill] sm:$0xff] }
0x19ef   :  { %v12676_v48 = vadd.f32 %v5915_v11, %v14390_v3  ;;  %v12679_v21 = vadd.f32 %v6004_v5, %v14391_v54  ;;  %8743 = vmatprep.subr.bf16.mxu1 %v14397_v45  ;;  %v14403_v5 = vld [vmem:[#allocation94_spill] sm:$0xff] }
0x19f0   :  { %v6229_v7 = vmul.f32 %v12669_v35, %v12669_v35  ;;  %v6231_v30 = vmul.f32 %v12672_v8, %v12672_v8 }
0x19f1   :  { %v5919_v49 = vpop.f32.mrb[66].mxu1  ;;  %v6008_v50 = vpop.f32.mrb[82].mxu0  ;;  %v6230_v14 = vmul.f32 %v12676_v48, %v12676_v48  ;;  %v6232_v2 = vmul.f32 %v12679_v21, %v12679_v21 }
0x19f2   :  { %v5921_v46 = vpop.f32.mrb[67].mxu1  ;;  %v6010_v56 = vpop.f32.mrb[83].mxu0  ;;  %8745 = vmatpush3.bf16.msra.mxu1 %v14398_v23  ;;  %v6257_v57 = vmul.f32 %v6229_v7, %v12669_v35  ;;  %v6259_v17 = vmul.f32 %v6231_v30, %v12672_v8  ;;  %v12695_v55 = vadd.f32 %v5919_v49, %v14388_v13  ;;  %v12698_v47 = vadd.f32 %v6008_v50, %v14389_v4  ;;  %v14401_v13 = vld [vmem:[#allocation112_spill] sm:$0xff]  ;;  %v14404_v50 = vld [vmem:[#allocation115_spill] sm:$0xff] }
0x19f3   :  { %8747 = vmatprep.subr.bf16.mxu1 %v14399_v19  ;;  %v6258_v15 = vmul.f32 %v6230_v14, %v12676_v48  ;;  %v6260_v6 = vmul.f32 %v6232_v2, %v12679_v21  ;;  %v12703_v22 = vadd.f32 %v5921_v46, %v14390_v3  ;;  %v12706_v62 = vadd.f32 %v6010_v56, %v14391_v54  ;;  %v14405_v23 = vld [vmem:[#allocation116_spill] sm:$0xff] }
0x19f4   :  { %v6285_v4 = vmul.f32 0.044715, %v6257_v57  ;;  %v6287_v53 = vmul.f32 0.044715, %v6259_v17  ;;  %v6236_v61 = vmul.f32 %v12695_v55, %v12695_v55  ;;  %v6238_v3 = vmul.f32 %v12698_v47, %v12698_v47 }
0x19f5   :  { %v6079_v52 = vpop.f32.mrb[68].mxu1  ;;  %v8268_v26 = vpop.f32.mrb[84].mxu0  ;;  %v6286_v60 = vmul.f32 0.044715, %v6258_v15  ;;  %v6288_v45 = vmul.f32 0.044715, %v6260_v6  ;;  %v6237_v7 = vmul.f32 %v12703_v22, %v12703_v22  ;;  %v6239_v30 = vmul.f32 %v12706_v62, %v12706_v62 }
0x19f6   :  { %v6081_v51 = vpop.f32.mrb[69].mxu1  ;;  %v6168_v10 = vpop.f32.mrb[85].mxu0  ;;  %8749 = vmatpush3.bf16.msra.mxu1 %v14400_v58  ;;  %v12713_v11 = vadd.f32 %v6079_v52, %v14402_v59  ;;  %v12718_v54 = vadd.f32 %v8268_v26, %v14403_v5  ;;  %v6313_v19 = vadd.f32 %v6285_v4, %v12669_v35  ;;  %v6315_v57 = vadd.f32 %v6287_v53, %v12672_v8 }
0x19f7   :  { %8751 = vmatprep.subr.bf16.mxu1 %v14401_v13  ;;  %v6264_v17 = vmul.f32 %v6236_v61, %v12695_v55  ;;  %v6266_v26 = vmul.f32 %v6238_v3, %v12698_v47  ;;  %v12737_v58 = vadd.f32 %v6168_v10, %v14403_v5  ;;  %v6265_v4 = vmul.f32 %v6237_v7, %v12703_v22 }
0x19f8   :  { %v6219_v14 = vmul.f32 %v12713_v11, %v12713_v11  ;;  %v6228_v2 = vmul.f32 %v12718_v54, %v12718_v54  ;;  %v6267_v53 = vmul.f32 %v6239_v30, %v12706_v62  ;;  %v6343_v9 = vmul.f32 0.7978846, %v6315_v57 }
0x19f9   :  { %v6085_v49 = vpop.f32.mrb[70].mxu1  ;;  %v8271_v46 = vpop.f32.mrb[86].mxu0  ;;  %v6221_v10 = vmul.f32 %v12737_v58, %v12737_v58  ;;  %v6292_v30 = vmul.f32 0.044715, %v6264_v17  ;;  %v6294_v42 = vmul.f32 0.044715, %v6266_v26 }
0x19fa   :  { %8753 = vmatpush3.bf16.msra.mxu1 %v14404_v50  ;;  %v6087_v56 = vpop.f32.mrb[71].mxu1  ;;  %v6178_v52 = vpop.f32.mrb[87].mxu0  ;;  %v6247_v15 = vmul.f32 %v6219_v14, %v12713_v11  ;;  %v6256_v6 = vmul.f32 %v6228_v2, %v12718_v54  ;;  %v6314_v50 = vadd.f32 %v6286_v60, %v12676_v48  ;;  %v14407_v14 = vld [vmem:[#allocation95_spill] sm:$0xff]  ;;  %v6341_v2 = vmul.f32 0.7978846, %v6313_v19 }
0x19fb   :  { %8755 = vmatprep.subr.bf16.mxu1 %v14405_v23  ;;  %v6316_v23 = vadd.f32 %v6288_v45, %v12679_v21  ;;  %v12745_v1 = vadd.f32 %v6081_v51, %v14407_v14  ;;  %v12750_v60 = vadd.f32 %v6085_v49, %v14402_v59  ;;  %v12753_v45 = vadd.f32 %v8271_v46, %v14403_v5 }
0x19fc   :  { %v6275_v3 = vmul.f32 0.044715, %v6247_v15  ;;  %v6284_v38 = vmul.f32 0.044715, %v6256_v6  ;;  %v12756_v7 = vadd.f32 %v6087_v56, %v14407_v14  ;;  %v6249_v15 = vmul.f32 %v6221_v10, %v12737_v58 }
0x19fd   :  { %v6091_v13 = vpop.f32.mrb[72].mxu1  ;;  %v12761_v51 = vadd.f32 %v6178_v52, %v14403_v5  ;;  %v6293_v19 = vmul.f32 0.044715, %v6265_v4  ;;  %v6242_v46 = vmul.f32 %v12753_v45, %v12753_v45  ;;  %v6342_v56 = vmul.f32 0.7978846, %v6314_v50 }
0x19fe   :  { %v6093_v61 = vpop.f32.mrb[73].mxu1  ;;  %8757 = vmatpush3.bf16.msra.mxu1 %v14406_v20  ;;  %v6303_v20 = vadd.f32 %v6275_v3, %v12713_v11  ;;  %v6312_v49 = vadd.f32 %v6284_v38, %v12718_v54  ;;  %v6220_v17 = vmul.f32 %v12745_v1, %v12745_v1  ;;  %v6277_v3 = vmul.f32 0.044715, %v6249_v15 }
0x19ff   :  { %v6344_v63 = vmul.f32 0.7978846, %v6316_v23  ;;  %v6226_v5 = vmul.f32 %v12750_v60, %v12750_v60  ;;  %v6270_v52 = vmul.f32 %v6242_v46, %v12753_v45  ;;  %v6227_v26 = vmul.f32 %v12756_v7, %v12756_v7 }
0x1a00   :  { %v6320_v38 = vadd.f32 %v6292_v30, %v12695_v55  ;;  %v6295_v4 = vmul.f32 0.044715, %v6267_v53  ;;  %v6331_v10 = vmul.f32 0.7978846, %v6303_v20  ;;  %v6235_v57 = vmul.f32 %v12761_v51, %v12761_v51 }
0x1a01   :  { %v6097_v6 = vpop.f32.mrb[74].mxu1  ;;  %v6322_v50 = vadd.f32 %v6294_v42, %v12698_v47  ;;  %v6321_v15 = vadd.f32 %v6293_v19, %v12703_v22  ;;  %v6340_v23 = vmul.f32 0.7978846, %v6312_v49  ;;  %v6298_v31 = vmul.f32 0.044715, %v6270_v52 }
0x1a02   :  { %v6099_v39 = vpop.f32.mrb[75].mxu1  ;;  %v6248_v27 = vmul.f32 %v6220_v17, %v12745_v1  ;;  %v6305_v46 = vadd.f32 %v6277_v3, %v12737_v58  ;;  %v6263_v33 = vmul.f32 %v6235_v57, %v12761_v51  ;;  %v12782_v24 = vadd.f32 %v6091_v13, %v14402_v59 }
0x1a03   :  { %v6254_v53 = vmul.f32 %v6226_v5, %v12750_v60  ;;  %v6326_v30 = vadd.f32 %v6298_v31, %v12753_v45  ;;  %v6255_v20 = vmul.f32 %v6227_v26, %v12756_v7  ;;  %v12788_v42 = vadd.f32 %v6093_v61, %v14407_v14 }
0x1a04   :  { %9158 = vtanh.f32 %v6331_v10  ;;  %v6291_v19 = vmul.f32 0.044715, %v6263_v33  ;;  %v6233_v49 = vmul.f32 %v12782_v24, %v12782_v24  ;;  %v12793_v17 = vadd.f32 %v6097_v6, %v14402_v59 }
0x1a05   :  { %v6323_v13 = vadd.f32 %v6295_v4, %v12706_v62  ;;  %9160 = vtanh.f32 %v6340_v23  ;;  %v6234_v3 = vmul.f32 %v12788_v42, %v12788_v42  ;;  %v12799_v31 = vadd.f32 %v6099_v39, %v14407_v14 }
0x1a06   :  { %v6276_v5 = vmul.f32 0.044715, %v6248_v27  ;;  %v6333_v61 = vmul.f32 0.7978846, %v6305_v46  ;;  %v6319_v52 = vadd.f32 %v6291_v19, %v12761_v51  ;;  %9162 = vtanh.f32 %v6342_v56 }
0x1a07   :  { %v6354_v33 = vmul.f32 0.7978846, %v6326_v30  ;;  %v6283_v26 = vmul.f32 0.044715, %v6255_v20  ;;  %v6262_v10 = vmul.f32 %v6234_v3, %v12788_v42  ;;  %v6241_v59 = vmul.f32 %v12799_v31, %v12799_v31 }
0x1a08   :  { %v6282_v6 = vmul.f32 0.044715, %v6254_v53  ;;  %v6261_v4 = vmul.f32 %v6233_v49, %v12782_v24  ;;  %v6240_v57 = vmul.f32 %v12793_v17, %v12793_v17  ;;  %9164 = vtanh.f32 %v6344_v63 }
0x1a09   :  { %v6347_v39 = vmul.f32 0.7978846, %v6319_v52  ;;  %v6290_v27 = vmul.f32 0.044715, %v6262_v10  ;;  %v6269_v14 = vmul.f32 %v6241_v59, %v12799_v31  ;;  %9166 = vtanh.f32 %v6341_v2 }
0x1a0a   :  { %v6348_v56 = vmul.f32 0.7978846, %v6320_v38  ;;  %v6349_v23 = vmul.f32 0.7978846, %v6321_v15  ;;  %v6304_v46 = vadd.f32 %v6276_v5, %v12745_v1  ;;  %9168 = vtanh.f32 %v6333_v61 }
0x1a0b   :  { %v6351_v30 = vmul.f32 0.7978846, %v6323_v13  ;;  %9170 = vtanh.f32 %v6354_v33  ;;  %v6311_v53 = vadd.f32 %v6283_v26, %v12756_v7  ;;  %v6297_v20 = vmul.f32 0.044715, %v6269_v14 }
0x1a0c   :  { %v6310_v19 = vadd.f32 %v6282_v6, %v12750_v60  ;;  %v6289_v49 = vmul.f32 0.044715, %v6261_v4  ;;  %v6268_v63 = vmul.f32 %v6240_v57, %v12793_v17  ;;  %9172 = vtanh.f32 %v6343_v9 }
0x1a0d   :  { %v6350_v3 = vmul.f32 0.7978846, %v6322_v50  ;;  %9174 = vtanh.f32 %v6347_v39  ;;  %v6318_v2 = vadd.f32 %v6290_v27, %v12788_v42  ;;  %v6332_v15 = vmul.f32 0.7978846, %v6304_v46 }
0x1a0e   :  { %v9159_v38 = vpop.eup %9158  ;;  %9176 = vtanh.f32 %v6349_v23  ;;  %v6339_v13 = vmul.f32 0.7978846, %v6311_v53  ;;  %v6325_v61 = vadd.f32 %v6297_v20, %v12799_v31  ;;  %v6338_v33 = vmul.f32 0.7978846, %v6310_v19 }
0x1a0f   :  { %v12814_v5 = vpop.eup %9160  ;;  %9178 = vtanh.f32 %v6351_v30  ;;  %v6317_v26 = vadd.f32 %v6289_v49, %v12782_v24  ;;  %v6296_v10 = vmul.f32 0.044715, %v6268_v63  ;;  %v6346_v9 = vmul.f32 0.7978846, %v6318_v2 }
0x1a10   :  { %v9163_v52 = vpop.eup %9162  ;;  %9180 = vtanh.f32 %v6348_v56  ;;  %v6202_v50 = vmul.f32 0.5, %v12676_v48  ;;  %v6204_v4 = vmul.f32 0.5, %v12679_v21  ;;  %v6201_v57 = vmul.f32 0.5, %v12669_v35 }
0x1a11   :  { %v6398_v59 = vadd.f32 1.0, %v9163_v52  ;;  %9182 = vtanh.f32 %v6350_v3  ;;  %v6353_v27 = vmul.f32 0.7978846, %v6325_v61  ;;  %v6345_v30 = vmul.f32 0.7978846, %v6317_v26 }
0x1a12   :  { %v9165_v6 = vpop.eup %9164  ;;  %9184 = vtanh.f32 %v6332_v15  ;;  %v6324_v56 = vadd.f32 %v6296_v10, %v12793_v17  ;;  %v6203_v49 = vmul.f32 0.5, %v12672_v8  ;;  %v6209_v61 = vmul.f32 0.5, %v12703_v22 }
0x1a13   :  { %v9167_v39 = vpop.eup %9166  ;;  %v6426_v14 = vmul.f32 %v6398_v59, %v6202_v50  ;;  %v6400_v23 = vadd.f32 1.0, %v9165_v6  ;;  %9186 = vtanh.f32 %v6339_v13  ;;  %v6193_v10 = vmul.f32 0.5, %v12737_v58 }
0x1a14   :  { %v9169_v46 = vpop.eup %9168  ;;  %v6397_v53 = vadd.f32 1.0, %v9167_v39  ;;  %9188 = vtanh.f32 %v6338_v33  ;;  %v6352_v2 = vmul.f32 0.7978846, %v6324_v56  ;;  %v6208_v8 = vmul.f32 0.5, %v12695_v55 }
0x1a15   :  { %v12822_v48 = vpop.eup %9170  ;;  %6525 = vmatprep.mubr.f32.mxu1 %v6426_v14  ;;  %v6428_v20 = vmul.f32 %v6400_v23, %v6204_v4  ;;  %9190 = vtanh.f32 %v6346_v9  ;;  %v6389_v33 = vadd.f32 1.0, %v9169_v46  ;;  %v6211_v9 = vmul.f32 0.5, %v12706_v62 }
0x1a16   :  { %v9173_v21 = vpop.eup %9172  ;;  %v6425_v19 = vmul.f32 %v6397_v53, %v6201_v57  ;;  %9192 = vtanh.f32 %v6353_v27  ;;  %v6387_v6 = vadd.f32 1.0, %v9159_v38  ;;  %v6210_v39 = vmul.f32 0.5, %v12698_v47 }
0x1a17   :  { %v9175_v35 = vpop.eup %9174  ;;  %6610 = vmatprep.mubr.f32.mxu0 %v6428_v20  ;;  %v6399_v63 = vadd.f32 1.0, %v9173_v21  ;;  %9194 = vtanh.f32 %v6345_v30  ;;  %v6192_v23 = vmul.f32 0.5, %v12745_v1  ;;  %v6417_v30 = vmul.f32 %v6389_v33, %v6193_v10 }
0x1a18   :  { %v9177_v3 = vpop.eup %9176  ;;  %6526 = vmatmul.mubr.f32.gmra.mrb[80].mxu1 %v6425_v19  ;;  %9196 = vtanh.f32 %v6352_v2  ;;  %v6403_v56 = vadd.f32 1.0, %v9175_v35  ;;  %v6396_v38 = vadd.f32 1.0, %v12814_v5  ;;  %v6199_v20 = vmul.f32 0.5, %v12756_v7 }
0x1a19   :  { %v9179_v15 = vpop.eup %9178  ;;  %v6427_v13 = vmul.f32 %v6399_v63, %v6203_v49  ;;  %v6405_v52 = vadd.f32 1.0, %v9177_v3  ;;  %v6191_v19 = vmul.f32 0.5, %v12713_v11  ;;  %v6207_v1 = vmul.f32 0.5, %v12761_v51 }
0x1a1a   :  { %v9181_v26 = vpop.eup %9180  ;;  %v6407_v50 = vadd.f32 1.0, %v9179_v15  ;;  %v6200_v63 = vmul.f32 0.5, %v12718_v54  ;;  %v6410_v11 = vadd.f32 1.0, %v12822_v48  ;;  %v6206_v51 = vmul.f32 0.5, %v12788_v42 }
0x1a1b   :  { %v9183_v59 = vpop.eup %9182  ;;  %6611 = vmatmul.mubr.f32.gmra.mrb[92].mxu0 %v6427_v13  ;;  %v6433_v4 = vmul.f32 %v6405_v52, %v6209_v61  ;;  %v6404_v57 = vadd.f32 1.0, %v9181_v26  ;;  %v6415_v15 = vmul.f32 %v6387_v6, %v6191_v19  ;;  %v6431_v5 = vmul.f32 %v6403_v56, %v6207_v1 }
0x1a1c   :  { %v9185_v27 = vpop.eup %9184  ;;  %v6435_v14 = vmul.f32 %v6407_v50, %v6211_v9  ;;  %v6406_v22 = vadd.f32 1.0, %v9183_v59  ;;  %v6424_v61 = vmul.f32 %v6396_v38, %v6200_v63  ;;  %v6198_v52 = vmul.f32 0.5, %v12750_v60  ;;  %v14410_v63 = vld [vmem:[#allocation120_spill] sm:$0xff] }
0x1a1d   :  { %v9187_v46 = vpop.eup %9186  ;;  %6530 = vmatprep.mubr.f32.mxu1 %v6433_v4  ;;  %v6432_v58 = vmul.f32 %v6404_v57, %v6208_v8  ;;  %v6388_v62 = vadd.f32 1.0, %v9185_v27  ;;  %v6214_v54 = vmul.f32 0.5, %v12753_v45  ;;  %v6213_v48 = vmul.f32 0.5, %v12799_v31 }
0x1a1e   :  { %v9189_v55 = vpop.eup %9188  ;;  %6615 = vmatprep.mubr.f32.mxu0 %v6435_v14  ;;  %v6434_v53 = vmul.f32 %v6406_v22, %v6210_v39  ;;  %v6395_v47 = vadd.f32 1.0, %v9187_v46  ;;  %v6205_v42 = vmul.f32 0.5, %v12782_v24  ;;  %v6212_v6 = vmul.f32 0.5, %v12793_v17  ;;  %v3460_v17 = vpop.xlane.xlu1 %3459 }
0x1a1f   :  { %v9191_v21 = vpop.eup %9190  ;;  %6531 = vmatmul.mubr.f32.gmra.mrb[82].mxu1 %v6432_v58  ;;  %v6416_v49 = vmul.f32 %v6388_v62, %v6192_v23  ;;  %v6394_v7 = vadd.f32 1.0, %v9189_v55  ;;  %v6438_v8 = vmul.f32 %v6410_v11, %v6214_v54  ;;  %v12851_v38 = vmul.f32 0.03125, %v3460_v17  ;;  %v14427_v17 = vld [vmem:[#allocation110_spill] sm:$0xff] }
0x1a20   :  { %6616 = vmatmul.mubr.f32.gmra.mrb[94].mxu0 %v6434_v53  ;;  %v6423_v3 = vmul.f32 %v6395_v47, %v6199_v20  ;;  %v6402_v35 = vadd.f32 1.0, %v9191_v21  ;;  %v9193_v2 = vpop.eup %9192  ;;  %v3463_v20 = vpop.xlane.xlu0 %3462  ;;  %v14408_v47 = vld [vmem:[#allocation49_spill] sm:$0xff] }
0x1a21   :  { %6685 = vmatprep.mubr.f32.mxu1 %v6416_v49  ;;  %8280 = vmatprep.mubr.msk.f32.mxu0 %vm375_vm7, %v6417_v30  ;;  %v9195_v13 = vpop.eup %9194  ;;  %v6409_v26 = vadd.f32 1.0, %v9193_v2  ;;  %v6422_v10 = vmul.f32 %v6394_v7, %v6198_v52  ;;  %v3478_v53 = vrot.slane %v12851_v38, 1  ;;  %v14409_v21 = vld [vmem:[#allocation121_spill] sm:$0xff]  ;;  %v3479_v1 = vrot.slane %v12851_v38, 2  ;;  %v12863_v2 = vld [vmem:[%s13817_s11] ss:$0 sm:$0xff] }
0x1a22   :  { %v6430_v33 = vmul.f32 %v6402_v35, %v6206_v51  ;;  %v6401_v9 = vadd.f32 1.0, %v9195_v13  ;;  %v9197_v50 = vpop.eup %9196  ;;  %v3355_v19 = vadd.f32 %v14409_v21, %v14408_v47  ;;  %v3471_v49 = vmul.f32 0.03125, %v3463_v20  ;;  %v3466_v35 = vpop.xlane.xlu1 %3465  ;;  %v14429_v47 = vld [vmem:[#allocation4_spill] sm:$0xff] }
0x1a23   :  { %6686 = vmatmul.mubr.f32.vlgmr.msra.gmra.mrb[84].mxu1 %v6415_v15  ;;  %v6437_v60 = vmul.f32 %v6409_v26, %v6213_v48  ;;  %v6408_v59 = vadd.f32 1.0, %v9197_v50  ;;  %v3480_v13 = vrot.slane %v12851_v38, 3  ;;  %v12874_v52 = vmul.f32 0.03125, %v3466_v35 }
0x1a24   :  { %8281 = vmatmul.mubr.msk.f32.vlgmr.msra.gmra.mrb[96].mxu0 %vm375_vm7, %v6424_v61  ;;  %6690 = vmatprep.mubr.f32.mxu1 %v6423_v3  ;;  %v6429_v45 = vmul.f32 %v6401_v9, %v6205_v42  ;;  %v12858_v3 = vsub.f32 %v14410_v63, %v3478_v53  ;;  %v12866_v15 = vadd.f32 %v12863_v2, %v3355_v19  ;;  %v3485_v11 = vrot.slane %v3471_v49, 1  ;;  %v14431_v19 = vld [vmem:[#allocation119_spill] sm:$0xff] }
0x1a25   :  { %8283 = vmatprep.mubr.msk.f32.mxu0 %vm375_vm7, %v6431_v5  ;;  %v6436_v4 = vmul.f32 %v6408_v59, %v6212_v6  ;;  %v14412_v5 = vld [vmem:[#allocation126_spill] sm:$0xff]  ;;  %v3486_v51 = vrot.slane %v3471_v49, 2  ;;  %v3487_v54 = vrot.slane %v3471_v49, 3  ;;  %v3481_v26 = vrot.slane %v12851_v38, 4  ;;  %v14417_v6 = vld [vmem:[#allocation84_spill] sm:$0xff] }
0x1a26   :  { %14411 = vst [vmem:[#allocation81_spill] sm:$0xff] %v12858_v3  ;;  %v12869_v7 = vsub.f32 %v14412_v5, %v3479_v1  ;;  %v3550_v61 = vmul.f32 %v12858_v3, %v12858_v3  ;;  %v3489_v50 = vrot.slane %v3471_v49, 5  ;;  %v12883_v48 = vsel %vm1873_vm13, %v12866_v15, 0.0  ;;  %v14433_v5 = vld [vmem:[#allocation125_spill] sm:$0xff] }
0x1a27   :  { %6691 = vmatmul.mubr.f32.gmra.mrb[86].mxu1 %v6422_v10  ;;  %v14414_v10 = vld [vmem:[#allocation128_spill] sm:$0xff]  ;;  %v12908_v53 = vsub.f32 %v14427_v17, %v3481_v26  ;;  %v3483_v63 = vrot.slane %v12851_v38, 6  ;;  %v3494_v17 = vrot.slane %v12874_v52, 3 }
0x1a28   :  { %8284 = vmatmul.mubr.msk.f32.gmra.mrb[98].mxu0 %vm375_vm7, %v6438_v8  ;;  %6695 = vmatprep.mubr.f32.mxu1 %v6430_v33  ;;  %14413 = vst [vmem:[#allocation82_spill] sm:$0xff] %v12869_v7  ;;  %v3488_v33 = vrot.slane %v3471_v49, 4  ;;  %v12879_v9 = vsub.f32 %v14414_v10, %v12851_v38  ;;  %v3490_v8 = vrot.slane %v3471_v49, 6  ;;  %v3551_v42 = vmul.f32 %v12869_v7, %v12869_v7  ;;  %v14463_v7 = vld [vmem:[#allocation14_spill] sm:$0xff] }
0x1a29   :  { %14428 = vst [vmem:[#allocation108_spill] sm:$0xff] %v12908_v53  ;;  %v12913_v21 = vsub.f32 %v14429_v47, %v3489_v50  ;;  %v3484_v10 = vrot.slane %v12851_v38, 7  ;;  %v14434_v50 = vld [vmem:[#allocation127_spill] sm:$0xff]  ;;  %v14439_v47 = vld [vmem:[#allocation85_spill] sm:$0xff] }
0x1a2a   :  { %v3549_v20 = vmul.f32 %v12879_v9, %v12879_v9  ;;  %v12916_v1 = vsub.f32 %v14431_v19, %v3490_v8  ;;  %v3601_v35 = vrot.slane %v3551_v42, 6 }
0x1a2b   :  { %6696 = vmatmul.mubr.f32.gmra.mrb[88].mxu1 %v6429_v45  ;;  %v14415_v45 = vld [vmem:[#allocation117_spill] sm:$0xff]  ;;  %14430 = vst [vmem:[#allocation109_spill] sm:$0xff] %v12913_v21 }
0x1a2c   :  { %6700 = vmatprep.mubr.f32.mxu1 %v6437_v60  ;;  %v3491_v60 = vrot.slane %v3471_v49, 7  ;;  %v12888_v59 = vsub.f32 %v14415_v45, %v3471_v49  ;;  %14432 = vst [vmem:[#allocation22_spill] sm:$0xff] %v12916_v1 }
0x1a2e   :  { %14416 = vst [vmem:[#allocation83_spill] sm:$0xff] %v12888_v59 }
0x1a2f   :  { %6701 = vmatmul.mubr.f32.gmra.mrb[90].mxu1 %v6436_v4  ;;  %v12891_v4 = vsub.f32 %v14417_v6, %v3480_v13  ;;  %v12920_v13 = vsub.f32 %v14433_v5, %v3491_v60  ;;  %v14436_v60 = vld [vmem:[#allocation118_spill] sm:$0xff] }
0x1a31   :  { %14418 = vst [vmem:[#allocation113_spill] sm:$0xff] %v12891_v4 }
0x1ab4   :  { %v7842_v57 = vpop.f32.mrb[76].mxu1 }
0x1ab5   :  { %v7886_v39 = vpop.f32.mrb[88].mxu0  ;;  %v7843_v27 = vpop.f32.mrb[77].mxu1 }
0x1ab6   :  { %v7844_v14 = vadd.f32 %v7843_v27, %v7842_v57  ;;  %v7887_v31 = vpop.f32.mrb[89].mxu0  ;;  %v3599_v57 = vrot.slane %v3550_v61, 7  ;;  %v3557_v61 = vmul.f32 %v12888_v59, %v12888_v59  ;;  %v14453_v59 = vld [vmem:[#allocation9_spill] sm:$0xff] }
0x1ab7   :  { %v7888_v22 = vadd.f32 %v7887_v31, %v7886_v39  ;;  %v14419_v39 = vld [vmem:[#allocation123_spill] sm:$0xff] }
0x1ab8   :  { %v7845_v23 = vpop.f32.mrb[78].mxu1  ;;  %v12894_v27 = vsub.f32 %v14419_v39, %v3485_v11  ;;  %v3553_v39 = vmul.f32 %v12908_v53, %v12908_v53 }
0x1ab9   :  { %v12847_v24 = vadd.f32 %v7888_v22, %v7844_v14  ;;  %v7889_v46 = vpop.f32.mrb[90].mxu0  ;;  %v7846_v58 = vpop.f32.mrb[79].mxu1  ;;  %v14421_v14 = vld [vmem:[#allocation114_spill] sm:$0xff]  ;;  %v3482_v22 = vrot.slane %v12851_v38, 5 }
0x1aba   :  { %v7847_v62 = vadd.f32 %v7846_v58, %v7845_v23  ;;  %v7890_v30 = vpop.f32.mrb[91].mxu0  ;;  %14420 = vst [vmem:[#allocation91_spill] sm:$0xff] %v12894_v27  ;;  %v12897_v31 = vsub.f32 %v14421_v14, %v3486_v51  ;;  %v14423_v23 = vld [vmem:[#allocation124_spill] sm:$0xff]  ;;  %v14425_v58 = vld [vmem:[#allocation122_spill] sm:$0xff]  ;;  %v3552_v51 = vmul.f32 %v12891_v4, %v12891_v4  ;;  %v3558_v42 = vmul.f32 %v12894_v27, %v12894_v27 }
0x1abb   :  { %v7891_v56 = vadd.f32 %v7890_v30, %v7889_v46  ;;  %v12901_v46 = vsub.f32 %v14423_v23, %v3487_v54  ;;  %v3492_v30 = vrot.slane %v12874_v52, 1  ;;  %v3600_v54 = vsel %vm327_vm0, %v3599_v57, %v3549_v20 }
0x1abc   :  { %14422 = vst [vmem:[#allocation100_spill] sm:$0xff] %v12897_v31  ;;  %v12930_v8 = vsub.f32 %v14434_v50, %v3482_v22  ;;  %v3559_v57 = vmul.f32 %v12897_v31, %v12897_v31  ;;  %v12950_v23 = vsub.f32 %v12222_v41, %v3483_v63  ;;  %v3495_v20 = vrot.slane %v12874_v52, 4 }
0x1abd   :  { %v12849_v55 = vadd.f32 %v7891_v56, %v7847_v62  ;;  %14424 = vst [vmem:[#allocation107_spill] sm:$0xff] %v12901_v46  ;;  %v12904_v62 = vsub.f32 %v14425_v58, %v3488_v33  ;;  %v3493_v33 = vrot.slane %v12874_v52, 2  ;;  %v12935_v45 = vsub.f32 %v14436_v60, %v3492_v30 }
0x1abe   :  { %14435 = vst [vmem:[#allocation24_spill] sm:$0xff] %v12930_v8  ;;  %v12943_v14 = vmul.f32 %v12901_v46, %v12901_v46  ;;  %14438 = vst [vmem:[#allocation25_spill] sm:$0xff] %v12950_v23  ;;  %v3602_v58 = vsel %vm330_vm1, %v3601_v35, %v3600_v54  ;;  %v12955_v30 = vmul.f32 %v12913_v21, %v12913_v21  ;;  %v3605_v50 = vrot.slane %v3553_v39, 4  ;;  %v14444_v21 = vld [vmem:[#allocation87_spill] sm:$0xff] }
0x1abf   :  { %14426 = vst [vmem:[#allocation101_spill] sm:$0xff] %v12904_v62  ;;  %14437 = vst [vmem:[#allocation21_spill] sm:$0xff] %v12935_v45  ;;  %v12947_v38 = vmul.f32 %v12904_v62, %v12904_v62  ;;  %v12960_v19 = vsub.f32 %v14439_v47, %v3493_v33  ;;  %v12965_v41 = vsub.f32 %v12225_v16, %v3484_v10  ;;  %v3496_v16 = vrot.slane %v12874_v52, 5 }
0x1ac0   :  { %v3554_v63 = vmul.f32 %v12930_v8, %v12930_v8  ;;  %v3566_v35 = vmul.f32 %v12935_v45, %v12935_v45  ;;  %v12974_v33 = vmul.f32 %v12916_v1, %v12916_v1  ;;  %v3497_v10 = vrot.slane %v12874_v52, 6  ;;  %v14455_v8 = vld [vmem:[#allocation13_spill] sm:$0xff] }
0x1ac1   :  { %14440 = vst [vmem:[#allocation30_spill] sm:$0xff] %v12960_v19  ;;  %14441 = vst [vmem:[#allocation26_spill] sm:$0xff] %v12965_v41  ;;  %v12983_v62 = vsub.f32 %v14444_v21, %v3494_v17  ;;  %v12986_v39 = vsub.f32 %v12243_v44, %v3495_v20  ;;  %v3498_v46 = vrot.slane %v12874_v52, 7  ;;  %v13004_v31 = vsub.f32 %v12295_v12, %v3496_v16 }
0x1ac3   :  { %14445 = vst [vmem:[#allocation27_spill] sm:$0xff] %v12983_v62  ;;  %14446 = vst [vmem:[#allocation37_spill] sm:$0xff] %v12986_v39  ;;  %v13032_v12 = vsub.f32 %v12322_v25, %v3498_v46 }
0x1ac4   :  { %14447 = vst [vmem:[#allocation28_spill] sm:$0xff] %v13004_v31 }
0x1aeb   :  { %v7848_v56 = vpop.f32.mrb[80].mxu1 }
0x1aec   :  { %v7849_v49 = vpop.f32.mrb[81].mxu1 }
0x1aed   :  { %v7850_v11 = vadd.f32 %v7849_v49, %v7848_v56  ;;  %v3603_v56 = vrot.slane %v3552_v51, 5 }
0x1aee   :  { %v7892_v26 = vpop.f32.mrb[92].mxu0 }
0x1aef   :  { %v7893_v6 = vpop.f32.mrb[93].mxu0 }
0x1af0   :  { %v7894_v22 = vadd.f32 %v7893_v6, %v7892_v26  ;;  %v3604_v26 = vsel %vm333_vm2, %v3603_v56, %v3602_v58  ;;  %v12992_v56 = vmul.f32 %v12950_v23, %v12950_v23 }
0x1af1   :  { %v3606_v44 = vsel %vm336_vm3, %v3605_v50, %v3604_v26 }
0x1af2   :  { %v12962_v49 = vadd.f32 %v7894_v22, %v7850_v11  ;;  %v7851_v5 = vpop.f32.mrb[82].mxu1  ;;  %v3613_v11 = vrot.slane %v3558_v42, 7  ;;  %v14442_v22 = vld [vmem:[#allocation111_spill] sm:$0xff]  ;;  %v3567_v42 = vmul.f32 %v12960_v19, %v12960_v19 }
0x1af3   :  { %v7895_v51 = vpop.f32.mrb[94].mxu0  ;;  %v7852_v54 = vpop.f32.mrb[83].mxu1  ;;  %v12980_v47 = vsub.f32 %v14442_v22, %v12874_v52  ;;  %v3615_v22 = vrot.slane %v3559_v57, 6 }
0x1af4   :  { %v7853_v60 = vadd.f32 %v7852_v54, %v7851_v5  ;;  %v7896_v6 = vpop.f32.mrb[95].mxu0  ;;  %v12996_v5 = vmul.f32 %v12965_v41, %v12965_v41  ;;  %v3607_v54 = vrot.slane %v3554_v63, 3  ;;  %v3614_v20 = vsel %vm327_vm0, %v3613_v11, %v3557_v61 }
0x1af5   :  { %14443 = vst [vmem:[#allocation31_spill] sm:$0xff] %v12980_v47  ;;  %v7897_v45 = vadd.f32 %v7896_v6, %v7895_v51  ;;  %v3627_v51 = vrot.slane %v3566_v35, 7  ;;  %v3565_v63 = vmul.f32 %v12980_v47, %v12980_v47  ;;  %v13013_v35 = vmul.f32 %v12983_v62, %v12983_v62 }
0x1af6   :  { %v7930_v58 = vpop.f32.mrb[84].mxu1  ;;  %v13017_v61 = vmul.f32 %v12986_v39, %v12986_v39  ;;  %v3629_v57 = vrot.slane %v3567_v42, 6  ;;  %v13024_v16 = vsel %vm339_vm4, %v3607_v54, %v3606_v44 }
0x1af7   :  { %v12998_v6 = vadd.f32 %v7897_v45, %v7853_v60  ;;  %v8282_v21 = vpop.f32.mrb[96].mxu0  ;;  %v7931_v17 = vpop.f32.mrb[85].mxu1  ;;  %v13009_v45 = vsub.f32 %v12310_v43, %v3497_v10  ;;  %v3628_v11 = vsel %vm327_vm0, %v3627_v51, %v3565_v63  ;;  %v13027_v10 = vsel %vm330_vm1, %v3615_v22, %v3614_v20 }
0x1af8   :  { %v7932_v19 = vadd.f32 %v7931_v17, %v7930_v58  ;;  %v6772_v1 = vpop.f32.mrb[97].mxu0  ;;  %v13036_v51 = vmul.f32 %v13004_v31, %v13004_v31  ;;  %v13043_v44 = vsel %vm330_vm1, %v3629_v57, %v3628_v11 }
0x1af9   :  { %14448 = vst [vmem:[#allocation32_spill] sm:$0xff] %v13009_v45  ;;  %v13040_v54 = vmul.f32 %v13009_v45, %v13009_v45 }
0x1afa   :  { %v6688_v52 = vadd.f32 %v7932_v19, %v12847_v24  ;;  %v7933_v26 = vpop.f32.mrb[86].mxu1 }
0x1afb   :  { %v8285_v43 = vpop.f32.mrb[98].mxu0  ;;  %v7934_v60 = vpop.f32.mrb[87].mxu1 }
0x1afc   :  { %v6773_v24 = vadd.f32 %v6772_v1, %v6688_v52  ;;  %v7935_v19 = vadd.f32 %v7934_v60, %v7933_v26  ;;  %v6782_v17 = vpop.f32.mrb[99].mxu0 }
0x1afe   :  { %v6693_v22 = vadd.f32 %v7935_v19, %v12849_v55  ;;  %v7936_v63 = vpop.f32.mrb[88].mxu1  ;;  %v6795_v25 = vrot.slane %v6773_v24, 1  ;;  %v6796_v46 = vrot.slane %v6773_v24, 2  ;;  %v6797_v52 = vrot.slane %v6773_v24, 3 }
0x1aff   :  { %v7937_v26 = vpop.f32.mrb[89].mxu1  ;;  %v6798_v60 = vrot.slane %v6773_v24, 4  ;;  %v6799_v42 = vrot.slane %v6773_v24, 5  ;;  %v6800_v50 = vrot.slane %v6773_v24, 6  ;;  %v6801_v58 = vrot.slane %v6773_v24, 7 }
0x1b00   :  { %v6778_v45 = vadd.f32 %v8282_v21, %v6693_v22  ;;  %v7938_v31 = vadd.f32 %v7937_v26, %v7936_v63  ;;  %v6841_v57 = vadd.f32 %v6773_v24, %v12410_v36  ;;  %v6842_v11 = vadd.f32 %v6795_v25, %v12392_v34 }
0x1b01   :  { %v6843_v20 = vadd.f32 %v6796_v46, %v12395_v37  ;;  %v6844_v1 = vadd.f32 %v6797_v52, %v12398_v32  ;;  %v6845_v55 = vadd.f32 %v6798_v60, %v12401_v28  ;;  %v6846_v19 = vadd.f32 %v6799_v42, %v12413_v29 }
0x1b02   :  { %v6698_v39 = vadd.f32 %v7938_v31, %v12962_v49  ;;  %v7939_v62 = vpop.f32.mrb[90].mxu1  ;;  %v6847_v47 = vadd.f32 %v6800_v50, %v12418_v0  ;;  %v6848_v21 = vadd.f32 %v6801_v58, %v12424_v40  ;;  %v13058_v22 = vadd.f32 %v12863_v2, %v6841_v57 }
0x1b03   :  { %v7940_v36 = vpop.f32.mrb[91].mxu1  ;;  %v13061_v34 = vadd.f32 %v12863_v2, %v6842_v11  ;;  %v13064_v37 = vadd.f32 %v12863_v2, %v6843_v20  ;;  %v13067_v32 = vadd.f32 %v12863_v2, %v6844_v1  ;;  %v13070_v28 = vadd.f32 %v12863_v2, %v6845_v55 }
0x1b04   :  { %v13072_v29 = vadd.f32 %v6782_v17, %v6698_v39  ;;  %v7941_v0 = vadd.f32 %v7940_v36, %v7939_v62  ;;  %v13075_v40 = vadd.f32 %v12863_v2, %v6846_v19  ;;  %v13078_v31 = vadd.f32 %v12863_v2, %v6847_v47 }
0x1b05   :  { %v13081_v49 = vadd.f32 %v12863_v2, %v6848_v21  ;;  %v6916_v50 = vrot.slane %v13061_v34, 7  ;;  %v6918_v58 = vrot.slane %v13064_v37, 6  ;;  %v6920_v42 = vrot.slane %v13067_v32, 5  ;;  %v14449_v21 = vld [vmem:[#allocation3_spill] sm:$0xff] }
0x1b06   :  { %v6703_v24 = vadd.f32 %v7941_v0, %v12998_v6  ;;  %v6922_v39 = vrot.slane %v13070_v28, 4  ;;  %v6924_v62 = vrot.slane %v13075_v40, 3  ;;  %v6926_v17 = vrot.slane %v13078_v31, 2  ;;  %v14450_v0 = vld [vmem:[#allocation86_spill] sm:$0xff] }
0x1b07   :  { %v6917_v47 = vsel %vm327_vm0, %v6916_v50, %v13058_v22  ;;  %v6928_v20 = vrot.slane %v13081_v49, 1  ;;  %v6802_v1 = vrot.slane %v6778_v45, 1  ;;  %v6803_v63 = vrot.slane %v6778_v45, 2 }
0x1b08   :  { %v13093_v25 = vadd.f32 %v8285_v43, %v6703_v24  ;;  %v6919_v46 = vsel %vm330_vm1, %v6918_v58, %v6917_v47  ;;  %v6804_v52 = vrot.slane %v6778_v45, 3  ;;  %v6805_v26 = vrot.slane %v6778_v45, 4  ;;  %v14451_v24 = vld [vmem:[#allocation5_spill] sm:$0xff]  ;;  %v14452_v58 = vld [vmem:[#allocation6_spill] sm:$0xff] }
0x1b09   :  { %v6921_v6 = vsel %vm333_vm2, %v6920_v42, %v6919_v46  ;;  %v6806_v60 = vrot.slane %v6778_v45, 5  ;;  %v6807_v57 = vrot.slane %v6778_v45, 6  ;;  %v6808_v11 = vrot.slane %v6778_v45, 7  ;;  %v14454_v46 = vld [vmem:[#allocation11_spill] sm:$0xff] }
0x1b0a   :  { %v6923_v55 = vsel %vm336_vm3, %v6922_v39, %v6921_v6  ;;  %v6849_v19 = vadd.f32 %v6778_v45, %v12362_v18  ;;  %v6850_v36 = vadd.f32 %v6802_v1, %v14449_v21  ;;  %v6851_v50 = vadd.f32 %v6803_v63, %v14450_v0 }
0x1b0b   :  { %v6925_v43 = vsel %vm339_vm4, %v6924_v62, %v6923_v55  ;;  %v6852_v27 = vadd.f32 %v6804_v52, %v14451_v24  ;;  %v6853_v47 = vadd.f32 %v6805_v26, %v14452_v58  ;;  %v6854_v41 = vadd.f32 %v6806_v60, %v14453_v59  ;;  %v14457_v58 = vld [vmem:[#allocation10_spill] sm:$0xff] }
0x1b0c   :  { %v6927_v42 = vsel %vm342_vm5, %v6926_v17, %v6925_v43  ;;  %v6855_v23 = vadd.f32 %v6807_v57, %v14454_v46  ;;  %v6856_v39 = vadd.f32 %v6808_v11, %v14455_v8  ;;  %v14456_v18 = vrot.slane %v13013_v35, 5 }
0x1b0d   :  { %v6929_v1 = vsel %vm345_vm6, %v6928_v20, %v6927_v42  ;;  %v13114_v62 = vadd.f32 %v12863_v2, %v6850_v36  ;;  %v13117_v63 = vadd.f32 %v12863_v2, %v6851_v50  ;;  %v13120_v59 = vadd.f32 %v12863_v2, %v6852_v27  ;;  %v14458_v42 = vld [vmem:[#allocation15_spill] sm:$0xff] }
0x1b0e   :  { %v3632_v45 = vsel %vm333_vm2, %v14456_v18, %v13043_v44  ;;  %v6962_v17 = vsel %vm375_vm7, %v6929_v1, 0.0  ;;  %v13124_v8 = vadd.f32 %v12863_v2, %v6853_v47  ;;  %v13127_v35 = vadd.f32 %v12863_v2, %v6854_v41  ;;  %v14459_v18 = vld [vmem:[#allocation18_spill] sm:$0xff] }
0x1b0f   :  { %v13130_v44 = vadd.f32 %v12863_v2, %v6855_v23  ;;  %6963 = vadd.xlane.f32.xlu0 %v6962_v17  ;;  %v13133_v20 = vadd.f32 %v12863_v2, %v6849_v19  ;;  %v13136_v52 = vadd.f32 %v12863_v2, %v6856_v39  ;;  %v6930_v27 = vrot.slane %v13114_v62, 7  ;;  %v14460_v17 = vld [vmem:[#allocation7_spill] sm:$0xff] }
0x1b10   :  { %v6932_v26 = vrot.slane %v13117_v63, 6  ;;  %v6934_v6 = vrot.slane %v13120_v59, 5  ;;  %v6936_v60 = vrot.slane %v13124_v8, 4  ;;  %v6938_v41 = vrot.slane %v13127_v35, 3 }
0x1b11   :  { %v6809_v23 = vrot.slane %v13072_v29, 1  ;;  %v6931_v57 = vsel %vm327_vm0, %v6930_v27, %v13133_v20  ;;  %v6940_v11 = vrot.slane %v13130_v44, 2  ;;  %v6810_v55 = vrot.slane %v13072_v29, 2 }
0x1b12   :  { %v6811_v19 = vrot.slane %v13072_v29, 3  ;;  %v6933_v21 = vsel %vm330_vm1, %v6932_v26, %v6931_v57  ;;  %v6812_v36 = vrot.slane %v13072_v29, 4  ;;  %v6813_v0 = vrot.slane %v13072_v29, 5  ;;  %v14461_v26 = vld [vmem:[#allocation8_spill] sm:$0xff] }
0x1b13   :  { %v6814_v50 = vrot.slane %v13072_v29, 6  ;;  %v6935_v43 = vsel %vm333_vm2, %v6934_v6, %v6933_v21  ;;  %v6815_v24 = vrot.slane %v13072_v29, 7  ;;  %v6857_v47 = vadd.f32 %v13072_v29, %v14457_v58  ;;  %v14462_v6 = vld [vmem:[#allocation12_spill] sm:$0xff] }
0x1b14   :  { %v6858_v46 = vadd.f32 %v6809_v23, %v14458_v42  ;;  %v6937_v39 = vsel %vm336_vm3, %v6936_v60, %v6935_v43  ;;  %v6859_v1 = vadd.f32 %v6810_v55, %v14459_v18  ;;  %v6860_v27 = vadd.f32 %v6811_v19, %v14460_v17  ;;  %v14464_v58 = vld [vmem:[#allocation16_spill] sm:$0xff] }
0x1b15   :  { %v6861_v57 = vadd.f32 %v6812_v36, %v14461_v26  ;;  %v6939_v53 = vsel %vm339_vm4, %v6938_v41, %v6937_v39  ;;  %v6942_v4 = vrot.slane %v13136_v52, 1  ;;  %v6862_v21 = vadd.f32 %v6813_v0, %v14462_v6 }
0x1b16   :  { %v6863_v3 = vadd.f32 %v6814_v50, %v14463_v7  ;;  %v6941_v29 = vsel %vm342_vm5, %v6940_v11, %v6939_v53  ;;  %v6864_v23 = vadd.f32 %v6815_v24, %v14464_v58  ;;  %v13169_v60 = vadd.f32 %v12863_v2, %v6858_v46 }
0x1b17   :  { %v13172_v55 = vadd.f32 %v12863_v2, %v6859_v1  ;;  %v6943_v19 = vsel %vm345_vm6, %v6942_v4, %v6941_v29  ;;  %v13176_v41 = vadd.f32 %v12863_v2, %v6860_v27  ;;  %v13179_v36 = vadd.f32 %v12863_v2, %v6861_v57 }
0x1b18   :  { %v14465_v7 = vrot.slane %v13017_v61, 4  ;;  %v6965_v11 = vsel %vm375_vm7, %v6943_v19, 0.0  ;;  %v13186_v0 = vadd.f32 %v12863_v2, %v6857_v47  ;;  %v13189_v50 = vadd.f32 %v12863_v2, %v6862_v21  ;;  %v14469_v21 = vld [vmem:[#allocation17_spill] sm:$0xff] }
0x1b19   :  { %v6944_v4 = vrot.slane %v13169_v60, 7  ;;  %6966 = vadd.xlane.f32.xlu1 %v6965_v11  ;;  %v13193_v43 = vadd.f32 %v12863_v2, %v6863_v3  ;;  %v6946_v24 = vrot.slane %v13172_v55, 6  ;;  %v14466_v61 = vrot.slane %v12992_v56, 2 }
0x1b1a   :  { %v3634_v53 = vsel %vm336_vm3, %v14465_v7, %v3632_v45  ;;  %v3635_v42 = vrot.slane %v13036_v51, 3  ;;  %v13202_v47 = vadd.f32 %v12863_v2, %v6864_v23  ;;  %v6948_v39 = vrot.slane %v13176_v41, 5 }
0x1b1b   :  { %v3610_v45 = vsel %vm342_vm5, %v14466_v61, %v13024_v16  ;;  %v6945_v46 = vsel %vm327_vm0, %v6944_v4, %v13186_v0  ;;  %v14467_v3 = vrot.slane %v12943_v14, 5  ;;  %v6950_v56 = vrot.slane %v13179_v36, 4 }
0x1b1c   :  { %v6947_v1 = vsel %vm330_vm1, %v6946_v24, %v6945_v46  ;;  %v3572_v16 = vmul.f32 %v13032_v12, %v13032_v12  ;;  %v3636_v51 = vsel %vm339_vm4, %v3635_v42, %v3634_v53  ;;  %v6952_v27 = vrot.slane %v13189_v50, 3 }
0x1b1d   :  { %v3618_v18 = vsel %vm333_vm2, %v14467_v3, %v13027_v10  ;;  %v6949_v17 = vsel %vm333_vm2, %v6948_v39, %v6947_v1  ;;  %v14468_v26 = vrot.slane %v12996_v5, 1  ;;  %v3637_v14 = vrot.slane %v13040_v54, 2  ;;  %3468 = vadd.xlane.f32.xlu1 %v12883_v48 }
0x1b1e   :  { %v6951_v10 = vsel %vm336_vm3, %v6950_v56, %v6949_v17  ;;  %v6954_v6 = vrot.slane %v13193_v43, 2  ;;  %v6865_v29 = vadd.f32 %v13093_v25, %v14469_v21  ;;  %v14470_v58 = vrot.slane %v12947_v38, 4 }
0x1b1f   :  { %v3612_v57 = vsel %vm345_vm6, %v14468_v26, %v3610_v45  ;;  %v6953_v19 = vsel %vm339_vm4, %v6952_v27, %v6951_v10  ;;  %v6956_v5 = vrot.slane %v13202_v47, 1  ;;  %v3621_v7 = vrot.slane %v12955_v30, 3 }
0x1b20   :  { %v3620_v23 = vsel %vm336_vm3, %v14470_v58, %v3618_v18  ;;  %v3638_v54 = vsel %vm342_vm5, %v3637_v14, %v3636_v51  ;;  %v6955_v53 = vsel %vm342_vm5, %v6954_v6, %v6953_v19  ;;  %v3639_v11 = vrot.slane %v3572_v16, 1 }
0x1b21   :  { %v6957_v48 = vsel %vm345_vm6, %v6956_v5, %v6955_v53  ;;  %v3645_v4 = vsel %vm375_vm7, %v3612_v57, 0.0  ;;  %v3564_v38 = vmul.f32 %v12920_v13, %v12920_v13  ;;  %v3622_v25 = vsel %vm339_vm4, %v3621_v7, %v3620_v23 }
0x1b22   :  { %v6968_v24 = vsel %vm375_vm7, %v6957_v48, 0.0  ;;  %v13242_v61 = vadd.f32 %v12863_v2, %v6865_v29  ;;  %3646 = vadd.xlane.f32.xlu1 %v3645_v4  ;;  %v3623_v30 = vrot.slane %v12974_v33, 2  ;;  %v3640_v45 = vsel %vm345_vm6, %v3639_v11, %v3638_v54 }
0x1b23   :  { %6969 = vadd.xlane.f32.xlu0 %v6968_v24  ;;  %v3625_v46 = vrot.slane %v3564_v38, 1  ;;  %v3651_v39 = vsel %vm375_vm7, %v3640_v45, 0.0 }
0x1b24   :  { %v3624_v42 = vsel %vm342_vm5, %v3623_v30, %v3622_v25  ;;  %v6971_v3 = vsel %vm1873_vm13, %v13242_v61, 0.0 }
0x1b25   :  { %v3626_v18 = vsel %vm345_vm6, %v3625_v46, %v3624_v42 }
0x1b26   :  { %3652 = vadd.xlane.f32.xlu1 %v3651_v39  ;;  %v3648_v2 = vsel %vm375_vm7, %v3626_v18, 0.0 }
0x1b27   :  { %6972 = vadd.xlane.f32.xlu0 %v6971_v3 }
0x1b2b   :  { %3649 = vadd.xlane.f32.xlu0 %v3648_v2 }
0x1b9c   :  { %v6964_v1 = vpop.xlane.xlu0 %6963 }
0x1b9d   :  { %v6974_v33 = vmul.f32 0.03125, %v6964_v1 }
0x1b9f   :  { %v6982_v56 = vrot.slane %v6974_v33, 1  ;;  %v6983_v16 = vrot.slane %v6974_v33, 2  ;;  %v6984_v51 = vrot.slane %v6974_v33, 3  ;;  %v6985_v17 = vrot.slane %v6974_v33, 4 }
0x1ba0   :  { %v6986_v27 = vrot.slane %v6974_v33, 5  ;;  %v6987_v26 = vrot.slane %v6974_v33, 6  ;;  %v6988_v57 = vrot.slane %v6974_v33, 7  ;;  %v13253_v14 = vsub.f32 %v13058_v22, %v6974_v33 }
0x1ba1   :  { %v13256_v10 = vsub.f32 %v13061_v34, %v6982_v56  ;;  %v13259_v6 = vsub.f32 %v13064_v37, %v6983_v16  ;;  %v13262_v21 = vsub.f32 %v13067_v32, %v6984_v51  ;;  %v13265_v29 = vsub.f32 %v13070_v28, %v6985_v17 }
0x1ba2   :  { %v13268_v58 = vsub.f32 %v13075_v40, %v6986_v27  ;;  %v13271_v23 = vsub.f32 %v13078_v31, %v6987_v26  ;;  %v13274_v22 = vsub.f32 %v13081_v49, %v6988_v57  ;;  %v7053_v49 = vmul.f32 %v13253_v14, %v13253_v14 }
0x1ba3   :  { %v7054_v34 = vmul.f32 %v13256_v10, %v13256_v10  ;;  %v7055_v37 = vmul.f32 %v13259_v6, %v13259_v6  ;;  %v7056_v32 = vmul.f32 %v13262_v21, %v13262_v21  ;;  %v7057_v28 = vmul.f32 %v13265_v29, %v13265_v29 }
0x1ba4   :  { %v7058_v40 = vmul.f32 %v13268_v58, %v13268_v58  ;;  %v7059_v31 = vmul.f32 %v13271_v23, %v13271_v23  ;;  %v7060_v53 = vmul.f32 %v13274_v22, %v13274_v22 }
0x1ba5   :  { %v7103_v19 = vrot.slane %v7054_v34, 7  ;;  %v7105_v5 = vrot.slane %v7055_v37, 6  ;;  %v7107_v48 = vrot.slane %v7056_v32, 5  ;;  %v7109_v38 = vrot.slane %v7057_v28, 4 }
0x1ba6   :  { %v6967_v7 = vpop.xlane.xlu1 %6966  ;;  %v7111_v25 = vrot.slane %v7058_v40, 3  ;;  %v7113_v24 = vrot.slane %v7059_v31, 2  ;;  %v7115_v56 = vrot.slane %v7060_v53, 1 }
0x1ba7   :  { %v6975_v54 = vmul.f32 0.03125, %v6967_v7  ;;  %v7104_v11 = vsel %vm327_vm0, %v7103_v19, %v7053_v49 }
0x1ba8   :  { %v7106_v4 = vsel %vm330_vm1, %v7105_v5, %v7104_v11 }
0x1ba9   :  { %v7108_v30 = vsel %vm333_vm2, %v7107_v48, %v7106_v4  ;;  %v6989_v45 = vrot.slane %v6975_v54, 1  ;;  %v6990_v42 = vrot.slane %v6975_v54, 2  ;;  %v6991_v46 = vrot.slane %v6975_v54, 3 }
0x1baa   :  { %v3469_v39 = vpop.xlane.xlu1 %3468  ;;  %v7110_v3 = vsel %vm336_vm3, %v7109_v38, %v7108_v30  ;;  %v6992_v18 = vrot.slane %v6975_v54, 4  ;;  %v6993_v2 = vrot.slane %v6975_v54, 5  ;;  %v6994_v1 = vrot.slane %v6975_v54, 6 }
0x1bab   :  { %v7112_v33 = vsel %vm339_vm4, %v7111_v25, %v7110_v3  ;;  %v6995_v16 = vrot.slane %v6975_v54, 7  ;;  %v13299_v17 = vsub.f32 %v13114_v62, %v6989_v45  ;;  %v13302_v27 = vsub.f32 %v13117_v63, %v6990_v42 }
0x1bac   :  { %v7114_v51 = vsel %vm342_vm5, %v7113_v24, %v7112_v33  ;;  %v13305_v26 = vsub.f32 %v13120_v59, %v6991_v46  ;;  %v13309_v34 = vsub.f32 %v13133_v20, %v6975_v54  ;;  %v13312_v37 = vsub.f32 %v13124_v8, %v6992_v18 }
0x1bad   :  { %v7116_v57 = vsel %vm345_vm6, %v7115_v56, %v7114_v51  ;;  %v13315_v32 = vsub.f32 %v13127_v35, %v6993_v2  ;;  %v13319_v63 = vsub.f32 %v13130_v44, %v6994_v1  ;;  %v13322_v59 = vsub.f32 %v13136_v52, %v6995_v16 }
0x1bae   :  { %v7149_v62 = vsel %vm375_vm7, %v7116_v57, 0.0  ;;  %v7062_v20 = vmul.f32 %v13299_v17, %v13299_v17  ;;  %v7063_v8 = vmul.f32 %v13302_v27, %v13302_v27  ;;  %v7064_v35 = vmul.f32 %v13305_v26, %v13305_v26 }
0x1baf   :  { %v3647_v28 = vpop.xlane.xlu1 %3646  ;;  %7150 = vadd.xlane.f32.xlu0 %v7149_v62  ;;  %v7065_v44 = vmul.f32 %v13312_v37, %v13312_v37  ;;  %v7066_v52 = vmul.f32 %v13315_v32, %v13315_v32  ;;  %v7067_v19 = vmul.f32 %v13319_v63, %v13319_v63  ;;  %v7061_v7 = vmul.f32 %v13309_v34, %v13309_v34 }
0x1bb0   :  { %v6970_v40 = vpop.xlane.xlu0 %6969  ;;  %v3657_v31 = vmul.f32 0.03125, %v3647_v28  ;;  %v7117_v54 = vrot.slane %v7062_v20, 7  ;;  %v7119_v53 = vrot.slane %v7063_v8, 6  ;;  %v3473_v11 = vmul.f32 0.03125, %v3469_v39 }
0x1bb1   :  { %v6976_v49 = vmul.f32 0.03125, %v6970_v40  ;;  %v7068_v4 = vmul.f32 %v13322_v59, %v13322_v59  ;;  %v7121_v38 = vrot.slane %v7064_v35, 5  ;;  %v7123_v25 = vrot.slane %v7065_v44, 4 }
0x1bb2   :  { %v3661_v5 = vadd.f32 1e-05, %v3657_v31  ;;  %v7118_v45 = vsel %vm327_vm0, %v7117_v54, %v7061_v7  ;;  %v7125_v42 = vrot.slane %v7066_v52, 3  ;;  %v7127_v3 = vrot.slane %v7067_v19, 2 }
0x1bb3   :  { %v3653_v48 = vpop.xlane.xlu1 %3652  ;;  %v7120_v46 = vsel %vm330_vm1, %v7119_v53, %v7118_v45  ;;  %v6996_v18 = vrot.slane %v6976_v49, 1  ;;  %v6997_v2 = vrot.slane %v6976_v49, 2  ;;  %v6998_v33 = vrot.slane %v6976_v49, 3 }
0x1bb4   :  { %v6973_v24 = vpop.xlane.xlu0 %6972  ;;  %9198 = vrsqrt.f32 %v3661_v5  ;;  %v3659_v30 = vmul.f32 0.03125, %v3653_v48  ;;  %v7122_v39 = vsel %vm333_vm2, %v7121_v38, %v7120_v46  ;;  %v6999_v56 = vrot.slane %v6976_v49, 4  ;;  %v14488_v38 = vld [vmem:[#allocation109_spill] sm:$0xff] }
0x1bb5   :  { %v7124_v16 = vsel %vm336_vm3, %v7123_v25, %v7122_v39  ;;  %v7129_v51 = vrot.slane %v7068_v4, 1  ;;  %v7000_v57 = vrot.slane %v6976_v49, 5  ;;  %v7001_v28 = vrot.slane %v6976_v49, 6  ;;  %v13416_v39 = vld [vmem:[%s13819_s13] ss:$0 sm:$0xff] }
0x1bb6   :  { %v3663_v1 = vadd.f32 1e-05, %v3659_v30  ;;  %v7126_v40 = vsel %vm339_vm4, %v7125_v42, %v7124_v16  ;;  %v7002_v31 = vrot.slane %v6976_v49, 7  ;;  %v13346_v20 = vsub.f32 %v13186_v0, %v6976_v49  ;;  %v14477_v16 = vld [vmem:[#allocation82_spill] sm:$0xff] }
0x1bb7   :  { %v7128_v35 = vsel %vm342_vm5, %v7127_v3, %v7126_v40  ;;  %v13350_v44 = vsub.f32 %v13169_v60, %v6996_v18  ;;  %v13353_v52 = vsub.f32 %v13172_v55, %v6997_v2  ;;  %v13357_v5 = vsub.f32 %v13176_v41, %v6998_v33  ;;  %v14476_v33 = vld [vmem:[#allocation81_spill] sm:$0xff] }
0x1bb8   :  { %v3650_v62 = vpop.xlane.xlu0 %3649  ;;  %9200 = vrsqrt.f32 %v3663_v1  ;;  %v7130_v19 = vsel %vm345_vm6, %v7129_v51, %v7128_v35  ;;  %v13360_v7 = vsub.f32 %v13179_v36, %v6999_v56  ;;  %v13363_v0 = vsub.f32 %v13189_v50, %v7000_v57  ;;  %v14478_v57 = vld [vmem:[#allocation113_spill] sm:$0xff] }
0x1bb9   :  { %v3658_v8 = vmul.f32 0.03125, %v3650_v62  ;;  %14471 = vst [vmem:[#allocation29_spill] sm:$0xff] %v13353_v52  ;;  %14472 = vst [vmem:[#allocation39_spill] sm:$0xff] %v13357_v5  ;;  %v13366_v49 = vsub.f32 %v12866_v15, %v3473_v11  ;;  %v7152_v60 = vsel %vm375_vm7, %v7130_v19, 0.0  ;;  %v13370_v55 = vsub.f32 %v13193_v43, %v7001_v28  ;;  %v14479_v62 = vld [vmem:[#allocation108_spill] sm:$0xff]  ;;  %v14481_v19 = vld [vmem:[#allocation25_spill] sm:$0xff] }
0x1bba   :  { %14473 = vst [vmem:[#allocation33_spill] sm:$0xff] %v13360_v7  ;;  %14474 = vst [vmem:[#allocation34_spill] sm:$0xff] %v13363_v0  ;;  %v13372_v53 = vmul.f32 0.03125, %v6973_v24  ;;  %7153 = vadd.xlane.f32.xlu1 %v7152_v60  ;;  %v13375_v41 = vsub.f32 %v13202_v47, %v7002_v31  ;;  %v13379_v36 = vmul.f32 %v13350_v44, %v13350_v44  ;;  %v13410_v24 = vld [vmem:[%s13818_s12] ss:$0 sm:$0xff] }
0x1bbb   :  { %v3662_v54 = vadd.f32 1e-05, %v3658_v8  ;;  %14475 = vst [vmem:[#allocation40_spill] sm:$0xff] %v13370_v55  ;;  %v13383_v15 = vmul.f32 %v13353_v52, %v13353_v52  ;;  %v13387_v50 = vmul.f32 %v13346_v20, %v13346_v20  ;;  %v13391_v43 = vmul.f32 %v13357_v5, %v13357_v5  ;;  %v14480_v8 = vld [vmem:[#allocation24_spill] sm:$0xff] }
0x1bbc   :  { %v13395_v47 = vmul.f32 %v13360_v7, %v13360_v7  ;;  %v13399_v48 = vmul.f32 %v13363_v0, %v13363_v0  ;;  %v13403_v4 = vmul.f32 %v13370_v55, %v13370_v55 }
0x1bbd   :  { %9202 = vrsqrt.f32 %v3662_v54 }
0x1bbe   :  { %v9199_v11 = vpop.eup %9198 }
0x1bbf   :  { %v3673_v30 = vrot.slane %v9199_v11, 1  ;;  %v3674_v45 = vrot.slane %v9199_v11, 2  ;;  %v3675_v42 = vrot.slane %v9199_v11, 3  ;;  %v3676_v46 = vrot.slane %v9199_v11, 4 }
0x1bc0   :  { %v3677_v3 = vrot.slane %v9199_v11, 5  ;;  %v3678_v18 = vrot.slane %v9199_v11, 6  ;;  %v3679_v2 = vrot.slane %v9199_v11, 7  ;;  %v3719_v1 = vmul.f32 %v9199_v11, %v12879_v9  ;;  %v14482_v9 = vld [vmem:[#allocation26_spill] sm:$0xff] }
0x1bc1   :  { %v3720_v56 = vmul.f32 %v3673_v30, %v14476_v33  ;;  %v3721_v51 = vmul.f32 %v3674_v45, %v14477_v16  ;;  %v3722_v28 = vmul.f32 %v3675_v42, %v14478_v57  ;;  %v3723_v40 = vmul.f32 %v3676_v46, %v14479_v62 }
0x1bc2   :  { %v13422_v31 = vpop.eup %9200  ;;  %v3724_v35 = vmul.f32 %v3677_v3, %v14480_v8  ;;  %v3725_v54 = vmul.f32 %v3678_v18, %v14481_v19  ;;  %v3726_v60 = vmul.f32 %v3679_v2, %v14482_v9  ;;  %v3750_v11 = vmul.f32 %v13410_v24, %v3719_v1 }
0x1bc3   :  { %v3751_v25 = vmul.f32 %v13410_v24, %v3720_v56  ;;  %v3752_v30 = vmul.f32 %v13410_v24, %v3721_v51  ;;  %v3753_v45 = vmul.f32 %v13410_v24, %v3722_v28  ;;  %v3754_v42 = vmul.f32 %v13410_v24, %v3723_v40 }
0x1bc4   :  { %v3755_v46 = vmul.f32 %v13410_v24, %v3724_v35  ;;  %v3756_v33 = vmul.f32 %v13410_v24, %v3725_v54  ;;  %v3757_v3 = vmul.f32 %v13410_v24, %v3726_v60  ;;  %v3781_v18 = vadd.f32 %v13416_v39, %v3750_v11 }
0x1bc5   :  { %v3782_v2 = vadd.f32 %v13416_v39, %v3751_v25  ;;  %v3783_v1 = vadd.f32 %v13416_v39, %v3752_v30  ;;  %v3784_v56 = vadd.f32 %v13416_v39, %v3753_v45  ;;  %v3785_v16 = vadd.f32 %v13416_v39, %v3754_v42 }
0x1bc6   :  { %v3786_v51 = vadd.f32 %v13416_v39, %v3755_v46  ;;  %v3787_v57 = vadd.f32 %v13416_v39, %v3756_v33  ;;  %v3788_v28 = vadd.f32 %v13416_v39, %v3757_v3  ;;  %3806 = vst.msk [vmem:[%s13820_s14] sm:$0x1] %vm1873_vm13, %v3781_v18  ;;  %v3687_v62 = vrot.slane %v13422_v31, 1  ;;  %v14483_v46 = vld [vmem:[#allocation83_spill] sm:$0xff] }
0x1bc7   :  { %v9203_v25 = vpop.eup %9202  ;;  %3807 = vst.msk [vmem:[%s13820_s14 + $0x2] sm:$0x1] %vm1873_vm13, %v3782_v2  ;;  %3808 = vst.msk [vmem:[%s13820_s14 + $0x4] sm:$0x1] %vm1873_vm13, %v3783_v1  ;;  %v3688_v40 = vrot.slane %v13422_v31, 2  ;;  %v3689_v8 = vrot.slane %v13422_v31, 3 }
0x1bc8   :  { %3809 = vst.msk [vmem:[%s13820_s14 + $0x6] sm:$0x1] %vm1873_vm13, %v3784_v56  ;;  %3810 = vst.msk [vmem:[%s13820_s14 + $0x8] sm:$0x1] %vm1873_vm13, %v3785_v16  ;;  %v3690_v35 = vrot.slane %v13422_v31, 4  ;;  %v3691_v19 = vrot.slane %v13422_v31, 5  ;;  %v3727_v33 = vmul.f32 %v9203_v25, %v14483_v46 }
0x1bc9   :  { %3811 = vst.msk [vmem:[%s13820_s14 + $0xa] sm:$0x1] %vm1873_vm13, %v3786_v51  ;;  %3812 = vst.msk [vmem:[%s13820_s14 + $0xc] sm:$0x1] %vm1873_vm13, %v3787_v57  ;;  %v3680_v54 = vrot.slane %v9203_v25, 1  ;;  %v3681_v9 = vrot.slane %v9203_v25, 2 }
0x1bca   :  { %3813 = vst.msk [vmem:[%s13820_s14 + $0xe] sm:$0x1] %vm1873_vm13, %v3788_v28  ;;  %v3682_v60 = vrot.slane %v9203_v25, 3  ;;  %v3683_v11 = vrot.slane %v9203_v25, 4  ;;  %v3684_v30 = vrot.slane %v9203_v25, 5  ;;  %v3685_v45 = vrot.slane %v9203_v25, 6 }
0x1bcb   :  { %v3686_v42 = vrot.slane %v9203_v25, 7  ;;  %v14484_v3 = vld [vmem:[#allocation91_spill] sm:$0xff]  ;;  %v14485_v2 = vld [vmem:[#allocation100_spill] sm:$0xff]  ;;  %v14487_v51 = vld [vmem:[#allocation101_spill] sm:$0xff]  ;;  %v3758_v5 = vmul.f32 %v13410_v24, %v3727_v33 }
0x1bcc   :  { %v3728_v18 = vmul.f32 %v3680_v54, %v14484_v3  ;;  %v3729_v1 = vmul.f32 %v3681_v9, %v14485_v2  ;;  %v14486_v56 = vld [vmem:[#allocation107_spill] sm:$0xff]  ;;  %v3731_v57 = vmul.f32 %v3683_v11, %v14487_v51  ;;  %v3732_v55 = vmul.f32 %v3684_v30, %v14488_v38  ;;  %v14489_v28 = vld [vmem:[#allocation22_spill] sm:$0xff] }
0x1bcd   :  { %v3730_v16 = vmul.f32 %v3682_v60, %v14486_v56  ;;  %v3733_v0 = vmul.f32 %v3685_v45, %v14489_v28  ;;  %v3734_v7 = vmul.f32 %v3686_v42, %v12920_v13  ;;  %v3789_v30 = vadd.f32 %v13416_v39, %v3758_v5  ;;  %v14496_v28 = vld [vmem:[#allocation32_spill] sm:$0xff] }
0x1bce   :  { %v3759_v52 = vmul.f32 %v13410_v24, %v3728_v18  ;;  %v3760_v25 = vmul.f32 %v13410_v24, %v3729_v1  ;;  %v3762_v9 = vmul.f32 %v13410_v24, %v3731_v57  ;;  %v3763_v60 = vmul.f32 %v13410_v24, %v3732_v55  ;;  %v14491_v18 = vld [vmem:[#allocation21_spill] sm:$0xff]  ;;  %v14492_v1 = vld [vmem:[#allocation30_spill] sm:$0xff] }
0x1bcf   :  { %v3761_v54 = vmul.f32 %v13410_v24, %v3730_v16  ;;  %v3764_v11 = vmul.f32 %v13410_v24, %v3733_v0  ;;  %v3765_v38 = vmul.f32 %v13410_v24, %v3734_v7  ;;  %3814 = vst.msk [vmem:[%s13820_s14 + $0x10] sm:$0x1] %vm1873_vm13, %v3789_v30  ;;  %v3692_v5 = vrot.slane %v13422_v31, 6  ;;  %v14490_v7 = vld [vmem:[#allocation31_spill] sm:$0xff] }
0x1bd0   :  { %v3790_v13 = vadd.f32 %v13416_v39, %v3759_v52  ;;  %v3791_v45 = vadd.f32 %v13416_v39, %v3760_v25  ;;  %v3793_v46 = vadd.f32 %v13416_v39, %v3762_v9  ;;  %v3794_v33 = vadd.f32 %v13416_v39, %v3763_v60 }
0x1bd1   :  { %v3792_v42 = vadd.f32 %v13416_v39, %v3761_v54  ;;  %v3795_v3 = vadd.f32 %v13416_v39, %v3764_v11  ;;  %v3796_v55 = vadd.f32 %v13416_v39, %v3765_v38  ;;  %v3693_v52 = vrot.slane %v13422_v31, 7 }
0x1bd2   :  { %3815 = vst.msk [vmem:[%s13820_s14 + $0x12] sm:$0x1] %vm1873_vm13, %v3790_v13  ;;  %3816 = vst.msk [vmem:[%s13820_s14 + $0x14] sm:$0x1] %vm1873_vm13, %v3791_v45  ;;  %v3735_v0 = vmul.f32 %v13422_v31, %v14490_v7  ;;  %v3736_v2 = vmul.f32 %v3687_v62, %v14491_v18  ;;  %v3737_v56 = vmul.f32 %v3688_v40, %v14492_v1  ;;  %v14493_v31 = vld [vmem:[#allocation27_spill] sm:$0xff]  ;;  %v14494_v62 = vld [vmem:[#allocation37_spill] sm:$0xff] }
0x1bd3   :  { %3817 = vst.msk [vmem:[%s13820_s14 + $0x16] sm:$0x1] %vm1873_vm13, %v3792_v42  ;;  %3818 = vst.msk [vmem:[%s13820_s14 + $0x18] sm:$0x1] %vm1873_vm13, %v3793_v46  ;;  %v3738_v16 = vmul.f32 %v3689_v8, %v14493_v31  ;;  %v3739_v51 = vmul.f32 %v3690_v35, %v14494_v62  ;;  %v14495_v40 = vld [vmem:[#allocation28_spill] sm:$0xff]  ;;  %v3741_v25 = vmul.f32 %v3692_v5, %v14496_v28  ;;  %v7139_v1 = vrot.slane %v13399_v48, 3 }
0x1bd4   :  { %3819 = vst.msk [vmem:[%s13820_s14 + $0x1a] sm:$0x1] %vm1873_vm13, %v3794_v33  ;;  %3820 = vst.msk [vmem:[%s13820_s14 + $0x1c] sm:$0x1] %vm1873_vm13, %v3795_v3  ;;  %v3740_v57 = vmul.f32 %v3691_v19, %v14495_v40  ;;  %v3742_v54 = vmul.f32 %v3693_v52, %v13032_v12  ;;  %v3766_v9 = vmul.f32 %v13410_v24, %v3735_v0  ;;  %v14497_v52 = vrot.slane %v13379_v36, 7 }
0x1bd5   :  { %3821 = vst.msk [vmem:[%s13820_s14 + $0x1e] sm:$0x1] %vm1873_vm13, %v3796_v55  ;;  %v3767_v60 = vmul.f32 %v13410_v24, %v3736_v2  ;;  %v3768_v11 = vmul.f32 %v13410_v24, %v3737_v56  ;;  %v3769_v38 = vmul.f32 %v13410_v24, %v3738_v16  ;;  %v3770_v30 = vmul.f32 %v13410_v24, %v3739_v51 }
0x1bd6   :  { %v3771_v8 = vmul.f32 %v13410_v24, %v3740_v57  ;;  %v3772_v35 = vmul.f32 %v13410_v24, %v3741_v25  ;;  %v3773_v19 = vmul.f32 %v13410_v24, %v3742_v54  ;;  %v3797_v13 = vadd.f32 %v13416_v39, %v3766_v9 }
0x1bd7   :  { %v3798_v12 = vadd.f32 %v13416_v39, %v3767_v60  ;;  %v3799_v45 = vadd.f32 %v13416_v39, %v3768_v11  ;;  %v3800_v42 = vadd.f32 %v13416_v39, %v3769_v38  ;;  %v3801_v46 = vadd.f32 %v13416_v39, %v3770_v30 }
0x1bd8   :  { %v3802_v33 = vadd.f32 %v13416_v39, %v3771_v8  ;;  %v3803_v3 = vadd.f32 %v13416_v39, %v3772_v35  ;;  %v3804_v55 = vadd.f32 %v13416_v39, %v3773_v19  ;;  %3822 = vst.msk [vmem:[%s13820_s14 + $0x20] sm:$0x1] %vm1873_vm13, %v3797_v13  ;;  %v7076_v5 = vmul.f32 %v13375_v41, %v13375_v41 }
0x1bd9   :  { %3823 = vst.msk [vmem:[%s13820_s14 + $0x22] sm:$0x1] %vm1873_vm13, %v3798_v12  ;;  %3824 = vst.msk [vmem:[%s13820_s14 + $0x24] sm:$0x1] %vm1873_vm13, %v3799_v45  ;;  %v7132_v7 = vsel %vm327_vm0, %v14497_v52, %v13387_v50  ;;  %v7135_v0 = vrot.slane %v13391_v43, 5  ;;  %v14498_v36 = vrot.slane %v13383_v15, 6  ;;  %v3573_v18 = vmul.f32 %v13366_v49, %v13366_v49 }
0x1bda   :  { %3825 = vst.msk [vmem:[%s13820_s14 + $0x26] sm:$0x1] %vm1873_vm13, %v3800_v42  ;;  %3826 = vst.msk [vmem:[%s13820_s14 + $0x28] sm:$0x1] %vm1873_vm13, %v3801_v46  ;;  %v7137_v43 = vrot.slane %v13395_v47, 4  ;;  %v13612_v56 = vsub.f32 %v13242_v61, %v13372_v53  ;;  %v7141_v47 = vrot.slane %v13403_v4, 2 }
0x1bdb   :  { %3827 = vst.msk [vmem:[%s13820_s14 + $0x2a] sm:$0x1] %vm1873_vm13, %v3802_v33  ;;  %3828 = vst.msk [vmem:[%s13820_s14 + $0x2c] sm:$0x1] %vm1873_vm13, %v3803_v3  ;;  %v7134_v50 = vsel %vm330_vm1, %v14498_v36, %v7132_v7  ;;  %v3654_v31 = vsel %vm1873_vm13, %v3573_v18, 0.0  ;;  %v7143_v62 = vrot.slane %v7076_v5, 1 }
0x1bdc   :  { %3829 = vst.msk [vmem:[%s13820_s14 + $0x2e] sm:$0x1] %vm1873_vm13, %v3804_v55  ;;  %v7136_v2 = vsel %vm333_vm2, %v7135_v0, %v7134_v50  ;;  %3655 = vadd.xlane.f32.xlu1 %v3654_v31  ;;  %v7077_v61 = vmul.f32 %v13612_v56, %v13612_v56 }
0x1bdd   :  { %v7138_v15 = vsel %vm336_vm3, %v7137_v43, %v7136_v2 }
0x1bde   :  { %v7140_v16 = vsel %vm339_vm4, %v7139_v1, %v7138_v15  ;;  %v7158_v53 = vsel %vm1873_vm13, %v7077_v61, 0.0 }
0x1bdf   :  { %v7142_v51 = vsel %vm342_vm5, %v7141_v47, %v7140_v16 }
0x1be0   :  { %v7144_v40 = vsel %vm345_vm6, %v7143_v62, %v7142_v51 }
0x1be1   :  { %v7155_v48 = vsel %vm375_vm7, %v7144_v40, 0.0 }
0x1be2   :  { %7156 = vadd.xlane.f32.xlu0 %v7155_v48 }
0x1be6   :  { %7159 = vadd.xlane.f32.xlu0 %v7158_v53 }
0x1c3c   :  { %v7151_v4 = vpop.xlane.xlu0 %7150 }
0x1c3d   :  { %v7161_v57 = vmul.f32 0.03125, %v7151_v4 }
0x1c3f   :  { %v7165_v28 = vadd.f32 1e-05, %v7161_v57 }
0x1c41   :  { %9204 = vrsqrt.f32 %v7165_v28 }
0x1c47   :  { %v7154_v25 = vpop.xlane.xlu1 %7153 }
0x1c48   :  { %v7162_v54 = vmul.f32 0.03125, %v7154_v25 }
0x1c4a   :  { %v7166_v60 = vadd.f32 1e-05, %v7162_v54 }
0x1c4b   :  { %v9205_v9 = vpop.eup %9204 }
0x1c4c   :  { %v7177_v11 = vrot.slane %v9205_v9, 1  ;;  %v7178_v38 = vrot.slane %v9205_v9, 2  ;;  %v7179_v30 = vrot.slane %v9205_v9, 3  ;;  %v7180_v8 = vrot.slane %v9205_v9, 4 }
0x1c4d   :  { %v7181_v35 = vrot.slane %v9205_v9, 5  ;;  %v7182_v19 = vrot.slane %v9205_v9, 6  ;;  %v7183_v13 = vrot.slane %v9205_v9, 7  ;;  %v7223_v12 = vmul.f32 %v9205_v9, %v13253_v14 }
0x1c4e   :  { %v7224_v45 = vmul.f32 %v7177_v11, %v13256_v10  ;;  %v7225_v42 = vmul.f32 %v7178_v38, %v13259_v6  ;;  %v7226_v46 = vmul.f32 %v7179_v30, %v13262_v21  ;;  %v7227_v33 = vmul.f32 %v7180_v8, %v13265_v29 }
0x1c4f   :  { %v7228_v3 = vmul.f32 %v7181_v35, %v13268_v58  ;;  %v7229_v55 = vmul.f32 %v7182_v19, %v13271_v23  ;;  %v7230_v5 = vmul.f32 %v7183_v13, %v13274_v22  ;;  %v7248_v52 = vmul.f32 %v13410_v24, %v7223_v12 }
0x1c50   :  { %v7249_v7 = vmul.f32 %v13410_v24, %v7224_v45  ;;  %v7250_v14 = vmul.f32 %v13410_v24, %v7225_v42  ;;  %v7251_v10 = vmul.f32 %v13410_v24, %v7226_v46  ;;  %v7252_v6 = vmul.f32 %v13410_v24, %v7227_v33 }
0x1c51   :  { %v7253_v21 = vmul.f32 %v13410_v24, %v7228_v3  ;;  %v7254_v29 = vmul.f32 %v13410_v24, %v7229_v55  ;;  %v7255_v58 = vmul.f32 %v13410_v24, %v7230_v5  ;;  %v7273_v23 = vadd.f32 %v13416_v39, %v7248_v52 }
0x1c52   :  { %v7274_v22 = vadd.f32 %v13416_v39, %v7249_v7  ;;  %v7275_v0 = vadd.f32 %v13416_v39, %v7250_v14  ;;  %v7276_v36 = vadd.f32 %v13416_v39, %v7251_v10  ;;  %v7277_v50 = vadd.f32 %v13416_v39, %v7252_v6 }
0x1c53   :  { %v7278_v43 = vadd.f32 %v13416_v39, %v7253_v21  ;;  %v7279_v18 = vadd.f32 %v13416_v39, %v7254_v29  ;;  %v7280_v2 = vadd.f32 %v13416_v39, %v7255_v58  ;;  %7298 = vst.msk [vmem:[%s13820_s14 + $0x1] sm:$0x1] %vm1873_vm13, %v7273_v23  ;;  %9206 = vrsqrt.f32 %v7166_v60 }
0x1c54   :  { %7299 = vst.msk [vmem:[%s13820_s14 + $0x3] sm:$0x1] %vm1873_vm13, %v7274_v22  ;;  %7300 = vst.msk [vmem:[%s13820_s14 + $0x5] sm:$0x1] %vm1873_vm13, %v7275_v0 }
0x1c55   :  { %7301 = vst.msk [vmem:[%s13820_s14 + $0x7] sm:$0x1] %vm1873_vm13, %v7276_v36  ;;  %7302 = vst.msk [vmem:[%s13820_s14 + $0x9] sm:$0x1] %vm1873_vm13, %v7277_v50 }
0x1c56   :  { %7303 = vst.msk [vmem:[%s13820_s14 + $0xb] sm:$0x1] %vm1873_vm13, %v7278_v43  ;;  %7304 = vst.msk [vmem:[%s13820_s14 + $0xd] sm:$0x1] %vm1873_vm13, %v7279_v18  ;;  %v14499_v43 = vld [vmem:[#allocation29_spill] sm:$0xff] }
0x1c57   :  { %7305 = vst.msk [vmem:[%s13820_s14 + $0xf] sm:$0x1] %vm1873_vm13, %v7280_v2  ;;  %v14500_v2 = vld [vmem:[#allocation39_spill] sm:$0xff] }
0x1c5d   :  { %v9207_v1 = vpop.eup %9206 }
0x1c5e   :  { %v7184_v15 = vrot.slane %v9207_v1, 1  ;;  %v7185_v47 = vrot.slane %v9207_v1, 2  ;;  %v7186_v31 = vrot.slane %v9207_v1, 3  ;;  %v7187_v16 = vrot.slane %v9207_v1, 4 }
0x1c5f   :  { %v7188_v62 = vrot.slane %v9207_v1, 5  ;;  %v7189_v51 = vrot.slane %v9207_v1, 6  ;;  %v7190_v40 = vrot.slane %v9207_v1, 7  ;;  %v7231_v48 = vmul.f32 %v9207_v1, %v13309_v34 }
0x1c60   :  { %v7232_v61 = vmul.f32 %v7184_v15, %v13299_v17  ;;  %v7233_v53 = vmul.f32 %v7185_v47, %v13302_v27  ;;  %v7234_v4 = vmul.f32 %v7186_v31, %v13305_v26  ;;  %v7235_v57 = vmul.f32 %v7187_v16, %v13312_v37  ;;  %v14501_v15 = vld [vmem:[#allocation33_spill] sm:$0xff]  ;;  %v14502_v47 = vld [vmem:[#allocation34_spill] sm:$0xff]  ;;  %v14503_v16 = vld [vmem:[#allocation40_spill] sm:$0xff] }
0x1c61   :  { %v7236_v28 = vmul.f32 %v7188_v62, %v13315_v32  ;;  %v7237_v25 = vmul.f32 %v7189_v51, %v13319_v63  ;;  %v7238_v54 = vmul.f32 %v7190_v40, %v13322_v59  ;;  %v7256_v9 = vmul.f32 %v13410_v24, %v7231_v48 }
0x1c62   :  { %v7257_v60 = vmul.f32 %v13410_v24, %v7232_v61  ;;  %v7258_v34 = vmul.f32 %v13410_v24, %v7233_v53  ;;  %v7259_v17 = vmul.f32 %v13410_v24, %v7234_v4  ;;  %v7260_v27 = vmul.f32 %v13410_v24, %v7235_v57 }
0x1c63   :  { %v7261_v26 = vmul.f32 %v13410_v24, %v7236_v28  ;;  %v7262_v37 = vmul.f32 %v13410_v24, %v7237_v25  ;;  %v7263_v32 = vmul.f32 %v13410_v24, %v7238_v54  ;;  %v7281_v63 = vadd.f32 %v13416_v39, %v7256_v9 }
0x1c64   :  { %v7282_v59 = vadd.f32 %v13416_v39, %v7257_v60  ;;  %v7283_v11 = vadd.f32 %v13416_v39, %v7258_v34  ;;  %v7284_v38 = vadd.f32 %v13416_v39, %v7259_v17  ;;  %v7285_v30 = vadd.f32 %v13416_v39, %v7260_v27 }
0x1c65   :  { %v7286_v8 = vadd.f32 %v13416_v39, %v7261_v26  ;;  %v7287_v35 = vadd.f32 %v13416_v39, %v7262_v37  ;;  %v7288_v19 = vadd.f32 %v13416_v39, %v7263_v32  ;;  %7306 = vst.msk [vmem:[%s13820_s14 + $0x11] sm:$0x1] %vm1873_vm13, %v7281_v63 }
0x1c66   :  { %7307 = vst.msk [vmem:[%s13820_s14 + $0x13] sm:$0x1] %vm1873_vm13, %v7282_v59  ;;  %7308 = vst.msk [vmem:[%s13820_s14 + $0x15] sm:$0x1] %vm1873_vm13, %v7283_v11 }
0x1c67   :  { %7309 = vst.msk [vmem:[%s13820_s14 + $0x17] sm:$0x1] %vm1873_vm13, %v7284_v38  ;;  %7310 = vst.msk [vmem:[%s13820_s14 + $0x19] sm:$0x1] %vm1873_vm13, %v7285_v30 }
0x1c68   :  { %7311 = vst.msk [vmem:[%s13820_s14 + $0x1b] sm:$0x1] %vm1873_vm13, %v7286_v8  ;;  %7312 = vst.msk [vmem:[%s13820_s14 + $0x1d] sm:$0x1] %vm1873_vm13, %v7287_v35 }
0x1c69   :  { %v3656_v13 = vpop.xlane.xlu1 %3655  ;;  %7313 = vst.msk [vmem:[%s13820_s14 + $0x1f] sm:$0x1] %vm1873_vm13, %v7288_v19 }
0x1c6a   :  { %v3660_v12 = vmul.f32 0.03125, %v3656_v13 }
0x1c6c   :  { %v3664_v45 = vadd.f32 1e-05, %v3660_v12 }
0x1c6e   :  { %9208 = vrsqrt.f32 %v3664_v45 }
0x1c6f   :  { %v7157_v42 = vpop.xlane.xlu0 %7156 }
0x1c70   :  { %v7163_v46 = vmul.f32 0.03125, %v7157_v42 }
0x1c72   :  { %v7167_v33 = vadd.f32 1e-05, %v7163_v46 }
0x1c73   :  { %v7160_v3 = vpop.xlane.xlu0 %7159 }
0x1c74   :  { %9210 = vrsqrt.f32 %v7167_v33  ;;  %v7164_v55 = vmul.f32 0.03125, %v7160_v3 }
0x1c76   :  { %v7168_v5 = vadd.f32 1e-05, %v7164_v55 }
0x1c78   :  { %v9209_v52 = vpop.eup %9208  ;;  %9212 = vrsqrt.f32 %v7168_v5 }
0x1c79   :  { %v3743_v7 = vmul.f32 %v9209_v52, %v13366_v49 }
0x1c7b   :  { %v3774_v10 = vmul.f32 %v13410_v24, %v3743_v7 }
0x1c7d   :  { %v3805_v26 = vadd.f32 %v13416_v39, %v3774_v10 }
0x1c7e   :  { %v9211_v14 = vpop.eup %9210 }
0x1c7f   :  { %v7191_v6 = vrot.slane %v9211_v14, 1  ;;  %v7192_v21 = vrot.slane %v9211_v14, 2  ;;  %v7193_v29 = vrot.slane %v9211_v14, 3  ;;  %v7194_v58 = vrot.slane %v9211_v14, 4  ;;  %3830 = vst.msk [vmem:[%s13820_s14 + $0x30] sm:$0x1] %vm1873_vm13, %v3805_v26 }
0x1c80   :  { %v7195_v23 = vrot.slane %v9211_v14, 5  ;;  %v7196_v22 = vrot.slane %v9211_v14, 6  ;;  %v7197_v0 = vrot.slane %v9211_v14, 7  ;;  %v7239_v36 = vmul.f32 %v9211_v14, %v13346_v20 }
0x1c81   :  { %v7240_v50 = vmul.f32 %v7191_v6, %v13350_v44  ;;  %v7241_v18 = vmul.f32 %v7192_v21, %v14499_v43  ;;  %v7242_v1 = vmul.f32 %v7193_v29, %v14500_v2  ;;  %v7243_v49 = vmul.f32 %v7194_v58, %v14501_v15 }
0x1c82   :  { %v7244_v31 = vmul.f32 %v7195_v23, %v14502_v47  ;;  %v7245_v62 = vmul.f32 %v7196_v22, %v14503_v16  ;;  %v7246_v51 = vmul.f32 %v7197_v0, %v13375_v41  ;;  %v7264_v40 = vmul.f32 %v13410_v24, %v7239_v36  ;;  %v9213_v53 = vpop.eup %9212 }
0x1c83   :  { %v7265_v48 = vmul.f32 %v13410_v24, %v7240_v50  ;;  %v7266_v20 = vmul.f32 %v13410_v24, %v7241_v18  ;;  %v7267_v44 = vmul.f32 %v13410_v24, %v7242_v1  ;;  %v7268_v61 = vmul.f32 %v13410_v24, %v7243_v49 }
0x1c84   :  { %v7269_v4 = vmul.f32 %v13410_v24, %v7244_v31  ;;  %v7270_v57 = vmul.f32 %v13410_v24, %v7245_v62  ;;  %v7271_v28 = vmul.f32 %v13410_v24, %v7246_v51  ;;  %v7289_v25 = vadd.f32 %v13416_v39, %v7264_v40 }
0x1c85   :  { %v7290_v41 = vadd.f32 %v13416_v39, %v7265_v48  ;;  %v7291_v54 = vadd.f32 %v13416_v39, %v7266_v20  ;;  %v7292_v9 = vadd.f32 %v13416_v39, %v7267_v44  ;;  %v7293_v60 = vadd.f32 %v13416_v39, %v7268_v61 }
0x1c86   :  { %v7294_v34 = vadd.f32 %v13416_v39, %v7269_v4  ;;  %v7295_v17 = vadd.f32 %v13416_v39, %v7270_v57  ;;  %v7296_v27 = vadd.f32 %v13416_v39, %v7271_v28  ;;  %7314 = vst.msk [vmem:[%s13820_s14 + $0x21] sm:$0x1] %vm1873_vm13, %v7289_v25  ;;  %v7247_v37 = vmul.f32 %v9213_v53, %v13612_v56 }
0x1c87   :  { %7315 = vst.msk [vmem:[%s13820_s14 + $0x23] sm:$0x1] %vm1873_vm13, %v7290_v41  ;;  %7316 = vst.msk [vmem:[%s13820_s14 + $0x25] sm:$0x1] %vm1873_vm13, %v7291_v54 }
0x1c88   :  { %7317 = vst.msk [vmem:[%s13820_s14 + $0x27] sm:$0x1] %vm1873_vm13, %v7292_v9  ;;  %7318 = vst.msk [vmem:[%s13820_s14 + $0x29] sm:$0x1] %vm1873_vm13, %v7293_v60  ;;  %v7272_v56 = vmul.f32 %v13410_v24, %v7247_v37 }
0x1c89   :  { %7319 = vst.msk [vmem:[%s13820_s14 + $0x2b] sm:$0x1] %vm1873_vm13, %v7294_v34  ;;  %7320 = vst.msk [vmem:[%s13820_s14 + $0x2d] sm:$0x1] %vm1873_vm13, %v7295_v17 }
0x1c8a   :  { %7321 = vst.msk [vmem:[%s13820_s14 + $0x2f] sm:$0x1] %vm1873_vm13, %v7296_v27  ;;  %v7297_v32 = vadd.f32 %v13416_v39, %v7272_v56 }
0x1c8c   :  { %7322 = vst.msk [vmem:[%s13820_s14 + $0x31] sm:$0x1] %vm1873_vm13, %v7297_v32 }

</bundles_post_ra>
